<compile_context>
chip_gen: v6e
topology: v6e:2x2x1
jax: 0.10.0
libtpu: 0.0.40
codegen_flags: <defaults>
</compile_context>

<pallas_src>
import functools
import math

import jax
import jax.numpy as jnp
from jax.experimental import pallas as pl
from jax.experimental.pallas import tpu as pltpu

N_BLOCKS = 18
C = 64  # feature channels


def _vdsr_kernel(x_ref, p0_ref, wf_ref, wb_ref, bb_ref, wl_ref, o_ref,
                 act_ref, *, H, W):
    """Fused VDSR forward for one batch element.

    x_ref  : (1, H, W)            f32   input image (also the residual)
    p0_ref : (1, H*W, 9)          f32   im2col patches of the 1-ch input
    wf_ref : (9, 64)              f32   conv_first weights (tap-major)
    wb_ref : (18, 576, 64)        bf16  stacked block weights (im2col layout)
    bb_ref : (18, 64)             f32   stacked block biases
    wl_ref : (9, 64)              f32   conv_last weights (tap-major)
    o_ref  : (1, H, W)            f32   output
    act_ref: (H+2, W+2, 64)       bf16  padded activation scratch (VMEM)
    """
    HW = H * W

    # ---- conv_first: 1 -> 64, single K=9 matmul + ReLU ------------------
    y0 = jnp.dot(p0_ref[0], wf_ref[...], preferred_element_type=jnp.float32)
    y0 = jnp.maximum(y0, 0.0)                                  # (H*W, 64)

    # Zero the padded scratch once; every layer only rewrites the interior,
    # so the 1-pixel zero ring stays valid for all 20 convolutions.
    act_ref[...] = jnp.zeros((H + 2, W + 2, C), jnp.bfloat16)
    act_ref[1:H + 1, 1:W + 1, :] = y0.astype(jnp.bfloat16).reshape(H, W, C)

    # ---- 18 x (3x3 conv 64->64 + bias + ReLU): one MXU matmul each ------
    def block(i, carry):
        cols = []
        for dy in range(3):
            for dx in range(3):
                cols.append(act_ref[dy:dy + H, dx:dx + W, :].reshape(HW, C))
        patches = jnp.concatenate(cols, axis=-1)               # (H*W, 576) bf16
        acc = jnp.dot(patches, wb_ref[i],
                      preferred_element_type=jnp.float32)      # (H*W, 64) f32
        acc = jnp.maximum(acc + bb_ref[i], 0.0)                # bias + ReLU (f32)
        act_ref[1:H + 1, 1:W + 1, :] = acc.astype(jnp.bfloat16).reshape(H, W, C)
        return carry

    jax.lax.fori_loop(0, N_BLOCKS, block, 0)

    # ---- conv_last: 64 -> 1, fused with the global residual -------------
    # VPU broadcast-MACs + one cross-lane reduction; no (..., 1) MXU output.
    acc = jnp.zeros((H, W, C), jnp.float32)
    for dy in range(3):
        for dx in range(3):
            acc = acc + act_ref[dy:dy + H, dx:dx + W, :] * wl_ref[dy * 3 + dx]
    o_ref[0] = jnp.sum(acc, axis=-1) + x_ref[0]


def _im2col_first(x):
    """(N, H, W) single-channel image -> (N, H*W, 9) 3x3 'same' patches."""
    N, H, W = x.shape
    xp = jnp.pad(x, ((0, 0), (1, 1), (1, 1)))
    cols = [xp[:, dy:dy + H, dx:dx + W].reshape(N, H * W, 1)
            for dy in range(3) for dx in range(3)]
    return jnp.concatenate(cols, axis=-1)


def vdsr_forward(params, x_nchw):
    """VDSR forward. Input/output are NCHW (matching PyTorch), C_in = 1."""
    N, Cin, H, W = x_nchw.shape
    assert Cin == 1
    x = x_nchw[:, 0, :, :].astype(jnp.float32)                     # (N, H, W)
    p0 = _im2col_first(x)                                          # (N, H*W, 9)

    # Weight layout: HWIO flattened tap-major so column k = (dy*3+dx)*Cin + cin
    # matches the kernel's patch concatenation order.
    wf = params["w_first"].reshape(9, C).astype(jnp.float32)       # (9, 64)
    wb = jnp.stack([w.reshape(9 * C, C) for (w, _) in params["blocks"]]
                   ).astype(jnp.bfloat16)                          # (18, 576, 64)
    bb = jnp.stack([b for (_, b) in params["blocks"]]
                   ).astype(jnp.float32)                           # (18, 64)
    wl = params["w_last"][:, :, :, 0].reshape(9, C).astype(jnp.float32)

    kernel = functools.partial(_vdsr_kernel, H=H, W=W)
    out = pl.pallas_call(
        kernel,
        out_shape=jax.ShapeDtypeStruct((N, H, W), jnp.float32),
        grid=(N,),
        in_specs=[
            pl.BlockSpec((1, H, W), lambda b: (b, 0, 0)),           # residual
            pl.BlockSpec((1, H * W, 9), lambda b: (b, 0, 0)),       # first-layer patches
            pl.BlockSpec((9, C), lambda b: (0, 0)),                 # w_first
            pl.BlockSpec((N_BLOCKS, 9 * C, C), lambda b: (0, 0, 0)),  # block weights
            pl.BlockSpec((N_BLOCKS, C), lambda b: (0, 0)),          # block biases
            pl.BlockSpec((9, C), lambda b: (0, 0)),                 # w_last
        ],
        out_specs=pl.BlockSpec((1, H, W), lambda b: (b, 0, 0)),
        scratch_shapes=[pltpu.VMEM((H + 2, W + 2, C), jnp.bfloat16)],
        compiler_params=pltpu.CompilerParams(
            dimension_semantics=("parallel",),
            vmem_limit_bytes=32 * 1024 * 1024),
        # TODO(synk): for large images (>=512x512) add halo-based spatial
        # tiling (grid over H/W tiles, 1-pixel halos) so the per-step VMEM
        # footprint stays under v7x's 64 MiB and both v7x TCs are fed.
    )(x, p0, wf, wb, bb, wl)

    return out[:, None, :, :]                                       # NCHW, C=1


def init_vdsr_params(key):
    """Deterministic init matching the PyTorch shapes.

    Weight std = sqrt(2 / (k*k*out_channels)), as in VDSR.__init__.
    Only the 18 residual-block convs have a bias (small uniform).
    """
    keys = jax.random.split(key, 2 + 2 * N_BLOCKS)
    std64 = math.sqrt(2.0 / (3 * 3 * 64))
    std1 = math.sqrt(2.0 / (3 * 3 * 1))
    params = {
        "w_first": std64 * jax.random.normal(keys[0], (3, 3, 1, 64), jnp.float32),
        "w_last": std1 * jax.random.normal(keys[1], (3, 3, 64, 1), jnp.float32),
    }
    k_bias = 1.0 / math.sqrt(64 * 3 * 3)
    blocks = []
    for i in range(N_BLOCKS):
        w = std64 * jax.random.normal(keys[2 + 2 * i], (3, 3, 64, 64), jnp.float32)
        b = jax.random.uniform(keys[3 + 2 * i], (64,), jnp.float32,
                               minval=-k_bias, maxval=k_bias)
        blocks.append((w, b))
    params["blocks"] = blocks
    return params


def vdsr_reference(params, x_nchw):
    """Pure-JAX (lax.conv) reference for correctness."""
    def conv(x, w):
        return jax.lax.conv_general_dilated(
            x, w, window_strides=(1, 1), padding="SAME",
            dimension_numbers=("NCHW", "HWIO", "NCHW"))
    out = jax.nn.relu(conv(x_nchw, params["w_first"]))
    for w, b in params["blocks"]:
        out = jax.nn.relu(conv(out, w) + b.reshape(1, C, 1, 1))
    out = conv(out, params["w_last"])
    return out + x_nchw


if __name__ == "__main__":
    key = jax.random.PRNGKey(0)
    k_param, k_x = jax.random.split(key)

    params = init_vdsr_params(k_param)
    # Small input: batch=2, single channel (VDSR works on luminance), 16x16.
    x = jax.random.normal(k_x, (2, 1, 16, 16), jnp.float32)

    y = jax.jit(vdsr_forward)(params, x)
    jax.block_until_ready(y)
    assert y.shape == (2, 1, 16, 16)

    y_ref = vdsr_reference(params, x)
    err = float(jnp.max(jnp.abs(y - y_ref)))
    assert err < 5e-2, f"max abs err {err}"
    print("KERNEL_OK")
</pallas_src>

<mosaic_0001>
module attributes {stable_mosaic.version = 11 : i64} {
  func.func @_vdsr_kernel(%arg0: i32, %arg1: memref<1x16x16xf32, #tpu.memory_space<vmem>>, %arg2: memref<1x256x9xf32, #tpu.memory_space<vmem>>, %arg3: memref<9x64xf32, #tpu.memory_space<vmem>>, %arg4: memref<18x576x64xbf16, #tpu.memory_space<vmem>>, %arg5: memref<18x64xf32, #tpu.memory_space<vmem>>, %arg6: memref<9x64xf32, #tpu.memory_space<vmem>>, %arg7: memref<1x16x16xf32, #tpu.memory_space<vmem>>, %arg8: memref<18x18x64xbf16, #tpu.memory_space<vmem>>) attributes {dimension_semantics = [#tpu.dimension_semantics<parallel>], iteration_bounds = array<i64: 2>, scalar_prefetch = 0 : i64, scratch_operands = 1 : i64, tpu.core_type = #tpu.core_type<tc>, window_params = [{transform_indices = @transform_0, window_bounds = array<i64: 1, 16, 16>}, {transform_indices = @transform_1, window_bounds = array<i64: 1, 256, 9>}, {pipeline_mode = #tpu.pipeline_mode<synchronous>, transform_indices = @transform_2, window_bounds = array<i64: 9, 64>}, {pipeline_mode = #tpu.pipeline_mode<synchronous>, transform_indices = @transform_3, window_bounds = array<i64: 18, 576, 64>}, {pipeline_mode = #tpu.pipeline_mode<synchronous>, transform_indices = @transform_4, window_bounds = array<i64: 18, 64>}, {pipeline_mode = #tpu.pipeline_mode<synchronous>, transform_indices = @transform_5, window_bounds = array<i64: 9, 64>}, {transform_indices = @transform_6, window_bounds = array<i64: 1, 16, 16>}]} {
    %c0 = arith.constant 0 : index
    %c0_0 = arith.constant 0 : index
    %c0_1 = arith.constant 0 : index
    %0 = vector.load %arg2[%c0, %c0_0, %c0_1] : memref<1x256x9xf32, #tpu.memory_space<vmem>>, vector<1x256x9xf32>
    %1 = vector.shape_cast %0 : vector<1x256x9xf32> to vector<256x9xf32>
    %c0_2 = arith.constant 0 : index
    %c0_3 = arith.constant 0 : index
    %2 = vector.load %arg3[%c0_2, %c0_3] : memref<9x64xf32, #tpu.memory_space<vmem>>, vector<9x64xf32>
    %cst = arith.constant dense<0.000000e+00> : vector<256x64xf32>
    %3 = tpu.matmul %1, %2, %cst {dimension_numbers = #tpu.dot_dimension_numbers<[1], [0], [0], [1], [0, 0, 1, 1], [], []>} : vector<256x9xf32>, vector<9x64xf32>, vector<256x64xf32> -> vector<256x64xf32>
    %cst_4 = arith.constant 0.000000e+00 : f32
    %4 = vector.broadcast %cst_4 : f32 to vector<256x64xf32>
    %5 = arith.maximumf %3, %4 : vector<256x64xf32>
    %cst_5 = arith.constant 0.000000e+00 : bf16
    %6 = vector.broadcast %cst_5 : bf16 to vector<18x18x64xbf16>
    %c0_6 = arith.constant 0 : index
    %c0_7 = arith.constant 0 : index
    %c0_8 = arith.constant 0 : index
    %7 = vector.load %arg8[%c0_6, %c0_7, %c0_8] : memref<18x18x64xbf16, #tpu.memory_space<vmem>>, vector<18x18x64xbf16>
    tpu.vector_store %arg8[%c0_6, %c0_7, %c0_8], %6 {strides = array<i32>} : memref<18x18x64xbf16, #tpu.memory_space<vmem>>, vector<18x18x64xbf16>,
    %8 = arith.truncf %5 : vector<256x64xf32> to vector<256x64xbf16>
    %9 = vector.shape_cast %8 : vector<256x64xbf16> to vector<16x16x64xbf16>
    %c1 = arith.constant 1 : index
    %c1_9 = arith.constant 1 : index
    %c0_10 = arith.constant 0 : index
    %10 = vector.load %arg8[%c1, %c1_9, %c0_10] : memref<18x18x64xbf16, #tpu.memory_space<vmem>>, vector<16x16x64xbf16>
    tpu.vector_store %arg8[%c1, %c1_9, %c0_10], %9 {strides = array<i32>} : memref<18x18x64xbf16, #tpu.memory_space<vmem>>, vector<16x16x64xbf16>,
    %c0_i32 = arith.constant 0 : i32
    %c18_i32 = arith.constant 18 : i32
    %11 = arith.addi %c0_i32, %c18_i32 : i32
    %c1_i32 = arith.constant 1 : i32
    scf.for %arg9 = %c0_i32 to %11 step %c1_i32  : i32 {
      %c0_58 = arith.constant 0 : index
      %c0_59 = arith.constant 0 : index
      %c0_60 = arith.constant 0 : index
      %92 = vector.load %arg8[%c0_58, %c0_59, %c0_60] : memref<18x18x64xbf16, #tpu.memory_space<vmem>>, vector<16x16x64xbf16>
      %93 = vector.shape_cast %92 : vector<16x16x64xbf16> to vector<256x64xbf16>
      %c0_61 = arith.constant 0 : index
      %c1_62 = arith.constant 1 : index
      %c0_63 = arith.constant 0 : index
      %94 = vector.load %arg8[%c0_61, %c1_62, %c0_63] : memref<18x18x64xbf16, #tpu.memory_space<vmem>>, vector<16x16x64xbf16>
      %95 = vector.shape_cast %94 : vector<16x16x64xbf16> to vector<256x64xbf16>
      %c0_64 = arith.constant 0 : index
      %c2_65 = arith.constant 2 : index
      %c0_66 = arith.constant 0 : index
      %96 = vector.load %arg8[%c0_64, %c2_65, %c0_66] : memref<18x18x64xbf16, #tpu.memory_space<vmem>>, vector<16x16x64xbf16>
      %97 = vector.shape_cast %96 : vector<16x16x64xbf16> to vector<256x64xbf16>
      %c1_67 = arith.constant 1 : index
      %c0_68 = arith.constant 0 : index
      %c0_69 = arith.constant 0 : index
      %98 = vector.load %arg8[%c1_67, %c0_68, %c0_69] : memref<18x18x64xbf16, #tpu.memory_space<vmem>>, vector<16x16x64xbf16>
      %99 = vector.shape_cast %98 : vector<16x16x64xbf16> to vector<256x64xbf16>
      %c1_70 = arith.constant 1 : index
      %c1_71 = arith.constant 1 : index
      %c0_72 = arith.constant 0 : index
      %100 = vector.load %arg8[%c1_70, %c1_71, %c0_72] : memref<18x18x64xbf16, #tpu.memory_space<vmem>>, vector<16x16x64xbf16>
      %101 = vector.shape_cast %100 : vector<16x16x64xbf16> to vector<256x64xbf16>
      %c1_73 = arith.constant 1 : index
      %c2_74 = arith.constant 2 : index
      %c0_75 = arith.constant 0 : index
      %102 = vector.load %arg8[%c1_73, %c2_74, %c0_75] : memref<18x18x64xbf16, #tpu.memory_space<vmem>>, vector<16x16x64xbf16>
      %103 = vector.shape_cast %102 : vector<16x16x64xbf16> to vector<256x64xbf16>
      %c2_76 = arith.constant 2 : index
      %c0_77 = arith.constant 0 : index
      %c0_78 = arith.constant 0 : index
      %104 = vector.load %arg8[%c2_76, %c0_77, %c0_78] : memref<18x18x64xbf16, #tpu.memory_space<vmem>>, vector<16x16x64xbf16>
      %105 = vector.shape_cast %104 : vector<16x16x64xbf16> to vector<256x64xbf16>
      %c2_79 = arith.constant 2 : index
      %c1_80 = arith.constant 1 : index
      %c0_81 = arith.constant 0 : index
      %106 = vector.load %arg8[%c2_79, %c1_80, %c0_81] : memref<18x18x64xbf16, #tpu.memory_space<vmem>>, vector<16x16x64xbf16>
      %107 = vector.shape_cast %106 : vector<16x16x64xbf16> to vector<256x64xbf16>
      %c2_82 = arith.constant 2 : index
      %c2_83 = arith.constant 2 : index
      %c0_84 = arith.constant 0 : index
      %108 = vector.load %arg8[%c2_82, %c2_83, %c0_84] : memref<18x18x64xbf16, #tpu.memory_space<vmem>>, vector<16x16x64xbf16>
      %109 = vector.shape_cast %108 : vector<16x16x64xbf16> to vector<256x64xbf16>
      %110 = tpu.concatenate %93, %95, %97, %99, %101, %103, %105, %107, %109 in 1 : vector<256x64xbf16>, vector<256x64xbf16>, vector<256x64xbf16>, vector<256x64xbf16>, vector<256x64xbf16>, vector<256x64xbf16>, vector<256x64xbf16>, vector<256x64xbf16>, vector<256x64xbf16> -> vector<256x576xbf16>
      %111 = arith.index_cast %arg9 : i32 to index
      %c0_85 = arith.constant 0 : index
      %c0_86 = arith.constant 0 : index
      %112 = vector.load %arg4[%111, %c0_85, %c0_86] : memref<18x576x64xbf16, #tpu.memory_space<vmem>>, vector<1x576x64xbf16>
      %113 = vector.shape_cast %112 : vector<1x576x64xbf16> to vector<576x64xbf16>
      %cst_87 = arith.constant dense<0.000000e+00> : vector<256x64xf32>
      %114 = tpu.matmul %110, %113, %cst_87 {dimension_numbers = #tpu.dot_dimension_numbers<[1], [0], [0], [1], [0, 0, 1, 1], [], []>} : vector<256x576xbf16>, vector<576x64xbf16>, vector<256x64xf32> -> vector<256x64xf32>
      %115 = arith.index_cast %arg9 : i32 to index
      %c0_88 = arith.constant 0 : index
      %116 = vector.load %arg5[%115, %c0_88] : memref<18x64xf32, #tpu.memory_space<vmem>>, vector<1x64xf32>
      %117 = vector.shape_cast %116 : vector<1x64xf32> to vector<64xf32>
      %118 = vector.shape_cast %117 : vector<64xf32> to vector<1x64xf32>
      %119 = vector.broadcast %118 : vector<1x64xf32> to vector<256x64xf32>
      %120 = arith.addf %114, %119 : vector<256x64xf32>
      %cst_89 = arith.constant 0.000000e+00 : f32
      %121 = vector.broadcast %cst_89 : f32 to vector<256x64xf32>
      %122 = arith.maximumf %120, %121 : vector<256x64xf32>
      %123 = arith.truncf %122 : vector<256x64xf32> to vector<256x64xbf16>
      %124 = vector.shape_cast %123 : vector<256x64xbf16> to vector<16x16x64xbf16>
      %c1_90 = arith.constant 1 : index
      %c1_91 = arith.constant 1 : index
      %c0_92 = arith.constant 0 : index
      %125 = vector.load %arg8[%c1_90, %c1_91, %c0_92] : memref<18x18x64xbf16, #tpu.memory_space<vmem>>, vector<16x16x64xbf16>
      tpu.vector_store %arg8[%c1_90, %c1_91, %c0_92], %124 {strides = array<i32>} : memref<18x18x64xbf16, #tpu.memory_space<vmem>>, vector<16x16x64xbf16>,
    }
    %c18_i32_11 = arith.constant 18 : i32
    %cst_12 = arith.constant 0.000000e+00 : f32
    %12 = vector.broadcast %cst_12 : f32 to vector<16x16x64xf32>
    %c0_13 = arith.constant 0 : index
    %c0_14 = arith.constant 0 : index
    %c0_15 = arith.constant 0 : index
    %13 = vector.load %arg8[%c0_13, %c0_14, %c0_15] : memref<18x18x64xbf16, #tpu.memory_space<vmem>>, vector<16x16x64xbf16>
    %c0_16 = arith.constant 0 : index
    %c0_17 = arith.constant 0 : index
    %14 = vector.load %arg6[%c0_16, %c0_17] : memref<9x64xf32, #tpu.memory_space<vmem>>, vector<1x64xf32>
    %15 = vector.shape_cast %14 : vector<1x64xf32> to vector<64xf32>
    %16 = arith.extf %13 : vector<16x16x64xbf16> to vector<16x16x64xf32>
    %17 = vector.shape_cast %15 : vector<64xf32> to vector<1x1x64xf32>
    %18 = vector.broadcast %17 : vector<1x1x64xf32> to vector<16x16x64xf32>
    %19 = arith.mulf %16, %18 : vector<16x16x64xf32>
    %20 = arith.addf %12, %19 : vector<16x16x64xf32>
    %c0_18 = arith.constant 0 : index
    %c1_19 = arith.constant 1 : index
    %c0_20 = arith.constant 0 : index
    %21 = vector.load %arg8[%c0_18, %c1_19, %c0_20] : memref<18x18x64xbf16, #tpu.memory_space<vmem>>, vector<16x16x64xbf16>
    %c1_21 = arith.constant 1 : index
    %c0_22 = arith.constant 0 : index
    %22 = vector.load %arg6[%c1_21, %c0_22] : memref<9x64xf32, #tpu.memory_space<vmem>>, vector<1x64xf32>
    %23 = vector.shape_cast %22 : vector<1x64xf32> to vector<64xf32>
    %24 = arith.extf %21 : vector<16x16x64xbf16> to vector<16x16x64xf32>
    %25 = vector.shape_cast %23 : vector<64xf32> to vector<1x1x64xf32>
    %26 = vector.broadcast %25 : vector<1x1x64xf32> to vector<16x16x64xf32>
    %27 = arith.mulf %24, %26 : vector<16x16x64xf32>
    %28 = arith.addf %20, %27 : vector<16x16x64xf32>
    %c0_23 = arith.constant 0 : index
    %c2 = arith.constant 2 : index
    %c0_24 = arith.constant 0 : index
    %29 = vector.load %arg8[%c0_23, %c2, %c0_24] : memref<18x18x64xbf16, #tpu.memory_space<vmem>>, vector<16x16x64xbf16>
    %c2_25 = arith.constant 2 : index
    %c0_26 = arith.constant 0 : index
    %30 = vector.load %arg6[%c2_25, %c0_26] : memref<9x64xf32, #tpu.memory_space<vmem>>, vector<1x64xf32>
    %31 = vector.shape_cast %30 : vector<1x64xf32> to vector<64xf32>
    %32 = arith.extf %29 : vector<16x16x64xbf16> to vector<16x16x64xf32>
    %33 = vector.shape_cast %31 : vector<64xf32> to vector<1x1x64xf32>
    %34 = vector.broadcast %33 : vector<1x1x64xf32> to vector<16x16x64xf32>
    %35 = arith.mulf %32, %34 : vector<16x16x64xf32>
    %36 = arith.addf %28, %35 : vector<16x16x64xf32>
    %c1_27 = arith.constant 1 : index
    %c0_28 = arith.constant 0 : index
    %c0_29 = arith.constant 0 : index
    %37 = vector.load %arg8[%c1_27, %c0_28, %c0_29] : memref<18x18x64xbf16, #tpu.memory_space<vmem>>, vector<16x16x64xbf16>
    %c3 = arith.constant 3 : index
    %c0_30 = arith.constant 0 : index
    %38 = vector.load %arg6[%c3, %c0_30] : memref<9x64xf32, #tpu.memory_space<vmem>>, vector<1x64xf32>
    %39 = vector.shape_cast %38 : vector<1x64xf32> to vector<64xf32>
    %40 = arith.extf %37 : vector<16x16x64xbf16> to vector<16x16x64xf32>
    %41 = vector.shape_cast %39 : vector<64xf32> to vector<1x1x64xf32>
    %42 = vector.broadcast %41 : vector<1x1x64xf32> to vector<16x16x64xf32>
    %43 = arith.mulf %40, %42 : vector<16x16x64xf32>
    %44 = arith.addf %36, %43 : vector<16x16x64xf32>
    %c1_31 = arith.constant 1 : index
    %c1_32 = arith.constant 1 : index
    %c0_33 = arith.constant 0 : index
    %45 = vector.load %arg8[%c1_31, %c1_32, %c0_33] : memref<18x18x64xbf16, #tpu.memory_space<vmem>>, vector<16x16x64xbf16>
    %c4 = arith.constant 4 : index
    %c0_34 = arith.constant 0 : index
    %46 = vector.load %arg6[%c4, %c0_34] : memref<9x64xf32, #tpu.memory_space<vmem>>, vector<1x64xf32>
    %47 = vector.shape_cast %46 : vector<1x64xf32> to vector<64xf32>
    %48 = arith.extf %45 : vector<16x16x64xbf16> to vector<16x16x64xf32>
    %49 = vector.shape_cast %47 : vector<64xf32> to vector<1x1x64xf32>
    %50 = vector.broadcast %49 : vector<1x1x64xf32> to vector<16x16x64xf32>
    %51 = arith.mulf %48, %50 : vector<16x16x64xf32>
    %52 = arith.addf %44, %51 : vector<16x16x64xf32>
    %c1_35 = arith.constant 1 : index
    %c2_36 = arith.constant 2 : index
    %c0_37 = arith.constant 0 : index
    %53 = vector.load %arg8[%c1_35, %c2_36, %c0_37] : memref<18x18x64xbf16, #tpu.memory_space<vmem>>, vector<16x16x64xbf16>
    %c5 = arith.constant 5 : index
    %c0_38 = arith.constant 0 : index
    %54 = vector.load %arg6[%c5, %c0_38] : memref<9x64xf32, #tpu.memory_space<vmem>>, vector<1x64xf32>
    %55 = vector.shape_cast %54 : vector<1x64xf32> to vector<64xf32>
    %56 = arith.extf %53 : vector<16x16x64xbf16> to vector<16x16x64xf32>
    %57 = vector.shape_cast %55 : vector<64xf32> to vector<1x1x64xf32>
    %58 = vector.broadcast %57 : vector<1x1x64xf32> to vector<16x16x64xf32>
    %59 = arith.mulf %56, %58 : vector<16x16x64xf32>
    %60 = arith.addf %52, %59 : vector<16x16x64xf32>
    %c2_39 = arith.constant 2 : index
    %c0_40 = arith.constant 0 : index
    %c0_41 = arith.constant 0 : index
    %61 = vector.load %arg8[%c2_39, %c0_40, %c0_41] : memref<18x18x64xbf16, #tpu.memory_space<vmem>>, vector<16x16x64xbf16>
    %c6 = arith.constant 6 : index
    %c0_42 = arith.constant 0 : index
    %62 = vector.load %arg6[%c6, %c0_42] : memref<9x64xf32, #tpu.memory_space<vmem>>, vector<1x64xf32>
    %63 = vector.shape_cast %62 : vector<1x64xf32> to vector<64xf32>
    %64 = arith.extf %61 : vector<16x16x64xbf16> to vector<16x16x64xf32>
    %65 = vector.shape_cast %63 : vector<64xf32> to vector<1x1x64xf32>
    %66 = vector.broadcast %65 : vector<1x1x64xf32> to vector<16x16x64xf32>
    %67 = arith.mulf %64, %66 : vector<16x16x64xf32>
    %68 = arith.addf %60, %67 : vector<16x16x64xf32>
    %c2_43 = arith.constant 2 : index
    %c1_44 = arith.constant 1 : index
    %c0_45 = arith.constant 0 : index
    %69 = vector.load %arg8[%c2_43, %c1_44, %c0_45] : memref<18x18x64xbf16, #tpu.memory_space<vmem>>, vector<16x16x64xbf16>
    %c7 = arith.constant 7 : index
    %c0_46 = arith.constant 0 : index
    %70 = vector.load %arg6[%c7, %c0_46] : memref<9x64xf32, #tpu.memory_space<vmem>>, vector<1x64xf32>
    %71 = vector.shape_cast %70 : vector<1x64xf32> to vector<64xf32>
    %72 = arith.extf %69 : vector<16x16x64xbf16> to vector<16x16x64xf32>
    %73 = vector.shape_cast %71 : vector<64xf32> to vector<1x1x64xf32>
    %74 = vector.broadcast %73 : vector<1x1x64xf32> to vector<16x16x64xf32>
    %75 = arith.mulf %72, %74 : vector<16x16x64xf32>
    %76 = arith.addf %68, %75 : vector<16x16x64xf32>
    %c2_47 = arith.constant 2 : index
    %c2_48 = arith.constant 2 : index
    %c0_49 = arith.constant 0 : index
    %77 = vector.load %arg8[%c2_47, %c2_48, %c0_49] : memref<18x18x64xbf16, #tpu.memory_space<vmem>>, vector<16x16x64xbf16>
    %c8 = arith.constant 8 : index
    %c0_50 = arith.constant 0 : index
    %78 = vector.load %arg6[%c8, %c0_50] : memref<9x64xf32, #tpu.memory_space<vmem>>, vector<1x64xf32>
    %79 = vector.shape_cast %78 : vector<1x64xf32> to vector<64xf32>
    %80 = arith.extf %77 : vector<16x16x64xbf16> to vector<16x16x64xf32>
    %81 = vector.shape_cast %79 : vector<64xf32> to vector<1x1x64xf32>
    %82 = vector.broadcast %81 : vector<1x1x64xf32> to vector<16x16x64xf32>
    %83 = arith.mulf %80, %82 : vector<16x16x64xf32>
    %84 = arith.addf %76, %83 : vector<16x16x64xf32>
    %cst_51 = arith.constant dense<0.000000e+00> : vector<16x16xf32>
    %85 = vector.multi_reduction <add>, %84, %cst_51 [2] : vector<16x16x64xf32> to vector<16x16xf32>
    %c0_52 = arith.constant 0 : index
    %c0_53 = arith.constant 0 : index
    %c0_54 = arith.constant 0 : index
    %86 = vector.load %arg1[%c0_52, %c0_53, %c0_54] : memref<1x16x16xf32, #tpu.memory_space<vmem>>, vector<1x16x16xf32>
    %87 = vector.shape_cast %86 : vector<1x16x16xf32> to vector<16x16xf32>
    %88 = arith.addf %85, %87 : vector<16x16xf32>
    %c0_55 = arith.constant 0 : index
    %c0_56 = arith.constant 0 : index
    %c0_57 = arith.constant 0 : index
    %89 = vector.load %arg7[%c0_55, %c0_56, %c0_57] : memref<1x16x16xf32, #tpu.memory_space<vmem>>, vector<1x16x16xf32>
    %90 = vector.shape_cast %89 : vector<1x16x16xf32> to vector<16x16xf32>
    %91 = vector.shape_cast %88 : vector<16x16xf32> to vector<1x16x16xf32>
    tpu.vector_store %arg7[%c0_55, %c0_56, %c0_57], %91 {strides = array<i32>} : memref<1x16x16xf32, #tpu.memory_space<vmem>>, vector<1x16x16xf32>,
    return
  }
  func.func @transform_0(%arg0: i32) -> (i32, i32, i32) {
    %c0_i32 = arith.constant 0 : i32
    %c0_i32_0 = arith.constant 0 : i32
    %c0_i32_1 = arith.constant 0 : i32
    return %arg0, %c0_i32, %c0_i32_0 : i32, i32, i32
  }
  func.func @transform_1(%arg0: i32) -> (i32, i32, i32) {
    %c0_i32 = arith.constant 0 : i32
    %c0_i32_0 = arith.constant 0 : i32
    %c0_i32_1 = arith.constant 0 : i32
    return %arg0, %c0_i32, %c0_i32_0 : i32, i32, i32
  }
  func.func @transform_2(%arg0: i32) -> (i32, i32) {
    %c0_i32 = arith.constant 0 : i32
    %c0_i32_0 = arith.constant 0 : i32
    %c0_i32_1 = arith.constant 0 : i32
    return %c0_i32, %c0_i32_0 : i32, i32
  }
  func.func @transform_3(%arg0: i32) -> (i32, i32, i32) {
    %c0_i32 = arith.constant 0 : i32
    %c0_i32_0 = arith.constant 0 : i32
    %c0_i32_1 = arith.constant 0 : i32
    %c0_i32_2 = arith.constant 0 : i32
    return %c0_i32, %c0_i32_0, %c0_i32_1 : i32, i32, i32
  }
  func.func @transform_4(%arg0: i32) -> (i32, i32) {
    %c0_i32 = arith.constant 0 : i32
    %c0_i32_0 = arith.constant 0 : i32
    %c0_i32_1 = arith.constant 0 : i32
    return %c0_i32, %c0_i32_0 : i32, i32
  }
  func.func @transform_5(%arg0: i32) -> (i32, i32) {
    %c0_i32 = arith.constant 0 : i32
    %c0_i32_0 = arith.constant 0 : i32
    %c0_i32_1 = arith.constant 0 : i32
    return %c0_i32, %c0_i32_0 : i32, i32
  }
  func.func @transform_6(%arg0: i32) -> (i32, i32, i32) {
    %c0_i32 = arith.constant 0 : i32
    %c0_i32_0 = arith.constant 0 : i32
    %c0_i32_1 = arith.constant 0 : i32
    return %arg0, %c0_i32, %c0_i32_0 : i32, i32, i32
  }
}

</mosaic_0001>

<bundles_post_ra>
// kernel: vdsr_forward.1
= control target key start
LH: loop header
LB: loop body
LE: loop exit
PB: predicated region body
PF: predicated region fallthrough
CT: control target
= control target key end

     0   :  { %11 = vsyncpa [#allocation4], 0  ;;  %s13025_s0 = inlined_call_operand.vmem [shape: f32[2,16,16], index: 0, kind: input, shape index: {}]   ;;  %s13026_s1 = inlined_call_operand.vmem [shape: f32[2,256,9], index: 1, kind: input, shape index: {}]   ;;  %s13027_s2 = inlined_call_operand.vmem [shape: f32[9,64], index: 2, kind: input, shape index: {}]   ;;  %s13028_s3 = inlined_call_operand.vmem [shape: bf16[18,576,64], index: 3, kind: input, shape index: {}]   ;;  %s13029_s4 = inlined_call_operand.vmem [shape: f32[18,64], index: 4, kind: input, shape index: {}]   ;;  %s13030_s5 = inlined_call_operand.vmem [shape: f32[9,64], index: 5, kind: input, shape index: {}]   ;;  %s13031_s6 = inlined_call_operand.hbm [shape: f32[2,16,16], index: 6, kind: output, shape index: {}]  }
   0x1   :  { %13 = vsyncpa [#allocation4 + $0x1], 0  ;;  %s9496_s21 = smov 0   ;;  %s9498_s22 = smov 0  }
   0x2   :  { %s9500_s23 = smov 0   ;;  %s9502_s24 = smov 0  }
   0x3 LB: > { %s9517_s25 = sadd.s32 4294967295, %s9450_s24   ;;  %s8148_s26 = sadd.s32 4294967294, %s9450_s24   ;;  %s9450_s24 = sphi %s9502_s24, %s13086_s24   ;;  %s9446_s23 = sphi %s9500_s23, %s13085_s23   ;;  %s9442_s22 = sphi %s9498_s22, %s13084_s22   ;;  %s9438_s21 = sphi %s9496_s21, %s13083_s21  }
   0x4   : > { %s9521_s27 = sadd.s32 1, %s9450_s24   ;;  %s162_s28 = sadd.s32 1, %s9446_s23 }
   0x5   : > { %s159_s29 = ssub.s32 %s9450_s24, %s9521_s27  ;;  %p172_p0 = scmp.ne.s32.totalorder %s9446_s23, %s9442_s22 }
   0x6   : > { %p160_p1 = scmp.eq.s32.totalorder %s159_s29, 0  ;;  %p173_p2 = scmp.eq.s32.totalorder %s9517_s25, 1 }
   0x7   : > { %p178_p3 = scmp.ne.s32.totalorder %s9442_s22, %s9438_s21  ;;  %p179_p4 = scmp.eq.s32.totalorder %s8148_s26, 1 }
   0x8   : > { %s9532_s30 = scalar_select %p160_p1, %s9446_s23, %s162_s28  }
   0x9   : > { %p9534_p5 = por %p173_p2, %p172_p0  ;;  %p9538_p6 = por %p179_p4, %p178_p3 }
   0xa   : > { %p8151_p7 = scmp.ge.s32.totalorder %s9450_s24, 1  ;;  %p225_p8 = scmp.lt.s32.totalorder %s9450_s24, 3 }
   0xc   : > { %p226_p9 = pnand %p8151_p7, %p225_p8 }
   0xe   : > { %229 = sbr.rel (%p226_p9) target bundleno = 1541 (0x605), region = 44 }
  0x13   : > { %s257_s9 = sand.u32 1, %s9442_s22   ;;  %v304_v0 = vld [vmem:[%s13027_s2 + $0x8] sm:$0x1]  ;;  %vm402_vm0 = vcmask 1040384   ;;  %v303_v1 = vld [vmem:[%s13027_s2] sm:$0xff]  ;;  %p260_p10 = scmp.lt.s32.totalorder %s9517_s25, 1 }
  0x14   : > { %s9554_s14 = sshll.u32 %s257_s9, 4  ;;  %8978 = vmatprep.subr.msk.mxu0 %vm402_vm0, %v304_v0  ;;  %9070 = vmatprep.subr.msk.mxu1 %vm402_vm0, %v304_v0  ;;  %vm305_vm1 = vcmask 72704   ;;  %vm666_vm2 = vcmask 516096   ;;  %v13032_v34 = vmov 0   ;;  %vm663_vm3 = vcmask 519168   ;;  %s9872_s11 = smov 0  }
  0x15   : > { %8979 = vmatpush3.msk.msra.mxu0 %vm402_vm0, %v304_v0  ;;  %9072 = vmatpush3.msk.msra.mxu1 %vm402_vm0, %v304_v0  ;;  %s261_s15 = scalar_select %p260_p10, %s9517_s25, 1  ;;  %670 = vst.msk [vmem:[#allocation2 + $0x14] sm:$0x1] %vm666_vm2, %v13032_v34  ;;  %667 = vst.msk [vmem:[#allocation2 + $0x8] sm:$0x1] %vm666_vm2, %v13032_v34  ;;  %v13042_v62 = vmov 0 }
  0x16   : > { %8980 = vmatprep.subr.mxu0 %v303_v1  ;;  %9071 = vmatprep.subr.mxu1 %v303_v1  ;;  %673 = vst.msk [vmem:[#allocation2 + $0x20] sm:$0x1] %vm666_vm2, %v13032_v34  ;;  %676 = vst.msk [vmem:[#allocation2 + $0x2c] sm:$0x1] %vm666_vm2, %v13032_v34  ;;  %vm815_vm4 = vsmask.f32 256 }
  0x17   : > { %8981 = vmatpush3.msra.mxu0 %v303_v1  ;;  %9073 = vmatpush3.msra.mxu1 %v303_v1  ;;  %s8514_s16 = sshll.u32 %s261_s15, 4  ;;  %s8515_s17 = sshll.u32 %s261_s15, 8  ;;  %679 = vst.msk [vmem:[#allocation2 + $0x38] sm:$0x1] %vm666_vm2, %v13032_v34  ;;  %682 = vst.msk [vmem:[#allocation2 + $0x44] sm:$0x1] %vm666_vm2, %v13032_v34 }
  0x18   : > { %s9560_s20 = scalar_lea.vmem %s13025_s0, %s8514_s16  ;;  %s9565_s29 = scalar_lea.vmem %s13026_s1, %s8515_s17  ;;  %685 = vst.msk [vmem:[#allocation2 + $0x50] sm:$0x1] %vm666_vm2, %v13032_v34  ;;  %688 = vst.msk [vmem:[#allocation2 + $0x5c] sm:$0x1] %vm666_vm2, %v13032_v34  ;;  %vm816_vm5 = vsmask.f32 4368 }
  0x19   : > { %v271_v2 = vld [vmem:[%s9565_s29] sm:$0xff]  ;;  %v272_v4 = vld [vmem:[%s9565_s29 + $0x8] sm:$0xff]  ;;  %v273_v6 = vld [vmem:[%s9565_s29 + $0x10] sm:$0xff]  ;;  %691 = vst.msk [vmem:[#allocation2 + $0x68] sm:$0x1] %vm666_vm2, %v13032_v34  ;;  %s9870_s10 = scalar_lea.vmem [#allocation3], %s9554_s14 }
  0x1a   : > { %v287_v3 = vld [vmem:[%s9565_s29 + $0x80] sm:$0xff]  ;;  %8982 = vmatprep.mubr.msk.f32.mxu0 %vm305_vm1, %v271_v2  ;;  %v288_v5 = vld [vmem:[%s9565_s29 + $0x88] sm:$0xff]  ;;  %v289_v7 = vld [vmem:[%s9565_s29 + $0x90] sm:$0xff]  ;;  %694 = vst.msk [vmem:[#allocation2 + $0x74] sm:$0x1] %vm666_vm2, %v13032_v34 }
  0x1b   : > { %9006 = vmatprep.mubr.msk.f32.mxu1 %vm305_vm1, %v287_v3  ;;  %8983 = vmatmul.mubr.msk.f32.vlgmr.msra.gmra.mxu0 %vm305_vm1, %v272_v4  ;;  %v274_v8 = vld [vmem:[%s9565_s29 + $0x18] sm:$0xff]  ;;  %v275_v10 = vld [vmem:[%s9565_s29 + $0x20] sm:$0xff]  ;;  %v276_v12 = vld [vmem:[%s9565_s29 + $0x28] sm:$0xff]  ;;  %697 = vst.msk [vmem:[#allocation2 + $0x80] sm:$0x1] %vm666_vm2, %v13032_v34 }
  0x1c   : > { %9007 = vmatmul.mubr.msk.f32.vlgmr.msra.gmra.mxu1 %vm305_vm1, %v288_v5  ;;  %8985 = vmatprep.mubr.msk.f32.mxu0 %vm305_vm1, %v273_v6  ;;  %v290_v9 = vld [vmem:[%s9565_s29 + $0x98] sm:$0xff]  ;;  %v291_v11 = vld [vmem:[%s9565_s29 + $0xa0] sm:$0xff]  ;;  %v292_v13 = vld [vmem:[%s9565_s29 + $0xa8] sm:$0xff]  ;;  %700 = vst.msk [vmem:[#allocation2 + $0x8c] sm:$0x1] %vm666_vm2, %v13032_v34 }
  0x1d   : > { %9009 = vmatprep.mubr.msk.f32.mxu1 %vm305_vm1, %v289_v7  ;;  %v277_v14 = vld [vmem:[%s9565_s29 + $0x30] sm:$0xff]  ;;  %v278_v16 = vld [vmem:[%s9565_s29 + $0x38] sm:$0xff]  ;;  %v279_v18 = vld [vmem:[%s9565_s29 + $0x40] sm:$0xff]  ;;  %703 = vst.msk [vmem:[#allocation2 + $0x98] sm:$0x1] %vm666_vm2, %v13032_v34 }
  0x1e   : > { %v293_v15 = vld [vmem:[%s9565_s29 + $0xb0] sm:$0xff]  ;;  %v294_v17 = vld [vmem:[%s9565_s29 + $0xb8] sm:$0xff]  ;;  %v295_v19 = vld [vmem:[%s9565_s29 + $0xc0] sm:$0xff]  ;;  %706 = vst.msk [vmem:[#allocation2 + $0xa4] sm:$0x1] %vm666_vm2, %v13032_v34 }
  0x1f   : > { %8986 = vmatmul.mubr.msk.f32.gmra.mxu0 %vm305_vm1, %v274_v8  ;;  %v280_v20 = vld [vmem:[%s9565_s29 + $0x48] sm:$0xff]  ;;  %v281_v22 = vld [vmem:[%s9565_s29 + $0x50] sm:$0xff]  ;;  %v282_v24 = vld [vmem:[%s9565_s29 + $0x58] sm:$0xff]  ;;  %709 = vst.msk [vmem:[#allocation2 + $0xb0] sm:$0x1] %vm666_vm2, %v13032_v34 }
  0x20   : > { %9010 = vmatmul.mubr.msk.f32.gmra.mxu1 %vm305_vm1, %v290_v9  ;;  %8988 = vmatprep.mubr.msk.f32.mxu0 %vm305_vm1, %v275_v10  ;;  %v296_v21 = vld [vmem:[%s9565_s29 + $0xc8] sm:$0xff]  ;;  %v297_v23 = vld [vmem:[%s9565_s29 + $0xd0] sm:$0xff]  ;;  %v298_v25 = vld [vmem:[%s9565_s29 + $0xd8] sm:$0xff]  ;;  %712 = vst.msk [vmem:[#allocation2 + $0xbc] sm:$0x1] %vm666_vm2, %v13032_v34  ;;  %v13045_v10 = vmov 0 }
  0x21   : > { %9012 = vmatprep.mubr.msk.f32.mxu1 %vm305_vm1, %v291_v11  ;;  %v283_v26 = vld [vmem:[%s9565_s29 + $0x60] sm:$0xff]  ;;  %v284_v28 = vld [vmem:[%s9565_s29 + $0x68] sm:$0xff]  ;;  %v285_v30 = vld [vmem:[%s9565_s29 + $0x70] sm:$0xff]  ;;  %715 = vst.msk [vmem:[#allocation2 + $0xc8] sm:$0x1] %vm666_vm2, %v13032_v34 }
  0x22   : > { %v299_v27 = vld [vmem:[%s9565_s29 + $0xe0] sm:$0xff]  ;;  %v300_v29 = vld [vmem:[%s9565_s29 + $0xe8] sm:$0xff]  ;;  %v301_v31 = vld [vmem:[%s9565_s29 + $0xf0] sm:$0xff]  ;;  %718 = vst.msk [vmem:[#allocation2 + $0xd4] sm:$0x1] %vm666_vm2, %v13032_v34 }
  0x23   : > { %8989 = vmatmul.mubr.msk.f32.gmra.mxu0 %vm305_vm1, %v276_v12  ;;  %v286_v32 = vld [vmem:[%s9565_s29 + $0x78] sm:$0xff]  ;;  %668 = vst.msk [vmem:[#allocation2 + $0xc] sm:$0xf] %vm663_vm3, %v13032_v34  ;;  %669 = vst.msk [vmem:[#allocation2 + $0x10] sm:$0xf] %vm663_vm3, %v13032_v34 }
  0x24   : > { %9013 = vmatmul.mubr.msk.f32.gmra.mxu1 %vm305_vm1, %v292_v13  ;;  %8991 = vmatprep.mubr.msk.f32.mxu0 %vm305_vm1, %v277_v14  ;;  %v302_v33 = vld [vmem:[%s9565_s29 + $0xf8] sm:$0xff]  ;;  %664 = vst.msk [vmem:[#allocation2] sm:$0xf] %vm663_vm3, %v13032_v34  ;;  %665 = vst.msk [vmem:[#allocation2 + $0x4] sm:$0xf] %vm663_vm3, %v13032_v34 }
  0x25   : > { %9015 = vmatprep.mubr.msk.f32.mxu1 %vm305_vm1, %v293_v15  ;;  %671 = vst.msk [vmem:[#allocation2 + $0x18] sm:$0xf] %vm663_vm3, %v13032_v34  ;;  %672 = vst.msk [vmem:[#allocation2 + $0x1c] sm:$0xf] %vm663_vm3, %v13032_v34  ;;  %vm1140_vm6 = vsmask.f32 7938 }
  0x26   : > { %674 = vst.msk [vmem:[#allocation2 + $0x24] sm:$0xf] %vm663_vm3, %v13032_v34  ;;  %675 = vst.msk [vmem:[#allocation2 + $0x28] sm:$0xf] %vm663_vm3, %v13032_v34  ;;  %v1148_v58 = vld [vmem:[#allocation2 + $0x14] sm:$0x1] }
  0x27   : > { %8992 = vmatmul.mubr.msk.f32.gmra.mxu0 %vm305_vm1, %v278_v16  ;;  %677 = vst.msk [vmem:[#allocation2 + $0x30] sm:$0xf] %vm663_vm3, %v13032_v34  ;;  %678 = vst.msk [vmem:[#allocation2 + $0x34] sm:$0xf] %vm663_vm3, %v13032_v34  ;;  %v1204_v63 = vld [vmem:[#allocation2 + $0x74] sm:$0x1] }
  0x28   : > { %9016 = vmatmul.mubr.msk.f32.gmra.mxu1 %vm305_vm1, %v294_v17  ;;  %8994 = vmatprep.mubr.msk.f32.mxu0 %vm305_vm1, %v279_v18  ;;  %680 = vst.msk [vmem:[#allocation2 + $0x3c] sm:$0xf] %vm663_vm3, %v13032_v34  ;;  %681 = vst.msk [vmem:[#allocation2 + $0x40] sm:$0xf] %vm663_vm3, %v13032_v34  ;;  %v13048_v17 = vmov 0 }
  0x29   : > { %9018 = vmatprep.mubr.msk.f32.mxu1 %vm305_vm1, %v295_v19  ;;  %683 = vst.msk [vmem:[#allocation2 + $0x48] sm:$0xf] %vm663_vm3, %v13032_v34  ;;  %684 = vst.msk [vmem:[#allocation2 + $0x4c] sm:$0xf] %vm663_vm3, %v13032_v34 }
  0x2a   : > { %686 = vst.msk [vmem:[#allocation2 + $0x54] sm:$0xf] %vm663_vm3, %v13032_v34  ;;  %687 = vst.msk [vmem:[#allocation2 + $0x58] sm:$0xf] %vm663_vm3, %v13032_v34  ;;  %v1142_v18 = vld [vmem:[#allocation2 + $0xc] sm:$0xf] }
  0x2b   : > { %8995 = vmatmul.mubr.msk.f32.gmra.mxu0 %vm305_vm1, %v280_v20  ;;  %689 = vst.msk [vmem:[#allocation2 + $0x60] sm:$0xf] %vm663_vm3, %v13032_v34  ;;  %690 = vst.msk [vmem:[#allocation2 + $0x64] sm:$0xf] %vm663_vm3, %v13032_v34 }
  0x2c   : > { %9019 = vmatmul.mubr.msk.f32.gmra.mxu1 %vm305_vm1, %v296_v21  ;;  %8997 = vmatprep.mubr.msk.f32.mxu0 %vm305_vm1, %v281_v22  ;;  %692 = vst.msk [vmem:[#allocation2 + $0x6c] sm:$0xf] %vm663_vm3, %v13032_v34  ;;  %693 = vst.msk [vmem:[#allocation2 + $0x70] sm:$0xf] %vm663_vm3, %v13032_v34 }
  0x2d   : > { %9021 = vmatprep.mubr.msk.f32.mxu1 %vm305_vm1, %v297_v23  ;;  %695 = vst.msk [vmem:[#allocation2 + $0x78] sm:$0xf] %vm663_vm3, %v13032_v34  ;;  %696 = vst.msk [vmem:[#allocation2 + $0x7c] sm:$0xf] %vm663_vm3, %v13032_v34 }
  0x2e   : > { %698 = vst.msk [vmem:[#allocation2 + $0x84] sm:$0xf] %vm663_vm3, %v13032_v34  ;;  %699 = vst.msk [vmem:[#allocation2 + $0x88] sm:$0xf] %vm663_vm3, %v13032_v34 }
  0x2f   : > { %8998 = vmatmul.mubr.msk.f32.gmra.mxu0 %vm305_vm1, %v282_v24  ;;  %701 = vst.msk [vmem:[#allocation2 + $0x90] sm:$0xf] %vm663_vm3, %v13032_v34  ;;  %702 = vst.msk [vmem:[#allocation2 + $0x94] sm:$0xf] %vm663_vm3, %v13032_v34 }
  0x30   : > { %9022 = vmatmul.mubr.msk.f32.gmra.mxu1 %vm305_vm1, %v298_v25  ;;  %9000 = vmatprep.mubr.msk.f32.mxu0 %vm305_vm1, %v283_v26  ;;  %704 = vst.msk [vmem:[#allocation2 + $0x9c] sm:$0xf] %vm663_vm3, %v13032_v34  ;;  %705 = vst.msk [vmem:[#allocation2 + $0xa0] sm:$0xf] %vm663_vm3, %v13032_v34 }
  0x31   : > { %9024 = vmatprep.mubr.msk.f32.mxu1 %vm305_vm1, %v299_v27  ;;  %707 = vst.msk [vmem:[#allocation2 + $0xa8] sm:$0xf] %vm663_vm3, %v13032_v34  ;;  %708 = vst.msk [vmem:[#allocation2 + $0xac] sm:$0xf] %vm663_vm3, %v13032_v34 }
  0x32   : > { %710 = vst.msk [vmem:[#allocation2 + $0xb4] sm:$0xf] %vm663_vm3, %v13032_v34  ;;  %711 = vst.msk [vmem:[#allocation2 + $0xb8] sm:$0xf] %vm663_vm3, %v13032_v34 }
  0x33   : > { %9001 = vmatmul.mubr.msk.f32.gmra.mxu0 %vm305_vm1, %v284_v28  ;;  %713 = vst.msk [vmem:[#allocation2 + $0xc0] sm:$0xf] %vm663_vm3, %v13032_v34  ;;  %714 = vst.msk [vmem:[#allocation2 + $0xc4] sm:$0xf] %vm663_vm3, %v13032_v34  ;;  %v1200_v19 = vld [vmem:[#allocation2 + $0x6c] sm:$0xf] }
  0x34   : > { %9025 = vmatmul.mubr.msk.f32.gmra.mxu1 %vm305_vm1, %v300_v29  ;;  %9003 = vmatprep.mubr.msk.f32.mxu0 %vm305_vm1, %v285_v30  ;;  %716 = vst.msk [vmem:[#allocation2 + $0xcc] sm:$0xf] %vm663_vm3, %v13032_v34  ;;  %717 = vst.msk [vmem:[#allocation2 + $0xd0] sm:$0xf] %vm663_vm3, %v13032_v34 }
  0x35   : > { %9027 = vmatprep.mubr.msk.f32.mxu1 %vm305_vm1, %v301_v31  ;;  %vm9741_vm7 = vmand %vm666_vm2, %vm815_vm4 }
  0x36   : > { %v13043_v62 = vsel %vm9741_vm7, 4294967295, %v13042_v62  ;;  %vm9747_vm8 = vmor %vm815_vm4, %vm816_vm5 }
  0x37   : > { %9004 = vmatmul.mubr.msk.f32.gmra.mxu0 %vm305_vm1, %v286_v32  ;;  %13044 = vst [vmem:[#allocation6_spill] sm:$0xff] %v13043_v62  ;;  %v13046_v10 = vsel %vm9747_vm8, 4294967295, %v13045_v10  ;;  %vm9757_vm9 = vmand %vm663_vm3, %vm1140_vm6 }
  0x38   : > { %9028 = vmatmul.mubr.msk.f32.gmra.mxu1 %vm305_vm1, %v302_v33  ;;  %13047 = vst [vmem:[#allocation7_spill] sm:$0xff] %v13046_v10  ;;  %v13049_v17 = vsel %vm9757_vm9, 4294967295, %v13048_v17 }
  0x39   : > { %13050 = vst [vmem:[#allocation8_spill] sm:$0xff] %v13049_v17 }
  0xdb   : > { %v8984_v35 = vpop.f32.mrf.mxu0 }
  0xdc   : > { %v9008_v36 = vpop.f32.mrf.mxu1  ;;  %v632_v37 = vmax.f32 %v8984_v35, 0.0 }
  0xdd   : > { %v648_v38 = vmax.f32 %v9008_v36, 0.0  ;;  %v472_v39 = vpop.f32.mrf.mxu0 }
  0xde   : > { %v552_v40 = vpop.f32.mrf.mxu1  ;;  %v8517_v41 = vpack.c.bf16 %v632_v37, %v632_v37  ;;  %v631_v43 = vmax.f32 %v472_v39, 0.0 }
  0xdf   : > { %v8533_v42 = vpack.c.bf16 %v648_v38, %v648_v38  ;;  %v647_v44 = vmax.f32 %v552_v40, 0.0  ;;  %v8987_v45 = vpop.f32.mrf.mxu0  ;;  %v1155_v38 = vld [vmem:[#allocation2 + $0x20] sm:$0x1] }
  0xe0   : > { %v9011_v46 = vpop.f32.mrf.mxu1  ;;  %v827_v47 = vshrl.u32 %v8517_v41, 16  ;;  %v830_v48 = vshll.u32 %v8517_v41, 16  ;;  %v8516_v51 = vpack.c.bf16 %v631_v43, %v631_v43  ;;  %v634_v53 = vmax.f32 %v8987_v45, 0.0 }
  0xe1   : > { %v963_v49 = vshrl.u32 %v8533_v42, 16  ;;  %v966_v50 = vshll.u32 %v8533_v42, 16  ;;  %v8532_v52 = vpack.c.bf16 %v647_v44, %v647_v44  ;;  %v650_v54 = vmax.f32 %v9011_v46, 0.0  ;;  %v482_v55 = vpop.f32.mrf.mxu0  ;;  %v1211_v42 = vld [vmem:[#allocation2 + $0x80] sm:$0x1] }
  0xe2   : > { %v562_v56 = vpop.f32.mrf.mxu1  ;;  %v829_v57 = vrot.slane %v827_v47, 7  ;;  %v633_v60 = vmax.f32 %v482_v55, 0.0  ;;  %v819_v0 = vshrl.u32 %v8516_v51, 16  ;;  %v822_v1 = vshll.u32 %v8516_v51, 16 }
  0xe3   : > { %v965_v59 = vrot.slane %v963_v49, 7  ;;  %v649_v61 = vmax.f32 %v562_v56, 0.0  ;;  %v955_v2 = vshrl.u32 %v8532_v52, 16  ;;  %v958_v3 = vshll.u32 %v8532_v52, 16  ;;  %v8990_v8 = vpop.f32.mrf.mxu0 }
  0xe4   : > { %v832_v4 = vor.u32 %v830_v48, %v829_v57  ;;  %v834_v5 = vrot.slane %v829_v57, 4  ;;  %v9014_v9 = vpop.f32.mrf.mxu1  ;;  %v821_v11 = vrot.slane %v819_v0, 7  ;;  %v8519_v13 = vpack.c.bf16 %v634_v53, %v634_v53 }
  0xe5   : > { %v968_v6 = vor.u32 %v966_v50, %v965_v59  ;;  %v970_v7 = vrot.slane %v965_v59, 4  ;;  %v957_v12 = vrot.slane %v955_v2, 7  ;;  %v8535_v14 = vpack.c.bf16 %v650_v54, %v650_v54  ;;  %v492_v30 = vpop.f32.mrf.mxu0  ;;  %v1151_v59 = vld [vmem:[#allocation2 + $0x18] sm:$0xf] }
  0xe6   : > { %v1149_v15 = vsel %vm9741_vm7, %v834_v5, %v1148_v58  ;;  %v8518_v20 = vpack.c.bf16 %v633_v60, %v633_v60  ;;  %v8534_v21 = vpack.c.bf16 %v649_v61, %v649_v61  ;;  %v824_v22 = vor.u32 %v822_v1, %v821_v11  ;;  %v572_v31 = vpop.f32.mrf.mxu1  ;;  %v1207_v60 = vld [vmem:[#allocation2 + $0x78] sm:$0xf] }
  0xe7   : > { %v1205_v16 = vsel %vm9741_vm7, %v970_v7, %v1204_v63  ;;  %1150 = vst [vmem:[#allocation2 + $0x14] sm:$0x1] %v1149_v15  ;;  %v825_v23 = vrot.slane %v821_v11, 4  ;;  %v960_v24 = vor.u32 %v958_v3, %v957_v12  ;;  %v961_v25 = vrot.slane %v957_v12, 4  ;;  %v8993_v51 = vpop.f32.mrf.mxu0 }
  0xe8   : > { %1206 = vst [vmem:[#allocation2 + $0x74] sm:$0x1] %v1205_v16  ;;  %v844_v26 = vshrl.u32 %v8519_v13, 16  ;;  %v847_v27 = vshll.u32 %v8519_v13, 16  ;;  %v980_v28 = vshrl.u32 %v8535_v14, 16  ;;  %v983_v29 = vshll.u32 %v8535_v14, 16  ;;  %v9017_v52 = vpop.f32.mrf.mxu1 }
  0xe9   : > { %v833_v32 = vsel %vm9747_vm8, %v825_v23, %v832_v4  ;;  %v1143_v33 = vsel %vm9757_vm9, %v824_v22, %v1142_v18  ;;  %v969_v35 = vsel %vm9747_vm8, %v961_v25, %v968_v6  ;;  %v1201_v36 = vsel %vm9757_vm9, %v960_v24, %v1200_v19  ;;  %v1162_v16 = vld [vmem:[#allocation2 + $0x2c] sm:$0x1] }
  0xea   : > { %1144 = vst [vmem:[#allocation2 + $0xc] sm:$0xf] %v1143_v33  ;;  %1145 = vst.msk [vmem:[#allocation2 + $0x10] sm:$0xf] %vm663_vm3, %v833_v32  ;;  %v846_v37 = vrot.slane %v844_v26, 7  ;;  %v982_v39 = vrot.slane %v980_v28, 7 }
  0xeb   : > { %1202 = vst [vmem:[#allocation2 + $0x6c] sm:$0xf] %v1201_v36  ;;  %1203 = vst.msk [vmem:[#allocation2 + $0x70] sm:$0xf] %vm663_vm3, %v969_v35  ;;  %v836_v40 = vshrl.u32 %v8518_v20, 16  ;;  %v839_v41 = vshll.u32 %v8518_v20, 16 }
  0xec   : > { %v972_v43 = vshrl.u32 %v8534_v21, 16  ;;  %v975_v44 = vshll.u32 %v8534_v21, 16  ;;  %v636_v45 = vmax.f32 %v8990_v8, 0.0  ;;  %v652_v46 = vmax.f32 %v9014_v9, 0.0  ;;  %v502_v8 = vpop.f32.mrf.mxu0  ;;  %v582_v9 = vpop.f32.mrf.mxu1  ;;  %v1218_v21 = vld [vmem:[#allocation2 + $0x8c] sm:$0x1] }
  0xed   : > { %v849_v47 = vor.u32 %v847_v27, %v846_v37  ;;  %v851_v48 = vrot.slane %v846_v37, 4  ;;  %v985_v49 = vor.u32 %v983_v29, %v982_v39  ;;  %v987_v50 = vrot.slane %v982_v39, 4 }
  0xee   : > { %v838_v53 = vrot.slane %v836_v40, 7  ;;  %v974_v54 = vrot.slane %v972_v43, 7  ;;  %v8521_v55 = vpack.c.bf16 %v636_v45, %v636_v45  ;;  %v8537_v56 = vpack.c.bf16 %v652_v46, %v652_v46  ;;  %v8996_v35 = vpop.f32.mrf.mxu0  ;;  %v9020_v45 = vpop.f32.mrf.mxu1  ;;  %v1214_v46 = vld [vmem:[#allocation2 + $0x84] sm:$0xf] }
  0xef   : > { %v1156_v57 = vsel %vm9741_vm7, %v851_v48, %v1155_v38  ;;  %v1212_v58 = vsel %vm9741_vm7, %v987_v50, %v1211_v42  ;;  %v635_v61 = vmax.f32 %v492_v30, 0.0  ;;  %v651_v63 = vmax.f32 %v572_v31, 0.0 }
  0xf0   : > { %1157 = vst [vmem:[#allocation2 + $0x20] sm:$0x1] %v1156_v57  ;;  %1213 = vst [vmem:[#allocation2 + $0x80] sm:$0x1] %v1212_v58  ;;  %v841_v0 = vor.u32 %v839_v41, %v838_v53  ;;  %v842_v1 = vrot.slane %v838_v53, 4  ;;  %v977_v2 = vor.u32 %v975_v44, %v974_v54  ;;  %v978_v3 = vrot.slane %v974_v54, 4 }
  0xf1   : > { %v861_v4 = vshrl.u32 %v8521_v55, 16  ;;  %v864_v5 = vshll.u32 %v8521_v55, 16  ;;  %v997_v6 = vshrl.u32 %v8537_v56, 16  ;;  %v1000_v7 = vshll.u32 %v8537_v56, 16  ;;  %v1158_v41 = vld [vmem:[#allocation2 + $0x24] sm:$0xf]  ;;  %v512_v55 = vpop.f32.mrf.mxu0 }
  0xf2   : > { %v850_v11 = vsel %vm9747_vm8, %v842_v1, %v849_v47  ;;  %v1152_v12 = vsel %vm9757_vm9, %v841_v0, %v1151_v59  ;;  %v986_v13 = vsel %vm9747_vm8, %v978_v3, %v985_v49  ;;  %v1208_v14 = vsel %vm9757_vm9, %v977_v2, %v1207_v60  ;;  %v1169_v1 = vld [vmem:[#allocation2 + $0x38] sm:$0x1]  ;;  %v592_v3 = vpop.f32.mrf.mxu1 }
  0xf3   : > { %1153 = vst [vmem:[#allocation2 + $0x18] sm:$0xf] %v1152_v12  ;;  %1154 = vst.msk [vmem:[#allocation2 + $0x1c] sm:$0xf] %vm663_vm3, %v850_v11  ;;  %v863_v15 = vrot.slane %v861_v4, 7  ;;  %v999_v18 = vrot.slane %v997_v6, 7  ;;  %v8520_v19 = vpack.c.bf16 %v635_v61, %v635_v61  ;;  %v8536_v20 = vpack.c.bf16 %v651_v63, %v651_v63 }
  0xf4   : > { %1209 = vst [vmem:[#allocation2 + $0x78] sm:$0xf] %v1208_v14  ;;  %1210 = vst.msk [vmem:[#allocation2 + $0x7c] sm:$0xf] %vm663_vm3, %v986_v13  ;;  %v638_v22 = vmax.f32 %v8993_v51, 0.0  ;;  %v654_v23 = vmax.f32 %v9017_v52, 0.0  ;;  %v8999_v13 = vpop.f32.mrf.mxu0 }
  0xf5   : > { %v637_v24 = vmax.f32 %v502_v8, 0.0  ;;  %v653_v25 = vmax.f32 %v582_v9, 0.0  ;;  %v866_v26 = vor.u32 %v864_v5, %v863_v15  ;;  %v868_v27 = vrot.slane %v863_v15, 4  ;;  %v1225_v2 = vld [vmem:[#allocation2 + $0x98] sm:$0x1] }
  0xf6   : > { %v1002_v28 = vor.u32 %v1000_v7, %v999_v18  ;;  %v1004_v29 = vrot.slane %v999_v18, 4  ;;  %v853_v30 = vshrl.u32 %v8520_v19, 16  ;;  %v856_v31 = vshll.u32 %v8520_v19, 16 }
  0xf7   : > { %v989_v32 = vshrl.u32 %v8536_v20, 16  ;;  %v992_v33 = vshll.u32 %v8536_v20, 16  ;;  %v1163_v36 = vsel %vm9741_vm7, %v868_v27, %v1162_v16  ;;  %v8523_v38 = vpack.c.bf16 %v638_v22, %v638_v22  ;;  %v1165_v16 = vld [vmem:[#allocation2 + $0x30] sm:$0xf] }
  0xf8   : > { %v1219_v37 = vsel %vm9741_vm7, %v1004_v29, %v1218_v21  ;;  %v8539_v39 = vpack.c.bf16 %v654_v23, %v654_v23  ;;  %1164 = vst [vmem:[#allocation2 + $0x2c] sm:$0x1] %v1163_v36  ;;  %v855_v40 = vrot.slane %v853_v30, 7  ;;  %v8522_v43 = vpack.c.bf16 %v637_v24, %v637_v24  ;;  %v9023_v24 = vpop.f32.mrf.mxu1 }
  0xf9   : > { %1220 = vst [vmem:[#allocation2 + $0x8c] sm:$0x1] %v1219_v37  ;;  %v991_v42 = vrot.slane %v989_v32, 7  ;;  %v8538_v44 = vpack.c.bf16 %v653_v25, %v653_v25  ;;  %v878_v47 = vshrl.u32 %v8523_v38, 16  ;;  %v881_v48 = vshll.u32 %v8523_v38, 16  ;;  %v522_v38 = vpop.f32.mrf.mxu0 }
  0xfa   : > { %v1014_v49 = vshrl.u32 %v8539_v39, 16  ;;  %v1017_v50 = vshll.u32 %v8539_v39, 16  ;;  %v858_v51 = vor.u32 %v856_v31, %v855_v40  ;;  %v859_v52 = vrot.slane %v855_v40, 4  ;;  %v1221_v25 = vld [vmem:[#allocation2 + $0x90] sm:$0xf] }
  0xfb   : > { %v994_v53 = vor.u32 %v992_v33, %v991_v42  ;;  %v995_v54 = vrot.slane %v991_v42, 4  ;;  %v880_v56 = vrot.slane %v878_v47, 7  ;;  %v870_v58 = vshrl.u32 %v8522_v43, 16 }
  0xfc   : > { %v1016_v57 = vrot.slane %v1014_v49, 7  ;;  %v873_v59 = vshll.u32 %v8522_v43, 16  ;;  %v867_v60 = vsel %vm9747_vm8, %v859_v52, %v866_v26  ;;  %v1159_v61 = vsel %vm9757_vm9, %v858_v51, %v1158_v41  ;;  %v602_v43 = vpop.f32.mrf.mxu1  ;;  %v1232_v49 = vld [vmem:[#allocation2 + $0xa4] sm:$0x1] }
  0xfd   : > { %v1003_v63 = vsel %vm9747_vm8, %v995_v54, %v1002_v28  ;;  %v1215_v0 = vsel %vm9757_vm9, %v994_v53, %v1214_v46  ;;  %1160 = vst [vmem:[#allocation2 + $0x24] sm:$0xf] %v1159_v61  ;;  %1161 = vst.msk [vmem:[#allocation2 + $0x28] sm:$0xf] %vm663_vm3, %v867_v60  ;;  %v883_v4 = vor.u32 %v881_v48, %v880_v56  ;;  %v885_v5 = vrot.slane %v880_v56, 4 }
  0xfe   : > { %1216 = vst [vmem:[#allocation2 + $0x84] sm:$0xf] %v1215_v0  ;;  %1217 = vst.msk [vmem:[#allocation2 + $0x88] sm:$0xf] %vm663_vm3, %v1003_v63  ;;  %v1019_v6 = vor.u32 %v1017_v50, %v1016_v57  ;;  %v1021_v7 = vrot.slane %v1016_v57, 4  ;;  %v872_v8 = vrot.slane %v870_v58, 7 }
  0xff   : > { %v1006_v9 = vshrl.u32 %v8538_v44, 16  ;;  %v1009_v11 = vshll.u32 %v8538_v44, 16  ;;  %v640_v12 = vmax.f32 %v8996_v35, 0.0  ;;  %v1170_v14 = vsel %vm9741_vm7, %v885_v5, %v1169_v1  ;;  %v1172_v57 = vld [vmem:[#allocation2 + $0x3c] sm:$0xf] }
 0x100   : > { %v1226_v15 = vsel %vm9741_vm7, %v1021_v7, %v1225_v2  ;;  %v656_v18 = vmax.f32 %v9020_v45, 0.0  ;;  %v639_v19 = vmax.f32 %v512_v55, 0.0  ;;  %1171 = vst [vmem:[#allocation2 + $0x38] sm:$0x1] %v1170_v14  ;;  %v875_v20 = vor.u32 %v873_v59, %v872_v8  ;;  %v1176_v45 = vld [vmem:[#allocation2 + $0x44] sm:$0x1]  ;;  %v9002_v59 = vpop.f32.mrf.mxu0 }
 0x101   : > { %1227 = vst [vmem:[#allocation2 + $0x98] sm:$0x1] %v1226_v15  ;;  %v876_v21 = vrot.slane %v872_v8, 4  ;;  %v1008_v22 = vrot.slane %v1006_v9, 7  ;;  %v8525_v23 = vpack.c.bf16 %v640_v12, %v640_v12  ;;  %v655_v28 = vmax.f32 %v592_v3, 0.0  ;;  %v9026_v15 = vpop.f32.mrf.mxu1 }
 0x102   : > { %v8541_v26 = vpack.c.bf16 %v656_v18, %v656_v18  ;;  %v8524_v27 = vpack.c.bf16 %v639_v19, %v639_v19  ;;  %v642_v29 = vmax.f32 %v8999_v13, 0.0  ;;  %v1166_v31 = vsel %vm9757_vm9, %v875_v20, %v1165_v16  ;;  %v1228_v9 = vld [vmem:[#allocation2 + $0x9c] sm:$0xf]  ;;  %v532_v16 = vpop.f32.mrf.mxu0 }
 0x103   : > { %v884_v30 = vsel %vm9747_vm8, %v876_v21, %v883_v4  ;;  %v1011_v32 = vor.u32 %v1009_v11, %v1008_v22  ;;  %v1012_v33 = vrot.slane %v1008_v22, 4  ;;  %1167 = vst [vmem:[#allocation2 + $0x30] sm:$0xf] %v1166_v31  ;;  %v895_v35 = vshrl.u32 %v8525_v23, 16  ;;  %v1183_v21 = vld [vmem:[#allocation2 + $0x50] sm:$0x1] }
 0x104   : > { %1168 = vst.msk [vmem:[#allocation2 + $0x34] sm:$0xf] %vm663_vm3, %v884_v30  ;;  %v898_v36 = vshll.u32 %v8525_v23, 16  ;;  %v1031_v37 = vshrl.u32 %v8541_v26, 16  ;;  %v1034_v41 = vshll.u32 %v8541_v26, 16  ;;  %v887_v42 = vshrl.u32 %v8524_v27, 16 }
 0x105   : > { %v1020_v39 = vsel %vm9747_vm8, %v1012_v33, %v1019_v6  ;;  %v1222_v40 = vsel %vm9757_vm9, %v1011_v32, %v1221_v25  ;;  %v897_v44 = vrot.slane %v895_v35, 7  ;;  %v8540_v47 = vpack.c.bf16 %v655_v28, %v655_v28  ;;  %v1239_v32 = vld [vmem:[#allocation2 + $0xb0] sm:$0x1] }
 0x106   : > { %1223 = vst [vmem:[#allocation2 + $0x90] sm:$0xf] %v1222_v40  ;;  %1224 = vst.msk [vmem:[#allocation2 + $0x94] sm:$0xf] %vm663_vm3, %v1020_v39  ;;  %v1033_v46 = vrot.slane %v1031_v37, 7  ;;  %v8527_v48 = vpack.c.bf16 %v642_v29, %v642_v29  ;;  %v889_v50 = vrot.slane %v887_v42, 7  ;;  %v612_v37 = vpop.f32.mrf.mxu1 }
 0x107   : > { %v890_v51 = vshll.u32 %v8524_v27, 16  ;;  %v658_v52 = vmax.f32 %v9023_v24, 0.0  ;;  %v641_v53 = vmax.f32 %v522_v38, 0.0  ;;  %v900_v54 = vor.u32 %v898_v36, %v897_v44  ;;  %v9005_v38 = vpop.f32.mrf.mxu0  ;;  %v1179_v40 = vld [vmem:[#allocation2 + $0x48] sm:$0xf] }
 0x108   : > { %v902_v55 = vrot.slane %v897_v44, 4  ;;  %v1038_v56 = vrot.slane %v1033_v46, 4  ;;  %v657_v58 = vmax.f32 %v602_v43, 0.0  ;;  %v893_v61 = vrot.slane %v889_v50, 4 }
 0x109   : > { %v892_v60 = vor.u32 %v890_v51, %v889_v50  ;;  %v1023_v63 = vshrl.u32 %v8540_v47, 16  ;;  %v1026_v0 = vshll.u32 %v8540_v47, 16  ;;  %v912_v3 = vshrl.u32 %v8527_v48, 16  ;;  %v1235_v47 = vld [vmem:[#allocation2 + $0xa8] sm:$0xf] }
 0x10a   : > { %v1177_v1 = vsel %vm9741_vm7, %v902_v55, %v1176_v45  ;;  %v1233_v2 = vsel %vm9741_vm7, %v1038_v56, %v1232_v49  ;;  %v915_v4 = vshll.u32 %v8527_v48, 16  ;;  %v901_v5 = vsel %vm9747_vm8, %v893_v61, %v900_v54  ;;  %v1190_v61 = vld [vmem:[#allocation2 + $0x5c] sm:$0x1] }
 0x10b   : > { %1178 = vst [vmem:[#allocation2 + $0x44] sm:$0x1] %v1177_v1  ;;  %1234 = vst [vmem:[#allocation2 + $0xa4] sm:$0x1] %v1233_v2  ;;  %v1173_v6 = vsel %vm9757_vm9, %v892_v60, %v1172_v57  ;;  %v1025_v7 = vrot.slane %v1023_v63, 7  ;;  %v8543_v8 = vpack.c.bf16 %v658_v52, %v658_v52  ;;  %v914_v11 = vrot.slane %v912_v3, 7  ;;  %v9029_v57 = vpop.f32.mrf.mxu1 }
 0x10c   : > { %1174 = vst [vmem:[#allocation2 + $0x3c] sm:$0xf] %v1173_v6  ;;  %1175 = vst.msk [vmem:[#allocation2 + $0x40] sm:$0xf] %vm663_vm3, %v901_v5  ;;  %v8526_v12 = vpack.c.bf16 %v641_v53, %v641_v53  ;;  %v8542_v13 = vpack.c.bf16 %v657_v58, %v657_v58  ;;  %v644_v14 = vmax.f32 %v9002_v59, 0.0  ;;  %v1036_v18 = vor.u32 %v1034_v41, %v1033_v46  ;;  %v542_v58 = vpop.f32.mrf.mxu0 }
 0x10d   : > { %v1028_v19 = vor.u32 %v1026_v0, %v1025_v7  ;;  %v1029_v20 = vrot.slane %v1025_v7, 4  ;;  %v1048_v22 = vshrl.u32 %v8543_v8, 16  ;;  %v917_v23 = vor.u32 %v915_v4, %v914_v11 }
 0x10e   : > { %v919_v24 = vrot.slane %v914_v11, 4  ;;  %v1051_v25 = vshll.u32 %v8543_v8, 16  ;;  %v904_v26 = vshrl.u32 %v8526_v12, 16  ;;  %v1040_v30 = vshrl.u32 %v8542_v13, 16 }
 0x10f   : > { %v1037_v27 = vsel %vm9747_vm8, %v1029_v20, %v1036_v18  ;;  %v1229_v28 = vsel %vm9757_vm9, %v1028_v19, %v1228_v9  ;;  %v1050_v29 = vrot.slane %v1048_v22, 7  ;;  %v907_v35 = vshll.u32 %v8526_v12, 16  ;;  %v1246_v9 = vld [vmem:[#allocation2 + $0xbc] sm:$0x1] }
 0x110   : > { %1230 = vst [vmem:[#allocation2 + $0x9c] sm:$0xf] %v1229_v28  ;;  %1231 = vst.msk [vmem:[#allocation2 + $0xa0] sm:$0xf] %vm663_vm3, %v1037_v27  ;;  %v1184_v31 = vsel %vm9741_vm7, %v919_v24, %v1183_v21  ;;  %v906_v33 = vrot.slane %v904_v26, 7  ;;  %v8529_v36 = vpack.c.bf16 %v644_v14, %v644_v14  ;;  %v1042_v41 = vrot.slane %v1040_v30, 7 }
 0x111   : > { %1185 = vst [vmem:[#allocation2 + $0x50] sm:$0x1] %v1184_v31  ;;  %v1055_v39 = vrot.slane %v1050_v29, 4  ;;  %v1043_v42 = vshll.u32 %v8542_v13, 16  ;;  %v660_v43 = vmax.f32 %v9026_v15, 0.0  ;;  %v1053_v44 = vor.u32 %v1051_v25, %v1050_v29 }
 0x112   : > { %v909_v45 = vor.u32 %v907_v35, %v906_v33  ;;  %v910_v46 = vrot.slane %v906_v33, 4  ;;  %v929_v48 = vshrl.u32 %v8529_v36, 16  ;;  %v1046_v51 = vrot.slane %v1042_v41, 4  ;;  %v1186_v24 = vld [vmem:[#allocation2 + $0x54] sm:$0xf] }
 0x113   : > { %v1240_v49 = vsel %vm9741_vm7, %v1055_v39, %v1239_v32  ;;  %v1045_v50 = vor.u32 %v1043_v42, %v1042_v41  ;;  %v8545_v52 = vpack.c.bf16 %v660_v43, %v660_v43  ;;  %v643_v56 = vmax.f32 %v532_v16, 0.0  ;;  %v1242_v32 = vld [vmem:[#allocation2 + $0xb4] sm:$0xf]  ;;  %v1197_v42 = vld [vmem:[#allocation2 + $0x68] sm:$0x1] }
 0x114   : > { %1241 = vst [vmem:[#allocation2 + $0xb0] sm:$0x1] %v1240_v49  ;;  %v918_v53 = vsel %vm9747_vm8, %v910_v46, %v917_v23  ;;  %v1180_v54 = vsel %vm9757_vm9, %v909_v45, %v1179_v40  ;;  %v931_v55 = vrot.slane %v929_v48, 7  ;;  %v1054_v59 = vsel %vm9747_vm8, %v1046_v51, %v1053_v44  ;;  %v1253_v43 = vld [vmem:[#allocation2 + $0xc8] sm:$0x1] }
 0x115   : > { %1181 = vst [vmem:[#allocation2 + $0x48] sm:$0xf] %v1180_v54  ;;  %1182 = vst.msk [vmem:[#allocation2 + $0x4c] sm:$0xf] %vm663_vm3, %v918_v53  ;;  %v1236_v60 = vsel %vm9757_vm9, %v1045_v50, %v1235_v47  ;;  %v1065_v63 = vshrl.u32 %v8545_v52, 16  ;;  %v8528_v1 = vpack.c.bf16 %v643_v56, %v643_v56  ;;  %v659_v2 = vmax.f32 %v612_v37, 0.0  ;;  %v622_v37 = vpop.f32.mrf.mxu1 }
 0x116   : > { %1237 = vst [vmem:[#allocation2 + $0xa8] sm:$0xf] %v1236_v60  ;;  %1238 = vst.msk [vmem:[#allocation2 + $0xac] sm:$0xf] %vm663_vm3, %v1054_v59  ;;  %v936_v0 = vrot.slane %v931_v55, 4  ;;  %v646_v4 = vmax.f32 %v9005_v38, 0.0 }
 0x117   : > { %v1067_v3 = vrot.slane %v1065_v63, 7  ;;  %v662_v5 = vmax.f32 %v9029_v57, 0.0  ;;  %v645_v6 = vmax.f32 %v542_v58, 0.0  ;;  %v932_v7 = vshll.u32 %v8529_v36, 16  ;;  %v1193_v54 = vld [vmem:[#allocation2 + $0x60] sm:$0xf] }
 0x118   : > { %v1191_v8 = vsel %vm9741_vm7, %v936_v0, %v1190_v61  ;;  %v921_v11 = vshrl.u32 %v8528_v1, 16  ;;  %v8544_v12 = vpack.c.bf16 %v659_v2, %v659_v2  ;;  %v1068_v13 = vshll.u32 %v8545_v52, 16  ;;  %v1249_v2 = vld [vmem:[#allocation2 + $0xc0] sm:$0xf] }
 0x119   : > { %1192 = vst [vmem:[#allocation2 + $0x5c] sm:$0x1] %v1191_v8  ;;  %v1072_v14 = vrot.slane %v1067_v3, 4  ;;  %v8531_v15 = vpack.c.bf16 %v646_v4, %v646_v4  ;;  %v8547_v16 = vpack.c.bf16 %v662_v5, %v662_v5  ;;  %v924_v19 = vshll.u32 %v8528_v1, 16 }
 0x11a   : > { %v923_v18 = vrot.slane %v921_v11, 7  ;;  %v1057_v20 = vshrl.u32 %v8544_v12, 16  ;;  %v8530_v21 = vpack.c.bf16 %v645_v6, %v645_v6  ;;  %v934_v22 = vor.u32 %v932_v7, %v931_v55 }
 0x11b   : > { %v1247_v23 = vsel %vm9741_vm7, %v1072_v14, %v1246_v9  ;;  %v946_v25 = vshrl.u32 %v8531_v15, 16  ;;  %v1082_v26 = vshrl.u32 %v8547_v16, 16  ;;  %v1060_v30 = vshll.u32 %v8544_v12, 16 }
 0x11c   : > { %1248 = vst [vmem:[#allocation2 + $0xbc] sm:$0x1] %v1247_v23  ;;  %v926_v27 = vor.u32 %v924_v19, %v923_v18  ;;  %v927_v28 = vrot.slane %v923_v18, 4  ;;  %v1059_v29 = vrot.slane %v1057_v20, 7  ;;  %v1070_v31 = vor.u32 %v1068_v13, %v1067_v3 }
 0x11d   : > { %v948_v33 = vrot.slane %v946_v25, 7  ;;  %v1084_v35 = vrot.slane %v1082_v26, 7  ;;  %v938_v36 = vshrl.u32 %v8530_v21, 16  ;;  %v949_v44 = vshll.u32 %v8531_v15, 16 }
 0x11e   : > { %v935_v38 = vsel %vm9747_vm8, %v927_v28, %v934_v22  ;;  %v1187_v39 = vsel %vm9757_vm9, %v926_v27, %v1186_v24  ;;  %v1062_v40 = vor.u32 %v1060_v30, %v1059_v29  ;;  %v1063_v41 = vrot.slane %v1059_v29, 4 }
 0x11f   : > { %1188 = vst [vmem:[#allocation2 + $0x54] sm:$0xf] %v1187_v39  ;;  %1189 = vst.msk [vmem:[#allocation2 + $0x58] sm:$0xf] %vm663_vm3, %v935_v38  ;;  %v953_v45 = vrot.slane %v948_v33, 4  ;;  %v1089_v46 = vrot.slane %v1084_v35, 4  ;;  %v951_v55 = vor.u32 %v949_v44, %v948_v33 }
 0x120   : > { %v941_v47 = vshll.u32 %v8530_v21, 16  ;;  %v1071_v48 = vsel %vm9747_vm8, %v1063_v41, %v1070_v31  ;;  %v1243_v49 = vsel %vm9757_vm9, %v1062_v40, %v1242_v32  ;;  %v940_v50 = vrot.slane %v938_v36, 7 }
 0x121   : > { %v661_v51 = vmax.f32 %v622_v37, 0.0  ;;  %1244 = vst [vmem:[#allocation2 + $0xb4] sm:$0xf] %v1243_v49  ;;  %1245 = vst.msk [vmem:[#allocation2 + $0xb8] sm:$0xf] %vm663_vm3, %v1071_v48  ;;  %v1198_v52 = vsel %vm9741_vm7, %v953_v45, %v1197_v42  ;;  %v1254_v53 = vsel %vm9741_vm7, %v1089_v46, %v1253_v43  ;;  %v1085_v63 = vshll.u32 %v8547_v16, 16 }
 0x122   : > { %1199 = vst [vmem:[#allocation2 + $0x68] sm:$0x1] %v1198_v52  ;;  %1255 = vst [vmem:[#allocation2 + $0xc8] sm:$0x1] %v1254_v53  ;;  %v943_v56 = vor.u32 %v941_v47, %v940_v50  ;;  %v944_v57 = vrot.slane %v940_v50, 4 }
 0x123   : > { %v8546_v58 = vpack.c.bf16 %v661_v51, %v661_v51  ;;  %v1087_v3 = vor.u32 %v1085_v63, %v1084_v35 }
 0x124   : > { %v952_v59 = vsel %vm9747_vm8, %v944_v57, %v951_v55  ;;  %v1194_v60 = vsel %vm9757_vm9, %v943_v56, %v1193_v54 }
 0x125   : > { %v1074_v61 = vshrl.u32 %v8546_v58, 16  ;;  %1195 = vst [vmem:[#allocation2 + $0x60] sm:$0xf] %v1194_v60  ;;  %1196 = vst.msk [vmem:[#allocation2 + $0x64] sm:$0xf] %vm663_vm3, %v952_v59  ;;  %v1077_v1 = vshll.u32 %v8546_v58, 16 }
 0x127   : > { %v1076_v0 = vrot.slane %v1074_v61, 7 }
 0x129   : > { %v1079_v4 = vor.u32 %v1077_v1, %v1076_v0  ;;  %v1080_v5 = vrot.slane %v1076_v0, 4 }
 0x12b   : > { %v1088_v6 = vsel %vm9747_vm8, %v1080_v5, %v1087_v3  ;;  %v1250_v7 = vsel %vm9757_vm9, %v1079_v4, %v1249_v2 }
 0x12c   : > { %1251 = vst [vmem:[#allocation2 + $0xc0] sm:$0xf] %v1250_v7  ;;  %1252 = vst.msk [vmem:[#allocation2 + $0xc4] sm:$0xf] %vm663_vm3, %v1088_v6 }
 0x12d LB: >> { %v9877_v8 = vld [vmem:[#allocation2 + $0x9c] sm:$0xf]  ;;  %v9879_v9 = vld [vmem:[#allocation2 + $0xa0] sm:$0xf]  ;;  %v9883_v12 = vld [vmem:[#allocation2 + $0xc] sm:$0xf]  ;;  %s4033_s19 = scalar_lea.vmem %s13029_s4, %s9454_s11  ;;  %s9454_s11 = sphi %s9872_s11, %s1261_s11  }
 0x12e   : >> { %v8330_v11 = vcombine.low %v9877_v8, %v9879_v9  ;;  %v9885_v13 = vld [vmem:[#allocation2 + $0x10] sm:$0xf]  ;;  %s9457_s12 = smov 64   ;;  %v1287_v16 = vld [vmem:[#allocation2 + $0x94] sm:$0xf]  ;;  %s8548_s13 = smul.u32 288, %s9454_s11 }
 0x12f   : >> { %v1286_v14 = vld [vmem:[#allocation2 + $0x90] sm:$0xf]  ;;  %v8318_v15 = vcombine.low %v9883_v12, %v9885_v13  ;;  %v1306_v18 = vld [vmem:[#allocation2 + $0x98] sm:$0x1]  ;;  %vm1310_vm10 = vsmask.f32 3328 }
 0x130   : >> { %3373 = vrot.lane.b32.xlu0 %v8330_v11, %s9457_s12  ;;  %vm1311_vm11 = vsmask.f32 7440  ;;  %v1602_v19 = vshrl.u32 %v1286_v14, 16  ;;  %v1605_v20 = vshll.u32 %v1286_v14, 16  ;;  %v1611_v21 = vshll.u32 %v1287_v16, 16  ;;  %s9895_s16 = scalar_lea.vmem %s13028_s3, %s8548_s13  ;;  %s1261_s11 = sadd.s32 1, %s9454_s11  }
 0x131   : >> { %3349 = vrot.lane.b32.xlu1 %v8318_v15, %s9457_s12  ;;  %v1262_v22 = vld [vmem:[#allocation2] sm:$0xf]  ;;  %v1615_v23 = vshrl.u32 %v1287_v16, 16  ;;  %v1621_v24 = vshll.u32 %v1306_v18, 16  ;;  %v1263_v25 = vld [vmem:[#allocation2 + $0x4] sm:$0xf]  ;;  %vm9900_vm12 = vmor %vm1310_vm10, %vm1311_vm11 }
 0x132   : >> { %v1294_v26 = vld [vmem:[#allocation2 + $0x8] sm:$0x1]  ;;  %v1604_v27 = vrot.slane %v1602_v19, 4  ;;  %v1607_v28 = vrot.slane %v1605_v20, 5  ;;  %v1613_v29 = vrot.slane %v1611_v21, 5  ;;  %v1314_v30 = vshrl.u32 %v1262_v22, 16 }
 0x133   : >> { %v1617_v31 = vrot.slane %v1615_v23, 4  ;;  %v1317_v32 = vshll.u32 %v1262_v22, 16  ;;  %v1323_v33 = vshll.u32 %v1263_v25, 16  ;;  %v1327_v37 = vshrl.u32 %v1263_v25, 16  ;;  %v9156_v39 = vld [vmem:[%s9895_s16 + $0x78] sm:$0xff]   ;;  %v9158_v0 = vld [vmem:[%s9895_s16 + $0x70] sm:$0xff]  }
 0x134   : >> { %v1608_v35 = vor.u32 %v1607_v28, %v1604_v27  ;;  %v1316_v36 = vrot.slane %v1314_v30, 4  ;;  %v1333_v38 = vshll.u32 %v1294_v26, 16  ;;  %v1623_v42 = vrot.slane %v1621_v24, 5  ;;  %v1288_v45 = vld [vmem:[#allocation2 + $0x9c] sm:$0xf]  ;;  %9074 = vmatprep.subr.bf16.mxu1 %v9156_v39  ;;  %8734 = vmatprep.subr.bf16.mxu0 %v9156_v39  ;;  %v9160_v5 = vld [vmem:[%s9895_s16 + $0x30] sm:$0xff]  }
 0x135   : >> { %v1618_v41 = vor.u32 %v1617_v31, %v1613_v29  ;;  %v1319_v43 = vrot.slane %v1317_v32, 5  ;;  %v1325_v44 = vrot.slane %v1323_v33, 5  ;;  %v9157_v46 = vld [vmem:[%s9895_s16 + $0x38] sm:$0xff]   ;;  %v1329_v48 = vrot.slane %v1327_v37, 4  ;;  %v1289_v49 = vld [vmem:[#allocation2 + $0xa0] sm:$0xf] }
 0x136   : >> { %v1609_v47 = vrot.slane %v1608_v35, 4  ;;  %9082 = vmatpush3.bf16.msra.mxu1 %v9157_v46  ;;  %8735 = vmatpush3.bf16.msra.mxu0 %v9157_v46  ;;  %v1335_v54 = vrot.slane %v1333_v38, 5  ;;  %v1902_v55 = vld [vmem:[#allocation2 + $0xa8] sm:$0xf]  ;;  %v1307_v56 = vld [vmem:[#allocation2 + $0xa4] sm:$0x1] }
 0x137   : >> { %v1619_v50 = vrot.slane %v1618_v41, 4  ;;  %v1320_v51 = vor.u32 %v1319_v43, %v1316_v36  ;;  %v1330_v53 = vor.u32 %v1329_v48, %v1325_v44  ;;  %v1626_v57 = vshrl.u32 %v1288_v45, 16  ;;  %v1903_v60 = vld [vmem:[#allocation2 + $0xac] sm:$0xf]  ;;  %9075 = vmatprep.subr.bf16.mxu1 %v9158_v0  ;;  %8736 = vmatprep.subr.bf16.mxu0 %v9158_v0  ;;  %v1265_v20 = vld [vmem:[#allocation2 + $0x10] sm:$0xf] }
 0x138   : >> { %v1614_v52 = vsel %vm9900_vm12, %v1609_v47, %v1613_v29  ;;  %v1629_v61 = vshll.u32 %v1288_v45, 16  ;;  %v1635_v63 = vshll.u32 %v1289_v49, 16  ;;  %v1639_v4 = vshrl.u32 %v1289_v49, 16  ;;  %v1264_v15 = vld [vmem:[#allocation2 + $0xc] sm:$0xf]  ;;  %p1258_p11 = scmp.ge.s32.totalorder %s1261_s11, 18  }
 0x139   : >> { %v1624_v58 = vsel %vm9900_vm12, %v1619_v50, %v1623_v42  ;;  %v1321_v59 = vrot.slane %v1320_v51, 4  ;;  %v1331_v2 = vrot.slane %v1330_v53, 4  ;;  %v1628_v3 = vrot.slane %v1626_v57, 4  ;;  %v9916_v23 = vld [vmem:[#allocation2 + $0x18] sm:$0xf]  ;;  %v9161_v29 = vld [vmem:[%s9895_s16 + $0x68] sm:$0xff]  }
 0x13a   : >> { %v8298_v1 = vcombine.low %v1614_v52, %v1624_v58  ;;  %v1631_v7 = vrot.slane %v1629_v61, 5  ;;  %v1637_v11 = vrot.slane %v1635_v63, 5  ;;  %v1645_v14 = vshll.u32 %v1307_v56, 16  ;;  %9083 = vmatpush3.bf16.msra.mxu1 %v9160_v5  ;;  %v9918_v24 = vld [vmem:[#allocation2 + $0x1c] sm:$0xf]  ;;  %8737 = vmatpush3.bf16.msra.mxu0 %v9160_v5  ;;  %v9162_v48 = vld [vmem:[%s9895_s16 + $0x28] sm:$0xff]  }
 0x13b   : >> { %v1326_v6 = vsel %vm9900_vm12, %v1321_v59, %v1325_v44  ;;  %v1336_v16 = vsel %vm9900_vm12, %v1331_v2, %v1335_v54  ;;  %v8331_v18 = vcombine.low %v1902_v55, %v1903_v60  ;;  %v1641_v19 = vrot.slane %v1639_v4, 4  ;;  %v1295_v25 = vld [vmem:[#allocation2 + $0x14] sm:$0x1]  ;;  %v1905_v36 = vld [vmem:[#allocation2 + $0xb8] sm:$0xf]  ;;  %9076 = vmatprep.subr.bf16.mxu1 %v9161_v29  ;;  %8738 = vmatprep.subr.bf16.mxu0 %v9161_v29  ;;  %v9163_v51 = vld [vmem:[%s9895_s16 + $0x60] sm:$0xff]  }
 0x13c   : >> { %3229 = vrot.lane.b32.xlu0 %v8298_v1, %s9457_s12  ;;  %v8286_v21 = vcombine.low %v1326_v6, %v1336_v16  ;;  %v1632_v22 = vor.u32 %v1631_v7, %v1628_v3  ;;  %v1647_v27 = vrot.slane %v1645_v14, 5  ;;  %v1338_v28 = vshrl.u32 %v1264_v15, 16  ;;  %v1904_v35 = vld [vmem:[#allocation2 + $0xb4] sm:$0xf]  ;;  %v1290_v42 = vld [vmem:[#allocation2 + $0xa8] sm:$0xf] }
 0x13d   : >> { %v1642_v26 = vor.u32 %v1641_v19, %v1637_v11  ;;  %v1341_v31 = vshll.u32 %v1264_v15, 16  ;;  %v1347_v32 = vshll.u32 %v1265_v20, 16  ;;  %v1351_v33 = vshrl.u32 %v1265_v20, 16  ;;  %v1291_v47 = vld [vmem:[#allocation2 + $0xac] sm:$0xf]  ;;  %s8066_s14 = sshll.u32 (%p1258_p11), %s9870_s10, 4  ;;  %s12976_s14 = int_to_ptr.vmem [resolvable:$true] %s8066_s14 }
 0x13e   : >> { %3205 = vrot.lane.b32.xlu1 %v8286_v21, %s9457_s12  ;;  %v1633_v30 = vrot.slane %v1632_v22, 4  ;;  %v8319_v38 = vcombine.low %v9916_v23, %v9918_v24  ;;  %v1340_v39 = vrot.slane %v1338_v28, 4  ;;  %v1357_v41 = vshll.u32 %v1295_v25, 16  ;;  %v1308_v50 = vld [vmem:[#allocation2 + $0xb0] sm:$0x1]  ;;  %9084 = vmatpush3.bf16.msra.mxu1 %v9162_v48  ;;  %s12985_s17 = scalar_lea.sflag (%p1258_p11), [#allocation4], %s257_s9 }
 0x13f   : >> { %v1643_v37 = vrot.slane %v1642_v26, 4  ;;  %v1343_v44 = vrot.slane %v1341_v31, 5  ;;  %v1349_v45 = vrot.slane %v1347_v32, 5  ;;  %v1353_v46 = vrot.slane %v1351_v33, 4  ;;  %v9932_v60 = vld [vmem:[#allocation2 + $0x24] sm:$0xf]  ;;  %8739 = vmatpush3.bf16.msra.mxu0 %v9162_v48  ;;  %9077 = vmatprep.subr.bf16.mxu1 %v9163_v51 }
 0x140   : >> { %3375 = vrot.lane.b32.xlu0 %v8331_v18, %s9457_s12  ;;  %v1638_v43 = vsel %vm9900_vm12, %v1633_v30, %v1637_v11  ;;  %v1359_v55 = vrot.slane %v1357_v41, 5  ;;  %v8332_v56 = vcombine.low %v1904_v35, %v1905_v36  ;;  %v1650_v57 = vshrl.u32 %v1290_v42, 16  ;;  %v9935_v2 = vld [vmem:[#allocation2 + $0x28] sm:$0xf]  ;;  %v1266_v6 = vld [vmem:[#allocation2 + $0x18] sm:$0xf]  ;;  %8740 = vmatprep.subr.bf16.mxu0 %v9163_v51 }
 0x141   : >> { %v1648_v49 = vsel %vm9900_vm12, %v1643_v37, %v1647_v27  ;;  %v1344_v53 = vor.u32 %v1343_v44, %v1340_v39  ;;  %v1354_v54 = vor.u32 %v1353_v46, %v1349_v45  ;;  %v1653_v58 = vshll.u32 %v1290_v42, 16  ;;  %v1267_v15 = vld [vmem:[#allocation2 + $0x1c] sm:$0xf]  ;;  %v1296_v20 = vld [vmem:[#allocation2 + $0x20] sm:$0x1]  ;;  %s9386_s18 = scalar_lea.vmem (%p1258_p11), %s12976_s14, 256 }
 0x142   : >> { %v8299_v52 = vcombine.low %v1638_v43, %v1648_v49  ;;  %v1659_v59 = vshll.u32 %v1291_v47, 16  ;;  %v1663_v0 = vshrl.u32 %v1291_v47, 16  ;;  %v1669_v1 = vshll.u32 %v1308_v50, 16  ;;  %v1906_v30 = vld [vmem:[#allocation2 + $0xc0] sm:$0xf]  ;;  %p9387_p12 = scmp.ne.s32.totalorder (%p1258_p11), %s12976_s14, %s9386_s18 }
 0x143   : >> { %v1345_v61 = vrot.slane %v1344_v53, 4  ;;  %v1355_v63 = vrot.slane %v1354_v54, 4  ;;  %v1652_v3 = vrot.slane %v1650_v57, 4  ;;  %v1655_v4 = vrot.slane %v1653_v58, 5  ;;  %v1907_v36 = vld [vmem:[#allocation2 + $0xc4] sm:$0xf] }
 0x144   : >> { %3351 = vrot.lane.b32.xlu0 %v8319_v38, %s9457_s12  ;;  %3231 = vrot.lane.b32.xlu1 %v8299_v52, %s9457_s12  ;;  %v1661_v5 = vrot.slane %v1659_v59, 5  ;;  %v1665_v14 = vrot.slane %v1663_v0, 4  ;;  %v1671_v19 = vrot.slane %v1669_v1, 5  ;;  %v8320_v22 = vcombine.low %v9932_v60, %v9935_v2  ;;  %v1292_v42 = vld [vmem:[#allocation2 + $0xb4] sm:$0xf]  ;;  %v9164_v43 = vld [vmem:[%s9895_s16 + $0x20] sm:$0xff]   ;;  %p9388_p13 = pnand (%p1258_p11), %p9387_p12, %p9534_p5 }
 0x145   : >> { %v1350_v7 = vsel %vm9900_vm12, %v1345_v61, %v1349_v45  ;;  %v1360_v11 = vsel %vm9900_vm12, %v1355_v63, %v1359_v55  ;;  %v1656_v18 = vor.u32 %v1655_v4, %v1652_v3  ;;  %v1362_v25 = vshrl.u32 %v1266_v6, 16  ;;  %v1293_v48 = vld [vmem:[#allocation2 + $0xb8] sm:$0xf]  ;;  %v1309_v49 = vld [vmem:[#allocation2 + $0xbc] sm:$0x1]  ;;  %9085 = vmatpush3.bf16.msra.mxu1 %v9164_v43  ;;  %8741 = vmatpush3.bf16.msra.mxu0 %v9164_v43 }
 0x146   : >> { %v8287_v16 = vcombine.low %v1350_v7, %v1360_v11  ;;  %v1666_v21 = vor.u32 %v1665_v14, %v1661_v5  ;;  %v1365_v26 = vshll.u32 %v1266_v6, 16  ;;  %v1371_v28 = vshll.u32 %v1267_v15, 16  ;;  %v9165_v54 = vld [vmem:[%s9895_s16 + $0x58] sm:$0xff]   ;;  %v9956_v59 = vld [vmem:[#allocation2 + $0x30] sm:$0xf]  ;;  %p9389_p0 = pneg (%p1258_p11), %p9388_p13 }
 0x147   : >> { %v1657_v27 = vrot.slane %v1656_v18, 4  ;;  %v1375_v29 = vshrl.u32 %v1267_v15, 16  ;;  %v1364_v32 = vrot.slane %v1362_v25, 4  ;;  %v1381_v35 = vshll.u32 %v1296_v20, 16  ;;  %v9960_v3 = vld [vmem:[#allocation2 + $0x34] sm:$0xf]  ;;  %9078 = vmatprep.subr.bf16.mxu1 %v9165_v54  ;;  %8742 = vmatprep.subr.bf16.mxu0 %v9165_v54 }
 0x148   : >> { %3377 = vrot.lane.b32.xlu0 %v8332_v56, %s9457_s12  ;;  %3207 = vrot.lane.b32.xlu1 %v8287_v16, %s9457_s12  ;;  %v1667_v31 = vrot.slane %v1666_v21, 4  ;;  %v1367_v33 = vrot.slane %v1365_v26, 5  ;;  %v1373_v39 = vrot.slane %v1371_v28, 5  ;;  %v2213_v44 = vshrl.u32 %v9877_v8, 16  ;;  %v1268_v11 = vld [vmem:[#allocation2 + $0x24] sm:$0xf] }
 0x149   : >> { %v1662_v38 = vsel %vm9900_vm12, %v1657_v27, %v1661_v5  ;;  %v1377_v41 = vrot.slane %v1375_v29, 4  ;;  %v1383_v52 = vrot.slane %v1381_v35, 5  ;;  %v8333_v53 = vcombine.low %v1906_v30, %v1907_v36  ;;  %v9166_v14 = vld [vmem:[%s9895_s16 + $0x18] sm:$0xff]   ;;  %v1269_v20 = vld [vmem:[#allocation2 + $0x28] sm:$0xf]  ;;  %v9167_v21 = vld [vmem:[%s9895_s16 + $0x50] sm:$0xff]  }
 0x14a   : >> { %v1672_v46 = vsel %vm9900_vm12, %v1667_v31, %v1671_v19  ;;  %v1368_v47 = vor.u32 %v1367_v33, %v1364_v32  ;;  %v1674_v57 = vshrl.u32 %v1292_v42, 16  ;;  %v1677_v58 = vshll.u32 %v1292_v42, 16  ;;  %v1297_v28 = vld [vmem:[#allocation2 + $0x2c] sm:$0x1]  ;;  %9086 = vmatpush3.bf16.msra.mxu1 %v9166_v14  ;;  %8743 = vmatpush3.bf16.msra.mxu0 %v9166_v14  ;;  %v2485_v33 = vld [vmem:[#allocation2 + $0x18] sm:$0xf] }
 0x14b   : >> { %v8300_v50 = vcombine.low %v1662_v38, %v1672_v46  ;;  %v1378_v51 = vor.u32 %v1377_v41, %v1373_v39  ;;  %v1683_v63 = vshll.u32 %v1293_v48, 16  ;;  %v1687_v0 = vshrl.u32 %v1293_v48, 16  ;;  %9079 = vmatprep.subr.bf16.mxu1 %v9167_v21  ;;  %8744 = vmatprep.subr.bf16.mxu0 %v9167_v21  ;;  %v2486_v46 = vld [vmem:[#allocation2 + $0x1c] sm:$0xf]  ;;  %v2527_v4 = vld [vmem:[#allocation2 + $0x98] sm:$0x1] }
 0x14c   : >> { %3353 = vrot.lane.b32.xlu0 %v8320_v22, %s9457_s12  ;;  %v1369_v56 = vrot.slane %v1368_v47, 4  ;;  %v1693_v1 = vshll.u32 %v1309_v49, 16  ;;  %v1676_v6 = vrot.slane %v1674_v57, 4  ;;  %v1679_v7 = vrot.slane %v1677_v58, 5  ;;  %v2308_v57 = vld [vmem:[#allocation2 + $0xc] sm:$0xe] }
 0x14d   : >> { %3233 = vrot.lane.b32.xlu1 %v8300_v50, %s9457_s12  ;;  %v1379_v61 = vrot.slane %v1378_v51, 4  ;;  %vm1761_vm13 = vcmask 1042432   ;;  %v9966_v15 = vrot.slane %v2213_v44, 4  ;;  %v1685_v18 = vrot.slane %v1683_v63, 5  ;;  %v2517_v50 = vld [vmem:[#allocation2 + $0x20] sm:$0x1] }
 0x14e   : >> { %v1374_v5 = vsel %vm9900_vm12, %v1369_v56, %v1373_v39  ;;  %v1689_v19 = vrot.slane %v1687_v0, 4  ;;  %v1949_v22 = vshrl.u32 %v9916_v23, 16  ;;  %v1680_v26 = vor.u32 %v1679_v7, %v1676_v6  ;;  %v9168_v51 = vld [vmem:[%s9895_s16 + $0x10] sm:$0xff]   ;;  %v1918_v62 = vld [vmem:[#allocation2 + $0x8c] sm:$0x1] }
 0x14f   : >> { %13053 = vst [vmem:[#allocation9_spill] sm:$0xff] %v9966_v15  ;;  %v1384_v16 = vsel %vm9900_vm12, %v1379_v61, %v1383_v52  ;;  %v1695_v27 = vrot.slane %v1693_v1, 5  ;;  %v8321_v30 = vcombine.low %v9956_v59, %v9960_v3  ;;  %v1386_v31 = vshrl.u32 %v1268_v11, 16  ;;  %9087 = vmatpush3.bf16.msra.mxu1 %v9168_v51  ;;  %8745 = vmatpush3.bf16.msra.mxu0 %v9168_v51  ;;  %v2487_v51 = vld [vmem:[#allocation2 + $0x24] sm:$0xf] }
 0x150   : >> { %3379 = vrot.lane.b32.xlu0 %v8333_v53, %s9457_s12  ;;  %v8288_v25 = vcombine.low %v1374_v5, %v1384_v16  ;;  %v1690_v29 = vor.u32 %v1689_v19, %v1685_v18  ;;  %v1389_v32 = vshll.u32 %v1268_v11, 16  ;;  %v1952_v35 = vshll.u32 %v9916_v23, 16  ;;  %v1908_v11 = vld [vmem:[#allocation2 + $0x14] sm:$0x1]  ;;  %v2510_v17 = vld [vmem:[#allocation2 + $0xac] sm:$0xf] }
 0x151   : >> { %v1681_v36 = vrot.slane %v1680_v26, 4  ;;  %v1395_v38 = vshll.u32 %v1269_v20, 16  ;;  %v1399_v39 = vshrl.u32 %v1269_v20, 16  ;;  %v1388_v42 = vrot.slane %v1386_v31, 4  ;;  %v2529_v15 = vld [vmem:[#allocation2 + $0xb0] sm:$0x1] }
 0x152   : >> { %3209 = vrot.lane.b32.xlu1 %v8288_v25, %s9457_s12  ;;  %v1691_v41 = vrot.slane %v1690_v29, 4  ;;  %v1391_v43 = vrot.slane %v1389_v32, 5  ;;  %v1405_v44 = vshll.u32 %v1297_v28, 16  ;;  %v2534_v23 = vshrl.u32 %v2485_v33, 16  ;;  %v9993_v28 = vld [vmem:[#allocation2 + $0x40] sm:$0xf] }
 0x153   : >> { %v1686_v47 = vsel %vm9900_vm12, %v1681_v36, %v1685_v18  ;;  %v1397_v48 = vrot.slane %v1395_v38, 5  ;;  %v1401_v49 = vrot.slane %v1399_v39, 4  ;;  %v2537_v56 = vshll.u32 %v2485_v33, 16  ;;  %v1270_v33 = vld [vmem:[#allocation2 + $0x30] sm:$0xf]  ;;  %v9169_v36 = vld [vmem:[%s9895_s16 + $0x48] sm:$0xff]  }
 0x154   : >> { %3355 = vrot.lane.b32.xlu0 %v8321_v30, %s9457_s12  ;;  %v1696_v52 = vsel %vm9900_vm12, %v1691_v41, %v1695_v27  ;;  %v1392_v53 = vor.u32 %v1391_v43, %v1388_v42  ;;  %v1407_v54 = vrot.slane %v1405_v44, 5  ;;  %v2536_v63 = vrot.slane %v2534_v23, 4  ;;  %v9991_v27 = vld [vmem:[#allocation2 + $0x3c] sm:$0xf]  ;;  %v1271_v43 = vld [vmem:[#allocation2 + $0x34] sm:$0xf]  ;;  %9080 = vmatprep.subr.bf16.mxu1 %v9169_v36 }
 0x155   : >> { %v8301_v58 = vcombine.low %v1686_v47, %v1696_v52  ;;  %v1402_v61 = vor.u32 %v1401_v49, %v1397_v48  ;;  %v2543_v0 = vshll.u32 %v2486_v46, 16  ;;  %v2539_v5 = vrot.slane %v2537_v56, 5  ;;  %8746 = vmatprep.subr.bf16.mxu0 %v9169_v36  ;;  %v9170_v52 = vld [vmem:[%s9895_s16 + $0x8] sm:$0xff]  }
 0x156   : >> { %v1393_v1 = vrot.slane %v1392_v53, 4  ;;  %v2547_v6 = vshrl.u32 %v2486_v46, 16  ;;  %v2553_v7 = vshll.u32 %v2517_v50, 16  ;;  %vm1762_vm14 = vcmask 1046532   ;;  %9088 = vmatpush3.bf16.msra.mxu1 %v9170_v52  ;;  %8747 = vmatpush3.bf16.msra.mxu0 %v9170_v52 }
 0x157   : >> { %3235 = vrot.lane.b32.xlu1 %v8301_v58, %s9457_s12  ;;  %v1403_v14 = vrot.slane %v1402_v61, 4  ;;  %v2545_v16 = vrot.slane %v2543_v0, 5  ;;  %v8238_v18 = vrot.slane %v2308_v57, 9  ;;  %v2540_v21 = vor.u32 %v2539_v5, %v2536_v63  ;;  %vm9987_vm15 = vmor %vm1761_vm13, %vm1762_vm14  ;;  %v10014_v58 = vld [vmem:[#allocation2 + $0x28] sm:$0xf]  ;;  %v9171_v61 = vld [vmem:[%s9895_s16 + $0x40] sm:$0xff]  }
 0x158   : >> { %v1398_v20 = vsel %vm9900_vm12, %v1393_v1, %v1397_v48  ;;  %v2549_v25 = vrot.slane %v2547_v6, 4  ;;  %v9995_v29 = vrot.slane %v1949_v22, 4  ;;  %v2374_v31 = vrot.slane %v9885_v13, 5  ;;  %v1298_v48 = vld [vmem:[#allocation2 + $0x38] sm:$0x1]  ;;  %9081 = vmatprep.subr.bf16.mxu1 %v9171_v61  ;;  %8748 = vmatprep.subr.bf16.mxu0 %v9171_v61 }
 0x159   : >> { %v1408_v30 = vsel %vm9900_vm12, %v1403_v14, %v1407_v54  ;;  %v2377_v32 = vrot.slane %v1908_v11, 5  ;;  %v2541_v39 = vrot.slane %v2540_v21, 4  ;;  %v2555_v42 = vrot.slane %v2553_v7, 5  ;;  %v10019_v6 = vld [vmem:[#allocation2 + $0x2c] sm:$0x1] }
 0x15a   : >> { %v8289_v38 = vcombine.low %v1398_v20, %v1408_v30  ;;  %v2550_v41 = vor.u32 %v2549_v25, %v2545_v16  ;;  %v10001_v44 = vrot.slane %v1952_v35, 5  ;;  %v1973_v46 = vshrl.u32 %v9932_v60, 16 }
 0x15b   : >> { %v2375_v22 = vsel %vm9987_vm15, %v8238_v18, %v2374_v31  ;;  %v2376_v47 = vrot.slane %v2374_v31, 4  ;;  %v2546_v49 = vsel %vm9900_vm12, %v2541_v39, %v2545_v16  ;;  %v8322_v35 = vcombine.low %v9991_v27, %v9993_v28  ;;  %v9172_v18 = vld [vmem:[%s9895_s16] sm:$0xff]  }
 0x15c   : >> { %3211 = vrot.lane.b32.xlu1 %v8289_v38, %s9457_s12  ;;  %v2551_v50 = vrot.slane %v2550_v41, 4  ;;  %v1410_v23 = vshrl.u32 %v1270_v33, 16  ;;  %v1413_v54 = vshll.u32 %v1270_v33, 16  ;;  %v1419_v56 = vshll.u32 %v1271_v43, 16  ;;  %v2309_v38 = vld [vmem:[#allocation2 + $0x18] sm:$0xe]  ;;  %9089 = vmatpush3.bf16.msra.mxu1 %v9172_v18 }
 0x15d   : >> { %v2378_v53 = vsel %vm9987_vm15, %v2376_v47, %v2377_v32  ;;  %v1423_v57 = vshrl.u32 %v1271_v43, 16  ;;  %v1429_v5 = vshll.u32 %v1298_v48, 16  ;;  %v2558_v21 = vshrl.u32 %v2487_v51, 16  ;;  %8749 = vmatpush3.bf16.msra.mxu0 %v9172_v18 }
 0x15e   : >> { %v2556_v63 = vsel %vm9900_vm12, %v2551_v50, %v2555_v42  ;;  %v8350_v0 = vcombine.low %v2375_v22, %v2378_v53  ;;  %v1412_v1 = vrot.slane %v1410_v23, 4  ;;  %v1415_v11 = vrot.slane %v1413_v54, 5  ;;  %v1909_v22 = vld [vmem:[#allocation2 + $0x20] sm:$0x1]  ;;  %v9173_v54 = vld [vmem:[%s9895_s16 + $0xf8] sm:$0xff]  }
 0x15f   : >> { %v8382_v7 = vcombine.low %v2546_v49, %v2556_v63  ;;  %v1421_v14 = vrot.slane %v1419_v56, 5  ;;  %v1425_v16 = vrot.slane %v1423_v57, 4  ;;  %v1431_v20 = vrot.slane %v1429_v5, 5  ;;  %8846 = vmatprep.subr.bf16.mxu1 %v9173_v54 }
 0x160   : >> { %3477 = vrot.lane.b32.xlu1 %v8350_v0, %s9457_s12  ;;  %v2561_v25 = vshll.u32 %v2487_v51, 16  ;;  %v2567_v30 = vshll.u32 %v10014_v58, 16  ;;  %v1416_v31 = vor.u32 %v1415_v11, %v1412_v1  ;;  %v2571_v33 = vshrl.u32 %v10014_v58, 16  ;;  %v1272_v0 = vld [vmem:[#allocation2 + $0x3c] sm:$0xf] }
 0x161   : >> { %3621 = vrot.lane.b32.xlu0 %v8382_v7, %s9457_s12  ;;  %v1426_v32 = vor.u32 %v1425_v16, %v1421_v14  ;;  %v2577_v36 = vshll.u32 %v10019_v6, 16  ;;  %v1976_v39 = vshll.u32 %v9932_v60, 16  ;;  %v2560_v41 = vrot.slane %v2558_v21, 4  ;;  %v10038_v16 = vld [vmem:[#allocation2 + $0x48] sm:$0xf] }
 0x162   : >> { %v2563_v42 = vrot.slane %v2561_v25, 5  ;;  %v2569_v43 = vrot.slane %v2567_v30, 5  ;;  %v1997_v47 = vshrl.u32 %v9956_v59, 16  ;;  %v1417_v48 = vrot.slane %v1416_v31, 4  ;;  %v1273_v21 = vld [vmem:[#allocation2 + $0x40] sm:$0xf] }
 0x163   : >> { %v1427_v49 = vrot.slane %v1426_v32, 4  ;;  %v2573_v50 = vrot.slane %v2571_v33, 4  ;;  %v2579_v51 = vrot.slane %v2577_v36, 5  ;;  %v8239_v52 = vrot.slane %v2309_v38, 9  ;;  %v1299_v31 = vld [vmem:[#allocation2 + $0x44] sm:$0x1] }
 0x164   : >> { %v2564_v23 = vor.u32 %v2563_v42, %v2560_v41  ;;  %v2381_v53 = vrot.slane %v9918_v24, 5  ;;  %v1422_v56 = vsel %vm9900_vm12, %v1417_v48, %v1421_v14  ;;  %v2384_v63 = vrot.slane %v1909_v22, 5  ;;  %v10040_v24 = vld [vmem:[#allocation2 + $0x4c] sm:$0xf]  ;;  %v2490_v41 = vld [vmem:[#allocation2 + $0x34] sm:$0xf] }
 0x165   : >> { %3357 = vrot.lane.b32.xlu0 %v8322_v35, %s9457_s12  ;;  %v1432_v57 = vsel %vm9900_vm12, %v1427_v49, %v1431_v20  ;;  %v2574_v61 = vor.u32 %v2573_v50, %v2569_v43  ;;  %v10044_v35 = vrot.slane %v1973_v46, 4  ;;  %v10046_v14 = vrot.slane %v1976_v39, 5  ;;  %v2489_v46 = vld [vmem:[#allocation2 + $0x30] sm:$0xf]  ;;  %v9178_v48 = vld [vmem:[%s9895_s16 + $0x118] sm:$0xff]  }
 0x166   : >> { %v8290_v1 = vcombine.low %v1422_v56, %v1432_v57  ;;  %v2565_v5 = vrot.slane %v2564_v23, 4  ;;  %v2382_v7 = vsel %vm9987_vm15, %v8239_v52, %v2381_v53  ;;  %v2383_v11 = vrot.slane %v2381_v53, 4  ;;  %v2519_v23 = vld [vmem:[#allocation2 + $0x38] sm:$0x1]  ;;  %v2310_v57 = vld [vmem:[#allocation2 + $0x24] sm:$0xe]  ;;  %9030 = vmatprep.subr.bf16.mxu0 %v9178_v48 }
 0x167   : >> { %v10048_v18 = vrot.slane %v1997_v47, 4  ;;  %v2575_v20 = vrot.slane %v2574_v61, 4  ;;  %v1434_v32 = vshrl.u32 %v1272_v0, 16  ;;  %v1437_v60 = vshll.u32 %v1272_v0, 16  ;;  %v10069_v48 = vld [vmem:[#allocation2 + $0x58] sm:$0xf] }
 0x168   : >> { %3213 = vrot.lane.b32.xlu1 %v8290_v1, %s9457_s12  ;;  %v2570_v25 = vsel %vm9900_vm12, %v2565_v5, %v2569_v43  ;;  %v2385_v30 = vsel %vm9987_vm15, %v2383_v11, %v2384_v63  ;;  %v2000_v33 = vshll.u32 %v9956_v59, 16  ;;  %v8323_v39 = vcombine.low %v10038_v16, %v10040_v24  ;;  %v1910_v5 = vld [vmem:[#allocation2 + $0x2c] sm:$0x1] }
 0x169   : >> { %v2580_v36 = vsel %vm9900_vm12, %v2575_v20, %v2579_v51  ;;  %v8351_v38 = vcombine.low %v2382_v7, %v2385_v30  ;;  %v1436_v22 = vrot.slane %v1434_v32, 4  ;;  %v1439_v43 = vrot.slane %v1437_v60, 5 }
 0x16a   : >> { %v8383_v42 = vcombine.low %v2570_v25, %v2580_v36  ;;  %v1443_v47 = vshll.u32 %v1273_v21, 16  ;;  %v1447_v49 = vshrl.u32 %v1273_v21, 16  ;;  %v1453_v50 = vshll.u32 %v1299_v31, 16 }
 0x16b   : >> { %v2582_v52 = vshrl.u32 %v2489_v46, 16  ;;  %v2585_v53 = vshll.u32 %v2489_v46, 16  ;;  %v1440_v59 = vor.u32 %v1439_v43, %v1436_v22  ;;  %v2591_v54 = vshll.u32 %v2490_v41, 16 }
 0x16c   : >> { %3623 = vrot.lane.b32.xlu0 %v8383_v42, %s9457_s12  ;;  %3479 = vrot.lane.b32.xlu1 %v8351_v38, %s9457_s12  ;;  %v1445_v51 = vrot.slane %v1443_v47, 5  ;;  %v2595_v56 = vshrl.u32 %v2490_v41, 16  ;;  %v1449_v61 = vrot.slane %v1447_v49, 4  ;;  %v1455_v63 = vrot.slane %v1453_v50, 5  ;;  %v10065_v38 = vld [vmem:[#allocation2 + $0x54] sm:$0xf] }
 0x16d   : >> { %v2584_v0 = vrot.slane %v2582_v52, 4  ;;  %v2587_v1 = vrot.slane %v2585_v53, 5  ;;  %v1441_v7 = vrot.slane %v1440_v59, 4  ;;  %v2593_v11 = vrot.slane %v2591_v54, 5  ;;  %v1274_v41 = vld [vmem:[#allocation2 + $0x48] sm:$0xf] }
 0x16e   : >> { %v2597_v20 = vrot.slane %v2595_v56, 4  ;;  %v2601_v21 = vshll.u32 %v2519_v23, 16  ;;  %v1450_v25 = vor.u32 %v1449_v61, %v1445_v51  ;;  %v8240_v31 = vrot.slane %v2310_v57, 9  ;;  %v1275_v23 = vld [vmem:[#allocation2 + $0x4c] sm:$0xf] }
 0x16f   : >> { %v2588_v30 = vor.u32 %v2587_v1, %v2584_v0  ;;  %v2388_v32 = vrot.slane %v9935_v2, 5  ;;  %v2391_v36 = vrot.slane %v1910_v5, 5  ;;  %v1446_v42 = vsel %vm9900_vm12, %v1441_v7, %v1445_v51  ;;  %v1300_v51 = vld [vmem:[#allocation2 + $0x50] sm:$0x1]  ;;  %v2492_v1 = vld [vmem:[#allocation2 + $0x40] sm:$0xf] }
 0x170   : >> { %3359 = vrot.lane.b32.xlu0 %v8323_v39, %s9457_s12  ;;  %v2598_v60 = vor.u32 %v2597_v20, %v2593_v11  ;;  %v2603_v46 = vrot.slane %v2601_v21, 5  ;;  %v1451_v22 = vrot.slane %v1450_v25, 4  ;;  %v10071_v49 = vrot.slane %v2000_v33, 5  ;;  %v2491_v33 = vld [vmem:[#allocation2 + $0x3c] sm:$0xf] }
 0x171   : >> { %v2589_v43 = vrot.slane %v2588_v30, 4  ;;  %v2390_v47 = vrot.slane %v2388_v32, 4  ;;  %v2021_v2 = vshrl.u32 %v9991_v27, 16  ;;  %v2389_v39 = vsel %vm9987_vm15, %v8240_v31, %v2388_v32  ;;  %v2520_v20 = vld [vmem:[#allocation2 + $0x44] sm:$0x1] }
 0x172   : >> { %v2599_v50 = vrot.slane %v2598_v60, 4  ;;  %v1456_v52 = vsel %vm9900_vm12, %v1451_v22, %v1455_v63  ;;  %v1458_v54 = vshrl.u32 %v1274_v41, 16  ;;  %v2024_v56 = vshll.u32 %v9991_v27, 16  ;;  %v1911_v27 = vld [vmem:[#allocation2 + $0x38] sm:$0x1] }
 0x173   : >> { %v2594_v53 = vsel %vm9900_vm12, %v2589_v43, %v2593_v11  ;;  %v2392_v59 = vsel %vm9987_vm15, %v2390_v47, %v2391_v36  ;;  %v8291_v57 = vcombine.low %v1446_v42, %v1456_v52  ;;  %v8324_v0 = vcombine.low %v10065_v38, %v10069_v48  ;;  %v2311_v32 = vld [vmem:[#allocation2 + $0x30] sm:$0xe] }
 0x174   : >> { %v2604_v61 = vsel %vm9900_vm12, %v2599_v50, %v2603_v46  ;;  %v8352_v5 = vcombine.low %v2389_v39, %v2392_v59  ;;  %v1460_v7 = vrot.slane %v1458_v54, 4  ;;  %v1461_v11 = vshll.u32 %v1274_v41, 16 }
 0x175   : >> { %v8384_v63 = vcombine.low %v2594_v53, %v2604_v61  ;;  %3215 = vrot.lane.b32.xlu1 %v8291_v57, %s9457_s12  ;;  %v1467_v21 = vshll.u32 %v1275_v23, 16  ;;  %v1471_v25 = vshrl.u32 %v1275_v23, 16  ;;  %v1477_v30 = vshll.u32 %v1300_v51, 16 }
 0x176   : >> { %v2606_v31 = vshrl.u32 %v2491_v33, 16  ;;  %v1463_v60 = vrot.slane %v1461_v11, 5  ;;  %v2609_v46 = vshll.u32 %v2491_v33, 16  ;;  %v2615_v36 = vshll.u32 %v2492_v1, 16  ;;  %v10092_v11 = vld [vmem:[#allocation2 + $0x64] sm:$0xf] }
 0x177   : >> { %3625 = vrot.lane.b32.xlu0 %v8384_v63, %s9457_s12  ;;  %v2619_v42 = vshrl.u32 %v2492_v1, 16  ;;  %v1469_v22 = vrot.slane %v1467_v21, 5  ;;  %v1473_v43 = vrot.slane %v1471_v25, 4  ;;  %v1479_v47 = vrot.slane %v1477_v30, 5  ;;  %v1890_v63 = vld [vmem:[#allocation2 + $0x60] sm:$0xf] }
 0x178   : >> { %v2608_v50 = vrot.slane %v2606_v31, 4  ;;  %v1464_v41 = vor.u32 %v1463_v60, %v1460_v7  ;;  %v2611_v39 = vrot.slane %v2609_v46, 5  ;;  %v2617_v52 = vrot.slane %v2615_v36, 5  ;;  %v1276_v7 = vld [vmem:[#allocation2 + $0x54] sm:$0xf] }
 0x179   : >> { %v2621_v53 = vrot.slane %v2619_v42, 4  ;;  %3481 = vrot.lane.b32.xlu1 %v8352_v5, %s9457_s12  ;;  %v1474_v23 = vor.u32 %v1473_v43, %v1469_v22  ;;  %v2625_v59 = vshll.u32 %v2520_v20, 16  ;;  %v8241_v51 = vrot.slane %v2311_v32, 9  ;;  %v1277_v32 = vld [vmem:[#allocation2 + $0x58] sm:$0xf] }
 0x17a   : >> { %v2395_v54 = vrot.slane %v9960_v3, 5  ;;  %v1465_v33 = vrot.slane %v1464_v41, 4  ;;  %v2612_v57 = vor.u32 %v2611_v39, %v2608_v50  ;;  %v2398_v1 = vrot.slane %v1911_v27, 5  ;;  %v1301_v60 = vld [vmem:[#allocation2 + $0x5c] sm:$0x1] }
 0x17b   : >> { %3361 = vrot.lane.b32.xlu0 %v8324_v0, %s9457_s12  ;;  %v2622_v61 = vor.u32 %v2621_v53, %v2617_v52  ;;  %v10094_v21 = vrot.slane %v2021_v2, 4  ;;  %v1475_v25 = vrot.slane %v1474_v23, 4  ;;  %v2627_v30 = vrot.slane %v2625_v59, 5  ;;  %v2493_v42 = vld [vmem:[#allocation2 + $0x48] sm:$0xf] }
 0x17c   : >> { %v2397_v5 = vrot.slane %v2395_v54, 4  ;;  %v1470_v20 = vsel %vm9900_vm12, %v1465_v33, %v1469_v22  ;;  %v2613_v31 = vrot.slane %v2612_v57, 4  ;;  %v2396_v0 = vsel %vm9987_vm15, %v8241_v51, %v2395_v54 }
 0x17d   : >> { %v2623_v3 = vrot.slane %v2622_v61, 4  ;;  %v10100_v27 = vrot.slane %v2024_v56, 5  ;;  %v1480_v2 = vsel %vm9900_vm12, %v1475_v25, %v1479_v47  ;;  %v2494_v56 = vld [vmem:[#allocation2 + $0x4c] sm:$0xf]  ;;  %v8325_v23 = vcombine.low %v1890_v63, %v10092_v11  ;;  %v2521_v47 = vld [vmem:[#allocation2 + $0x50] sm:$0x1] }
 0x17e   : >> { %v2399_v36 = vsel %vm9987_vm15, %v2397_v5, %v2398_v1  ;;  %v8292_v43 = vcombine.low %v1470_v20, %v1480_v2  ;;  %v2618_v50 = vsel %vm9900_vm12, %v2613_v31, %v2617_v52  ;;  %v1482_v59 = vshrl.u32 %v1276_v7, 16  ;;  %v1912_v63 = vld [vmem:[#allocation2 + $0x44] sm:$0x1] }
 0x17f   : >> { %v2628_v41 = vsel %vm9900_vm12, %v2623_v3, %v2627_v30  ;;  %v8353_v53 = vcombine.low %v2396_v0, %v2399_v36  ;;  %v1485_v51 = vshll.u32 %v1276_v7, 16  ;;  %v1491_v54 = vshll.u32 %v1277_v32, 16  ;;  %v2312_v30 = vld [vmem:[#allocation2 + $0x3c] sm:$0xe] }
 0x180   : >> { %v8385_v39 = vcombine.low %v2618_v50, %v2628_v41  ;;  %3217 = vrot.lane.b32.xlu1 %v8292_v43, %s9457_s12  ;;  %v1495_v33 = vshrl.u32 %v1277_v32, 16  ;;  %v1501_v57 = vshll.u32 %v1301_v60, 16  ;;  %v1484_v61 = vrot.slane %v1482_v59, 4 }
 0x181   : >> { %v2630_v52 = vshrl.u32 %v2493_v42, 16  ;;  %v2633_v1 = vshll.u32 %v2493_v42, 16  ;;  %v2639_v25 = vshll.u32 %v2494_v56, 16  ;;  %v1487_v5 = vrot.slane %v1485_v51, 5  ;;  %v1892_v51 = vld [vmem:[#allocation2 + $0x6c] sm:$0xf] }
 0x182   : >> { %3627 = vrot.lane.b32.xlu0 %v8385_v39, %s9457_s12  ;;  %v1493_v20 = vrot.slane %v1491_v54, 5  ;;  %v1497_v31 = vrot.slane %v1495_v33, 4  ;;  %v1503_v3 = vrot.slane %v1501_v57, 5  ;;  %v2643_v43 = vshrl.u32 %v2494_v56, 16  ;;  %v10118_v54 = vld [vmem:[#allocation2 + $0x70] sm:$0xf] }
 0x183   : >> { %v2632_v0 = vrot.slane %v2630_v52, 4  ;;  %v2635_v2 = vrot.slane %v2633_v1, 5  ;;  %v2641_v36 = vrot.slane %v2639_v25, 5  ;;  %v1488_v7 = vor.u32 %v1487_v5, %v1484_v61  ;;  %v1279_v25 = vld [vmem:[#allocation2 + $0x64] sm:$0xf] }
 0x184   : >> { %3483 = vrot.lane.b32.xlu1 %v8353_v53, %s9457_s12  ;;  %v1498_v32 = vor.u32 %v1497_v31, %v1493_v20  ;;  %v2649_v60 = vshll.u32 %v2521_v47, 16  ;;  %v8242_v50 = vrot.slane %v2312_v30, 9  ;;  %v2645_v41 = vrot.slane %v2643_v43, 4  ;;  %v1302_v5 = vld [vmem:[#allocation2 + $0x68] sm:$0x1] }
 0x185   : >> { %v2636_v42 = vor.u32 %v2635_v2, %v2632_v0  ;;  %v2402_v39 = vrot.slane %v9993_v28, 5  ;;  %v2405_v59 = vrot.slane %v1912_v63, 5  ;;  %v2045_v33 = vshrl.u32 %v10038_v16, 16  ;;  %v2495_v31 = vld [vmem:[#allocation2 + $0x54] sm:$0xf] }
 0x186   : >> { %3363 = vrot.lane.b32.xlu0 %v8325_v23, %s9457_s12  ;;  %v1489_v57 = vrot.slane %v1488_v7, 4  ;;  %v1499_v56 = vrot.slane %v1498_v32, 4  ;;  %v2651_v52 = vrot.slane %v2649_v60, 5  ;;  %v2646_v61 = vor.u32 %v2645_v41, %v2641_v36  ;;  %v1278_v23 = vld [vmem:[#allocation2 + $0x60] sm:$0xf] }
 0x187   : >> { %v2637_v53 = vrot.slane %v2636_v42, 4  ;;  %v2403_v47 = vsel %vm9987_vm15, %v8242_v50, %v2402_v39  ;;  %v2404_v1 = vrot.slane %v2402_v39, 4  ;;  %v2496_v7 = vld [vmem:[#allocation2 + $0x58] sm:$0xf]  ;;  %v2048_v32 = vshll.u32 %v10038_v16, 16 }
 0x188   : >> { %v1494_v28 = vsel %vm9900_vm12, %v1489_v57, %v1493_v20  ;;  %v1504_v30 = vsel %vm9900_vm12, %v1499_v56, %v1503_v3  ;;  %v2647_v2 = vrot.slane %v2646_v61, 4  ;;  %v8326_v50 = vcombine.low %v1892_v51, %v10118_v54  ;;  %v2522_v42 = vld [vmem:[#allocation2 + $0x5c] sm:$0x1]  ;;  %v2313_v57 = vld [vmem:[#allocation2 + $0x48] sm:$0xe] }
 0x189   : >> { %v8293_v63 = vcombine.low %v1494_v28, %v1504_v30  ;;  %v2642_v0 = vsel %vm9900_vm12, %v2637_v53, %v2641_v36  ;;  %v2406_v43 = vsel %vm9987_vm15, %v2404_v1, %v2405_v59  ;;  %v1506_v20 = vshrl.u32 %v1278_v23, 16 }
 0x18a   : >> { %v8354_v60 = vcombine.low %v2403_v47, %v2406_v43  ;;  %v2652_v3 = vsel %vm9900_vm12, %v2647_v2, %v2651_v52  ;;  %v1509_v41 = vshll.u32 %v1278_v23, 16  ;;  %v1515_v39 = vshll.u32 %v1279_v25, 16 }
 0x18b   : >> { %3219 = vrot.lane.b32.xlu1 %v8293_v63, %s9457_s12  ;;  %v1519_v36 = vshrl.u32 %v1279_v25, 16  ;;  %v8386_v56 = vcombine.low %v2642_v0, %v2652_v3  ;;  %v1508_v53 = vrot.slane %v1506_v20, 4  ;;  %v1525_v59 = vshll.u32 %v1302_v5, 16  ;;  %v1913_v0 = vld [vmem:[#allocation2 + $0x50] sm:$0x1] }
 0x18c   : >> { %v2654_v61 = vshrl.u32 %v2495_v31, 16  ;;  %v1511_v1 = vrot.slane %v1509_v41, 5  ;;  %v1517_v28 = vrot.slane %v1515_v39, 5  ;;  %v2657_v30 = vshll.u32 %v2495_v31, 16 }
 0x18d   : >> { %v1521_v47 = vrot.slane %v1519_v36, 4  ;;  %3629 = vrot.lane.b32.xlu0 %v8386_v56, %s9457_s12  ;;  %v1527_v51 = vrot.slane %v1525_v59, 5  ;;  %v2663_v63 = vshll.u32 %v2496_v7, 16  ;;  %v2667_v34 = vshrl.u32 %v2496_v7, 16  ;;  %v1894_v59 = vld [vmem:[#allocation2 + $0x78] sm:$0xf] }
 0x18e   : >> { %v2656_v43 = vrot.slane %v2654_v61, 4  ;;  %v1512_v52 = vor.u32 %v1511_v1, %v1508_v53  ;;  %v2659_v25 = vrot.slane %v2657_v30, 5  ;;  %v2673_v2 = vshll.u32 %v2522_v42, 16  ;;  %v10139_v61 = vld [vmem:[#allocation2 + $0x7c] sm:$0xf] }
 0x18f   : >> { %3485 = vrot.lane.b32.xlu1 %v8354_v60, %s9457_s12  ;;  %v1522_v23 = vor.u32 %v1521_v47, %v1517_v28  ;;  %v2665_v20 = vrot.slane %v2663_v63, 5  ;;  %v2669_v5 = vrot.slane %v2667_v34, 4  ;;  %v8243_v3 = vrot.slane %v2313_v57, 9  ;;  %v1280_v7 = vld [vmem:[#allocation2 + $0x6c] sm:$0xf] }
 0x190   : >> { %v2409_v41 = vrot.slane %v10040_v24, 5  ;;  %v1513_v39 = vrot.slane %v1512_v52, 4  ;;  %v2660_v36 = vor.u32 %v2659_v25, %v2656_v43  ;;  %v2675_v56 = vrot.slane %v2673_v2, 5  ;;  %v1281_v34 = vld [vmem:[#allocation2 + $0x70] sm:$0xf] }
 0x191   : >> { %v1523_v31 = vrot.slane %v1522_v23, 4  ;;  %3365 = vrot.lane.b32.xlu0 %v8326_v50, %s9457_s12  ;;  %v2670_v60 = vor.u32 %v2669_v5, %v2665_v20  ;;  %v2412_v1 = vrot.slane %v1913_v0, 5  ;;  %v10146_v24 = vrot.slane %v2045_v33, 4  ;;  %v1303_v43 = vld [vmem:[#allocation2 + $0x74] sm:$0x1] }
 0x192   : >> { %v2410_v42 = vsel %vm9987_vm15, %v8243_v3, %v2409_v41  ;;  %v2411_v53 = vrot.slane %v2409_v41, 4  ;;  %v1518_v57 = vsel %vm9900_vm12, %v1513_v39, %v1517_v28  ;;  %v2661_v30 = vrot.slane %v2660_v36, 4  ;;  %v2497_v50 = vld [vmem:[#allocation2 + $0x60] sm:$0xf]  ;;  %v2498_v2 = vld [vmem:[#allocation2 + $0x64] sm:$0xf] }
 0x193   : >> { %v1528_v47 = vsel %vm9900_vm12, %v1523_v31, %v1527_v51  ;;  %v10152_v63 = vrot.slane %v2048_v32, 5  ;;  %v2671_v23 = vrot.slane %v2670_v60, 4  ;;  %v8327_v51 = vcombine.low %v1894_v59, %v10139_v61  ;;  %v2523_v5 = vld [vmem:[#allocation2 + $0x68] sm:$0x1] }
 0x194   : >> { %v8294_v52 = vcombine.low %v1518_v57, %v1528_v47  ;;  %v2413_v25 = vsel %vm9987_vm15, %v2411_v53, %v2412_v1  ;;  %v2666_v16 = vsel %vm9900_vm12, %v2661_v30, %v2665_v20  ;;  %v1530_v0 = vshrl.u32 %v1280_v7, 16 }
 0x195   : >> { %v8355_v33 = vcombine.low %v2410_v42, %v2413_v25  ;;  %v2676_v28 = vsel %vm9900_vm12, %v2671_v23, %v2675_v56  ;;  %v1533_v32 = vshll.u32 %v1280_v7, 16  ;;  %v1539_v41 = vshll.u32 %v1281_v34, 16  ;;  %v2314_v42 = vld [vmem:[#allocation2 + $0x54] sm:$0xe]  ;;  %v1914_v23 = vld [vmem:[#allocation2 + $0x5c] sm:$0x1] }
 0x196   : >> { %3221 = vrot.lane.b32.xlu1 %v8294_v52, %s9457_s12  ;;  %v8387_v3 = vcombine.low %v2666_v16, %v2676_v28  ;;  %v1543_v39 = vshrl.u32 %v1281_v34, 16  ;;  %v1549_v31 = vshll.u32 %v1303_v43, 16  ;;  %v1532_v36 = vrot.slane %v1530_v0, 4 }
 0x197   : >> { %v1535_v60 = vrot.slane %v1533_v32, 5  ;;  %v2678_v53 = vshrl.u32 %v2497_v50, 16  ;;  %v2681_v20 = vshll.u32 %v2497_v50, 16  ;;  %v1541_v1 = vrot.slane %v1539_v41, 5 }
 0x198   : >> { %3631 = vrot.lane.b32.xlu0 %v8387_v3, %s9457_s12  ;;  %v1545_v57 = vrot.slane %v1543_v39, 4  ;;  %v1551_v47 = vrot.slane %v1549_v31, 5  ;;  %v2687_v56 = vshll.u32 %v2498_v2, 16  ;;  %v2691_v52 = vshrl.u32 %v2498_v2, 16  ;;  %v10165_v3 = vld [vmem:[#allocation2 + $0x84] sm:$0xf] }
 0x199   : >> { %v1536_v59 = vor.u32 %v1535_v60, %v1532_v36  ;;  %v2680_v7 = vrot.slane %v2678_v53, 4  ;;  %v2683_v30 = vrot.slane %v2681_v20, 5  ;;  %v2697_v25 = vshll.u32 %v2523_v5, 16  ;;  %v10168_v39 = vld [vmem:[#allocation2 + $0x88] sm:$0xf] }
 0x19a   : >> { %3487 = vrot.lane.b32.xlu1 %v8355_v33, %s9457_s12  ;;  %v1546_v34 = vor.u32 %v1545_v57, %v1541_v1  ;;  %v2689_v43 = vrot.slane %v2687_v56, 5  ;;  %v8244_v16 = vrot.slane %v2314_v42, 9  ;;  %v2693_v0 = vrot.slane %v2691_v52, 4  ;;  %v1282_v31 = vld [vmem:[#allocation2 + $0x78] sm:$0xf] }
 0x19b   : >> { %v1537_v28 = vrot.slane %v1536_v59, 4  ;;  %v2684_v50 = vor.u32 %v2683_v30, %v2680_v7  ;;  %v2416_v32 = vrot.slane %v10069_v48, 5  ;;  %v2419_v33 = vrot.slane %v1914_v23, 5  ;;  %v1283_v53 = vld [vmem:[#allocation2 + $0x7c] sm:$0xf] }
 0x19c   : >> { %3367 = vrot.lane.b32.xlu0 %v8327_v51, %s9457_s12  ;;  %v1547_v41 = vrot.slane %v1546_v34, 4  ;;  %v2694_v5 = vor.u32 %v2693_v0, %v2689_v43  ;;  %v2699_v60 = vrot.slane %v2697_v25, 5  ;;  %v1304_v20 = vld [vmem:[#allocation2 + $0x80] sm:$0x1]  ;;  %v2069_v42 = vshrl.u32 %v10065_v38, 16 }
 0x19d   : >> { %v1542_v2 = vsel %vm9900_vm12, %v1537_v28, %v1541_v1  ;;  %v2685_v36 = vrot.slane %v2684_v50, 4  ;;  %v2417_v51 = vsel %vm9987_vm15, %v8244_v16, %v2416_v32  ;;  %v2418_v57 = vrot.slane %v2416_v32, 4  ;;  %v2499_v56 = vld [vmem:[#allocation2 + $0x6c] sm:$0xf]  ;;  %v2500_v52 = vld [vmem:[#allocation2 + $0x70] sm:$0xf] }
 0x19e   : >> { %v1552_v48 = vsel %vm9900_vm12, %v1547_v41, %v1551_v47  ;;  %v2072_v59 = vshll.u32 %v10065_v38, 16  ;;  %v2695_v30 = vrot.slane %v2694_v5, 4  ;;  %v8328_v34 = vcombine.low %v10165_v3, %v10168_v39  ;;  %v2524_v28 = vld [vmem:[#allocation2 + $0x74] sm:$0x1] }
 0x19f   : >> { %v8295_v7 = vcombine.low %v1542_v2, %v1552_v48  ;;  %v2690_v1 = vsel %vm9900_vm12, %v2685_v36, %v2689_v43  ;;  %v2420_v23 = vsel %vm9987_vm15, %v2418_v57, %v2419_v33  ;;  %v1554_v47 = vshrl.u32 %v1282_v31, 16 }
 0x1a0   : >> { %v1557_v25 = vshll.u32 %v1282_v31, 16  ;;  %v2700_v16 = vsel %vm9900_vm12, %v2695_v30, %v2699_v60  ;;  %v8356_v50 = vcombine.low %v2417_v51, %v2420_v23  ;;  %v1563_v0 = vshll.u32 %v1283_v53, 16  ;;  %v2315_v31 = vld [vmem:[#allocation2 + $0x60] sm:$0xe] }
 0x1a1   : >> { %3223 = vrot.lane.b32.xlu1 %v8295_v7, %s9457_s12  ;;  %v1567_v32 = vshrl.u32 %v1283_v53, 16  ;;  %v8388_v43 = vcombine.low %v2690_v1, %v2700_v16  ;;  %v1556_v41 = vrot.slane %v1554_v47, 4  ;;  %v1573_v36 = vshll.u32 %v1304_v20, 16  ;;  %v1915_v20 = vld [vmem:[#allocation2 + $0x68] sm:$0x1] }
 0x1a2   : >> { %v1559_v2 = vrot.slane %v1557_v25, 5  ;;  %v10187_v5 = vpop.permute.xlu0 %3373  ;;  %v1565_v33 = vrot.slane %v1563_v0, 5  ;;  %v2702_v3 = vshrl.u32 %v2499_v56, 16  ;;  %v2705_v57 = vshll.u32 %v2499_v56, 16 }
 0x1a3   : >> { %v1569_v48 = vrot.slane %v1567_v32, 4  ;;  %3633 = vrot.lane.b32.xlu0 %v8388_v43, %s9457_s12  ;;  %v1575_v37 = vrot.slane %v1573_v36, 5  ;;  %v2711_v45 = vshll.u32 %v2500_v52, 16  ;;  %v2715_v60 = vshrl.u32 %v2500_v52, 16  ;;  %v10191_v23 = vpop.permute.xlu1 %3349  ;;  %v10196_v52 = vld [vmem:[#allocation2 + $0x94] sm:$0xf] }
 0x1a4   : >> { %v1560_v7 = vor.u32 %v1559_v2, %v1556_v41  ;;  %v2704_v51 = vrot.slane %v2702_v3, 4  ;;  %v2707_v1 = vrot.slane %v2705_v57, 5  ;;  %v2721_v30 = vshll.u32 %v2524_v28, 16  ;;  %v10194_v41 = vld [vmem:[#allocation2 + $0x90] sm:$0xf] }
 0x1a5   : >> { %3489 = vrot.lane.b32.xlu1 %v8356_v50, %s9457_s12  ;;  %v1570_v53 = vor.u32 %v1569_v48, %v1565_v33  ;;  %v2713_v25 = vrot.slane %v2711_v45, 5  ;;  %v2717_v16 = vrot.slane %v2715_v60, 4  ;;  %v8245_v56 = vrot.slane %v2315_v31, 9  ;;  %v1284_v50 = vld [vmem:[#allocation2 + $0x84] sm:$0xf] }
 0x1a6   : >> { %v1561_v47 = vrot.slane %v1560_v7, 4  ;;  %v2708_v32 = vor.u32 %v2707_v1, %v2704_v51  ;;  %v2423_v43 = vrot.slane %v10092_v11, 5  ;;  %v2723_v36 = vrot.slane %v2721_v30, 5  ;;  %v1285_v7 = vld [vmem:[#allocation2 + $0x88] sm:$0xf] }
 0x1a7   : >> { %v1571_v0 = vrot.slane %v1570_v53, 4  ;;  %3369 = vrot.lane.b32.xlu0 %v8328_v34, %s9457_s12  ;;  %v2718_v2 = vor.u32 %v2717_v16, %v2713_v25  ;;  %v2426_v48 = vrot.slane %v1915_v20, 5  ;;  %v1305_v60 = vld [vmem:[#allocation2 + $0x8c] sm:$0x1]  ;;  %v10209_v34 = vrot.slane %v2069_v42, 4 }
 0x1a8   : >> { %v1566_v28 = vsel %vm9900_vm12, %v1561_v47, %v1565_v33  ;;  %v2709_v57 = vrot.slane %v2708_v32, 4  ;;  %v2424_v11 = vsel %vm9987_vm15, %v8245_v56, %v2423_v43  ;;  %v2425_v31 = vrot.slane %v2423_v43, 4  ;;  %v2501_v51 = vld [vmem:[#allocation2 + $0x78] sm:$0xf]  ;;  %v2502_v47 = vld [vmem:[#allocation2 + $0x7c] sm:$0xf] }
 0x1a9   : >> { %v1576_v3 = vsel %vm9900_vm12, %v1571_v0, %v1575_v37  ;;  %v2719_v53 = vrot.slane %v2718_v2, 4  ;;  %v10211_v1 = vrot.slane %v2072_v59, 5  ;;  %v1578_v20 = vshrl.u32 %v1284_v50, 16  ;;  %v2525_v0 = vld [vmem:[#allocation2 + $0x80] sm:$0x1] }
 0x1aa   : >> { %v8296_v33 = vcombine.low %v1566_v28, %v1576_v3  ;;  %v2714_v30 = vsel %vm9900_vm12, %v2709_v57, %v2713_v25  ;;  %v2427_v37 = vsel %vm9987_vm15, %v2425_v31, %v2426_v48  ;;  %v8329_v59 = vcombine.low %v10194_v41, %v10196_v52  ;;  %v2316_v2 = vld [vmem:[#allocation2 + $0x6c] sm:$0xe] }
 0x1ab   : >> { %v2724_v38 = vsel %vm9900_vm12, %v2719_v53, %v2723_v36  ;;  %v8357_v42 = vcombine.low %v2424_v11, %v2427_v37  ;;  %v1581_v56 = vshll.u32 %v1284_v50, 16  ;;  %v1580_v25 = vrot.slane %v1578_v20, 4 }
 0x1ac   : >> { %3225 = vrot.lane.b32.xlu1 %v8296_v33, %s9457_s12  ;;  %v8389_v32 = vcombine.low %v2714_v30, %v2724_v38  ;;  %v1587_v43 = vshll.u32 %v1285_v7, 16  ;;  %v1591_v28 = vshrl.u32 %v1285_v7, 16  ;;  %v1597_v57 = vshll.u32 %v1305_v60, 16  ;;  %v1916_v7 = vld [vmem:[#allocation2 + $0x74] sm:$0x1] }
 0x1ad   : >> { %v1583_v3 = vrot.slane %v1581_v56, 5  ;;  %v2726_v31 = vshrl.u32 %v2501_v51, 16  ;;  %v2729_v33 = vshll.u32 %v2501_v51, 16  ;;  %v2735_v53 = vshll.u32 %v2502_v47, 16  ;;  %v2503_v60 = vld [vmem:[#allocation2 + $0x84] sm:$0xf] }
 0x1ae   : >> { %v10201_v45 = vpop.permute.xlu0 %3229  ;;  %3635 = vrot.lane.b32.xlu0 %v8389_v32, %s9457_s12  ;;  %v1589_v36 = vrot.slane %v1587_v43, 5  ;;  %v1593_v11 = vrot.slane %v1591_v28, 4  ;;  %v2739_v37 = vshrl.u32 %v2502_v47, 16  ;;  %v1599_v50 = vrot.slane %v1597_v57, 5  ;;  %v2504_v47 = vld [vmem:[#allocation2 + $0x88] sm:$0xf] }
 0x1af   : >> { %v1584_v41 = vor.u32 %v1583_v3, %v1580_v25  ;;  %v2728_v30 = vrot.slane %v2726_v31, 4  ;;  %v2731_v20 = vrot.slane %v2729_v33, 5  ;;  %v2737_v22 = vrot.slane %v2735_v53, 5  ;;  %v2526_v31 = vld [vmem:[#allocation2 + $0x8c] sm:$0x1] }
 0x1b0   : >> { %v10217_v16 = vpop.permute.xlu1 %3205  ;;  %3491 = vrot.lane.b32.xlu1 %v8357_v42, %s9457_s12  ;;  %v1594_v38 = vor.u32 %v1593_v11, %v1589_v36  ;;  %v2741_v46 = vrot.slane %v2739_v37, 4  ;;  %v2745_v56 = vshll.u32 %v2525_v0, 16  ;;  %v8246_v43 = vrot.slane %v2316_v2, 9  ;;  %v1917_v37 = vld [vmem:[#allocation2 + $0x80] sm:$0x1] }
 0x1b1   : >> { %v1585_v51 = vrot.slane %v1584_v41, 4  ;;  %v2732_v32 = vor.u32 %v2731_v20, %v2728_v30  ;;  %v2430_v28 = vrot.slane %v10118_v54, 5  ;;  %v2433_v57 = vrot.slane %v1916_v7, 5  ;;  %v2317_v54 = vld [vmem:[#allocation2 + $0x78] sm:$0xe] }
 0x1b2   : >> { %v10224_v48 = vpop.permute.xlu0 %3375  ;;  %3371 = vrot.lane.b32.xlu0 %v8329_v59, %s9457_s12  ;;  %v1595_v42 = vrot.slane %v1594_v38, 4  ;;  %v2742_v25 = vor.u32 %v2741_v46, %v2737_v22  ;;  %v2747_v3 = vrot.slane %v2745_v56, 5  ;;  %v2750_v46 = vshrl.u32 %v2503_v60, 16  ;;  %v2505_v20 = vld [vmem:[#allocation2 + $0x90] sm:$0xf] }
 0x1b3   : >> { %v1590_v0 = vsel %vm9900_vm12, %v1585_v51, %v1589_v36  ;;  %v2733_v11 = vrot.slane %v2732_v32, 4  ;;  %v2431_v53 = vsel %vm9987_vm15, %v8246_v43, %v2430_v28  ;;  %v2432_v2 = vrot.slane %v2430_v28, 4 }
 0x1b4   : >> { %v1600_v59 = vsel %vm9900_vm12, %v1595_v42, %v1599_v50  ;;  %v2743_v41 = vrot.slane %v2742_v25, 4  ;;  %v2753_v30 = vshll.u32 %v2503_v60, 16  ;;  %v2759_v56 = vshll.u32 %v2504_v47, 16  ;;  %v2506_v42 = vld [vmem:[#allocation2 + $0x94] sm:$0xf] }
 0x1b5   : >> { %v8297_v7 = vcombine.low %v1590_v0, %v1600_v59  ;;  %v2738_v38 = vsel %vm9900_vm12, %v2733_v11, %v2737_v22  ;;  %v2434_v36 = vsel %vm9987_vm15, %v2432_v2, %v2433_v57  ;;  %v2752_v28 = vrot.slane %v2750_v46, 4 }
 0x1b6   : >> { %v10228_v19 = vpop.permute.xlu1 %3231  ;;  %v10232_v33 = vpop.permute.xlu0 %3351  ;;  %v2748_v32 = vsel %vm9900_vm12, %v2743_v41, %v2747_v3  ;;  %v8358_v43 = vcombine.low %v2431_v53, %v2434_v36  ;;  %v2755_v50 = vrot.slane %v2753_v30, 5  ;;  %v2761_v25 = vrot.slane %v2759_v56, 5  ;;  %v1709_v36 = vld [vmem:[#allocation2 + $0x90] sm:$0xe] }
 0x1b7   : >> { %3227 = vrot.lane.b32.xlu1 %v8297_v7, %s9457_s12  ;;  %v8390_v60 = vcombine.low %v2738_v38, %v2748_v32  ;;  %v2763_v0 = vshrl.u32 %v2504_v47, 16  ;;  %v2769_v59 = vshll.u32 %v2526_v31, 16  ;;  %v8247_v11 = vrot.slane %v2317_v54, 9 }
 0x1b8   : >> { %v2756_v22 = vor.u32 %v2755_v50, %v2752_v28  ;;  %v2437_v57 = vrot.slane %v10139_v61, 5  ;;  %v2440_v2 = vrot.slane %v1917_v37, 5  ;;  %v2774_v41 = vshrl.u32 %v2505_v20, 16 }
 0x1b9   : >> { %3637 = vrot.lane.b32.xlu0 %v8390_v60, %s9457_s12  ;;  %v2765_v3 = vrot.slane %v2763_v0, 4  ;;  %v2771_v53 = vrot.slane %v2769_v59, 5  ;;  %v2777_v46 = vshll.u32 %v2505_v20, 16  ;;  %v2783_v31 = vshll.u32 %v2506_v42, 16  ;;  %v2318_v60 = vld [vmem:[#allocation2 + $0x84] sm:$0xe] }
 0x1ba   : >> { %v10244_v51 = vpop.permute.xlu1 %3207  ;;  %v10250_v55 = vpop.permute.xlu0 %3377  ;;  %v2757_v30 = vrot.slane %v2756_v22, 4  ;;  %v2438_v7 = vsel %vm9987_vm15, %v8247_v11, %v2437_v57  ;;  %v2439_v47 = vrot.slane %v2437_v57, 4  ;;  %v2776_v61 = vrot.slane %v2774_v41, 4  ;;  %v9226_v41 = vld [vmem:[#allocation2 + $0x98] sm:$0x1] }
 0x1bb   : >> { %3493 = vrot.lane.b32.xlu1 %v8358_v43, %s9457_s12  ;;  %v2766_v54 = vor.u32 %v2765_v3, %v2761_v25  ;;  %v2779_v37 = vrot.slane %v2777_v46, 5  ;;  %v2787_v38 = vshrl.u32 %v2506_v42, 16  ;;  %v2785_v28 = vrot.slane %v2783_v31, 5  ;;  %v9225_v3 = vld [vmem:[#allocation2 + $0x94] sm:$0xf] }
 0x1bc   : >> { %v2762_v32 = vsel %vm9900_vm12, %v2757_v30, %v2761_v25  ;;  %v2441_v20 = vsel %vm9987_vm15, %v2439_v47, %v2440_v2  ;;  %v2793_v50 = vshll.u32 %v2527_v4, 16  ;;  %v8234_v57 = vrot.slane %v1709_v36, 9  ;;  %v1697_v30 = vld [vmem:[#allocation2] sm:$0xe] }
 0x1bd   : >> { %v2767_v0 = vrot.slane %v2766_v54, 4  ;;  %v8359_v59 = vcombine.low %v2438_v7, %v2441_v20  ;;  %v2780_v22 = vor.u32 %v2779_v37, %v2776_v61  ;;  %v2789_v43 = vrot.slane %v2787_v38, 4  ;;  %v2507_v61 = vld [vmem:[#allocation2 + $0x9c] sm:$0xf] }
 0x1be   : >> { %v2795_v11 = vrot.slane %v2793_v50, 5  ;;  %v1850_v42 = vrot.slane %v9225_v3, 5  ;;  %v1853_v46 = vrot.slane %v9226_v41, 5  ;;  %v10262_v10 = vpop.permute.xlu0 %3353  ;;  %vm3701_vm0 = vcmask 523264  }
 0x1bf   : >> { %v10256_v56 = vpop.permute.xlu1 %3233  ;;  %v2772_v25 = vsel %vm9900_vm12, %v2767_v0, %v2771_v53  ;;  %3495 = vrot.lane.b32.xlu1 %v8359_v59, %s9457_s12  ;;  %v2781_v4 = vrot.slane %v2780_v22, 4  ;;  %v2790_v2 = vor.u32 %v2789_v43, %v2785_v28  ;;  %v8248_v54 = vrot.slane %v2318_v60, 9  ;;  %v9227_v0 = vld [vmem:[#allocation2 + $0x4] sm:$0xf]  ;;  %v9228_v22 = vld [vmem:[#allocation2 + $0x8] sm:$0x1] }
 0x1c0   : >> { %v8391_v7 = vcombine.low %v2762_v32, %v2772_v25  ;;  %v1851_v47 = vsel %vm9987_vm15, %v8234_v57, %v1850_v42  ;;  %v1852_v31 = vrot.slane %v1850_v42, 4  ;;  %v2444_v36 = vrot.slane %v10168_v39, 5  ;;  %v2508_v43 = vld [vmem:[#allocation2 + $0xa0] sm:$0xf]  ;;  %v2528_v42 = vld [vmem:[#allocation2 + $0xa4] sm:$0x1] }
 0x1c1   : >> { %v2786_v37 = vsel %vm9900_vm12, %v2781_v4, %v2785_v28  ;;  %v2791_v38 = vrot.slane %v2790_v2, 4  ;;  %v2447_v53 = vrot.slane %v1918_v62, 5  ;;  %v8222_v50 = vrot.slane %v1697_v30, 9  ;;  %v9229_v4 = vld [vmem:[#allocation2] sm:$0xf] }
 0x1c2   : >> { %3639 = vrot.lane.b32.xlu0 %v8391_v7, %s9457_s12  ;;  %v1854_v32 = vsel %vm9987_vm15, %v1852_v31, %v1853_v46  ;;  %v1766_v59 = vrot.slane %v9227_v0, 5  ;;  %v1769_v60 = vrot.slane %v9228_v22, 5  ;;  %v2445_v62 = vsel %vm9987_vm15, %v8248_v54, %v2444_v36  ;;  %v1919_v30 = vld [vmem:[#allocation2 + $0x98] sm:$0x1]  ;;  %v10283_v7 = vpop.permute.xlu0 %3379  ;;  %v9230_v31 = vld [vmem:[#allocation2 + $0x90] sm:$0xf] }
 0x1c3   : >> { %v2796_v28 = vsel %vm9900_vm12, %v2791_v38, %v2795_v11  ;;  %v8314_v57 = vcombine.low %v1851_v47, %v1854_v32  ;;  %v2446_v39 = vrot.slane %v2444_v36, 4  ;;  %v8270_v2 = vcombine.low %v9229_v4, %v9227_v0  ;;  %v9176_v38 = vld [vmem:[%s9895_s16 + $0xb8] sm:$0xff]   ;;  %v2319_v36 = vld [vmem:[#allocation2 + $0x90] sm:$0xe] }
 0x1c4   : >> { %v10272_v20 = vpop.permute.xlu1 %3209  ;;  %v8392_v41 = vcombine.low %v2786_v37, %v2796_v28  ;;  %v1767_v46 = vsel %vm9987_vm15, %v8222_v50, %v1766_v59  ;;  %v1768_v25 = vrot.slane %v1766_v59, 4  ;;  %v8282_v54 = vcombine.low %v9230_v31, %v9225_v3  ;;  %v1710_v32 = vld [vmem:[#allocation2 + $0x9c] sm:$0xe]  ;;  %v9177_v22 = vld [vmem:[%s9895_s16 + $0xf0] sm:$0xff]  }
 0x1c5   : >> { %v3816_v11 = vsel %vm3701_vm0, %v8314_v57, %v10187_v5  ;;  %v2448_v47 = vsel %vm9987_vm15, %v2446_v39, %v2447_v53  ;;  %v2798_v37 = vshrl.u32 %v2507_v61, 16  ;;  %v3704_v5 = vsel %vm3701_vm0, %v8270_v2, %v10217_v16  ;;  %v9179_v16 = vld [vmem:[%s9895_s16 + $0xb0] sm:$0xff]   ;;  %v1698_v2 = vld [vmem:[#allocation2 + $0xc] sm:$0xe] }
 0x1c6   : >> { %3641 = vrot.lane.b32.xlu0 %v8392_v41, %s9457_s12  ;;  %4431 = vmatprep.mubr.bf16.mxu1 %v3816_v11  ;;  %v8360_v50 = vcombine.low %v2445_v62, %v2448_v47  ;;  %v1770_v0 = vsel %vm9987_vm15, %v1768_v25, %v1769_v60  ;;  %v2801_v59 = vshll.u32 %v2507_v61, 16  ;;  %v3752_v3 = vsel %vm3701_vm0, %v8282_v54, %v10201_v45  ;;  %v9197_v11 = vld [vmem:[%s9895_s16 + $0x110] sm:$0xff]   ;;  %v9180_v54 = vld [vmem:[%s9895_s16 + $0xe8] sm:$0xff]  }
 0x1c7   : >> { %v8302_v53 = vcombine.low %v1767_v46, %v1770_v0  ;;  %v2800_v28 = vrot.slane %v2798_v37, 4  ;;  %v2807_v57 = vshll.u32 %v2508_v43, 16  ;;  %4432 = vmatmul.mubr.bf16.vlgmr.msra.gmra.mxu1 %v3752_v3  ;;  %v2811_v41 = vshrl.u32 %v2508_v43, 16  ;;  %v10309_v37 = vpop.permute.xlu0 %3355 }
 0x1c8   : >> { %3497 = vrot.lane.b32.xlu1 %v8360_v50, %s9457_s12  ;;  %v2803_v62 = vrot.slane %v2801_v59, 5  ;;  %v2817_v60 = vshll.u32 %v2528_v42, 16  ;;  %v8249_v25 = vrot.slane %v2319_v36, 9  ;;  %8847 = vmatpush3.bf16.msra.mxu1 %v9176_v38  ;;  %v2451_v45 = vrot.slane %v10196_v52, 5  ;;  %v9231_v36 = vld [vmem:[#allocation2 + $0xa0] sm:$0xf] }
 0x1c9   : >> { %v10298_v39 = vpop.permute.xlu1 %3235  ;;  %v3768_v61 = vsel %vm3701_vm0, %v8302_v53, %v10191_v23  ;;  %v10304_v46 = vrot.slane %v2807_v57, 5  ;;  %v2454_v4 = vrot.slane %v1919_v30, 5  ;;  %v2813_v31 = vrot.slane %v2811_v41, 4  ;;  %8848 = vmatprep.subr.bf16.mxu1 %v9177_v22  ;;  %v9232_v30 = vld [vmem:[#allocation2 + $0xa4] sm:$0x1]  ;;  %v9233_v53 = vld [vmem:[%s9895_s16 + $0x118] sm:$0xff]  }
 0x1ca   : >> { %4335 = vmatprep.mubr.bf16.mxu0 %v3768_v61  ;;  %v2804_v47 = vor.u32 %v2803_v62, %v2800_v28  ;;  %v2819_v43 = vrot.slane %v2817_v60, 5  ;;  %v8235_v42 = vrot.slane %v1710_v32, 9  ;;  %v2452_v23 = vsel %vm9987_vm15, %v8249_v25, %v2451_v45  ;;  %v9234_v32 = vld [vmem:[#allocation2 + $0x10] sm:$0xf]  ;;  %v9235_v62 = vld [vmem:[#allocation2 + $0x14] sm:$0x1] }
 0x1cb   : >> { %4336 = vmatmul.mubr.bf16.vlgmr.msra.gmra.mxu0 %v3704_v5  ;;  %v2453_v38 = vrot.slane %v2451_v45, 4  ;;  %v1857_v52 = vrot.slane %v9231_v36, 5  ;;  %v1860_v50 = vrot.slane %v9232_v30, 5  ;;  %v2814_v59 = vor.u32 %v2813_v31, %v10304_v46  ;;  %v9182_v60 = vld [vmem:[%s9895_s16 + $0xa8] sm:$0xff]  }
 0x1cc   : >> { %v2805_v0 = vrot.slane %v2804_v47, 4  ;;  %9031 = vmatpush3.bf16.msra.mxu0 %v9233_v53  ;;  %v8223_v22 = vrot.slane %v1698_v2, 9  ;;  %v1773_v3 = vrot.slane %v9234_v32, 5  ;;  %8849 = vmatpush3.bf16.msra.mxu1 %v9179_v16  ;;  %v1776_v41 = vrot.slane %v9235_v62, 5  ;;  %v2509_v25 = vld [vmem:[#allocation2 + $0xa8] sm:$0xf] }
 0x1cd   : >> { %v2455_v5 = vsel %vm9987_vm15, %v2453_v38, %v2454_v4  ;;  %v1858_v28 = vsel %vm9987_vm15, %v8235_v42, %v1857_v52  ;;  %v1859_v57 = vrot.slane %v1857_v52, 4  ;;  %9032 = vmatprep.subr.bf16.mxu0 %v9197_v11  ;;  %v2815_v2 = vrot.slane %v2814_v59, 4  ;;  %8850 = vmatprep.subr.bf16.mxu1 %v9180_v54  ;;  %v9184_v47 = vld [vmem:[%s9895_s16 + $0xe0] sm:$0xff]   ;;  %v9205_v31 = vld [vmem:[%s9895_s16 + $0x108] sm:$0xff]   ;;  %v9236_v52 = vld [vmem:[#allocation2 + $0x9c] sm:$0xf] }
 0x1ce   : >> { %v10320_v61 = vpop.permute.xlu1 %3211  ;;  %v2810_v45 = vsel %vm9900_vm12, %v2805_v0, %v10304_v46  ;;  %v8361_v4 = vcombine.low %v2452_v23, %v2455_v5  ;;  %v1774_v16 = vsel %vm9987_vm15, %v8223_v22, %v1773_v3  ;;  %v1775_v38 = vrot.slane %v1773_v3, 4  ;;  %v9237_v53 = vld [vmem:[#allocation2 + $0xc] sm:$0xf]  ;;  %v9185_v46 = vld [vmem:[%s9895_s16 + $0xa0] sm:$0xff]   ;;  %v2320_v22 = vld [vmem:[#allocation2 + $0x9c] sm:$0xe] }
 0x1cf   : >> { %v1861_v42 = vsel %vm9987_vm15, %v1859_v57, %v1860_v50  ;;  %v8283_v30 = vcombine.low %v9236_v52, %v9231_v36  ;;  %v8271_v62 = vcombine.low %v9237_v53, %v9234_v32  ;;  %v2820_v54 = vsel %vm9900_vm12, %v2815_v2, %v2819_v43  ;;  %v9186_v5 = vld [vmem:[%s9895_s16 + $0xd8] sm:$0xff]   ;;  %v1920_v57 = vld [vmem:[#allocation2 + $0xa4] sm:$0x1] }
 0x1d0   : >> { %3499 = vrot.lane.b32.xlu1 %v8361_v4, %s9457_s12  ;;  %v8315_v23 = vcombine.low %v1858_v28, %v1861_v42  ;;  %v2822_v0 = vshrl.u32 %v2509_v25, 16  ;;  %v2825_v59 = vshll.u32 %v2509_v25, 16  ;;  %9033 = vmatpush3.bf16.msra.mxu0 %v9197_v11  ;;  %v8393_v36 = vcombine.low %v2810_v45, %v2820_v54  ;;  %v9212_v28 = vld [vmem:[%s9895_s16 + $0x100] sm:$0xff]   ;;  %v1711_v11 = vld [vmem:[#allocation2 + $0xa8] sm:$0xe]  ;;  %v9188_v54 = vld [vmem:[%s9895_s16 + $0x98] sm:$0xff]  }
 0x1d1   : >> { %v1777_v32 = vsel %vm9987_vm15, %v1775_v38, %v1776_v41  ;;  %v3756_v3 = vsel %vm3701_vm0, %v8283_v30, %v10228_v19  ;;  %8851 = vmatpush3.bf16.msra.mxu1 %v9182_v60  ;;  %v3708_v43 = vsel %vm3701_vm0, %v8271_v62, %v10244_v51  ;;  %9034 = vmatprep.subr.bf16.mxu0 %v9205_v31  ;;  %v2831_v41 = vshll.u32 %v2510_v17, 16  ;;  %v1699_v30 = vld [vmem:[#allocation2 + $0x18] sm:$0xe] }
 0x1d2   : >> { %v3820_v25 = vsel %vm3701_vm0, %v8315_v23, %v10224_v48  ;;  %v8303_v2 = vcombine.low %v1774_v16, %v1777_v32  ;;  %v2824_v4 = vrot.slane %v2822_v0, 4  ;;  %v2827_v42 = vrot.slane %v2825_v59, 5  ;;  %8852 = vmatprep.subr.bf16.mxu1 %v9184_v47  ;;  %3643 = vrot.lane.b32.xlu0 %v8393_v36, %s9457_s12  ;;  %v10348_v51 = vpop.permute.xlu1 %3477  ;;  %v9238_v16 = vld [vmem:[#allocation2 + $0xa0] sm:$0xf] }
 0x1d3   : >> { %v10336_v50 = vpop.permute.xlu0 %3621  ;;  %4439 = vmatprep.mubr.bf16.mxu1 %v3820_v25  ;;  %v2835_v19 = vshrl.u32 %v2510_v17, 16  ;;  %v2841_v60 = vshll.u32 %v2529_v15, 16  ;;  %v8250_v45 = vrot.slane %v2320_v22, 9  ;;  %v2458_v52 = vrot.slane %v9238_v16, 5  ;;  %v9239_v22 = vld [vmem:[#allocation2 + $0xac] sm:$0xf] }
 0x1d4   : >> { %v3772_v38 = vsel %vm3701_vm0, %v8303_v2, %v10232_v33  ;;  %4440 = vmatmul.mubr.bf16.gmra.mxu1 %v3756_v3  ;;  %v2828_v48 = vor.u32 %v2827_v42, %v2824_v4  ;;  %v2461_v47 = vrot.slane %v1920_v57, 5  ;;  %9035 = vmatpush3.bf16.msra.mxu0 %v9205_v31  ;;  %v2833_v53 = vrot.slane %v2831_v41, 5  ;;  %v9190_v31 = vld [vmem:[%s9895_s16 + $0xd0] sm:$0xff]  }
 0x1d5   : >> { %4343 = vmatprep.mubr.bf16.mxu0 %v3772_v38  ;;  %v2837_v62 = vrot.slane %v2835_v19, 4  ;;  %v2843_v17 = vrot.slane %v2841_v60, 5  ;;  %8853 = vmatpush3.bf16.msra.mxu1 %v9185_v46  ;;  %v8236_v15 = vrot.slane %v1711_v11, 9  ;;  %v2459_v33 = vsel %vm9987_vm15, %v8250_v45, %v2458_v52  ;;  %v9240_v3 = vld [vmem:[#allocation2 + $0xb0] sm:$0x1] }
 0x1d6   : >> { %4344 = vmatmul.mubr.bf16.gmra.mxu0 %v3708_v43  ;;  %v2829_v0 = vrot.slane %v2828_v48, 4  ;;  %v2460_v59 = vrot.slane %v2458_v52, 4  ;;  %v1864_v36 = vrot.slane %v9239_v22, 5  ;;  %8854 = vmatprep.subr.bf16.mxu1 %v9186_v5  ;;  %v1867_v57 = vrot.slane %v9240_v3, 5  ;;  %v9241_v46 = vld [vmem:[#allocation2 + $0x1c] sm:$0xf] }
 0x1d7   : >> { %v10353_v23 = vpop.permute.xlu0 %3357  ;;  %v2838_v32 = vor.u32 %v2837_v62, %v2833_v53  ;;  %v8224_v25 = vrot.slane %v1699_v30, 9  ;;  %v1780_v2 = vrot.slane %v9241_v46, 5  ;;  %9036 = vmatprep.subr.bf16.mxu0 %v9212_v28  ;;  %v2511_v5 = vld [vmem:[#allocation2 + $0xb4] sm:$0xf]  ;;  %v9242_v52 = vld [vmem:[#allocation2 + $0x20] sm:$0x1] }
 0x1d8   : >> { %v2834_v43 = vsel %vm9900_vm12, %v2829_v0, %v2833_v53  ;;  %v2462_v4 = vsel %vm9987_vm15, %v2460_v59, %v2461_v47  ;;  %v1865_v42 = vsel %vm9987_vm15, %v8236_v15, %v1864_v36  ;;  %v1866_v11 = vrot.slane %v1864_v36, 4  ;;  %9037 = vmatpush3.bf16.msra.mxu0 %v9212_v28  ;;  %v9191_v38 = vld [vmem:[%s9895_s16 + $0x90] sm:$0xff]   ;;  %v9243_v30 = vld [vmem:[#allocation2 + $0xa8] sm:$0xf]  ;;  %v9244_v62 = vld [vmem:[#allocation2 + $0x18] sm:$0xf] }
 0x1d9   : >> { %v2839_v41 = vrot.slane %v2838_v32, 4  ;;  %v8362_v19 = vcombine.low %v2459_v33, %v2462_v4  ;;  %v1781_v60 = vsel %vm9987_vm15, %v8224_v25, %v1780_v2  ;;  %v1782_v45 = vrot.slane %v1780_v2, 4  ;;  %8855 = vmatpush3.bf16.msra.mxu1 %v9188_v54  ;;  %v2512_v15 = vld [vmem:[#allocation2 + $0xb8] sm:$0xf]  ;;  %v9192_v0 = vld [vmem:[%s9895_s16 + $0xc8] sm:$0xff]  }
 0x1da   : >> { %v10367_v48 = vpop.permute.xlu1 %3213  ;;  %v1868_v16 = vsel %vm9987_vm15, %v1866_v11, %v1867_v57  ;;  %v1783_v47 = vrot.slane %v9242_v52, 5  ;;  %v8284_v53 = vcombine.low %v9243_v30, %v9239_v22  ;;  %v8272_v28 = vcombine.low %v9244_v62, %v9241_v46  ;;  %8856 = vmatprep.subr.bf16.mxu1 %v9190_v31  ;;  %v2530_v59 = vld [vmem:[#allocation2 + $0xbc] sm:$0x1]  ;;  %v2321_v3 = vld [vmem:[#allocation2 + $0xa8] sm:$0xe] }
 0x1db   : >> { %v2844_v33 = vsel %vm9900_vm12, %v2839_v41, %v2843_v17  ;;  %3501 = vrot.lane.b32.xlu1 %v8362_v19, %s9457_s12  ;;  %v8316_v54 = vcombine.low %v1865_v42, %v1868_v16  ;;  %v2846_v36 = vshrl.u32 %v2511_v5, 16  ;;  %v2849_v32 = vshll.u32 %v2511_v5, 16  ;;  %v1921_v46 = vld [vmem:[#allocation2 + $0xb0] sm:$0x1]  ;;  %v1712_v5 = vld [vmem:[#allocation2 + $0xb4] sm:$0xe] }
 0x1dc   : >> { %v8394_v25 = vcombine.low %v2834_v43, %v2844_v33  ;;  %v1784_v22 = vsel %vm9987_vm15, %v1782_v45, %v1783_v47  ;;  %v3760_v31 = vsel %vm3701_vm0, %v8284_v53, %v10256_v56  ;;  %v3712_v17 = vsel %vm3701_vm0, %v8272_v28, %v10272_v20  ;;  %v9194_v43 = vld [vmem:[%s9895_s16 + $0x88] sm:$0xff]   ;;  %v9196_v16 = vld [vmem:[%s9895_s16 + $0xc0] sm:$0xff]  }
 0x1dd   : >> { %v3824_v2 = vsel %vm3701_vm0, %v8316_v54, %v10250_v55  ;;  %v8304_v4 = vcombine.low %v1781_v60, %v1784_v22  ;;  %v2848_v42 = vrot.slane %v2846_v36, 4  ;;  %v2851_v11 = vrot.slane %v2849_v32, 5  ;;  %8857 = vmatpush3.bf16.msra.mxu1 %v9191_v38  ;;  %v9245_v55 = vld [vmem:[#allocation2 + $0xac] sm:$0xf]  ;;  %v1700_v38 = vld [vmem:[#allocation2 + $0x24] sm:$0xe] }
 0x1de   : >> { %v10375_v57 = vpop.permute.xlu0 %3623  ;;  %3645 = vrot.lane.b32.xlu0 %v8394_v25, %s9457_s12  ;;  %4447 = vmatprep.mubr.bf16.mxu1 %v3824_v2  ;;  %v2855_v41 = vshll.u32 %v2512_v15, 16  ;;  %v2859_v19 = vshrl.u32 %v2512_v15, 16  ;;  %v2865_v56 = vshll.u32 %v2530_v59, 16  ;;  %v8251_v45 = vrot.slane %v2321_v3, 9  ;;  %v10390_v30 = vpop.permute.xlu1 %3479  ;;  %v9246_v36 = vld [vmem:[#allocation2 + $0xb8] sm:$0xf] }
 0x1df   : >> { %v3776_v20 = vsel %vm3701_vm0, %v8304_v4, %v10262_v10  ;;  %4448 = vmatmul.mubr.bf16.gmra.mxu1 %v3760_v31  ;;  %v2852_v52 = vor.u32 %v2851_v11, %v2848_v42  ;;  %v2465_v60 = vrot.slane %v9245_v55, 5  ;;  %v2468_v47 = vrot.slane %v1921_v46, 5  ;;  %8858 = vmatprep.subr.bf16.mxu1 %v9192_v0  ;;  %v9198_v0 = vld [vmem:[%s9895_s16 + $0x80] sm:$0xff]   ;;  %v9247_v25 = vld [vmem:[#allocation2 + $0xbc] sm:$0x1] }
 0x1e0   : >> { %4351 = vmatprep.mubr.bf16.mxu0 %v3776_v20  ;;  %v2857_v53 = vrot.slane %v2855_v41, 5  ;;  %v2861_v62 = vrot.slane %v2859_v19, 4  ;;  %v2867_v28 = vrot.slane %v2865_v56, 5  ;;  %v8237_v15 = vrot.slane %v1712_v5, 9  ;;  %v9248_v46 = vld [vmem:[#allocation2 + $0x28] sm:$0xf] }
 0x1e1   : >> { %4352 = vmatmul.mubr.bf16.gmra.mxu0 %v3712_v17  ;;  %v2853_v54 = vrot.slane %v2852_v52, 4  ;;  %v2466_v10 = vsel %vm9987_vm15, %v8251_v45, %v2465_v60  ;;  %v2467_v59 = vrot.slane %v2465_v60, 4  ;;  %v1871_v32 = vrot.slane %v9246_v36, 5  ;;  %8859 = vmatpush3.bf16.msra.mxu1 %v9194_v43  ;;  %v2513_v5 = vld [vmem:[#allocation2 + $0xc0] sm:$0xf] }
 0x1e2   : >> { %v10392_v33 = vpop.permute.xlu0 %3359  ;;  %v2862_v3 = vor.u32 %v2861_v62, %v2857_v53  ;;  %v1874_v22 = vrot.slane %v9247_v25, 5  ;;  %v8225_v31 = vrot.slane %v1700_v38, 9  ;;  %v1787_v2 = vrot.slane %v9248_v46, 5  ;;  %8860 = vmatprep.subr.bf16.mxu1 %v9196_v16  ;;  %v9249_v16 = vld [vmem:[#allocation2 + $0x2c] sm:$0x1] }
 0x1e3   : >> { %v2858_v4 = vsel %vm9900_vm12, %v2853_v54, %v2857_v53  ;;  %v2469_v17 = vsel %vm9987_vm15, %v2467_v59, %v2468_v47  ;;  %v1872_v42 = vsel %vm9987_vm15, %v8237_v15, %v1871_v32  ;;  %v1873_v11 = vrot.slane %v1871_v32, 4  ;;  %v9250_v52 = vld [vmem:[#allocation2 + $0xb4] sm:$0xf]  ;;  %v9251_v60 = vld [vmem:[#allocation2 + $0x24] sm:$0xf] }
 0x1e4   : >> { %v2863_v43 = vrot.slane %v2862_v3, 4  ;;  %v8363_v41 = vcombine.low %v2466_v10, %v2469_v17  ;;  %v1788_v19 = vsel %vm9987_vm15, %v8225_v31, %v1787_v2  ;;  %v1789_v56 = vrot.slane %v1787_v2, 4  ;;  %v2514_v15 = vld [vmem:[#allocation2 + $0xc4] sm:$0xf]  ;;  %v2531_v54 = vld [vmem:[#allocation2 + $0xc8] sm:$0x1] }
 0x1e5   : >> { %v1875_v45 = vsel %vm9987_vm15, %v1873_v11, %v1874_v22  ;;  %v1790_v20 = vrot.slane %v9249_v16, 5  ;;  %v8285_v55 = vcombine.low %v9250_v52, %v9246_v36  ;;  %v8273_v47 = vcombine.low %v9251_v60, %v9248_v46  ;;  %8861 = vmatpush3.bf16.msra.mxu1 %v9198_v0 }
 0x1e6   : >> { %v2868_v53 = vsel %vm9900_vm12, %v2863_v43, %v2867_v28  ;;  %3503 = vrot.lane.b32.xlu1 %v8363_v41, %s9457_s12  ;;  %v8317_v62 = vcombine.low %v1872_v42, %v1875_v45  ;;  %v2870_v10 = vshrl.u32 %v2513_v5, 16  ;;  %v2873_v59 = vshll.u32 %v2513_v5, 16  ;;  %v9252_v43 = vld [vmem:[#allocation2 + $0x10] sm:$0xf] }
 0x1e7   : >> { %v10407_v38 = vpop.permute.xlu1 %3215  ;;  %v8395_v3 = vcombine.low %v2858_v4, %v2868_v53  ;;  %v1791_v36 = vsel %vm9987_vm15, %v1789_v56, %v1790_v20  ;;  %v3764_v0 = vsel %vm3701_vm0, %v8285_v55, %v10298_v39  ;;  %v3716_v25 = vsel %vm3701_vm0, %v8273_v47, %v10320_v61  ;;  %v2322_v56 = vld [vmem:[#allocation2 + $0xb4] sm:$0xe] }
 0x1e8   : >> { %v3828_v28 = vsel %vm3701_vm0, %v8317_v62, %v10283_v7  ;;  %v8305_v22 = vcombine.low %v1788_v19, %v1791_v36  ;;  %v2872_v31 = vrot.slane %v2870_v10, 4  ;;  %v2875_v46 = vrot.slane %v2873_v59, 5  ;;  %v1922_v19 = vld [vmem:[#allocation2 + $0xbc] sm:$0x1]  ;;  %v9253_v62 = vld [vmem:[#allocation2 + $0x14] sm:$0x1] }
 0x1e9   : >> { %v10412_v32 = vpop.permute.xlu0 %3625  ;;  %3647 = vrot.lane.b32.xlu0 %v8395_v3, %s9457_s12  ;;  %4455 = vmatprep.mubr.bf16.mxu1 %v3828_v28  ;;  %v2879_v2 = vshll.u32 %v2514_v15, 16  ;;  %v2883_v4 = vshrl.u32 %v2514_v15, 16  ;;  %v2889_v17 = vshll.u32 %v2531_v54, 16  ;;  %v13056_v42 = vshrl.u32 %v9883_v12, 16  ;;  %v9254_v59 = vld [vmem:[#allocation2 + $0xb8] sm:$0xf] }
 0x1ea   : >> { %v3780_v39 = vsel %vm3701_vm0, %v8305_v22, %v10309_v37  ;;  %4456 = vmatmul.mubr.bf16.gmra.mxu1 %v3764_v0  ;;  %v2876_v61 = vor.u32 %v2875_v46, %v2872_v31  ;;  %v13057_v5 = vshll.u32 %v9883_v12, 16  ;;  %v1934_v41 = vshll.u32 %v9252_v43, 16  ;;  %v1701_v0 = vld [vmem:[#allocation2 + $0x30] sm:$0xe]  ;;  %v2515_v43 = vld [vmem:[#allocation2 + $0xcc] sm:$0xf] }
 0x1eb   : >> { %v1927_v11 = vrot.slane %v13056_v42, 4  ;;  %4359 = vmatprep.mubr.bf16.mxu0 %v3780_v39  ;;  %v2881_v45 = vrot.slane %v2879_v2, 5  ;;  %v2885_v16 = vrot.slane %v2883_v4, 4  ;;  %v2891_v20 = vrot.slane %v2889_v17, 5  ;;  %v10431_v60 = vpop.permute.xlu1 %3481  ;;  %v9255_v4 = vld [vmem:[#allocation2 + $0x18] sm:$0xf] }
 0x1ec   : >> { %v1930_v7 = vrot.slane %v13057_v5, 5  ;;  %v13058_v52 = vshrl.u32 %v9885_v13, 16  ;;  %4360 = vmatmul.mubr.bf16.gmra.mxu0 %v3716_v25  ;;  %v2877_v37 = vrot.slane %v2876_v61, 4  ;;  %v1936_v53 = vrot.slane %v1934_v41, 5  ;;  %v10439_v17 = vld [vmem:[#allocation2 + $0x1c] sm:$0xf] }
 0x1ed   : >> { %v1944_v12 = vshll.u32 %v9253_v62, 16  ;;  %v10433_v15 = vpop.permute.xlu0 %3361  ;;  %v2886_v54 = vor.u32 %v2885_v16, %v2881_v45  ;;  %v8252_v10 = vrot.slane %v2322_v56, 9  ;;  %v2472_v3 = vrot.slane %v9254_v59, 5  ;;  %v9257_v5 = vld [vmem:[#allocation2 + $0x34] sm:$0xf] }
 0x1ee   : >> { %v1940_v55 = vrot.slane %v13058_v52, 4  ;;  %v1931_v47 = vor.u32 %v1930_v7, %v1927_v11  ;;  %v2475_v36 = vrot.slane %v1922_v19, 5  ;;  %v2882_v13 = vsel %vm9900_vm12, %v2877_v37, %v2881_v45  ;;  %v9258_v45 = vld [vmem:[#allocation2 + $0x38] sm:$0x1]  ;;  %v2516_v52 = vld [vmem:[#allocation2 + $0xd0] sm:$0xf] }
 0x1ef   : >> { %v1946_v31 = vrot.slane %v1944_v12, 5  ;;  %v2887_v25 = vrot.slane %v2886_v54, 4  ;;  %v2473_v46 = vsel %vm9987_vm15, %v8252_v10, %v2472_v3  ;;  %v2474_v2 = vrot.slane %v2472_v3, 4 }
 0x1f0   : >> { %v1932_v28 = vrot.slane %v1931_v47, 4  ;;  %v1941_v22 = vor.u32 %v1940_v55, %v1936_v53  ;;  %v8366_v42 = vcombine.low %v9255_v4, %v10439_v17  ;;  %v8226_v61 = vrot.slane %v1701_v0, 9  ;;  %v2532_v55 = vld [vmem:[#allocation2 + $0xd4] sm:$0x1] }
 0x1f1   : >> { %v1794_v7 = vrot.slane %v9257_v5, 5  ;;  %v2892_v41 = vsel %vm9900_vm12, %v2887_v25, %v2891_v20  ;;  %v2476_v19 = vsel %vm9987_vm15, %v2474_v2, %v2475_v36  ;;  %v1797_v16 = vrot.slane %v9258_v45, 5 }
 0x1f2   : >> { %v1937_v11 = vsel %vm9900_vm12, %v1932_v28, %v1936_v53  ;;  %v1942_v39 = vrot.slane %v1941_v22, 4  ;;  %v3896_v56 = vsel %vm3701_vm0, %v8366_v42, %v10336_v50  ;;  %v10450_v37 = vpop.permute.xlu1 %3217  ;;  %v8396_v47 = vcombine.low %v2882_v13, %v2892_v41  ;;  %v9259_v50 = vld [vmem:[#allocation2 + $0x30] sm:$0xf]  ;;  %v2323_v22 = vld [vmem:[#allocation2 + $0xc0] sm:$0xe] }
 0x1f3   : >> { %v8364_v62 = vcombine.low %v2473_v46, %v2476_v19  ;;  %4496 = vmatprep.mubr.bf16.mxu1 %v3896_v56  ;;  %v1795_v20 = vsel %vm9987_vm15, %v8226_v61, %v1794_v7  ;;  %v1796_v10 = vrot.slane %v1794_v7, 4  ;;  %v8274_v59 = vcombine.low %v9259_v50, %v9257_v5  ;;  %v1923_v42 = vld [vmem:[#allocation2 + $0xc8] sm:$0x1]  ;;  %v1702_v7 = vld [vmem:[#allocation2 + $0x3c] sm:$0xe] }
 0x1f4   : >> { %v1947_v53 = vsel %vm9900_vm12, %v1942_v39, %v1946_v31  ;;  %v10456_v12 = vpop.permute.xlu0 %3627  ;;  %v2894_v3 = vshrl.u32 %v2515_v43, 16  ;;  %3649 = vrot.lane.b32.xlu0 %v8396_v47, %s9457_s12  ;;  %v2897_v36 = vshll.u32 %v2515_v43, 16  ;;  %v2903_v0 = vshll.u32 %v2516_v52, 16  ;;  %v10460_v31 = vld [vmem:[#allocation2 + $0x60] sm:$0xf] }
 0x1f5   : >> { %v8334_v54 = vcombine.low %v1937_v11, %v1947_v53  ;;  %3505 = vrot.lane.b32.xlu1 %v8364_v62, %s9457_s12  ;;  %v2907_v13 = vshrl.u32 %v2516_v52, 16  ;;  %v2913_v28 = vshll.u32 %v2532_v55, 16  ;;  %v2093_v25 = vshrl.u32 %v10460_v31, 16  ;;  %v9261_v56 = vld [vmem:[#allocation2 + $0xc4] sm:$0xf] }
 0x1f6   : >> { %v1798_v2 = vsel %vm9987_vm15, %v1796_v10, %v1797_v16  ;;  %v2896_v4 = vrot.slane %v2894_v3, 4  ;;  %v2899_v39 = vrot.slane %v2897_v36, 5  ;;  %v2905_v61 = vrot.slane %v2903_v0, 5  ;;  %v10469_v52 = vpop.permute.xlu1 %3483  ;;  %v9264_v36 = vld [vmem:[#allocation2 + $0x40] sm:$0xf] }
 0x1f7   : >> { %v3832_v46 = vsel %vm3701_vm0, %v8334_v54, %v10348_v51  ;;  %v8306_v11 = vcombine.low %v1795_v20, %v1798_v2  ;;  %v2909_v5 = vrot.slane %v2907_v13, 4  ;;  %v3720_v43 = vsel %vm3701_vm0, %v8274_v59, %v10367_v48  ;;  %v9262_v48 = vld [vmem:[#allocation2 + $0x24] sm:$0xf]  ;;  %v9263_v54 = vld [vmem:[#allocation2 + $0x28] sm:$0xf] }
 0x1f8   : >> { %4497 = vmatmul.mubr.bf16.vlgmr.msra.gmra.mxu1 %v3832_v46  ;;  %v2915_v41 = vrot.slane %v2913_v28, 5  ;;  %v8253_v19 = vrot.slane %v2323_v22, 9  ;;  %v2479_v45 = vrot.slane %v9261_v56, 5  ;;  %v2900_v16 = vor.u32 %v2899_v39, %v2896_v4  ;;  %v10473_v53 = vpop.permute.xlu0 %3363  ;;  %v9266_v2 = vld [vmem:[#allocation2 + $0x1c] sm:$0xf] }
 0x1f9   : >> { %v3784_v51 = vsel %vm3701_vm0, %v8306_v11, %v10353_v23  ;;  %v2910_v55 = vor.u32 %v2909_v5, %v2905_v61  ;;  %v2482_v47 = vrot.slane %v1923_v42, 5  ;;  %v8367_v10 = vcombine.low %v9262_v48, %v9263_v54  ;;  %v9265_v23 = vld [vmem:[#allocation2 + $0x44] sm:$0x1] }
 0x1fa   : >> { %4367 = vmatprep.mubr.bf16.mxu0 %v3784_v51  ;;  %v2480_v62 = vsel %vm9987_vm15, %v8253_v19, %v2479_v45  ;;  %v2481_v20 = vrot.slane %v2479_v45, 4  ;;  %v8227_v50 = vrot.slane %v1702_v7, 9  ;;  %v2901_v59 = vrot.slane %v2900_v16, 4  ;;  %v1703_v7 = vld [vmem:[#allocation2 + $0x48] sm:$0xe] }
 0x1fb   : >> { %4368 = vmatmul.mubr.bf16.gmra.mxu0 %v3720_v43  ;;  %v2911_v3 = vrot.slane %v2910_v55, 4  ;;  %v1801_v0 = vrot.slane %v9264_v36, 5  ;;  %v1804_v13 = vrot.slane %v9265_v23, 5  ;;  %v3900_v22 = vsel %vm3701_vm0, %v8367_v10, %v10375_v57  ;;  %v9267_v51 = vld [vmem:[#allocation2 + $0x20] sm:$0x1] }
 0x1fc   : >> { %v2483_v28 = vsel %vm9987_vm15, %v2481_v20, %v2482_v47  ;;  %v1955_v46 = vor.u32 %v10001_v44, %v9995_v29  ;;  %v1958_v4 = vshll.u32 %v9266_v2, 16  ;;  %v2096_v42 = vshll.u32 %v10460_v31, 16  ;;  %4504 = vmatprep.mubr.bf16.mxu1 %v3900_v22  ;;  %v9268_v16 = vld [vmem:[#allocation2 + $0x3c] sm:$0xf]  ;;  %v10498_v20 = vld [vmem:[#allocation2 + $0x34] sm:$0xf] }
 0x1fd   : >> { %v2906_v11 = vsel %vm9900_vm12, %v2901_v59, %v2905_v61  ;;  %v2916_v39 = vsel %vm9900_vm12, %v2911_v3, %v2915_v41  ;;  %v8365_v5 = vcombine.low %v2480_v62, %v2483_v28  ;;  %v1802_v57 = vsel %vm9987_vm15, %v8227_v50, %v1801_v0  ;;  %v10490_v29 = vpop.permute.xlu1 %3219  ;;  %v9269_v62 = vld [vmem:[#allocation2 + $0x30] sm:$0xf]  ;;  %v9271_v10 = vld [vmem:[#allocation2 + $0x4c] sm:$0xf] }
 0x1fe   : >> { %v8397_v43 = vcombine.low %v2906_v11, %v2916_v39  ;;  %v1803_v19 = vrot.slane %v1801_v0, 4  ;;  %v1956_v56 = vrot.slane %v1955_v46, 4  ;;  %v1960_v44 = vrot.slane %v1958_v4, 5  ;;  %v9272_v22 = vld [vmem:[#allocation2 + $0x50] sm:$0x1] }
 0x1ff   : >> { %3507 = vrot.lane.b32.xlu1 %v8365_v5, %s9457_s12  ;;  %v1962_v45 = vshrl.u32 %v9266_v2, 16  ;;  %v1968_v61 = vshll.u32 %v9267_v51, 16  ;;  %v8275_v55 = vcombine.low %v9268_v16, %v9264_v36  ;;  %v10493_v41 = vpop.permute.xlu0 %3629  ;;  %v8368_v48 = vcombine.low %v9269_v62, %v10498_v20  ;;  %v9273_v39 = vld [vmem:[#allocation2 + $0x28] sm:$0xf] }
 0x200   : >> { %3651 = vrot.lane.b32.xlu0 %v8397_v43, %s9457_s12  ;;  %v1805_v47 = vsel %vm9987_vm15, %v1803_v19, %v1804_v13  ;;  %v8228_v54 = vrot.slane %v1703_v7, 9  ;;  %v1808_v50 = vrot.slane %v9271_v10, 5  ;;  %v1961_v3 = vsel %vm9900_vm12, %v1956_v56, %v1960_v44  ;;  %v9274_v43 = vld [vmem:[#allocation2 + $0x2c] sm:$0x1]  ;;  %v9275_v19 = vld [vmem:[#allocation2 + $0x48] sm:$0xf] }
 0x201   : >> { %v8307_v59 = vcombine.low %v1802_v57, %v1805_v47  ;;  %v1964_v36 = vrot.slane %v1962_v45, 4  ;;  %v1970_v0 = vrot.slane %v1968_v61, 5  ;;  %v3724_v23 = vsel %vm3701_vm0, %v8275_v55, %v10407_v38  ;;  %v1704_v45 = vld [vmem:[#allocation2 + $0x54] sm:$0xe]  ;;  %v10513_v51 = vpop.permute.xlu1 %3485 }
 0x202   : >> { %v1809_v13 = vsel %vm9987_vm15, %v8228_v54, %v1808_v50  ;;  %v1810_v28 = vrot.slane %v1808_v50, 4  ;;  %v1811_v46 = vrot.slane %v9272_v22, 5  ;;  %v1979_v11 = vor.u32 %v10046_v14, %v10044_v35  ;;  %v9276_v50 = vld [vmem:[#allocation2 + $0x3c] sm:$0xf] }
 0x203   : >> { %v3788_v2 = vsel %vm3701_vm0, %v8307_v59, %v10392_v33  ;;  %v1965_v4 = vor.u32 %v1964_v36, %v1960_v44  ;;  %v1982_v5 = vshll.u32 %v9273_v39, 16  ;;  %v1986_v38 = vshrl.u32 %v9273_v39, 16  ;;  %v10515_v61 = vpop.permute.xlu0 %3365  ;;  %v10525_v59 = vld [vmem:[#allocation2 + $0x40] sm:$0xf]  ;;  %v9279_v22 = vld [vmem:[#allocation2 + $0x5c] sm:$0x1] }
 0x204   : >> { %4375 = vmatprep.mubr.bf16.mxu0 %v3788_v2  ;;  %v1812_v7 = vsel %vm9987_vm15, %v1810_v28, %v1811_v46  ;;  %v1992_v57 = vshll.u32 %v9274_v43, 16  ;;  %v8276_v56 = vcombine.low %v9275_v19, %v9271_v10  ;;  %v1980_v35 = vrot.slane %v1979_v11, 4  ;;  %v9278_v28 = vld [vmem:[#allocation2 + $0x58] sm:$0xf] }
 0x205   : >> { %v1966_v33 = vrot.slane %v1965_v4, 4  ;;  %4376 = vmatmul.mubr.bf16.gmra.mxu0 %v3724_v23  ;;  %v8308_v44 = vcombine.low %v1809_v13, %v1812_v7  ;;  %v1984_v14 = vrot.slane %v1982_v5, 5  ;;  %v3904_v16 = vsel %vm3701_vm0, %v8368_v48, %v10412_v32 }
 0x206   : >> { %v1988_v55 = vrot.slane %v1986_v38, 4  ;;  %v1994_v47 = vrot.slane %v1992_v57, 5  ;;  %v3728_v62 = vsel %vm3701_vm0, %v8276_v56, %v10450_v37  ;;  %v8369_v36 = vcombine.low %v9276_v50, %v10525_v59  ;;  %v1705_v56 = vld [vmem:[#allocation2 + $0x60] sm:$0xe] }
 0x207   : >> { %v1971_v54 = vsel %vm9900_vm12, %v1966_v33, %v1970_v0  ;;  %v3792_v10 = vsel %vm3701_vm0, %v8308_v44, %v10433_v15  ;;  %v8229_v23 = vrot.slane %v1704_v45, 9  ;;  %v1985_v32 = vsel %vm9900_vm12, %v1980_v35, %v1984_v14  ;;  %v9280_v15 = vld [vmem:[#allocation2 + $0x34] sm:$0xf] }
 0x208   : >> { %v8335_v13 = vcombine.low %v1961_v3, %v1971_v54  ;;  %4383 = vmatprep.mubr.bf16.mxu0 %v3792_v10  ;;  %v1989_v48 = vor.u32 %v1988_v55, %v1984_v14  ;;  %v1815_v37 = vrot.slane %v9278_v28, 5  ;;  %v1818_v46 = vrot.slane %v9279_v22, 5  ;;  %v10536_v7 = vpop.permute.xlu1 %3221 }
 0x209   : >> { %v2003_v0 = vor.u32 %v10071_v49, %v10048_v18  ;;  %v2006_v2 = vshll.u32 %v9280_v15, 16  ;;  %v2010_v4 = vshrl.u32 %v9280_v15, 16  ;;  %v9281_v18 = vld [vmem:[#allocation2 + $0x38] sm:$0x1]  ;;  %v10542_v45 = vrot.slane %v2093_v25, 4 }
 0x20a   : >> { %v3836_v11 = vsel %vm3701_vm0, %v8335_v13, %v10390_v30  ;;  %v1990_v39 = vrot.slane %v1989_v48, 4  ;;  %v1816_v3 = vsel %vm9987_vm15, %v8229_v23, %v1815_v37  ;;  %v1817_v5 = vrot.slane %v1815_v37, 4  ;;  %v10538_v38 = vpop.permute.xlu0 %3631  ;;  %v10544_v30 = vld [vmem:[#allocation2 + $0x6c] sm:$0xf]  ;;  %v9283_v23 = vld [vmem:[#allocation2 + $0x54] sm:$0xf] }
 0x20b   : >> { %4505 = vmatmul.mubr.bf16.gmra.mxu1 %v3836_v11  ;;  %v2004_v43 = vrot.slane %v2003_v0, 4  ;;  %v2008_v57 = vrot.slane %v2006_v2, 5  ;;  %v2012_v19 = vrot.slane %v2010_v4, 4  ;;  %v2016_v49 = vshll.u32 %v9281_v18, 16  ;;  %v9287_v11 = vld [vmem:[#allocation2 + $0x44] sm:$0x1] }
 0x20c   : >> { %v2117_v33 = vshrl.u32 %v10544_v30, 16  ;;  %4512 = vmatprep.mubr.bf16.mxu1 %v3904_v16  ;;  %v1995_v44 = vsel %vm9900_vm12, %v1990_v39, %v1994_v47  ;;  %v1819_v35 = vsel %vm9987_vm15, %v1817_v5, %v1818_v46  ;;  %v3908_v55 = vsel %vm3701_vm0, %v8369_v36, %v10456_v12  ;;  %v9285_v36 = vld [vmem:[#allocation2 + $0x68] sm:$0x1]  ;;  %v9286_v46 = vld [vmem:[#allocation2 + $0x40] sm:$0xf]  ;;  %v10564_v15 = vpop.permute.xlu1 %3487 }
 0x20d   : >> { %v8336_v14 = vcombine.low %v1985_v32, %v1995_v44  ;;  %4384 = vmatmul.mubr.bf16.gmra.mxu0 %v3728_v62  ;;  %v8309_v54 = vcombine.low %v1816_v3, %v1819_v35  ;;  %v2013_v10 = vor.u32 %v2012_v19, %v2008_v57  ;;  %v2009_v25 = vsel %vm9900_vm12, %v2004_v43, %v2008_v57  ;;  %v10559_v62 = vld [vmem:[#allocation2 + $0x64] sm:$0xf]  ;;  %v1706_v43 = vld [vmem:[#allocation2 + $0x6c] sm:$0xe]  ;;  %v9288_v35 = vld [vmem:[#allocation2 + $0x48] sm:$0xf] }
 0x20e   : >> { %v2018_v50 = vrot.slane %v2016_v49, 5  ;;  %v8277_v13 = vcombine.low %v9283_v23, %v9278_v28  ;;  %v8230_v16 = vrot.slane %v1705_v56, 9  ;;  %v1822_v12 = vrot.slane %v10559_v62, 5 }
 0x20f   : >> { %v3840_v47 = vsel %vm3701_vm0, %v8336_v14, %v10431_v60  ;;  %v3796_v48 = vsel %vm3701_vm0, %v8309_v54, %v10473_v53  ;;  %v2014_v32 = vrot.slane %v2013_v10, 4  ;;  %v1825_v37 = vrot.slane %v9285_v36, 5  ;;  %v10566_v60 = vpop.permute.xlu0 %3367  ;;  %v10587_v10 = vld [vmem:[#allocation2 + $0x70] sm:$0xf] }
 0x210   : >> { %4391 = vmatprep.mubr.bf16.mxu0 %v3796_v48  ;;  %v2027_v22 = vor.u32 %v10100_v27, %v10094_v21  ;;  %v2030_v28 = vshll.u32 %v9286_v46, 16  ;;  %v2034_v0 = vshrl.u32 %v9286_v46, 16  ;;  %v1823_v2 = vsel %vm9987_vm15, %v8230_v16, %v1822_v12 }
 0x211   : >> { %v2019_v53 = vsel %vm9900_vm12, %v2014_v32, %v2018_v50  ;;  %v1824_v4 = vrot.slane %v1822_v12, 4  ;;  %v2040_v39 = vshll.u32 %v9287_v11, 16  ;;  %v10574_v3 = vrot.slane %v2096_v42, 5  ;;  %v9293_v12 = vld [vmem:[#allocation2 + $0x4c] sm:$0xf] }
 0x212   : >> { %v3732_v21 = vsel %vm3701_vm0, %v8277_v13, %v10490_v29  ;;  %v2032_v27 = vrot.slane %v2030_v28, 5  ;;  %v2036_v5 = vrot.slane %v2034_v0, 4  ;;  %v10578_v57 = vrot.slane %v2117_v33, 4  ;;  %v10583_v29 = vld [vmem:[#allocation2 + $0x4c] sm:$0xf] }
 0x213   : >> { %v2120_v19 = vshll.u32 %v10544_v30, 16  ;;  %4513 = vmatmul.mubr.bf16.gmra.mxu1 %v3840_v47  ;;  %v8337_v18 = vcombine.low %v2009_v25, %v2019_v53  ;;  %v1826_v49 = vsel %vm9987_vm15, %v1824_v4, %v1825_v37  ;;  %v2028_v31 = vrot.slane %v2027_v22, 4  ;;  %v9290_v33 = vld [vmem:[#allocation2 + $0x60] sm:$0xf]  ;;  %v10592_v23 = vpop.permute.xlu1 %3223  ;;  %v9292_v13 = vld [vmem:[#allocation2 + $0x74] sm:$0x1] }
 0x214   : >> { %4520 = vmatprep.mubr.bf16.mxu1 %v3908_v55  ;;  %v8310_v56 = vcombine.low %v1823_v2, %v1826_v49  ;;  %v2037_v42 = vor.u32 %v2036_v5, %v2032_v27  ;;  %v2042_v44 = vrot.slane %v2040_v39, 5  ;;  %v8370_v14 = vcombine.low %v9288_v35, %v10583_v29  ;;  %v1707_v28 = vld [vmem:[#allocation2 + $0x78] sm:$0xe]  ;;  %v9295_v39 = vld [vmem:[#allocation2 + $0x54] sm:$0xf] }
 0x215   : >> { %4392 = vmatmul.mubr.bf16.gmra.mxu0 %v3732_v21  ;;  %v8278_v54 = vcombine.low %v9290_v33, %v10559_v62  ;;  %v8231_v30 = vrot.slane %v1706_v43, 9  ;;  %v1829_v25 = vrot.slane %v10587_v10, 5  ;;  %v1832_v16 = vrot.slane %v9292_v13, 5  ;;  %v10596_v48 = vpop.permute.xlu0 %3633  ;;  %v10614_v21 = vld [vmem:[#allocation2 + $0x58] sm:$0xf] }
 0x216   : >> { %v3800_v55 = vsel %vm3701_vm0, %v8310_v56, %v10515_v61  ;;  %v2038_v50 = vrot.slane %v2037_v42, 4  ;;  %v2051_v47 = vor.u32 %v10152_v63, %v10146_v24  ;;  %v2054_v36 = vshll.u32 %v9293_v12, 16  ;;  %v9294_v24 = vld [vmem:[#allocation2 + $0x50] sm:$0x1]  ;;  %v9298_v35 = vld [vmem:[#allocation2 + $0x80] sm:$0x1] }
 0x217   : >> { %4399 = vmatprep.mubr.bf16.mxu0 %v3800_v55  ;;  %v1830_v32 = vsel %vm9987_vm15, %v8231_v30, %v1829_v25  ;;  %v1831_v62 = vrot.slane %v1829_v25, 4  ;;  %v2058_v37 = vshrl.u32 %v9293_v12, 16  ;;  %v3844_v61 = vsel %vm3701_vm0, %v8337_v18, %v10469_v52  ;;  %v10619_v42 = vpop.permute.xlu1 %3489  ;;  %v9300_v25 = vld [vmem:[#allocation2 + $0x58] sm:$0xf] }
 0x218   : >> { %v2033_v22 = vsel %vm9900_vm12, %v2028_v31, %v2032_v27  ;;  %v2043_v46 = vsel %vm9900_vm12, %v2038_v50, %v2042_v44  ;;  %v2064_v63 = vshll.u32 %v9294_v24, 16  ;;  %v3912_v0 = vsel %vm3701_vm0, %v8370_v14, %v10493_v41  ;;  %v10625_v13 = vld [vmem:[#allocation2 + $0x78] sm:$0xf] }
 0x219   : >> { %v1833_v53 = vsel %vm9987_vm15, %v1831_v62, %v1832_v16  ;;  %v2056_v2 = vrot.slane %v2054_v36, 5  ;;  %v2060_v4 = vrot.slane %v2058_v37, 4  ;;  %v10610_v11 = vrot.slane %v2120_v19, 5  ;;  %v3370_v49 = vpop.permute.xlu0 %3369  ;;  %v1708_v37 = vld [vmem:[#allocation2 + $0x84] sm:$0xe] }
 0x21a   : >> { %v3736_v52 = vsel %vm3701_vm0, %v8278_v54, %v10536_v7  ;;  %v8371_v27 = vcombine.low %v9295_v39, %v10614_v21  ;;  %v8311_v5 = vcombine.low %v1830_v32, %v1833_v53  ;;  %v8338_v43 = vcombine.low %v2033_v22, %v2043_v46  ;;  %v10621_v7 = vld [vmem:[#allocation2 + $0x7c] sm:$0xf]  ;;  %v9299_v54 = vld [vmem:[#allocation2 + $0x6c] sm:$0xf]  ;;  %v9303_v53 = vld [vmem:[#allocation2 + $0x60] sm:$0xf] }
 0x21b   : >> { %4521 = vmatmul.mubr.bf16.gmra.mxu1 %v3844_v61  ;;  %v2052_v18 = vrot.slane %v2051_v47, 4  ;;  %v2061_v41 = vor.u32 %v2060_v4, %v2056_v2  ;;  %v8232_v56 = vrot.slane %v1707_v28, 9  ;;  %v2066_v31 = vrot.slane %v2064_v63, 5  ;;  %v9302_v63 = vld [vmem:[#allocation2 + $0x5c] sm:$0x1] }
 0x21c   : >> { %4528 = vmatprep.mubr.bf16.mxu1 %v3912_v0  ;;  %v3804_v19 = vsel %vm3701_vm0, %v8311_v5, %v10566_v60  ;;  %v1836_v44 = vrot.slane %v10621_v7, 5  ;;  %v1839_v14 = vrot.slane %v9298_v35, 5  ;;  %v8279_v30 = vcombine.low %v9299_v54, %v10587_v10  ;;  %v10650_v4 = vld [vmem:[#allocation2 + $0x64] sm:$0xf]  ;;  %v10653_v39 = vld [vmem:[#allocation2 + $0x88] sm:$0xf] }
 0x21d   : >> { %4400 = vmatmul.mubr.bf16.gmra.mxu0 %v3736_v52  ;;  %v2062_v33 = vrot.slane %v2061_v41, 4  ;;  %v2078_v55 = vshll.u32 %v9300_v25, 16  ;;  %v2082_v50 = vshrl.u32 %v9300_v25, 16  ;;  %v2141_v60 = vshrl.u32 %v10625_v13, 16  ;;  %v9306_v5 = vld [vmem:[#allocation2 + $0x8c] sm:$0x1] }
 0x21e   : >> { %v2144_v16 = vshll.u32 %v10625_v13, 16  ;;  %4407 = vmatprep.mubr.bf16.mxu0 %v3804_v19  ;;  %v1837_v47 = vsel %vm9987_vm15, %v8232_v56, %v1836_v44  ;;  %v1838_v32 = vrot.slane %v1836_v44, 4  ;;  %v3916_v62 = vsel %vm3701_vm0, %v8371_v27, %v10538_v38  ;;  %v9307_v56 = vld [vmem:[#allocation2 + $0x78] sm:$0xf]  ;;  %v9308_v35 = vld [vmem:[#allocation2 + $0x64] sm:$0xf] }
 0x21f   : >> { %v2075_v10 = vor.u32 %v10211_v1, %v10209_v34  ;;  %v10635_v12 = vrot.slane %v2078_v55, 5  ;;  %v2084_v36 = vrot.slane %v2082_v50, 4  ;;  %v3848_v61 = vsel %vm3701_vm0, %v8338_v43, %v10513_v51  ;;  %v3226_v51 = vpop.permute.xlu1 %3225 }
 0x220   : >> { %v2057_v22 = vsel %vm9900_vm12, %v2052_v18, %v2056_v2  ;;  %v2067_v46 = vsel %vm9900_vm12, %v2062_v33, %v2066_v31  ;;  %v1840_v24 = vsel %vm9987_vm15, %v1838_v32, %v1839_v14  ;;  %v3740_v38 = vsel %vm3701_vm0, %v8279_v30, %v10592_v23  ;;  %v10648_v0 = vpop.permute.xlu0 %3635 }
 0x221   : >> { %v8312_v34 = vcombine.low %v1837_v47, %v1840_v24  ;;  %v2085_v1 = vor.u32 %v2084_v36, %v10635_v12  ;;  %v2088_v28 = vshll.u32 %v9302_v63, 16  ;;  %v8372_v2 = vcombine.low %v9303_v53, %v10650_v4  ;;  %v9309_v47 = vld [vmem:[#allocation2 + $0x68] sm:$0x1]  ;;  %v9311_v24 = vld [vmem:[#allocation2 + $0x70] sm:$0xf] }
 0x222   : >> { %v8233_v52 = vrot.slane %v1708_v37, 9  ;;  %v1843_v27 = vrot.slane %v10653_v39, 5  ;;  %v1846_v23 = vrot.slane %v9306_v5, 5  ;;  %v8339_v43 = vcombine.low %v2057_v22, %v2067_v46  ;;  %v10684_v63 = vld [vmem:[#allocation2 + $0x70] sm:$0xf] }
 0x223   : >> { %4529 = vmatmul.mubr.bf16.gmra.mxu1 %v3848_v61  ;;  %v3808_v18 = vsel %vm3701_vm0, %v8312_v34, %v3370_v49  ;;  %v2076_v41 = vrot.slane %v2075_v10, 4  ;;  %v8280_v19 = vcombine.low %v9307_v56, %v10621_v7  ;;  %v2102_v14 = vshll.u32 %v9308_v35, 16  ;;  %v10679_v22 = vpop.permute.xlu1 %3491  ;;  %v2917_v34 = vld [vmem:[#allocation2 + $0x18] sm:$0xe] }
 0x224   : >> { %4536 = vmatprep.mubr.bf16.mxu1 %v3916_v62  ;;  %v1844_v31 = vsel %vm9987_vm15, %v8233_v52, %v1843_v27  ;;  %v1845_v44 = vrot.slane %v1843_v27, 4  ;;  %v2106_v33 = vshrl.u32 %v9308_v35, 16  ;;  %v10660_v54 = vrot.slane %v2141_v60, 4  ;;  %v10668_v62 = vld [vmem:[#allocation2 + $0x84] sm:$0xf]  ;;  %v3372_v37 = vpop.permute.xlu0 %3371 }
 0x225   : >> { %4408 = vmatmul.mubr.bf16.gmra.mxu0 %v3740_v38  ;;  %v2086_v30 = vrot.slane %v2085_v1, 4  ;;  %v2090_v25 = vrot.slane %v2088_v28, 5  ;;  %v2099_v49 = vor.u32 %v10574_v3, %v10542_v45  ;;  %v10666_v55 = vrot.slane %v2102_v14, 5  ;;  %v9312_v1 = vld [vmem:[#allocation2 + $0x6c] sm:$0xf] }
 0x226   : >> { %4415 = vmatprep.mubr.bf16.mxu0 %v3808_v18  ;;  %v1847_v7 = vsel %vm9987_vm15, %v1845_v44, %v1846_v23  ;;  %v2108_v50 = vrot.slane %v2106_v33, 4  ;;  %v2112_v32 = vshll.u32 %v9309_v47, 16  ;;  %v2165_v60 = vshrl.u32 %v10668_v62, 16  ;;  %v9315_v35 = vld [vmem:[#allocation2 + $0x84] sm:$0xf] }
 0x227   : >> { %v3920_v10 = vsel %vm3701_vm0, %v8372_v2, %v10596_v48  ;;  %v3744_v36 = vsel %vm3701_vm0, %v8280_v19, %v3226_v51  ;;  %v8313_v45 = vcombine.low %v1844_v31, %v1847_v7  ;;  %v3852_v3 = vsel %vm3701_vm0, %v8339_v43, %v10564_v15  ;;  %v9314_v43 = vld [vmem:[#allocation2 + $0x20] sm:$0x1]  ;;  %v9316_v33 = vld [vmem:[#allocation2 + $0x74] sm:$0x1]  ;;  %v2918_v47 = vld [vmem:[#allocation2 + $0x24] sm:$0xe] }
 0x228   : >> { %v2081_v61 = vsel %vm9900_vm12, %v2076_v41, %v10635_v12  ;;  %v2109_v46 = vor.u32 %v2108_v50, %v10666_v55  ;;  %v2126_v38 = vshll.u32 %v9311_v24, 16  ;;  %v2091_v48 = vsel %vm9900_vm12, %v2086_v30, %v2090_v25  ;;  %v10701_v25 = vld [vmem:[#allocation2 + $0x90] sm:$0xf] }
 0x229   : >> { %v8373_v28 = vcombine.low %v9312_v1, %v10684_v63  ;;  %v2100_v15 = vrot.slane %v2099_v49, 4  ;;  %v2130_v51 = vshrl.u32 %v9311_v24, 16  ;;  %v3812_v53 = vsel %vm3701_vm0, %v8313_v45, %v3372_v37 }
 0x22a   : >> { %v2114_v12 = vrot.slane %v2112_v32, 5  ;;  %v10688_v2 = vrot.slane %v2126_v38, 5  ;;  %v2983_v52 = vrot.slane %v10439_v17, 5  ;;  %v2110_v27 = vrot.slane %v2109_v46, 4 }
 0x22b   : >> { %4537 = vmatmul.mubr.bf16.gmra.mxu1 %v3852_v3  ;;  %v2132_v5 = vrot.slane %v2130_v51, 4  ;;  %v8254_v23 = vrot.slane %v2917_v34, 9  ;;  %v2986_v18 = vrot.slane %v9314_v43, 5  ;;  %v10693_v41 = vrot.slane %v2144_v16, 5  ;;  %v3228_v16 = vpop.permute.xlu1 %3227  ;;  %v2919_v3 = vld [vmem:[#allocation2 + $0x30] sm:$0xe]  ;;  %v3638_v51 = vpop.permute.xlu0 %3637 }
 0x22c   : >> { %4544 = vmatprep.mubr.bf16.mxu1 %v3920_v10  ;;  %v8340_v56 = vcombine.low %v2081_v61, %v2091_v48  ;;  %v2123_v19 = vor.u32 %v10610_v11, %v10578_v57  ;;  %v2985_v31 = vrot.slane %v2983_v52, 4  ;;  %v10697_v44 = vrot.slane %v2165_v60, 4  ;;  %v9318_v57 = vld [vmem:[#allocation2 + $0x78] sm:$0xf]  ;;  %v10706_v11 = vld [vmem:[#allocation2 + $0x7c] sm:$0xf] }
 0x22d   : >> { %v2168_v17 = vshll.u32 %v10668_v62, 16  ;;  %4416 = vmatmul.mubr.bf16.gmra.mxu0 %v3744_v36  ;;  %v8281_v14 = vcombine.low %v9315_v35, %v10653_v39  ;;  %v2136_v30 = vshll.u32 %v9316_v33, 16  ;;  %v2189_v13 = vshrl.u32 %v10701_v25, 16  ;;  %v9320_v36 = vld [vmem:[#allocation2 + $0x7c] sm:$0xf] }
 0x22e   : >> { %v3924_v49 = vsel %vm3701_vm0, %v8373_v28, %v10648_v0  ;;  %4423 = vmatprep.mubr.bf16.mxu0 %v3812_v53  ;;  %v8374_v7 = vcombine.low %v9318_v57, %v10706_v11  ;;  %v2133_v50 = vor.u32 %v2132_v5, %v10688_v2  ;;  %v2105_v39 = vsel %vm9900_vm12, %v2100_v15, %v10666_v55 }
 0x22f   : >> { %v2115_v32 = vsel %vm9900_vm12, %v2110_v27, %v2114_v12  ;;  %v2984_v62 = vsel %vm9987_vm15, %v8254_v23, %v2983_v52  ;;  %v2987_v0 = vsel %vm9987_vm15, %v2985_v31, %v2986_v18  ;;  %v3856_v60 = vsel %vm3701_vm0, %v8340_v56, %v10619_v42  ;;  %v9321_v12 = vld [vmem:[#allocation2 + $0x38] sm:$0x1] }
 0x230   : >> { %v2124_v10 = vrot.slane %v2123_v19, 4  ;;  %v2150_v37 = vshll.u32 %v9320_v36, 16  ;;  %v2154_v45 = vshrl.u32 %v9320_v36, 16  ;;  %v3748_v61 = vsel %vm3701_vm0, %v8281_v14, %v3228_v16 }
 0x231   : >> { %v2138_v55 = vrot.slane %v2136_v30, 5  ;;  %v8255_v46 = vrot.slane %v2918_v47, 9  ;;  %v13059_v24 = vrot.slane %v10014_v58, 5  ;;  %v8341_v34 = vcombine.low %v2105_v39, %v2115_v32  ;;  %v9324_v39 = vld [vmem:[#allocation2 + $0x44] sm:$0x1] }
 0x232   : >> { %v2134_v48 = vrot.slane %v2133_v50, 4  ;;  %v8398_v1 = vcombine.low %v2984_v62, %v2987_v0  ;;  %v2997_v28 = vrot.slane %v10498_v20, 5  ;;  %v10725_v15 = vrot.slane %v2168_v17, 5  ;;  %v2920_v17 = vld [vmem:[#allocation2 + $0x3c] sm:$0xe] }
 0x233   : >> { %v2992_v38 = vrot.slane %v13059_v24, 4  ;;  %v10727_v42 = vrot.slane %v2189_v13, 4  ;;  %4545 = vmatmul.mubr.bf16.gmra.mxu1 %v3856_v60  ;;  %v8256_v53 = vrot.slane %v2919_v3, 9  ;;  %v3000_v52 = vrot.slane %v9321_v12, 5  ;;  %v2921_v50 = vld [vmem:[#allocation2 + $0x48] sm:$0xe] }
 0x234   : >> { %v2192_v27 = vshll.u32 %v10701_v25, 16  ;;  %4552 = vmatprep.mubr.bf16.mxu1 %v3924_v49  ;;  %v2129_v5 = vsel %vm9900_vm12, %v2124_v10, %v10688_v2  ;;  %v10733_v23 = vrot.slane %v2150_v37, 5  ;;  %v2156_v43 = vrot.slane %v2154_v45, 4  ;;  %v9323_v49 = vld [vmem:[#allocation2 + $0x80] sm:$0x1]  ;;  %v3494_v37 = vpop.permute.xlu1 %3493 }
 0x235   : >> { %4424 = vmatmul.mubr.bf16.gmra.mxu0 %v3748_v61  ;;  %v13060_v20 = vmov %v13059_v24  ;;  %v13061_v56 = vrot.slane %v10019_v6, 5  ;;  %v2999_v31 = vrot.slane %v2997_v28, 4  ;;  %v3004_v35 = vrot.slane %v10525_v59, 5  ;;  %v9322_v59 = vld [vmem:[#allocation2 + $0x88] sm:$0xf] }
 0x236   : >> { %v2991_v18 = vsel %vm9987_vm15, %v8255_v46, %v13060_v20  ;;  %v3860_v2 = vsel %vm3701_vm0, %v8341_v34, %v10679_v22  ;;  %v3928_v14 = vsel %vm3701_vm0, %v8374_v7, %v3638_v51  ;;  %v2139_v58 = vsel %vm9900_vm12, %v2134_v48, %v2138_v55  ;;  %9038 = vmatprep.mubr.msk.bf16.mxu0 %vm3701_vm0, %v8398_v1  ;;  %v9325_v45 = vld [vmem:[#allocation2 + $0x84] sm:$0xf]  ;;  %v10762_v3 = vld [vmem:[#allocation2 + $0x88] sm:$0xf]  ;;  %v9327_v46 = vld [vmem:[#allocation2 + $0x50] sm:$0x1] }
 0x237   : >> { %v2994_v19 = vsel %vm9987_vm15, %v2992_v38, %v13061_v56  ;;  %v2147_v6 = vor.u32 %v10693_v41, %v10660_v54  ;;  %v2998_v33 = vsel %vm9987_vm15, %v8256_v53, %v2997_v28  ;;  %v3001_v30 = vsel %vm9987_vm15, %v2999_v31, %v3000_v52  ;;  %v3640_v38 = vpop.permute.xlu0 %3639  ;;  %v9328_v12 = vld [vmem:[#allocation2 + $0x8c] sm:$0x1] }
 0x238   : >> { %v2174_v25 = vshll.u32 %v9322_v59, 16  ;;  %v2178_v13 = vshrl.u32 %v9322_v59, 16  ;;  %v8399_v22 = vcombine.low %v2991_v18, %v2994_v19  ;;  %v2157_v16 = vor.u32 %v2156_v43, %v10733_v23  ;;  %v9329_v43 = vld [vmem:[#allocation2 + $0x94] sm:$0xf] }
 0x239   : >> { %v2160_v57 = vshll.u32 %v9323_v49, 16  ;;  %v8257_v7 = vrot.slane %v2920_v17, 9  ;;  %v3006_v47 = vrot.slane %v3004_v35, 4  ;;  %v3007_v32 = vrot.slane %v9324_v39, 5 }
 0x23a   : >> { %v10757_v54 = vrot.slane %v2174_v25, 5  ;;  %v2180_v41 = vrot.slane %v2178_v13, 4  ;;  %v8342_v62 = vcombine.low %v2129_v5, %v2139_v58  ;;  %v2148_v0 = vrot.slane %v2147_v6, 4  ;;  %v2923_v58 = vld [vmem:[#allocation2 + $0x60] sm:$0xe] }
 0x23b   : >> { %v8400_v60 = vcombine.low %v2998_v33, %v3001_v30  ;;  %v3011_v10 = vrot.slane %v10583_v29, 5  ;;  %v10760_v36 = vrot.slane %v2192_v27, 5  ;;  %4553 = vmatmul.mubr.bf16.gmra.mxu1 %v3860_v2  ;;  %v8375_v61 = vcombine.low %v9325_v45, %v10762_v3  ;;  %v10786_v2 = vld [vmem:[#allocation2 + $0x94] sm:$0xf]  ;;  %v3496_v45 = vpop.permute.xlu1 %3495 }
 0x23c   : >> { %v8258_v55 = vrot.slane %v2921_v50, 9  ;;  %v3014_v24 = vrot.slane %v9327_v46, 5  ;;  %4560 = vmatprep.mubr.bf16.mxu1 %v3928_v14  ;;  %v2158_v34 = vrot.slane %v2157_v16, 4  ;;  %v2162_v48 = vrot.slane %v2160_v57, 5 }
 0x23d   : >> { %v2171_v1 = vor.u32 %v10725_v15, %v10697_v44  ;;  %v3013_v29 = vrot.slane %v3011_v10, 4  ;;  %9039 = vmatmul.mubr.msk.bf16.vlgmr.msra.gmra.mxu0 %vm3701_vm0, %v8399_v22  ;;  %v3005_v28 = vsel %vm9987_vm15, %v8257_v7, %v3004_v35  ;;  %v3008_v51 = vsel %vm9987_vm15, %v3006_v47, %v3007_v32  ;;  %v2922_v44 = vld [vmem:[#allocation2 + $0x54] sm:$0xe]  ;;  %v9330_v35 = vld [vmem:[#allocation2 + $0x90] sm:$0xf] }
 0x23e   : >> { %v2181_v53 = vor.u32 %v2180_v41, %v10757_v54  ;;  %v2184_v52 = vshll.u32 %v9328_v12, 16  ;;  %v3864_v27 = vsel %vm3701_vm0, %v8342_v62, %v3494_v37  ;;  %v2153_v5 = vsel %vm9900_vm12, %v2148_v0, %v10733_v23  ;;  %9042 = vmatprep.mubr.msk.bf16.mxu0 %vm3701_vm0, %v8400_v60  ;;  %v9332_v22 = vld [vmem:[#allocation2 + $0x5c] sm:$0x1]  ;;  %v9333_v47 = vld [vmem:[#allocation2 + $0x68] sm:$0x1]  ;;  %v3642_v60 = vpop.permute.xlu0 %3641 }
 0x23f   : >> { %v3018_v15 = vrot.slane %v10614_v21, 5  ;;  %v2198_v20 = vshll.u32 %v9329_v43, 16  ;;  %v3932_v18 = vsel %vm3701_vm0, %v8375_v61, %v3640_v38  ;;  %v3012_v56 = vsel %vm9987_vm15, %v8258_v55, %v3011_v10  ;;  %v9334_v62 = vld [vmem:[#allocation2 + $0xa8] sm:$0xf]  ;;  %v9335_v55 = vld [vmem:[#allocation2 + $0x98] sm:$0x1] }
 0x240   : >> { %v3015_v19 = vsel %vm9987_vm15, %v3013_v29, %v3014_v24  ;;  %v2202_v31 = vshrl.u32 %v9329_v43, 16  ;;  %v2163_v17 = vsel %vm9900_vm12, %v2158_v34, %v2162_v48  ;;  %v8401_v23 = vcombine.low %v3005_v28, %v3008_v51  ;;  %v9336_v34 = vld [vmem:[#allocation2 + $0xa0] sm:$0xf] }
 0x241   : >> { %v8376_v21 = vcombine.low %v9330_v35, %v10786_v2  ;;  %v2172_v14 = vrot.slane %v2171_v1, 4  ;;  %v2182_v6 = vrot.slane %v2181_v53, 4  ;;  %v2186_v33 = vrot.slane %v2184_v52, 5  ;;  %v2925_v52 = vld [vmem:[#allocation2 + $0x78] sm:$0xe] }
 0x242   : >> { %v8259_v30 = vrot.slane %v2922_v44, 9  ;;  %v3025_v59 = vrot.slane %v10650_v4, 5  ;;  %v8402_v25 = vcombine.low %v3012_v56, %v3015_v19  ;;  %v3020_v13 = vrot.slane %v3018_v15, 4 }
 0x243   : >> { %v3021_v16 = vrot.slane %v9332_v22, 5  ;;  %v10790_v49 = vrot.slane %v2198_v20, 5  ;;  %4561 = vmatmul.mubr.bf16.gmra.mxu1 %v3864_v27  ;;  %v2204_v57 = vrot.slane %v2202_v31, 4  ;;  %v8260_v7 = vrot.slane %v2923_v58, 9  ;;  %v3498_v20 = vpop.permute.xlu1 %3497 }
 0x244   : >> { %v3027_v50 = vrot.slane %v3025_v59, 4  ;;  %v3028_v39 = vrot.slane %v9333_v47, 5  ;;  %v13062_v32 = vshll.u32 %v9877_v8, 16  ;;  %v2237_v0 = vshrl.u32 %v9334_v62, 16  ;;  %4568 = vmatprep.mubr.bf16.mxu1 %v3932_v18  ;;  %v3644_v22 = vpop.permute.xlu0 %3643 }
 0x245   : >> { %v8343_v4 = vcombine.low %v2153_v5, %v2163_v17  ;;  %v2195_v10 = vor.u32 %v10760_v36, %v10727_v42  ;;  %v2240_v37 = vshll.u32 %v9334_v62, 16  ;;  %9043 = vmatmul.mubr.msk.bf16.gmra.mxu0 %vm3701_vm0, %v8401_v23  ;;  %v2177_v61 = vsel %vm9900_vm12, %v2172_v14, %v10757_v54  ;;  %v2924_v36 = vld [vmem:[#allocation2 + $0x6c] sm:$0xe]  ;;  %v9338_v14 = vld [vmem:[#allocation2 + $0x80] sm:$0x1] }
 0x246   : >> { %v10794_v41 = vrot.slane %v13062_v32, 5  ;;  %v2187_v8 = vsel %vm9900_vm12, %v2182_v6, %v2186_v33  ;;  %v2208_v46 = vshll.u32 %v9335_v55, 16  ;;  %9046 = vmatprep.mubr.msk.bf16.mxu0 %vm3701_vm0, %v8402_v25  ;;  %v3019_v24 = vsel %vm9987_vm15, %v8259_v30, %v3018_v15  ;;  %v9337_v15 = vld [vmem:[#allocation2 + $0x74] sm:$0x1]  ;;  %v9339_v30 = vld [vmem:[#allocation2 + $0x9c] sm:$0xf] }
 0x247   : >> { %v3022_v42 = vsel %vm9987_vm15, %v3020_v13, %v3021_v16  ;;  %v3032_v38 = vrot.slane %v10684_v63, 5  ;;  %v2222_v48 = vshll.u32 %v9336_v34, 16  ;;  %v3936_v54 = vsel %vm3701_vm0, %v8376_v21, %v3642_v60 }
 0x248   : >> { %v2205_v1 = vor.u32 %v2204_v57, %v10790_v49  ;;  %v3026_v29 = vsel %vm9987_vm15, %v8260_v7, %v3025_v59  ;;  %v3029_v28 = vsel %vm9987_vm15, %v3027_v50, %v3028_v39  ;;  %v3868_v51 = vsel %vm3701_vm0, %v8343_v4, %v3496_v45  ;;  %v10826_v59 = vld [vmem:[#allocation2 + $0xa0] sm:$0xf]  ;;  %v9341_v39 = vld [vmem:[#allocation2 + $0xa4] sm:$0x1] }
 0x249   : >> { %v8344_v53 = vcombine.low %v2177_v61, %v2187_v8  ;;  %v2196_v12 = vrot.slane %v2195_v10, 4  ;;  %v3039_v27 = vrot.slane %v10706_v11, 5  ;;  %v8403_v63 = vcombine.low %v3019_v24, %v3022_v42  ;;  %v13064_v11 = vld [vmem:[#allocation9_spill] sm:$0xff]  ;;  %v9342_v10 = vld [vmem:[#allocation2 + $0xac] sm:$0xf] }
 0x24a   : >> { %v2210_v5 = vrot.slane %v2208_v46, 5  ;;  %v8261_v44 = vrot.slane %v2924_v36, 9  ;;  %v3035_v43 = vrot.slane %v9337_v15, 5  ;;  %v8404_v18 = vcombine.low %v3026_v29, %v3029_v28  ;;  %v2927_v61 = vld [vmem:[#allocation2 + $0x90] sm:$0xe] }
 0x24b   : >> { %v3034_v56 = vrot.slane %v3032_v38, 4  ;;  %v10818_v19 = vrot.slane %v2222_v48, 5  ;;  %v13063_v31 = vshrl.u32 %v9879_v9, 16  ;;  %4569 = vmatmul.mubr.bf16.gmra.mxu1 %v3868_v51  ;;  %v2206_v23 = vrot.slane %v2205_v1, 4  ;;  %v9343_v24 = vld [vmem:[#allocation2 + $0x8c] sm:$0x1] }
 0x24c   : >> { %v8262_v35 = vrot.slane %v2925_v52, 9  ;;  %v3041_v21 = vrot.slane %v3039_v27, 4  ;;  %v3042_v58 = vrot.slane %v9338_v14, 5  ;;  %v2219_v6 = vor.u32 %v10794_v41, %v13064_v11  ;;  %4576 = vmatprep.mubr.bf16.mxu1 %v3936_v54  ;;  %v2926_v41 = vld [vmem:[#allocation2 + $0x84] sm:$0xe]  ;;  %v3500_v54 = vpop.permute.xlu1 %3499 }
 0x24d   : >> { %v2228_v17 = vrot.slane %v13063_v31, 4  ;;  %v10824_v33 = vrot.slane %v2237_v0, 4  ;;  %v8377_v25 = vcombine.low %v9339_v30, %v10826_v59  ;;  %v10829_v13 = vrot.slane %v2240_v37, 5  ;;  %9047 = vmatmul.mubr.msk.bf16.gmra.mxu0 %vm3701_vm0, %v8403_v63  ;;  %v9344_v29 = vld [vmem:[#allocation2 + $0x98] sm:$0x1] }
 0x24e   : >> { %v3872_v9 = vsel %vm3701_vm0, %v8344_v53, %v3498_v20  ;;  %v2201_v16 = vsel %vm9900_vm12, %v2196_v12, %v10790_v49  ;;  %v3046_v57 = vrot.slane %v10762_v3, 5  ;;  %9050 = vmatprep.mubr.msk.bf16.mxu0 %vm3701_vm0, %v8404_v18  ;;  %v3033_v7 = vsel %vm9987_vm15, %v8261_v44, %v3032_v38  ;;  %v9345_v51 = vld [vmem:[#allocation2 + $0xb4] sm:$0xf]  ;;  %v9346_v12 = vld [vmem:[#allocation2 + $0xa8] sm:$0xf] }
 0x24f   : >> { %v3036_v50 = vsel %vm9987_vm15, %v3034_v56, %v3035_v43  ;;  %v2229_v47 = vor.u32 %v2228_v17, %v10818_v19  ;;  %v2232_v32 = vshll.u32 %v9341_v39, 16  ;;  %v2211_v62 = vsel %vm9900_vm12, %v2206_v23, %v2210_v5  ;;  %v10851_v52 = vld [vmem:[#allocation2 + $0xac] sm:$0xf]  ;;  %v2928_v18 = vld [vmem:[#allocation2 + $0x9c] sm:$0xe] }
 0x250   : >> { %v3040_v49 = vsel %vm9987_vm15, %v8262_v35, %v3039_v27  ;;  %v3043_v3 = vsel %vm9987_vm15, %v3041_v21, %v3042_v58  ;;  %v3053_v0 = vrot.slane %v10786_v2, 5  ;;  %v3940_v4 = vsel %vm3701_vm0, %v8377_v25, %v3644_v22  ;;  %v3646_v15 = vpop.permute.xlu0 %3645  ;;  %v9348_v21 = vld [vmem:[#allocation2 + $0xb0] sm:$0x1] }
 0x251   : >> { %v2220_v60 = vrot.slane %v2219_v6, 4  ;;  %v2246_v37 = vshll.u32 %v9342_v10, 16  ;;  %v2250_v45 = vshrl.u32 %v9342_v10, 16  ;;  %v8405_v8 = vcombine.low %v3033_v7, %v3036_v50  ;;  %v9353_v10 = vld [vmem:[#allocation2 + $0xb8] sm:$0xf] }
 0x252   : >> { %v8263_v55 = vrot.slane %v2926_v41, 9  ;;  %v3048_v46 = vrot.slane %v3046_v57, 4  ;;  %v3049_v42 = vrot.slane %v9343_v24, 5  ;;  %v8345_v36 = vcombine.low %v2201_v16, %v2211_v62  ;;  %v9349_v16 = vld [vmem:[#allocation2 + $0xa4] sm:$0x1] }
 0x253   : >> { %v2230_v38 = vrot.slane %v2229_v47, 4  ;;  %v2234_v34 = vrot.slane %v2232_v32, 5  ;;  %v8406_v48 = vcombine.low %v3040_v49, %v3043_v3  ;;  %4577 = vmatmul.mubr.bf16.gmra.mxu1 %v3872_v9  ;;  %v8264_v1 = vrot.slane %v2927_v61, 9  ;;  %v2929_v9 = vld [vmem:[#allocation2 + $0xa8] sm:$0xe]  ;;  %v3502_v32 = vpop.permute.xlu1 %3501 }
 0x254   : >> { %v3055_v2 = vrot.slane %v3053_v0, 4  ;;  %v3056_v28 = vrot.slane %v9344_v29, 5  ;;  %v2261_v53 = vshrl.u32 %v9345_v51, 16  ;;  %4584 = vmatprep.mubr.bf16.mxu1 %v3940_v4  ;;  %v8378_v27 = vcombine.low %v9346_v12, %v10851_v52  ;;  %v9351_v3 = vld [vmem:[#allocation2 + $0xb0] sm:$0x1] }
 0x255   : >> { %v10854_v63 = vrot.slane %v2246_v37, 5  ;;  %v2252_v5 = vrot.slane %v2250_v45, 4  ;;  %v2264_v44 = vshll.u32 %v9345_v51, 16  ;;  %9051 = vmatmul.mubr.msk.bf16.gmra.mxu0 %vm3701_vm0, %v8405_v8  ;;  %v3047_v43 = vsel %vm9987_vm15, %v8263_v55, %v3046_v57  ;;  %v9355_v51 = vld [vmem:[#allocation2 + $0xc4] sm:$0xf] }
 0x256   : >> { %v3050_v20 = vsel %vm9987_vm15, %v3048_v46, %v3049_v42  ;;  %v3060_v56 = vrot.slane %v10826_v59, 5  ;;  %v3876_v31 = vsel %vm3701_vm0, %v8345_v36, %v3500_v54  ;;  %v2225_v17 = vsel %vm9900_vm12, %v2220_v60, %v10818_v19  ;;  %9054 = vmatprep.mubr.msk.bf16.mxu0 %vm3701_vm0, %v8406_v48  ;;  %v9352_v60 = vld [vmem:[#allocation2 + $0xb4] sm:$0xf]  ;;  %v9354_v42 = vld [vmem:[#allocation2 + $0xc0] sm:$0xf] }
 0x257   : >> { %v2235_v23 = vsel %vm9900_vm12, %v2230_v38, %v2234_v34  ;;  %v2243_v35 = vor.u32 %v10829_v13, %v10824_v33  ;;  %v2256_v14 = vshll.u32 %v9348_v21, 16  ;;  %v3054_v58 = vsel %vm9987_vm15, %v8264_v1, %v3053_v0  ;;  %v9350_v13 = vld [vmem:[#allocation2 + $0xb8] sm:$0xf] }
 0x258   : >> { %v3057_v11 = vsel %vm9987_vm15, %v3055_v2, %v3056_v28  ;;  %v3067_v6 = vrot.slane %v10851_v52, 5  ;;  %v3944_v19 = vsel %vm3701_vm0, %v8378_v27, %v3646_v15  ;;  %v8407_v30 = vcombine.low %v3047_v43, %v3050_v20  ;;  %v2930_v28 = vld [vmem:[#allocation2 + $0xb4] sm:$0xe]  ;;  %v2931_v15 = vld [vmem:[#allocation2 + $0xc0] sm:$0xe] }
 0x259   : >> { %v2253_v59 = vor.u32 %v2252_v5, %v10854_v63  ;;  %v8265_v25 = vrot.slane %v2928_v18, 9  ;;  %v3062_v22 = vrot.slane %v3060_v56, 4  ;;  %v3063_v33 = vrot.slane %v9349_v16, 5  ;;  %v9356_v5 = vld [vmem:[#allocation2 + $0xbc] sm:$0x1]  ;;  %v3504_v16 = vpop.permute.xlu1 %3503 }
 0x25a   : >> { %v2270_v57 = vshll.u32 %v9350_v13, 16  ;;  %v2274_v7 = vshrl.u32 %v9350_v13, 16  ;;  %v2263_v50 = vrot.slane %v2261_v53, 4  ;;  %v8346_v47 = vcombine.low %v2225_v17, %v2235_v23  ;;  %v9357_v20 = vld [vmem:[#allocation2 + $0xc4] sm:$0xf] }
 0x25b   : >> { %v8408_v39 = vcombine.low %v3054_v58, %v3057_v11  ;;  %4585 = vmatmul.mubr.bf16.gmra.mxu1 %v3876_v31  ;;  %v2244_v41 = vrot.slane %v2243_v35, 4  ;;  %v8266_v62 = vrot.slane %v2929_v9, 9  ;;  %v3069_v49 = vrot.slane %v3067_v6, 4  ;;  %v3648_v48 = vpop.permute.xlu0 %3647  ;;  %v9358_v35 = vld [vmem:[#allocation2 + $0xbc] sm:$0x1] }
 0x25c   : >> { %v3070_v0 = vrot.slane %v9351_v3, 5  ;;  %v2266_v4 = vrot.slane %v2264_v44, 5  ;;  %4592 = vmatprep.mubr.bf16.mxu1 %v3944_v19  ;;  %v8379_v37 = vcombine.low %v9352_v60, %v9353_v10  ;;  %v2254_v45 = vrot.slane %v2253_v59, 4  ;;  %v2932_v3 = vld [vmem:[#allocation2 + $0xcc] sm:$0xe] }
 0x25d   : >> { %v2258_v61 = vrot.slane %v2256_v14, 5  ;;  %9055 = vmatmul.mubr.msk.bf16.gmra.mxu0 %vm3701_vm0, %v8407_v30  ;;  %v3061_v8 = vsel %vm9987_vm15, %v8265_v25, %v3060_v56  ;;  %v3064_v55 = vsel %vm9987_vm15, %v3062_v22, %v3063_v33  ;;  %v10883_v46 = vrot.slane %v2270_v57, 5  ;;  %v9360_v25 = vld [vmem:[#allocation2 + $0xc0] sm:$0xf] }
 0x25e   : >> { %v2276_v24 = vrot.slane %v2274_v7, 4  ;;  %v2285_v36 = vshrl.u32 %v9354_v42, 16  ;;  %v2288_v38 = vshll.u32 %v9354_v42, 16  ;;  %v3880_v34 = vsel %vm3701_vm0, %v8346_v47, %v3502_v32  ;;  %9058 = vmatprep.mubr.msk.bf16.mxu0 %vm3701_vm0, %v8408_v39  ;;  %v9361_v39 = vld [vmem:[#allocation2 + $0xd0] sm:$0xf] }
 0x25f   : >> { %v3074_v54 = vrot.slane %v9353_v10, 5  ;;  %v2249_v1 = vsel %vm9900_vm12, %v2244_v41, %v10854_v63  ;;  %v3068_v2 = vsel %vm9987_vm15, %v8266_v62, %v3067_v6  ;;  %v3071_v29 = vsel %vm9987_vm15, %v3069_v49, %v3070_v0  ;;  %v9359_v6 = vld [vmem:[#allocation2 + $0xc8] sm:$0x1] }
 0x260   : >> { %v3081_v53 = vrot.slane %v9355_v51, 5  ;;  %v2259_v12 = vsel %vm9900_vm12, %v2254_v45, %v2258_v61  ;;  %v8409_v52 = vcombine.low %v3061_v8, %v3064_v55  ;;  %v2267_v27 = vor.u32 %v2266_v4, %v2263_v50  ;;  %v9362_v10 = vld [vmem:[#allocation2 + $0xc8] sm:$0x1] }
 0x261   : >> { %v2280_v44 = vshll.u32 %v9356_v5, 16  ;;  %v3948_v43 = vsel %vm3701_vm0, %v8379_v37, %v3648_v48  ;;  %v2277_v63 = vor.u32 %v2276_v24, %v10883_v46  ;;  %v2294_v18 = vshll.u32 %v9357_v20, 16  ;;  %v9363_v24 = vld [vmem:[#allocation2 + $0xd4] sm:$0x1] }
 0x262   : >> { %v2298_v56 = vshrl.u32 %v9357_v20, 16  ;;  %v8410_v31 = vcombine.low %v3068_v2, %v3071_v29  ;;  %v8267_v17 = vrot.slane %v2930_v28, 9  ;;  %v3076_v23 = vrot.slane %v3074_v54, 4 }
 0x263   : >> { %v3077_v21 = vrot.slane %v9358_v35, 5  ;;  %v2287_v14 = vrot.slane %v2285_v36, 4  ;;  %4593 = vmatmul.mubr.bf16.gmra.mxu1 %v3880_v34  ;;  %v8268_v58 = vrot.slane %v2931_v15, 9  ;;  %v3083_v11 = vrot.slane %v3081_v53, 4 }
 0x264   : >> { %v3084_v19 = vrot.slane %v9359_v6, 5  ;;  %v2290_v30 = vrot.slane %v2288_v38, 5  ;;  %4600 = vmatprep.mubr.bf16.mxu1 %v3948_v43  ;;  %v8347_v59 = vcombine.low %v2249_v1, %v2259_v12  ;;  %v8380_v9 = vcombine.low %v9360_v25, %v9355_v51  ;;  %v9364_v51 = vld [vmem:[#allocation2 + $0xcc] sm:$0xf] }
 0x265   : >> { %v2268_v22 = vrot.slane %v2267_v27, 4  ;;  %9059 = vmatmul.mubr.msk.bf16.gmra.mxu0 %vm3701_vm0, %v8409_v52  ;;  %v2278_v33 = vrot.slane %v2277_v63, 4  ;;  %v2282_v13 = vrot.slane %v2280_v44, 5  ;;  %v2296_v57 = vrot.slane %v2294_v18, 5 }
 0x266   : >> { %v2300_v7 = vrot.slane %v2298_v56, 4  ;;  %9062 = vmatprep.mubr.msk.bf16.mxu0 %vm3701_vm0, %v8410_v31  ;;  %v3075_v50 = vsel %vm9987_vm15, %v8267_v17, %v3074_v54  ;;  %v3078_v47 = vsel %vm9987_vm15, %v3076_v23, %v3077_v21  ;;  %v3088_v32 = vrot.slane %v9361_v39, 5  ;;  %v3650_v41 = vpop.permute.xlu0 %3649 }
 0x267   : >> { %v3082_v62 = vsel %vm9987_vm15, %v8268_v58, %v3081_v53  ;;  %v3085_v49 = vsel %vm9987_vm15, %v3083_v11, %v3084_v19  ;;  %v3884_v0 = vsel %vm3701_vm0, %v8347_v59, %v3504_v16  ;;  %v2273_v4 = vsel %vm9900_vm12, %v2268_v22, %v10883_v46  ;;  %v3506_v54 = vpop.permute.xlu1 %3505 }
 0x268   : >> { %v2291_v60 = vor.u32 %v2290_v30, %v2287_v14  ;;  %v2304_v37 = vshll.u32 %v9362_v10, 16  ;;  %v3952_v45 = vsel %vm3701_vm0, %v8380_v9, %v3650_v41  ;;  %v2283_v61 = vsel %vm9900_vm12, %v2278_v33, %v2282_v13 }
 0x269   : >> { %v8411_v8 = vcombine.low %v3075_v50, %v3078_v47  ;;  %v2301_v55 = vor.u32 %v2300_v7, %v2296_v57  ;;  %v3091_v42 = vrot.slane %v9363_v24, 5  ;;  %v8412_v36 = vcombine.low %v3082_v62, %v3085_v49 }
 0x26a   : >> { %v8269_v38 = vrot.slane %v2932_v3, 9  ;;  %v3090_v34 = vrot.slane %v3088_v32, 4  ;;  %v8348_v48 = vcombine.low %v2273_v4, %v2283_v61  ;;  %v2292_v46 = vrot.slane %v2291_v60, 4 }
 0x26b   : >> { %4601 = vmatmul.mubr.bf16.gmra.mxu1 %v3884_v0  ;;  %v2302_v1 = vrot.slane %v2301_v55, 4  ;;  %v2306_v2 = vrot.slane %v2304_v37, 5  ;;  %v8381_v53 = vcombine.low %v9364_v51, %v9361_v39  ;;  %vm5611_vm1 = vcmask (%p1258_p11), 1046528  }
 0x26c   : >> { %4608 = vmatprep.mubr.bf16.mxu1 %v3952_v45  ;;  %v3089_v29 = vsel %vm9987_vm15, %v8269_v38, %v3088_v32  ;;  %v3092_v28 = vsel %vm9987_vm15, %v3090_v34, %v3091_v42  ;;  %v3888_v12 = vsel %vm3701_vm0, %v8348_v48, %v3506_v54  ;;  %v2297_v52 = vsel %vm9900_vm12, %v2292_v46, %v2296_v57 }
 0x26d   : >> { %9063 = vmatmul.mubr.msk.bf16.gmra.mxu0 %vm3701_vm0, %v8411_v8  ;;  %v2307_v27 = vsel %vm9900_vm12, %v2302_v1, %v2306_v2  ;;  %v8413_v5 = vcombine.low %v3089_v29, %v3092_v28  ;;  %vm5889_vm2 = vcmask (%p1258_p11), 1045504   ;;  %vm8026_vm4 = vcmask (%p1258_p11), 1041409  }
 0x26e   : >> { %9066 = vmatprep.mubr.msk.bf16.mxu0 %vm3701_vm0, %v8412_v36  ;;  %v8349_v43 = vcombine.low %v2297_v52, %v2307_v27  ;;  %vm8028_vm5 = vcmask (%p1258_p11), 1042434   ;;  %vm8030_vm6 = vcmask (%p1258_p11), 1043459   ;;  %vm8038_vm10 = vcmask (%p1258_p11), 1047559  }
 0x26f   : > { %vm8049_vm11 = vcmask (%p1258_p11), 130048  }
 0x271   : >> { %v3508_v63 = vpop.permute.xlu1 %3507 }
 0x272   : >> { %v3652_v44 = vpop.permute.xlu0 %3651  ;;  %v3892_v26 = vsel %vm3701_vm0, %v8349_v43, %v3508_v63 }
 0x273   : >> { %4609 = vmatmul.mubr.bf16.gmra.mxu1 %v3888_v12  ;;  %v3956_v15 = vsel %vm3701_vm0, %v8381_v53, %v3652_v44 }
 0x274   : >> { %4616 = vmatprep.mubr.bf16.mxu1 %v3956_v15 }
 0x275   : >> { %9067 = vmatmul.mubr.msk.bf16.gmra.mxu0 %vm3701_vm0, %v8413_v5 }
 0x27b   : >> { %4617 = vmatmul.mubr.bf16.gmra.mxu1 %v3892_v26 }
 0x287   : >> { %v8822_v20 = vpop.f32.mrf.mxu1 }
 0x289   : >> { %v8823_v18 = vpop.f32.mrf.mxu1 }
 0x28a   : >> { %v10929_v31 = vadd.f32 %v8823_v18, %v8822_v20 }
 0x28b   : >> { %v8750_v56 = vpop.f32.mrf.mxu0  ;;  %v8825_v40 = vpop.f32.mrf.mxu1 }
 0x28d   : >> { %v8751_v17 = vpop.f32.mrf.mxu0  ;;  %v8826_v35 = vpop.f32.mrf.mxu1 }
 0x28e   : >> { %v10931_v23 = vadd.f32 %v8751_v17, %v8750_v56  ;;  %v10933_v14 = vadd.f32 %v8826_v35, %v8825_v40 }
 0x28f   : >> { %v8753_v21 = vpop.f32.mrf.mxu0 }
 0x291   : >> { %v8754_v58 = vpop.f32.mrf.mxu0 }
 0x292   : >> { %v10935_v11 = vadd.f32 %v8754_v58, %v8753_v21 }
 0x294   : >> { %v8828_v6 = vpop.f32.mrf.mxu1 }
 0x296   : >> { %v8756_v19 = vpop.f32.mrf.mxu0  ;;  %v8829_v30 = vpop.f32.mrf.mxu1 }
 0x297   : >> { %v10937_v59 = vadd.f32 %v8829_v30, %v8828_v6 }
 0x298   : >> { %v8757_v25 = vpop.f32.mrf.mxu0  ;;  %v8831_v9 = vpop.f32.mrf.mxu1 }
 0x299   : >> { %v10939_v22 = vadd.f32 %v8757_v25, %v8756_v19 }
 0x29a   : >> { %v8759_v16 = vpop.f32.mrf.mxu0  ;;  %v8832_v33 = vpop.f32.mrf.mxu1 }
 0x29b   : >> { %v10941_v13 = vadd.f32 %v8832_v33, %v8831_v9 }
 0x29c   : >> { %v8760_v57 = vpop.f32.mrf.mxu0 }
 0x29d   : >> { %v10943_v7 = vadd.f32 %v8760_v57, %v8759_v16 }
 0x29f   : >> { %v8834_v50 = vpop.f32.mrf.mxu1 }
 0x2a1   : >> { %v8762_v47 = vpop.f32.mrf.mxu0  ;;  %v8835_v39 = vpop.f32.mrf.mxu1 }
 0x2a2   : >> { %v10945_v32 = vadd.f32 %v8835_v39, %v8834_v50 }
 0x2a3   : >> { %v8763_v41 = vpop.f32.mrf.mxu0  ;;  %v8837_v62 = vpop.f32.mrf.mxu1 }
 0x2a4   : >> { %v10947_v49 = vadd.f32 %v8763_v41, %v8762_v47 }
 0x2a5   : >> { %v8765_v3 = vpop.f32.mrf.mxu0  ;;  %v8838_v0 = vpop.f32.mrf.mxu1 }
 0x2a6   : >> { %v10949_v4 = vadd.f32 %v8838_v0, %v8837_v62 }
 0x2a7   : >> { %v8766_v60 = vpop.f32.mrf.mxu0 }
 0x2a8   : >> { %v10951_v10 = vadd.f32 %v8766_v60, %v8765_v3 }
 0x2aa   : >> { %v8840_v37 = vpop.f32.mrf.mxu1 }
 0x2ac   : >> { %v8768_v45 = vpop.f32.mrf.mxu0  ;;  %v8841_v61 = vpop.f32.mrf.mxu1 }
 0x2ad   : >> { %v10953_v8 = vadd.f32 %v8841_v61, %v8840_v37 }
 0x2ae   : >> { %v8769_v55 = vpop.f32.mrf.mxu0  ;;  %v8843_v24 = vpop.f32.mrf.mxu1 }
 0x2af   : >> { %v10955_v42 = vadd.f32 %v8769_v55, %v8768_v45 }
 0x2b0   : >> { %v8771_v36 = vpop.f32.mrf.mxu0  ;;  %v8844_v38 = vpop.f32.mrf.mxu1 }
 0x2b1   : >> { %v10957_v34 = vadd.f32 %v8844_v38, %v8843_v24 }
 0x2b2   : >> { %v8772_v48 = vpop.f32.mrf.mxu0 }
 0x2b3   : >> { %v10959_v54 = vadd.f32 %v8772_v48, %v8771_v36 }
 0x2b8   : >> { %v10961_v46 = vpop.f32.mrf.mxu1 }
 0x2ba   : >> { %v8863_v28 = vpop.f32.mrf.mxu1 }
 0x2bb   : >> { %v8774_v1 = vpop.f32.mrf.mxu0 }
 0x2bc   : >> { %v8865_v52 = vpop.f32.mrf.mxu1 }
 0x2bd   : >> { %v8775_v2 = vpop.f32.mrf.mxu0 }
 0x2be   : >> { %v10963_v29 = vadd.f32 %v8775_v2, %v8774_v1  ;;  %v8866_v5 = vpop.f32.mrf.mxu1 }
 0x2bf   : >> { %v8777_v51 = vpop.f32.mrf.mxu0 }
 0x2c1   : >> { %v8778_v53 = vpop.f32.mrf.mxu0 }
 0x2c2   : >> { %v10965_v12 = vadd.f32 %v8778_v53, %v8777_v51 }
 0x2c5   : >> { %v8780_v27 = vpop.f32.mrf.mxu0 }
 0x2c7   : >> { %v8781_v44 = vpop.f32.mrf.mxu0 }
 0x2c8   : >> { %v10967_v15 = vadd.f32 %v8781_v44, %v8780_v27 }
 0x2c9   : >> { %v8783_v43 = vpop.f32.mrf.mxu0 }
 0x2cb   : >> { %v10969_v63 = vpop.f32.mrf.mxu1  ;;  %v8784_v26 = vpop.f32.mrf.mxu0 }
 0x2cc   : >> { %v10971_v20 = vadd.f32 %v8784_v26, %v8783_v43  ;;  %v11013_v26 = vld [vmem:[%s4033_s19] ss:$0 sm:$0xff]  ;;  %s9458_s19 = smov (%p1258_p11), [#allocation3]  }
 0x2cd   : >> { %v10973_v18 = vpop.f32.mrf.mxu1  ;;  %v8786_v56 = vpop.f32.mrf.mxu0  ;;  %s9390_s26 = sshll.u32 (%p1258_p11), %s9458_s19, 4  ;;  %s9391_s26 = int_to_ptr.vmem [resolvable:$false] %s9390_s26 }
 0x2ce   : > { %s9392_s28 = scalar_lea.vmem (%p1258_p11), %s9391_s26, 512  ;;  %p9393_p1 = scmp.lt.s32.totalorder (%p1258_p11), %s12976_s14, %s9391_s26 }
 0x2cf   : >> { %v10975_v40 = vpop.f32.mrf.mxu1  ;;  %v8787_v17 = vpop.f32.mrf.mxu0  ;;  %p9394_p2 = scmp.lt.s32.totalorder (%p1258_p11), %s9392_s28, %s9386_s18 }
 0x2d0   : >> { %v10977_v35 = vadd.f32 %v8787_v17, %v8786_v56 }
 0x2d1   : >> { %v10979_v21 = vpop.f32.mrf.mxu1  ;;  %v8789_v58 = vpop.f32.mrf.mxu0  ;;  %p9395_p3 = por (%p1258_p11), %p9394_p2, %p9393_p1 }
 0x2d3   : >> { %v10981_v6 = vpop.f32.mrf.mxu1  ;;  %v8790_v19 = vpop.f32.mrf.mxu0  ;;  %p9396_p4 = pnand (%p1258_p11), %p9395_p3, %p9389_p0 }
 0x2d4   : >> { %v10983_v30 = vadd.f32 %v8790_v19, %v8789_v58  ;;  %v11021_v58 = vadd.f32 %v10929_v31, %v11013_v26  ;;  %v4346_v31 = vadd.f32 %v10939_v22, %v11013_v26  ;;  %v11056_v22 = vadd.f32 %v10949_v4, %v11013_v26 }
 0x2d5   : >> { %v8875_v25 = vpop.f32.mrf.mxu1  ;;  %v10985_v9 = vpop.f32.mrf.mxu0  ;;  %v4365_v4 = vadd.f32 %v10959_v54, %v11013_v26 }
 0x2d6   : >> { %13067 = vst [vmem:[#allocation11_spill] sm:$0xff] %v11021_v58  ;;  %v11042_v58 = vadd.f32 %v10941_v13, %v11013_v26  ;;  %13070 = vst [vmem:[#allocation14_spill] sm:$0xff] %v11056_v22  ;;  %v4357_v13 = vadd.f32 %v10951_v10, %v11013_v26 }
 0x2d7   : >> { %v10987_v16 = vpop.f32.mrf.mxu1  ;;  %v10989_v33 = vpop.f32.mrf.mxu0 }
 0x2d9   : >> { %v8878_v57 = vpop.f32.mrf.mxu1  ;;  %v10991_v50 = vpop.f32.mrf.mxu0 }
 0x2da   : >> { %v8879_v54 = vadd.f32 %v8878_v57, %v10987_v16 }
 0x2db   : >> { %v10993_v47 = vpop.f32.mrf.mxu1  ;;  %v8796_v39 = vpop.f32.mrf.mxu0 }
 0x2dd   : >> { %v10995_v41 = vpop.f32.mrf.mxu1  ;;  %v8798_v62 = vpop.f32.mrf.mxu0 }
 0x2df   : >> { %v8883_v3 = vpop.f32.mrf.mxu1  ;;  %v8799_v0 = vpop.f32.mrf.mxu0 }
 0x2e0   : >> { %v10997_v60 = vadd.f32 %v8799_v0, %v8798_v62  ;;  %v4338_v0 = vadd.f32 %v10931_v23, %v11013_v26  ;;  %v8867_v23 = vadd.f32 %v8866_v5, %v8865_v52  ;;  %v11062_v52 = vadd.f32 %v10953_v8, %v11013_v26 }
 0x2e1   : >> { %v8884_v37 = vpop.f32.mrf.mxu1  ;;  %v8801_v45 = vpop.f32.mrf.mxu0  ;;  %v4370_v8 = vadd.f32 %v10963_v29, %v11013_v26  ;;  %v4378_v29 = vadd.f32 %v10967_v15, %v11013_v26 }
 0x2e2   : >> { %13071 = vst [vmem:[#allocation15_spill] sm:$0xff] %v11062_v52 }
 0x2e3   : >> { %v8886_v61 = vpop.f32.mrf.mxu1  ;;  %v8802_v55 = vpop.f32.mrf.mxu0 }
 0x2e4   : >> { %v10999_v24 = vadd.f32 %v8802_v55, %v8801_v45  ;;  %v4341_v45 = vadd.f32 %v10935_v11, %v11013_v26  ;;  %v11031_v55 = vadd.f32 %v10933_v14, %v11013_v26  ;;  %v4349_v14 = vadd.f32 %v10943_v7, %v11013_v26 }
 0x2e5   : >> { %v8887_v36 = vpop.f32.mrf.mxu1  ;;  %v8804_v38 = vpop.f32.mrf.mxu0  ;;  %v4362_v7 = vadd.f32 %v10955_v42, %v11013_v26  ;;  %v8876_v42 = vadd.f32 %v8875_v25, %v10981_v6  ;;  %v8885_v6 = vadd.f32 %v8884_v37, %v8883_v3  ;;  %v11102_v37 = vadd.f32 %v8879_v54, %v4357_v13 }
 0x2e6   : >> { %v11079_v52 = vadd.f32 %v8867_v23, %v4341_v45  ;;  %v8888_v16 = vadd.f32 %v8887_v36, %v8886_v61 }
 0x2e7   : >> { %v8889_v48 = vpop.f32.mrf.mxu1  ;;  %v8805_v1 = vpop.f32.mrf.mxu0 }
 0x2e8   : >> { %v8806_v57 = vadd.f32 %v8805_v1, %v8804_v38  ;;  %v11114_v1 = vadd.f32 %v10999_v24, %v11013_v26 }
 0x2e9   : >> { %v8890_v2 = vpop.f32.mrf.mxu1  ;;  %v11001_v51 = vpop.f32.mrf.mxu0 }
 0x2eb   : >> { %v11007_v53 = vpop.f32.mrf.mxu1  ;;  %v8808_v27 = vpop.f32.mrf.mxu0 }
 0x2ec   : >> { %v8809_v3 = vadd.f32 %v8808_v27, %v11001_v51  ;;  %v11119_v27 = vadd.f32 %v8888_v16, %v4370_v8 }
 0x2ed   : >> { %v11009_v44 = vpop.f32.mrf.mxu1  ;;  %v11011_v43 = vpop.f32.mrf.mxu0 }
 0x2ee   : >> { %13065 = vst [vmem:[#allocation9_spill] sm:$0xff] %v11011_v43  ;;  %v8864_v43 = vadd.f32 %v8863_v28, %v10961_v46  ;;  %v11048_v46 = vadd.f32 %v10945_v32, %v11013_v26  ;;  %v11128_v24 = vadd.f32 %v8809_v3, %v11013_v26 }
 0x2ef   : >> { %v11015_v56 = vpop.f32.mrf.mxu1  ;;  %v11017_v17 = vpop.f32.mrf.mxu0 }
 0x2f0   : >> { %13066 = vst [vmem:[#allocation10_spill] sm:$0xff] %v11017_v17  ;;  %v11036_v17 = vadd.f32 %v10937_v59, %v11013_v26  ;;  %13069 = vst [vmem:[#allocation13_spill] sm:$0xff] %v11048_v46  ;;  %v4354_v59 = vadd.f32 %v10947_v49, %v11013_v26  ;;  %v11068_v49 = vadd.f32 %v10957_v34, %v11013_v26 }
 0x2f1   : >> { %v11023_v19 = vpop.f32.mrf.mxu1  ;;  %v8813_v62 = vpop.f32.mrf.mxu0  ;;  %v4499_v10 = vadd.f32 %v8864_v43, %v4338_v0  ;;  %v4373_v34 = vadd.f32 %v10965_v12, %v11013_v26  ;;  %v4386_v12 = vadd.f32 %v10977_v35, %v11013_v26  ;;  %v11106_v35 = vadd.f32 %v10997_v60, %v11013_v26 }
 0x2f2   : >> { %13068 = vst [vmem:[#allocation12_spill] sm:$0xff] %v11023_v19 }
 0x2f3   : >> { %v8898_v19 = vpop.f32.mrf.mxu1  ;;  %v8814_v11 = vpop.f32.mrf.mxu0 }
 0x2f4   : >> { %v11052_v28 = vadd.f32 %v8814_v11, %v8813_v62  ;;  %v8870_v62 = vadd.f32 %v10973_v18, %v10969_v63  ;;  %v8873_v11 = vadd.f32 %v10979_v21, %v10975_v40  ;;  %v8794_v63 = vadd.f32 %v10989_v33, %v10985_v9 }
 0x2f5   : >> { %v8899_v32 = vpop.f32.mrf.mxu1  ;;  %v8816_v5 = vpop.f32.mrf.mxu0  ;;  %v8797_v18 = vadd.f32 %v8796_v39, %v10991_v50  ;;  %v4381_v40 = vadd.f32 %v10971_v20, %v11013_v26  ;;  %v8882_v21 = vadd.f32 %v10995_v41, %v10993_v47  ;;  %v4389_v33 = vadd.f32 %v10983_v30, %v11013_v26 }
 0x2f6   : >> { %v4507_v9 = vadd.f32 %v8870_v62, %v4346_v31  ;;  %v8891_v50 = vadd.f32 %v8890_v2, %v8889_v48  ;;  %v4510_v0 = vadd.f32 %v8873_v11, %v4349_v14  ;;  %v11097_v20 = vadd.f32 %v8876_v42, %v4354_v59 }
 0x2f7   : >> { %v8901_v22 = vpop.f32.mrf.mxu1  ;;  %v8817_v46 = vpop.f32.mrf.mxu0  ;;  %v4394_v47 = vadd.f32 %v8794_v63, %v11013_v26  ;;  %v4397_v41 = vadd.f32 %v8797_v18, %v11013_v26  ;;  %v8894_v30 = vadd.f32 %v11009_v44, %v11007_v53  ;;  %v4523_v38 = vadd.f32 %v8882_v21, %v4362_v7  ;;  %v13073_v53 = vld [vmem:[#allocation9_spill] sm:$0xff]  ;;  %v13074_v44 = vld [vmem:[#allocation10_spill] sm:$0xff] }
 0x2f8   : >> { %v11110_v48 = vadd.f32 %v8885_v6, %v4365_v4  ;;  %v11117_v2 = vadd.f32 %v8806_v57, %v11013_v26  ;;  %v8900_v31 = vadd.f32 %v8899_v32, %v8898_v19  ;;  %v8812_v23 = vadd.f32 %v13074_v44, %v13073_v53 }
 0x2f9   : >> { %v8902_v25 = vpop.f32.mrf.mxu1  ;;  %v8819_v43 = vpop.f32.mrf.mxu0  ;;  %v13072_v60 = vld [vmem:[#allocation12_spill] sm:$0xff]  ;;  %v11125_v13 = vadd.f32 %v8891_v50, %v4373_v34  ;;  %v8818_v7 = vadd.f32 %v8817_v46, %v8816_v5  ;;  %v11137_v6 = vadd.f32 %v11052_v28, %v11013_v26 }
 0x2fa   : >> { %v8897_v45 = vadd.f32 %v13072_v60, %v11015_v56  ;;  %v8903_v11 = vadd.f32 %v8902_v25, %v8901_v22  ;;  %v11130_v56 = vadd.f32 %v8894_v30, %v4378_v29  ;;  %v11133_v34 = vadd.f32 %v8812_v23, %v11013_v26  ;;  %v5240_v30 = vld [vmem:[#allocation2 + $0x18] sm:$0xf] }
 0x2fb   : >> { %v8904_v15 = vpop.f32.mrf.mxu1  ;;  %v8820_v39 = vpop.f32.mrf.mxu0  ;;  %v11144_v29 = vadd.f32 %v8818_v7, %v11013_v26  ;;  %v11389_v7 = vld [vmem:[%s13030_s5 + $0x2] ss:$0 sm:$0xff] (%p1258_p11) }
 0x2fc   : >> { %v8821_v54 = vadd.f32 %v8820_v39, %v8819_v43  ;;  %v11139_v22 = vadd.f32 %v8897_v45, %v4381_v40  ;;  %v11152_v39 = vadd.f32 %v8903_v11, %v4389_v33 }
 0x2fd   : >> { %v8905_v61 = vpop.f32.mrf.mxu1  ;;  %v9040_v36 = vpop.f32.mrf.mxu0 }
 0x2fe   : >> { %v4668_v51 = vadd.f32 %v9040_v36, %v4507_v9  ;;  %v8906_v8 = vadd.f32 %v8905_v61, %v8904_v15  ;;  %v11147_v57 = vadd.f32 %v8821_v54, %v11013_v26 }
 0x2ff   : >> { %v8907_v14 = vpop.f32.mrf.mxu1  ;;  %v4659_v59 = vpop.f32.mrf.mxu0 }
 0x300   : >> { %v4788_v4 = vmax.f32 %v4668_v51, 0.0  ;;  %v4660_v62 = vadd.f32 %v4659_v59, %v4499_v10  ;;  %v11141_v10 = vadd.f32 %v8900_v31, %v4386_v12  ;;  %v11150_v15 = vadd.f32 %v8906_v8, %v4394_v47 }
 0x301   : >> { %v8908_v42 = vpop.f32.mrf.mxu1  ;;  %v9041_v63 = vpop.f32.mrf.mxu0 }
 0x302   : >> { %v8909_v19 = vadd.f32 %v8908_v42, %v8907_v14  ;;  %v8551_v32 = vpack.c.bf16 %v4788_v4, %v4788_v4  ;;  %v4786_v18 = vmax.f32 %v4660_v62, 0.0  ;;  %v4671_v21 = vadd.f32 %v9041_v63, %v4510_v0 }
 0x303   : >> { %v8910_v46 = vpop.f32.mrf.mxu1  ;;  %v4662_v5 = vpop.f32.mrf.mxu0 }
 0x304   : >> { %v4932_v25 = vshrl.u32 %v8551_v32, 16  ;;  %v8549_v43 = vpack.c.bf16 %v4786_v18, %v4786_v18  ;;  %v4789_v16 = vmax.f32 %v4671_v21, 0.0  ;;  %v4663_v50 = vadd.f32 %v4662_v5, %v11079_v52  ;;  %v5244_v21 = vld [vmem:[#allocation2 + $0x20] sm:$0x1] }
 0x305   : >> { %v8911_v9 = vpop.f32.mrf.mxu1  ;;  %v9044_v28 = vpop.f32.mrf.mxu0  ;;  %v4935_v12 = vshll.u32 %v8551_v32, 16  ;;  %v11154_v3 = vadd.f32 %v8909_v19, %v4397_v41 }
 0x306   : >> { %v4934_v40 = vrot.slane %v4932_v25, 7  ;;  %v4915_v0 = vshrl.u32 %v8549_v43, 16  ;;  %v11156_v61 = vadd.f32 %v8911_v9, %v8910_v46  ;;  %v8552_v51 = vpack.c.bf16 %v4789_v16, %v4789_v16 }
 0x307   : >> { %v8913_v36 = vpop.f32.mrf.mxu1  ;;  %v4787_v26 = vmax.f32 %v4663_v50, 0.0  ;;  %v4684_v60 = vadd.f32 %v9044_v28, %v4523_v38  ;;  %v4675_v45 = vpop.f32.mrf.mxu0  ;;  %v4918_v53 = vshll.u32 %v8549_v43, 16 }
 0x308   : >> { %v4937_v31 = vor.u32 %v4935_v12, %v4934_v40  ;;  %v4917_v52 = vrot.slane %v4915_v0, 7  ;;  %v4676_v47 = vadd.f32 %v4675_v45, %v11097_v20  ;;  %v4938_v33 = vrot.slane %v4934_v40, 4  ;;  %v9365_v20 = vld [vmem:[#allocation2 + $0xc] sm:$0xf]  ;;  %v5237_v0 = vld [vmem:[#allocation2 + $0x14] sm:$0x1] }
 0x309   : >> { %v4940_v44 = vshrl.u32 %v8552_v51, 16  ;;  %v8914_v23 = vpop.f32.mrf.mxu1  ;;  %v8550_v14 = vpack.c.bf16 %v4787_v26, %v4787_v26  ;;  %v4792_v59 = vmax.f32 %v4684_v60, 0.0  ;;  %v9045_v41 = vpop.f32.mrf.mxu0  ;;  %v4943_v8 = vshll.u32 %v8552_v51, 16 }
 0x30a   : >> { %v5241_v4 = vsel %vm9757_vm9, %v4937_v31, %v5240_v30  ;;  %v4920_v62 = vor.u32 %v4918_v53, %v4917_v52  ;;  %v4921_v11 = vrot.slane %v4917_v52, 4  ;;  %v4790_v46 = vmax.f32 %v4676_v47, 0.0 }
 0x30b   : >> { %5242 = vst [vmem:[#allocation2 + $0x18] sm:$0xf] %v5241_v4  ;;  %v4942_v38 = vrot.slane %v4940_v44, 7  ;;  %v4923_v42 = vshrl.u32 %v8550_v14, 16  ;;  %v4926_v54 = vshll.u32 %v8550_v14, 16  ;;  %v8916_v63 = vpop.f32.mrf.mxu1  ;;  %v8555_v19 = vpack.c.bf16 %v4792_v59, %v4792_v59  ;;  %v4678_v32 = vpop.f32.mrf.mxu0 }
 0x30c   : >> { %v5234_v18 = vsel %vm9757_vm9, %v4920_v62, %v9365_v20  ;;  %v4687_v5 = vadd.f32 %v9045_v41, %v11110_v48  ;;  %v4679_v25 = vadd.f32 %v4678_v32, %v11102_v37  ;;  %v11165_v12 = vadd.f32 %v8914_v23, %v8913_v36  ;;  %v5254_v41 = vld [vmem:[#allocation2 + $0x30] sm:$0xf]  ;;  %v5247_v20 = vld [vmem:[#allocation2 + $0x24] sm:$0xf] }
 0x30d   : >> { %5235 = vst [vmem:[#allocation2 + $0xc] sm:$0xf] %v5234_v18  ;;  %v4945_v43 = vor.u32 %v4943_v8, %v4942_v38  ;;  %v4947_v16 = vrot.slane %v4942_v38, 4  ;;  %v4925_v9 = vrot.slane %v4923_v42, 7  ;;  %v4966_v50 = vshrl.u32 %v8555_v19, 16  ;;  %v8917_v28 = vpop.f32.mrf.mxu1  ;;  %v9048_v40 = vpop.f32.mrf.mxu0 }
 0x30e   : >> { %v4969_v30 = vshll.u32 %v8555_v19, 16  ;;  %v8553_v51 = vpack.c.bf16 %v4790_v46, %v4790_v46  ;;  %v4793_v26 = vmax.f32 %v4687_v5, 0.0  ;;  %v11172_v36 = vadd.f32 %v8917_v28, %v8916_v63 }
 0x30f   : >> { %v4946_v45 = vsel %vm9747_vm8, %v4938_v33, %v4945_v43  ;;  %v5245_v48 = vsel %vm9741_vm7, %v4947_v16, %v5244_v21  ;;  %v4928_v37 = vor.u32 %v4926_v54, %v4925_v9  ;;  %v4930_v52 = vrot.slane %v4925_v9, 4  ;;  %v8919_v53 = vpop.f32.mrf.mxu1  ;;  %v4691_v47 = vpop.f32.mrf.mxu0 }
 0x310   : >> { %5243 = vst.msk [vmem:[#allocation2 + $0x1c] sm:$0xf] %vm663_vm3, %v4946_v45  ;;  %5246 = vst [vmem:[#allocation2 + $0x20] sm:$0x1] %v5245_v48  ;;  %v4968_v44 = vrot.slane %v4966_v50, 7  ;;  %v4949_v23 = vshrl.u32 %v8553_v51, 16  ;;  %v8556_v14 = vpack.c.bf16 %v4793_v26, %v4793_v26  ;;  %v4700_v8 = vadd.f32 %v9048_v40, %v11130_v56 }
 0x311   : >> { %v4929_v59 = vsel %vm9747_vm8, %v4921_v11, %v4928_v37  ;;  %v5238_v33 = vsel %vm9741_vm7, %v4930_v52, %v5237_v0  ;;  %v8920_v4 = vpop.f32.mrf.mxu1  ;;  %v4791_v62 = vmax.f32 %v4679_v25, 0.0  ;;  %v9049_v38 = vpop.f32.mrf.mxu0  ;;  %v4952_v63 = vshll.u32 %v8553_v51, 16  ;;  %v5258_v50 = vld [vmem:[#allocation2 + $0x38] sm:$0x1] }
 0x312   : >> { %5236 = vst.msk [vmem:[#allocation2 + $0x10] sm:$0xf] %vm663_vm3, %v4929_v59  ;;  %5239 = vst [vmem:[#allocation2 + $0x14] sm:$0x1] %v5238_v33  ;;  %v4971_v42 = vor.u32 %v4969_v30, %v4968_v44  ;;  %v4951_v54 = vrot.slane %v4949_v23, 7  ;;  %v4974_v19 = vshrl.u32 %v8556_v14, 16  ;;  %v11182_v16 = vadd.f32 %v8920_v4, %v8919_v53 }
 0x313   : >> { %v4972_v32 = vrot.slane %v4968_v44, 4  ;;  %v4977_v18 = vshll.u32 %v8556_v14, 16  ;;  %v8554_v11 = vpack.c.bf16 %v4791_v62, %v4791_v62  ;;  %v8922_v21 = vpop.f32.mrf.mxu1  ;;  %v4796_v46 = vmax.f32 %v4700_v8, 0.0  ;;  %v4694_v5 = vpop.f32.mrf.mxu0 }
 0x314   : >> { %v5255_v25 = vsel %vm9757_vm9, %v4971_v42, %v5254_v41  ;;  %v4954_v43 = vor.u32 %v4952_v63, %v4951_v54  ;;  %v4976_v56 = vrot.slane %v4974_v19, 7  ;;  %v4955_v9 = vrot.slane %v4951_v54, 4 }
 0x315   : >> { %5256 = vst [vmem:[#allocation2 + $0x30] sm:$0xf] %v5255_v25  ;;  %v4957_v28 = vshrl.u32 %v8554_v11, 16  ;;  %v8559_v40 = vpack.c.bf16 %v4796_v46, %v4796_v46  ;;  %v8923_v0 = vpop.f32.mrf.mxu1  ;;  %v4692_v30 = vadd.f32 %v4691_v47, %v11119_v27  ;;  %v9052_v51 = vpop.f32.mrf.mxu0  ;;  %v4960_v37 = vshll.u32 %v8554_v11, 16  ;;  %v5251_v47 = vld [vmem:[#allocation2 + $0x2c] sm:$0x1] }
 0x316   : >> { %v5248_v26 = vsel %vm9757_vm9, %v4954_v43, %v5247_v20  ;;  %v4979_v45 = vor.u32 %v4977_v18, %v4976_v56  ;;  %v4981_v48 = vrot.slane %v4976_v56, 4  ;;  %v4703_v41 = vadd.f32 %v9049_v38, %v11139_v22  ;;  %v5268_v20 = vld [vmem:[#allocation2 + $0x48] sm:$0xf] }
 0x317   : >> { %5249 = vst [vmem:[#allocation2 + $0x24] sm:$0xf] %v5248_v26  ;;  %v4959_v52 = vrot.slane %v4957_v28, 7  ;;  %v5000_v44 = vshrl.u32 %v8559_v40, 16  ;;  %v5003_v53 = vshll.u32 %v8559_v40, 16  ;;  %v4794_v23 = vmax.f32 %v4692_v30, 0.0  ;;  %v8925_v14 = vpop.f32.mrf.mxu1  ;;  %v4707_v59 = vpop.f32.mrf.mxu0 }
 0x318   : >> { %v4980_v33 = vsel %vm9747_vm8, %v4972_v32, %v4979_v45  ;;  %v5259_v27 = vsel %vm9741_vm7, %v4981_v48, %v5258_v50  ;;  %v4695_v4 = vadd.f32 %v4694_v5, %v11125_v13  ;;  %v11196_v32 = vadd.f32 %v8923_v0, %v8922_v21  ;;  %v8685_v60 = vld [vmem:[#allocation2 + $0x18] sm:$0xff] (%p1258_p11)  }
 0x319   : >> { %5257 = vst.msk [vmem:[#allocation2 + $0x34] sm:$0xf] %vm663_vm3, %v4980_v33  ;;  %5260 = vst [vmem:[#allocation2 + $0x38] sm:$0x1] %v5259_v27  ;;  %v4962_v62 = vor.u32 %v4960_v37, %v4959_v52  ;;  %v4964_v8 = vrot.slane %v4959_v52, 4  ;;  %v11194_v42 = vrot.slane %v5000_v44, 7  ;;  %v8557_v54 = vpack.c.bf16 %v4794_v23, %v4794_v23  ;;  %v8926_v63 = vpop.f32.mrf.mxu1  ;;  %v9053_v19 = vpop.f32.mrf.mxu0 }
 0x31a   : >> { %v4797_v18 = vmax.f32 %v4703_v41, 0.0  ;;  %v4795_v11 = vmax.f32 %v4695_v4, 0.0  ;;  %v4716_v46 = vadd.f32 %v9052_v51, %v11150_v15  ;;  %v11204_v5 = vadd.f32 %v8926_v63, %v8925_v14  ;;  %v5261_v52 = vld [vmem:[#allocation2 + $0x3c] sm:$0xf]  ;;  %v5272_v4 = vld [vmem:[#allocation2 + $0x50] sm:$0x1] }
 0x31b   : >> { %v4963_v13 = vsel %vm9747_vm8, %v4955_v9, %v4962_v62  ;;  %v5252_v22 = vsel %vm9741_vm7, %v4964_v8, %v5251_v47  ;;  %v5005_v38 = vor.u32 %v5003_v53, %v11194_v42  ;;  %v8928_v25 = vpop.f32.mrf.mxu1  ;;  %v11206_v43 = vpop.f32.mrf.mxu0  ;;  %v5006_v21 = vrot.slane %v11194_v42, 4 }
 0x31c   : >> { %5250 = vst.msk [vmem:[#allocation2 + $0x28] sm:$0xf] %vm663_vm3, %v4963_v13  ;;  %5253 = vst [vmem:[#allocation2 + $0x2c] sm:$0x1] %v5252_v22  ;;  %v4983_v56 = vshrl.u32 %v8557_v54, 16  ;;  %v8560_v15 = vpack.c.bf16 %v4797_v18, %v4797_v18  ;;  %v8558_v50 = vpack.c.bf16 %v4795_v11, %v4795_v11  ;;  %v4800_v28 = vmax.f32 %v4716_v46, 0.0 }
 0x31d   : >> { %v5269_v9 = vsel %vm9757_vm9, %v5005_v38, %v5268_v20  ;;  %v8929_v40 = vpop.f32.mrf.mxu1  ;;  %v4708_v0 = vadd.f32 %v4707_v59, %v11141_v10  ;;  %v4719_v30 = vadd.f32 %v9053_v19, %v11154_v3  ;;  %v11214_v51 = vpop.f32.mrf.mxu0  ;;  %v4986_v45 = vshll.u32 %v8557_v54, 16  ;;  %v5265_v46 = vld [vmem:[#allocation2 + $0x44] sm:$0x1] }
 0x31e   : >> { %5270 = vst [vmem:[#allocation2 + $0x48] sm:$0xf] %v5269_v9  ;;  %v4985_v26 = vrot.slane %v4983_v56, 7  ;;  %v5008_v48 = vshrl.u32 %v8560_v15, 16  ;;  %v4991_v37 = vshrl.u32 %v8558_v50, 16  ;;  %v5011_v44 = vshll.u32 %v8560_v15, 16 }
 0x31f   : >> { %v4994_v53 = vshll.u32 %v8558_v50, 16  ;;  %v8563_v23 = vpack.c.bf16 %v4800_v28, %v4800_v28  ;;  %v4798_v14 = vmax.f32 %v4708_v0, 0.0  ;;  %v8931_v33 = vpop.f32.mrf.mxu1  ;;  %v11216_v27 = vpop.f32.mrf.mxu0  ;;  %v11218_v59 = vadd.f32 %v8929_v40, %v8928_v25  ;;  %v5282_v40 = vld [vmem:[#allocation2 + $0x60] sm:$0xf] }
 0x320   : >> { %v4988_v47 = vor.u32 %v4986_v45, %v4985_v26  ;;  %v5010_v41 = vrot.slane %v5008_v48, 7  ;;  %v4993_v10 = vrot.slane %v4991_v37, 7  ;;  %v4989_v3 = vrot.slane %v4985_v26, 4 }
 0x321   : >> { %v5034_v62 = vshrl.u32 %v8563_v23, 16  ;;  %v8561_v8 = vpack.c.bf16 %v4798_v14, %v4798_v14  ;;  %v4801_v42 = vmax.f32 %v4719_v30, 0.0  ;;  %v8932_v54 = vpop.f32.mrf.mxu1  ;;  %v9057_v63 = vpop.f32.mrf.mxu0  ;;  %v5037_v38 = vshll.u32 %v8563_v23, 16 }
 0x322   : >> { %v5262_v19 = vsel %vm9757_vm9, %v4988_v47, %v5261_v52  ;;  %v5013_v20 = vor.u32 %v5011_v44, %v5010_v41  ;;  %v5015_v18 = vrot.slane %v5010_v41, 4  ;;  %v4996_v11 = vor.u32 %v4994_v53, %v4993_v10  ;;  %v5275_v44 = vld [vmem:[#allocation2 + $0x54] sm:$0xf] }
 0x323   : >> { %5263 = vst [vmem:[#allocation2 + $0x3c] sm:$0xf] %v5262_v19  ;;  %v4998_v13 = vrot.slane %v4993_v10, 4  ;;  %v5036_v22 = vrot.slane %v5034_v62, 7  ;;  %v5017_v25 = vshrl.u32 %v8561_v8, 16  ;;  %v8934_v56 = vpop.f32.mrf.mxu1  ;;  %v4726_v15 = vpop.f32.mrf.mxu0  ;;  %v8564_v0 = vpack.c.bf16 %v4801_v42, %v4801_v42 }
 0x324   : >> { %v5014_v50 = vsel %vm9747_vm8, %v5006_v21, %v5013_v20  ;;  %v5273_v9 = vsel %vm9741_vm7, %v5015_v18, %v5272_v4  ;;  %v4997_v28 = vsel %vm9747_vm8, %v4989_v3, %v4996_v11  ;;  %v5020_v21 = vshll.u32 %v8561_v8, 16 }
 0x325   : >> { %5271 = vst.msk [vmem:[#allocation2 + $0x4c] sm:$0xf] %vm663_vm3, %v5014_v50  ;;  %5274 = vst [vmem:[#allocation2 + $0x50] sm:$0x1] %v5273_v9  ;;  %v5266_v30 = vsel %vm9741_vm7, %v4998_v13, %v5265_v46  ;;  %v5039_v26 = vor.u32 %v5037_v38, %v5036_v22  ;;  %v11232_v45 = vrot.slane %v5017_v25, 7  ;;  %v8935_v48 = vpop.f32.mrf.mxu1  ;;  %v9060_v37 = vpop.f32.mrf.mxu0  ;;  %v5040_v52 = vrot.slane %v5036_v22, 4 }
 0x326   : >> { %5264 = vst.msk [vmem:[#allocation2 + $0x40] sm:$0xf] %vm663_vm3, %v4997_v28  ;;  %5267 = vst [vmem:[#allocation2 + $0x44] sm:$0x1] %v5266_v30  ;;  %v5042_v53 = vshrl.u32 %v8564_v0, 16  ;;  %v5045_v23 = vshll.u32 %v8564_v0, 16  ;;  %v4711_v14 = vadd.f32 %v11206_v43, %v11152_v39  ;;  %v11239_v10 = vadd.f32 %v8932_v54, %v8931_v33 }
 0x327   : >> { %v5283_v47 = vsel %vm9757_vm9, %v5039_v26, %v5282_v40  ;;  %v5022_v41 = vor.u32 %v5020_v21, %v11232_v45  ;;  %v4571_v3 = vadd.f32 %v11172_v36, %v11117_v2  ;;  %v11243_v4 = vpop.f32.mrf.mxu1  ;;  %v11245_v62 = vpop.f32.mrf.mxu0  ;;  %v5023_v8 = vrot.slane %v11232_v45, 4  ;;  %v5286_v33 = vld [vmem:[#allocation2 + $0x68] sm:$0x1]  ;;  %v5279_v45 = vld [vmem:[#allocation2 + $0x5c] sm:$0x1] }
 0x328   : >> { %5284 = vst [vmem:[#allocation2 + $0x60] sm:$0xf] %v5283_v47  ;;  %v5044_v42 = vrot.slane %v5042_v53, 7  ;;  %v4799_v19 = vmax.f32 %v4711_v14, 0.0  ;;  %v4563_v39 = vadd.f32 %v11156_v61, %v11106_v35  ;;  %v4574_v2 = vadd.f32 %v11182_v16, %v11128_v24 }
 0x329   : >> { %v5276_v43 = vsel %vm9757_vm9, %v5022_v41, %v5275_v44  ;;  %v4732_v54 = vadd.f32 %v11214_v51, %v4571_v3  ;;  %v11255_v36 = vpop.f32.mrf.mxu1  ;;  %v4566_v20 = vadd.f32 %v11165_v12, %v11114_v1  ;;  %v11259_v18 = vpop.f32.mrf.mxu0  ;;  %v11262_v22 = vadd.f32 %v8935_v48, %v8934_v56 }
 0x32a   : >> { %5277 = vst [vmem:[#allocation2 + $0x54] sm:$0xf] %v5276_v43  ;;  %v5047_v11 = vor.u32 %v5045_v23, %v5044_v42  ;;  %v5049_v46 = vrot.slane %v5044_v42, 4  ;;  %v8562_v35 = vpack.c.bf16 %v4799_v19, %v4799_v19  ;;  %v4724_v61 = vadd.f32 %v11216_v27, %v4563_v39  ;;  %v5296_v39 = vld [vmem:[#allocation2 + $0x78] sm:$0xf] }
 0x32b   : >> { %v4804_v13 = vmax.f32 %v4732_v54, 0.0  ;;  %v4735_v51 = vadd.f32 %v9057_v63, %v4574_v2  ;;  %v4727_v38 = vadd.f32 %v4726_v15, %v4566_v20  ;;  %v8940_v25 = vpop.f32.mrf.mxu1  ;;  %v11264_v24 = vpop.f32.mrf.mxu0  ;;  %v4587_v40 = vadd.f32 %v11218_v59, %v11144_v29 }
 0x32c   : >> { %v5048_v16 = vsel %vm9747_vm8, %v5040_v52, %v5047_v11  ;;  %v5287_v1 = vsel %vm9741_vm7, %v5049_v46, %v5286_v33  ;;  %v5025_v12 = vshrl.u32 %v8562_v35, 16  ;;  %v5028_v50 = vshll.u32 %v8562_v35, 16  ;;  %v5289_v35 = vld [vmem:[#allocation2 + $0x6c] sm:$0xf] }
 0x32d   : >> { %5285 = vst.msk [vmem:[#allocation2 + $0x64] sm:$0xf] %vm663_vm3, %v5048_v16  ;;  %5288 = vst [vmem:[#allocation2 + $0x68] sm:$0x1] %v5287_v1  ;;  %v8567_v27 = vpack.c.bf16 %v4804_v13, %v4804_v13  ;;  %v4802_v9 = vmax.f32 %v4724_v61, 0.0  ;;  %v4805_v56 = vmax.f32 %v4735_v51, 0.0  ;;  %v8941_v63 = vpop.f32.mrf.mxu1  ;;  %v4579_v30 = vadd.f32 %v11196_v32, %v11133_v34  ;;  %v11277_v26 = vpop.f32.mrf.mxu0 }
 0x32e   : >> { %v4803_v28 = vmax.f32 %v4727_v38, 0.0  ;;  %v5027_v15 = vrot.slane %v5025_v12, 7  ;;  %v11273_v0 = vadd.f32 %v8941_v63, %v8940_v25  ;;  %v4748_v41 = vadd.f32 %v9060_v37, %v4587_v40  ;;  %v5300_v12 = vld [vmem:[#allocation2 + $0x80] sm:$0x1] }
 0x32f   : >> { %v5068_v21 = vshrl.u32 %v8567_v27, 16  ;;  %v5071_v48 = vshll.u32 %v8567_v27, 16  ;;  %v8565_v52 = vpack.c.bf16 %v4802_v9, %v4802_v9  ;;  %v8568_v44 = vpack.c.bf16 %v4805_v56, %v4805_v56  ;;  %v8943_v53 = vpop.f32.mrf.mxu1  ;;  %v11283_v54 = vpop.f32.mrf.mxu0 }
 0x330   : >> { %v5030_v23 = vor.u32 %v5028_v50, %v5027_v15  ;;  %v5032_v14 = vrot.slane %v5027_v15, 4  ;;  %v8566_v47 = vpack.c.bf16 %v4803_v28, %v4803_v28  ;;  %v4740_v51 = vadd.f32 %v11245_v62, %v4579_v30  ;;  %v5293_v50 = vld [vmem:[#allocation2 + $0x74] sm:$0x1] }
 0x331   : >> { %v5070_v3 = vrot.slane %v5068_v21, 7  ;;  %v5051_v42 = vshrl.u32 %v8565_v52, 16  ;;  %v5054_v29 = vshll.u32 %v8565_v52, 16  ;;  %v5076_v59 = vshrl.u32 %v8568_v44, 16  ;;  %v8944_v19 = vpop.f32.mrf.mxu1  ;;  %v9065_v15 = vpop.f32.mrf.mxu0 }
 0x332   : >> { %v5031_v34 = vsel %vm9747_vm8, %v5023_v8, %v5030_v23  ;;  %v5280_v32 = vsel %vm9741_vm7, %v5032_v14, %v5279_v45  ;;  %v5079_v43 = vshll.u32 %v8568_v44, 16  ;;  %v5059_v33 = vshrl.u32 %v8566_v47, 16 }
 0x333   : >> { %5278 = vst.msk [vmem:[#allocation2 + $0x58] sm:$0xf] %vm663_vm3, %v5031_v34  ;;  %5281 = vst [vmem:[#allocation2 + $0x5c] sm:$0x1] %v5280_v32  ;;  %v5073_v37 = vor.u32 %v5071_v48, %v5070_v3  ;;  %v5074_v2 = vrot.slane %v5070_v3, 4  ;;  %v5053_v20 = vrot.slane %v5051_v42, 7  ;;  %v8946_v46 = vpop.f32.mrf.mxu1  ;;  %v4590_v45 = vadd.f32 %v11239_v10, %v11147_v57  ;;  %v4758_v34 = vpop.f32.mrf.mxu0 }
 0x334   : >> { %v5078_v11 = vrot.slane %v5076_v59, 7  ;;  %v5061_v61 = vrot.slane %v5059_v33, 7  ;;  %v5062_v13 = vshll.u32 %v8566_v47, 16  ;;  %v4808_v8 = vmax.f32 %v4748_v41, 0.0  ;;  %v5310_v32 = vld [vmem:[#allocation2 + $0x90] sm:$0xf] }
 0x335   : >> { %v5297_v38 = vsel %vm9757_vm9, %v5073_v37, %v5296_v39  ;;  %v5056_v25 = vor.u32 %v5054_v29, %v5053_v20  ;;  %v5057_v16 = vrot.slane %v5053_v20, 4  ;;  %v8947_v27 = vpop.f32.mrf.mxu1  ;;  %v4806_v30 = vmax.f32 %v4740_v51, 0.0 }
 0x336   : >> { %v5081_v1 = vor.u32 %v5079_v43, %v5078_v11  ;;  %5298 = vst [vmem:[#allocation2 + $0x78] sm:$0xf] %v5297_v38  ;;  %v5083_v9 = vrot.slane %v5078_v11, 4  ;;  %v5064_v56 = vor.u32 %v5062_v13, %v5061_v61  ;;  %v5066_v28 = vrot.slane %v5061_v61, 4  ;;  %v13078_v43 = vld [vmem:[#allocation11_spill] sm:$0xff]  ;;  %v9068_v61 = vpop.f32.mrf.mxu0 }
 0x337   : >> { %v8571_v63 = vpack.c.bf16 %v4808_v8, %v4808_v8  ;;  %v5290_v40 = vsel %vm9757_vm9, %v5056_v25, %v5289_v35  ;;  %v8949_v21 = vpop.f32.mrf.mxu1  ;;  %v8939_v14 = vadd.f32 %v11255_v36, %v11243_v4  ;;  %v8569_v10 = vpack.c.bf16 %v4806_v30, %v4806_v30  ;;  %v5303_v11 = vld [vmem:[#allocation2 + $0x84] sm:$0xf] }
 0x338   : >> { %v5082_v62 = vsel %vm9747_vm8, %v5074_v2, %v5081_v1  ;;  %5291 = vst [vmem:[#allocation2 + $0x6c] sm:$0xf] %v5290_v40  ;;  %v5301_v48 = vsel %vm9741_vm7, %v5083_v9, %v5300_v12  ;;  %v5065_v52 = vsel %vm9747_vm8, %v5057_v16, %v5064_v56  ;;  %v5294_v44 = vsel %vm9741_vm7, %v5066_v28, %v5293_v50  ;;  %v4771_v40 = vpop.f32.mrf.mxu0 }
 0x339   : >> { %5299 = vst.msk [vmem:[#allocation2 + $0x7c] sm:$0xf] %vm663_vm3, %v5082_v62  ;;  %v5102_v23 = vshrl.u32 %v8571_v63, 16  ;;  %5302 = vst [vmem:[#allocation2 + $0x80] sm:$0x1] %v5301_v48  ;;  %v5105_v57 = vshll.u32 %v8571_v63, 16  ;;  %v4751_v47 = vadd.f32 %v11259_v18, %v4590_v45  ;;  %v8950_v41 = vpop.f32.mrf.mxu1  ;;  %v8945_v42 = vadd.f32 %v8944_v19, %v8943_v53 }
 0x33a   : >> { %5292 = vst.msk [vmem:[#allocation2 + $0x70] sm:$0xf] %vm663_vm3, %v5065_v52  ;;  %5295 = vst [vmem:[#allocation2 + $0x74] sm:$0x1] %v5294_v44  ;;  %v4582_v29 = vadd.f32 %v11204_v5, %v11137_v6  ;;  %v4603_v59 = vadd.f32 %v11273_v0, %v11036_v17  ;;  %v5085_v39 = vshrl.u32 %v8569_v10, 16  ;;  %v11310_v36 = vadd.f32 %v8947_v27, %v8946_v46 }
 0x33b   : >> { %v5104_v3 = vrot.slane %v5102_v23, 7  ;;  %v4809_v4 = vmax.f32 %v4751_v47, 0.0  ;;  %v4595_v33 = vadd.f32 %v11262_v22, %v13078_v43  ;;  %v8952_v37 = vpop.f32.mrf.mxu1  ;;  %v5088_v2 = vshll.u32 %v8569_v10, 16  ;;  %v13079_v23 = vld [vmem:[#allocation15_spill] sm:$0xff]  ;;  %v5307_v47 = vld [vmem:[#allocation2 + $0x8c] sm:$0x1] }
 0x33c   : >> { %v4743_v53 = vadd.f32 %v11264_v24, %v4582_v29  ;;  %v4764_v19 = vadd.f32 %v11277_v26, %v4603_v59  ;;  %v5087_v5 = vrot.slane %v5085_v39, 7  ;;  %v4606_v22 = vadd.f32 %v8945_v42, %v11042_v58  ;;  %v5314_v58 = vld [vmem:[#allocation2 + $0x98] sm:$0x1] }
 0x33d   : >> { %v5107_v18 = vor.u32 %v5105_v57, %v5104_v3  ;;  %v5108_v6 = vrot.slane %v5104_v3, 4  ;;  %v8572_v20 = vpack.c.bf16 %v4809_v4, %v4809_v4  ;;  %v4756_v17 = vadd.f32 %v11283_v54, %v4595_v33  ;;  %v8953_v13 = vpop.f32.mrf.mxu1 }
 0x33e   : >> { %v4807_v46 = vmax.f32 %v4743_v53, 0.0  ;;  %v4812_v35 = vmax.f32 %v4764_v19, 0.0  ;;  %v5090_v8 = vor.u32 %v5088_v2, %v5087_v5  ;;  %v11320_v26 = vadd.f32 %v8950_v41, %v8949_v21  ;;  %v5324_v41 = vld [vmem:[#allocation2 + $0xa8] sm:$0xf]  ;;  %v5317_v19 = vld [vmem:[#allocation2 + $0x9c] sm:$0xf] }
 0x33f   : >> { %v5311_v0 = vsel %vm9757_vm9, %v5107_v18, %v5310_v32  ;;  %v5110_v24 = vshrl.u32 %v8572_v20, 16  ;;  %v5113_v51 = vshll.u32 %v8572_v20, 16  ;;  %v4810_v16 = vmax.f32 %v4756_v17, 0.0  ;;  %v8955_v48 = vpop.f32.mrf.mxu1 }
 0x340   : >> { %5312 = vst [vmem:[#allocation2 + $0x90] sm:$0xf] %v5311_v0  ;;  %v8570_v38 = vpack.c.bf16 %v4807_v46, %v4807_v46  ;;  %v8575_v25 = vpack.c.bf16 %v4812_v35, %v4812_v35  ;;  %v4767_v54 = vadd.f32 %v9065_v15, %v4606_v22  ;;  %v5304_v1 = vsel %vm9757_vm9, %v5090_v8, %v5303_v11 }
 0x341   : >> { %v5112_v12 = vrot.slane %v5110_v24, 7  ;;  %v4598_v50 = vadd.f32 %v8939_v14, %v11031_v55  ;;  %v8954_v27 = vadd.f32 %v8953_v13, %v8952_v37  ;;  %5305 = vst [vmem:[#allocation2 + $0x84] sm:$0xf] %v5304_v1  ;;  %v8573_v45 = vpack.c.bf16 %v4810_v16, %v4810_v16  ;;  %v8956_v37 = vpop.f32.mrf.mxu1 }
 0x342   : >> { %v5093_v9 = vshrl.u32 %v8570_v38, 16  ;;  %v5096_v56 = vshll.u32 %v8570_v38, 16  ;;  %v5136_v28 = vshrl.u32 %v8575_v25, 16  ;;  %v5139_v63 = vshll.u32 %v8575_v25, 16  ;;  %v13081_v38 = vld [vmem:[#allocation14_spill] sm:$0xff] }
 0x343   : >> { %v5115_v62 = vor.u32 %v5113_v51, %v5112_v12  ;;  %v5117_v30 = vrot.slane %v5112_v12, 4  ;;  %v4813_v21 = vmax.f32 %v4767_v54, 0.0  ;;  %v4759_v44 = vadd.f32 %v4758_v34, %v4598_v50  ;;  %v9069_v34 = vpop.f32.mrf.mxu0  ;;  %v5328_v25 = vld [vmem:[#allocation2 + $0xb0] sm:$0x1] }
 0x344   : >> { %v5095_v15 = vrot.slane %v5093_v9, 7  ;;  %v5138_v52 = vrot.slane %v5136_v28, 7  ;;  %v4619_v57 = vadd.f32 %v8954_v27, %v13079_v23  ;;  %v5091_v10 = vrot.slane %v5087_v5, 4 }
 0x345   : >> { %v5116_v55 = vsel %vm9747_vm8, %v5108_v6, %v5115_v62  ;;  %v5315_v14 = vsel %vm9741_vm7, %v5117_v30, %v5314_v58  ;;  %v5119_v3 = vshrl.u32 %v8573_v45, 16  ;;  %v5122_v32 = vshll.u32 %v8573_v45, 16  ;;  %v13080_v6 = vld [vmem:[#allocation13_spill] sm:$0xff]  ;;  %v4774_v13 = vpop.f32.mrf.mxu0  ;;  %v5321_v30 = vld [vmem:[#allocation2 + $0xa4] sm:$0x1] }
 0x346   : >> { %5313 = vst.msk [vmem:[#allocation2 + $0x94] sm:$0xf] %vm663_vm3, %v5116_v55  ;;  %5316 = vst [vmem:[#allocation2 + $0x98] sm:$0x1] %v5315_v14  ;;  %v5098_v42 = vor.u32 %v5096_v56, %v5095_v15  ;;  %v5100_v29 = vrot.slane %v5095_v15, 4  ;;  %v5141_v59 = vor.u32 %v5139_v63, %v5138_v52  ;;  %v8576_v4 = vpack.c.bf16 %v4813_v21, %v4813_v21 }
 0x347   : >> { %v5121_v39 = vrot.slane %v5119_v3, 7  ;;  %v4811_v43 = vmax.f32 %v4759_v44, 0.0  ;;  %v4780_v33 = vadd.f32 %v9068_v61, %v4619_v57  ;;  %v4611_v5 = vadd.f32 %v11310_v36, %v13080_v6  ;;  %v5338_v44 = vld [vmem:[#allocation2 + $0xc0] sm:$0xf] }
 0x348   : >> { %v5099_v18 = vsel %vm9747_vm8, %v5091_v10, %v5098_v42  ;;  %v5308_v2 = vsel %vm9741_vm7, %v5100_v29, %v5307_v47  ;;  %v5325_v53 = vsel %vm9757_vm9, %v5141_v59, %v5324_v41  ;;  %v5142_v20 = vrot.slane %v5138_v52, 4  ;;  %v5331_v59 = vld [vmem:[#allocation2 + $0xb4] sm:$0xf] }
 0x349   : >> { %5306 = vst.msk [vmem:[#allocation2 + $0x88] sm:$0xf] %vm663_vm3, %v5099_v18  ;;  %5309 = vst [vmem:[#allocation2 + $0x8c] sm:$0x1] %v5308_v2  ;;  %v5124_v17 = vor.u32 %v5122_v32, %v5121_v39  ;;  %v5125_v0 = vrot.slane %v5121_v39, 4  ;;  %v5144_v11 = vshrl.u32 %v8576_v4, 16  ;;  %v8574_v46 = vpack.c.bf16 %v4811_v43, %v4811_v43 }
 0x34a   : >> { %5326 = vst [vmem:[#allocation2 + $0xa8] sm:$0xf] %v5325_v53  ;;  %v4816_v35 = vmax.f32 %v4780_v33, 0.0  ;;  %v4772_v22 = vadd.f32 %v4771_v40, %v4611_v5  ;;  %v8957_v61 = vadd.f32 %v8956_v37, %v8955_v48  ;;  %v5147_v51 = vshll.u32 %v8576_v4, 16  ;;  %v5335_v18 = vld [vmem:[#allocation2 + $0xbc] sm:$0x1] }
 0x34b   : >> { %v5318_v8 = vsel %vm9757_vm9, %v5124_v17, %v5317_v19  ;;  %v5146_v24 = vrot.slane %v5144_v11, 7  ;;  %v4614_v36 = vadd.f32 %v11320_v26, %v13081_v38  ;;  %v5127_v16 = vshrl.u32 %v8574_v46, 16  ;;  %v5342_v53 = vld [vmem:[#allocation2 + $0xc8] sm:$0x1]  ;;  %v5757_v38 = vld [vmem:[#allocation2 + $0xc] sm:$0xe] (%p1258_p11) }
 0x34c   : >> { %5319 = vst [vmem:[#allocation2 + $0x9c] sm:$0xf] %v5318_v8  ;;  %v5130_v54 = vshll.u32 %v8574_v46, 16  ;;  %v8579_v1 = vpack.c.bf16 %v4816_v35, %v4816_v35  ;;  %v4814_v12 = vmax.f32 %v4772_v22, 0.0  ;;  %v4622_v58 = vadd.f32 %v8957_v61, %v11068_v49  ;;  %v5347_v22 = vld [vmem:[#allocation2 + $0xc] sm:$0xff] (%p1258_p11)  }
 0x34d   : >> { %v5149_v50 = vor.u32 %v5147_v51, %v5146_v24  ;;  %v5151_v27 = vrot.slane %v5146_v24, 4  ;;  %v4775_v9 = vadd.f32 %v4774_v13, %v4614_v36  ;;  %v5129_v56 = vrot.slane %v5127_v16, 7  ;;  %v11375_v61 = vld [vmem:[%s13030_s5] ss:$0 sm:$0xff] (%p1258_p11)  ;;  %v11380_v13 = vld [vmem:[%s13030_s5 + $0x1] ss:$0 sm:$0xff] (%p1258_p11) }
 0x34e   : >> { %v5170_v28 = vshrl.u32 %v8579_v1, 16  ;;  %v5173_v63 = vshll.u32 %v8579_v1, 16  ;;  %v8577_v40 = vpack.c.bf16 %v4814_v12, %v4814_v12  ;;  %v4783_v45 = vadd.f32 %v9069_v34, %v4622_v58  ;;  %v11398_v16 = vld [vmem:[%s13030_s5 + $0x3] ss:$0 sm:$0xff] (%p1258_p11)  ;;  %v6445_v1 = vld [vmem:[#allocation2 + $0x18] sm:$0xe] (%p1258_p11) }
 0x34f   : >> { %v5150_v62 = vsel %vm9747_vm8, %v5142_v20, %v5149_v50  ;;  %v5329_v26 = vsel %vm9741_vm7, %v5151_v27, %v5328_v25  ;;  %v4815_v21 = vmax.f32 %v4775_v9, 0.0  ;;  %v5132_v48 = vor.u32 %v5130_v54, %v5129_v56  ;;  %v11403_v54 = vld [vmem:[%s13030_s5 + $0x4] ss:$0 sm:$0xff] (%p1258_p11)  ;;  %v11418_v9 = vld [vmem:[%s13030_s5 + $0x5] ss:$0 sm:$0xff] (%p1258_p11) }
 0x350   : >> { %5327 = vst.msk [vmem:[#allocation2 + $0xac] sm:$0xf] %vm663_vm3, %v5150_v62  ;;  %5330 = vst [vmem:[#allocation2 + $0xb0] sm:$0x1] %v5329_v26  ;;  %v5134_v15 = vrot.slane %v5129_v56, 4  ;;  %v5172_v49 = vrot.slane %v5170_v28, 7  ;;  %v5380_v24 = vunpack.c.l.bf16 (%p1258_p11), %v5347_v22  ;;  %v11384_v51 = vunpack.c.h.bf16 (%p1258_p11), %v5347_v22 }
 0x351   : >> { %v5153_v52 = vshrl.u32 %v8577_v40, 16  ;;  %v4817_v23 = vmax.f32 %v4783_v45, 0.0  ;;  %v8578_v57 = vpack.c.bf16 %v4815_v21, %v4815_v21  ;;  %v5133_v10 = vsel %vm9747_vm8, %v5125_v0, %v5132_v48  ;;  %v6724_v62 = vld [vmem:[#allocation2 + $0x24] sm:$0xff] (%p1258_p11)  }
 0x352   : >> { %v5322_v55 = vsel %vm9741_vm7, %v5134_v15, %v5321_v30  ;;  %v5175_v14 = vor.u32 %v5173_v63, %v5172_v49  ;;  %5320 = vst.msk [vmem:[#allocation2 + $0xa0] sm:$0xf] %vm663_vm3, %v5133_v10  ;;  %v5156_v41 = vshll.u32 %v8577_v40, 16  ;;  %v5176_v5 = vrot.slane %v5172_v49, 4  ;;  %v11434_v48 = vld [vmem:[%s13030_s5 + $0x6] ss:$0 sm:$0xff] (%p1258_p11) }
 0x353   : >> { %5323 = vst [vmem:[#allocation2 + $0xa4] sm:$0x1] %v5322_v55  ;;  %v5155_v47 = vrot.slane %v5153_v52, 7  ;;  %v8580_v3 = vpack.c.bf16 %v4817_v23, %v4817_v23  ;;  %v5161_v42 = vshrl.u32 %v8578_v57, 16  ;;  %v5164_v4 = vshll.u32 %v8578_v57, 16 }
 0x354   : >> { %v5339_v29 = vsel %vm9757_vm9, %v5175_v14, %v5338_v44  ;;  %v13082_v8 = vmov (%p1258_p11), 0   ;;  %v5774_v31 = vunpack.c.l.bf16 (%p1258_p11), %v5757_v38  ;;  %v11391_v36 = vunpack.c.l.bf16 (%p1258_p11), %v8685_v60  ;;  %v11444_v23 = vld [vmem:[%s13030_s5 + $0x7] ss:$0 sm:$0xff] (%p1258_p11) }
 0x355   : >> { %5340 = vst [vmem:[#allocation2 + $0xc0] sm:$0xf] %v5339_v29  ;;  %v5158_v32 = vor.u32 %v5156_v41, %v5155_v47  ;;  %v5178_v34 = vshrl.u32 %v8580_v3, 16  ;;  %v5163_v39 = vrot.slane %v5161_v42, 7  ;;  %v5181_v37 = vshll.u32 %v8580_v3, 16  ;;  %9367 = vset.pattern.permute.xlu1 (%p1258_p11), %v13082_v8  ;;  %9366 = vset.pattern.permute.xlu0 (%p1258_p11), %v13082_v8  ;;  %v8583_v3 = vld [vmem:[#allocation2] sm:$0xff] (%p1258_p11)  }
 0x356   : >> { %v5159_v2 = vrot.slane %v5155_v47, 4  ;;  %v11393_v25 = vunpack.c.h.bf16 (%p1258_p11), %v8685_v60  ;;  %v5416_v12 = vmul.f32 (%p1258_p11), %v11375_v61, %v5380_v24  ;;  %v5518_v50 = vmul.f32 (%p1258_p11), %v11380_v13, %v5380_v24  ;;  %v7133_v47 = vld [vmem:[#allocation2 + $0x24] sm:$0xe] (%p1258_p11)  ;;  %v11455_v41 = vld [vmem:[%s13030_s5 + $0x8] ss:$0 sm:$0xff] (%p1258_p11) }
 0x357   : >> { %v5332_v43 = vsel %vm9757_vm9, %v5158_v32, %v5331_v59  ;;  %v5180_v33 = vrot.slane %v5178_v34, 7  ;;  %v5166_v19 = vor.u32 %v5164_v4, %v5163_v39  ;;  %v5168_v6 = vrot.slane %v5163_v39, 4 }
 0x358   : >> { %5333 = vst [vmem:[#allocation2 + $0xb4] sm:$0xf] %v5332_v43  ;;  %1260 = sbr.rel (!%p1258_p11) target bundleno = 301 (0x12d), region = 94  ;;  %v11409_v27 = vmul.f32 (%p1258_p11), %v11380_v13, %v11384_v51  ;;  %v11413_v58 = vmul.f32 (%p1258_p11), %v11389_v7, %v11384_v51  ;;  %v5796_v56 = vmul.f32 (%p1258_p11), %v11389_v7, %v5774_v31  ;;  %v6105_v28 = vmul.f32 (%p1258_p11), %v11391_v36, %v11398_v16 }
 0x359   : >> { %v5183_v20 = vor.u32 %v5181_v37, %v5180_v33  ;;  %v5185_v17 = vrot.slane %v5180_v33, 4  ;;  %v5167_v0 = vsel %vm9747_vm8, %v5159_v2, %v5166_v19  ;;  %v5336_v11 = vsel %vm9741_vm7, %v5168_v6, %v5335_v18 }
 0x35a   : >> { %5334 = vst.msk [vmem:[#allocation2 + $0xb8] sm:$0xf] %vm663_vm3, %v5167_v0  ;;  %5337 = vst [vmem:[#allocation2 + $0xbc] sm:$0x1] %v5336_v11  ;;  %v6207_v63 = vmul.f32 (%p1258_p11), %v11391_v36, %v11403_v54  ;;  %v11427_v40 = vmul.f32 (%p1258_p11), %v11393_v25, %v11403_v54  ;;  %v5617_v26 = vrot.slane (%p1258_p11), %v5518_v50, 1  ;;  %v5618_v30 = vrot.slane (%p1258_p11), %v11409_v27, 1 }
 0x35b   : >> { %v5184_v46 = vsel %vm9747_vm8, %v5176_v5, %v5183_v20  ;;  %v5343_v35 = vsel %vm9741_vm7, %v5185_v17, %v5342_v53  ;;  %v5896_v45 = vrot.slane (%p1258_p11), %v11413_v58, 2  ;;  %v6462_v21 = vunpack.c.l.bf16 (%p1258_p11), %v6445_v1  ;;  %v5756_v53 = vld [vmem:[#allocation2] sm:$0xe] (%p1258_p11)  ;;  %v6034_v17 = vld [vmem:[#allocation2 + $0xc] sm:$0xff] (%p1258_p11)  }
 0x35c   : >> { %5341 = vst.msk [vmem:[#allocation2 + $0xc4] sm:$0xf] %vm663_vm3, %v5184_v46  ;;  %5344 = vst [vmem:[#allocation2 + $0xc8] sm:$0x1] %v5343_v35  ;;  %v5895_v15 = vrot.slane (%p1258_p11), %v5796_v56, 2  ;;  %v6305_v49 = vrot.slane (%p1258_p11), %v6207_v63, 1  ;;  %v11439_v44 = vmul.f32 (%p1258_p11), %v11393_v25, %v11418_v9  ;;  %v5619_v57 = vsel (%p1258_p11), %vm5611_vm1, %v5617_v26, %v5618_v30 }
 0x35d   : > { %v6306_v52 = vrot.slane %v11427_v40, 1  ;;  %v6484_v10 = vmul.f32 %v11418_v9, %v6462_v21  ;;  %v6757_v55 = vunpack.c.l.bf16 %v6724_v62  ;;  %v11450_v14 = vunpack.c.h.bf16 %v6724_v62  ;;  %v6444_v62 = vld [vmem:[#allocation2 + $0xc] sm:$0xe] }
 0x35e   : > { %v5726_v42 = vadd.f32 %v5619_v57, %v5416_v12  ;;  %v5897_v29 = vsel %vm5889_vm2, %v5895_v15, %v5896_v45  ;;  %v6583_v32 = vrot.slane %v11439_v44, 2  ;;  %v7150_v37 = vunpack.c.l.bf16 %v7133_v47 }
 0x35f   : > { %v6307_v59 = vsel %vm5611_vm1, %v6305_v49, %v6306_v52  ;;  %v6582_v34 = vrot.slane %v6484_v10, 2  ;;  %v6793_v39 = vmul.f32 %v11434_v48, %v6757_v55  ;;  %v6895_v4 = vmul.f32 %v11444_v23, %v6757_v55 }
 0x360   : > { %v11468_v43 = vmul.f32 %v11444_v23, %v11450_v14  ;;  %v6004_v33 = vadd.f32 %v5897_v29, %v5726_v42  ;;  %v11472_v18 = vmul.f32 %v11455_v41, %v11450_v14  ;;  %v8584_v2 = vunpack.c.l.bf16 %v8583_v3 }
 0x361   : > { %v6584_v19 = vsel %vm5889_vm2, %v6582_v34, %v6583_v32  ;;  %v6993_v6 = vrot.slane %v6895_v4, 1  ;;  %v11478_v20 = vunpack.c.h.bf16 %v8583_v3  ;;  %v7172_v11 = vmul.f32 %v11455_v41, %v7150_v37  ;;  %v7132_v34 = vld [vmem:[#allocation2 + $0x18] sm:$0xe] }
 0x362   : > { %v6994_v5 = vrot.slane %v11468_v43, 1  ;;  %v6137_v0 = vadd.f32 %v6105_v28, %v6004_v33  ;;  %v7271_v46 = vrot.slane %v11472_v18, 2  ;;  %v5414_v35 = vmul.f32 %v8584_v2, %v11375_v61 }
 0x363   : > { %v5515_v8 = vmul.f32 %v8584_v2, %v11380_v13  ;;  %v11489_v24 = vmul.f32 %v11478_v20, %v11380_v13  ;;  %v5773_v38 = vunpack.c.l.bf16 %v5756_v53  ;;  %v7270_v31 = vrot.slane %v7172_v11, 2 }
 0x364   : > { %v6995_v22 = vsel %vm5611_vm1, %v6993_v6, %v6994_v5  ;;  %v6414_v60 = vadd.f32 %v6307_v59, %v6137_v0  ;;  %v11493_v1 = vmul.f32 %v11478_v20, %v11389_v7  ;;  %v6067_v12 = vunpack.c.l.bf16 %v6034_v17 }
 0x365   : > { %v5612_v50 = vrot.slane %v5515_v8, 1  ;;  %v5613_v56 = vrot.slane %v11489_v24, 1  ;;  %v5793_v28 = vmul.f32 %v11389_v7, %v5773_v38  ;;  %v11497_v63 = vunpack.c.h.bf16 %v6034_v17 }
 0x366   : > { %v6691_v26 = vadd.f32 %v6584_v19, %v6414_v60  ;;  %v7272_v21 = vsel %vm5889_vm2, %v7270_v31, %v7271_v46  ;;  %v5891_v15 = vrot.slane %v11493_v1, 2  ;;  %v6103_v49 = vmul.f32 %v11398_v16, %v6067_v12  ;;  %v5479_v31 = vld [vmem:[#allocation2 + $0x14] sm:$0x1] }
 0x367   : > { %v5614_v57 = vsel %vm5611_vm1, %v5612_v50, %v5613_v56  ;;  %v5890_v10 = vrot.slane %v5793_v28, 2  ;;  %v6204_v55 = vmul.f32 %v11403_v54, %v6067_v12  ;;  %v11510_v47 = vmul.f32 %v11403_v54, %v11497_v63 }
 0x368   : > { %v6825_v3 = vadd.f32 %v6793_v39, %v6691_v26  ;;  %v5724_v42 = vadd.f32 %v5614_v57, %v5414_v35  ;;  %v6461_v29 = vunpack.c.l.bf16 %v6444_v62  ;;  %v11514_v59 = vmul.f32 %v11418_v9, %v11497_v63  ;;  %v6168_v26 = vld [vmem:[#allocation2 + $0x20] sm:$0x1]  ;;  %v6856_v57 = vld [vmem:[#allocation2 + $0x2c] sm:$0x1] }
 0x369   : > { %v5892_v4 = vsel %vm5889_vm2, %v5890_v10, %v5891_v15  ;;  %v6300_v33 = vrot.slane %v6204_v55, 1  ;;  %v6301_v37 = vrot.slane %v11510_v47, 1  ;;  %v6791_v2 = vmul.f32 %v11391_v36, %v11434_v48 }
 0x36a   : > { %v7102_v53 = vadd.f32 %v6995_v22, %v6825_v3  ;;  %v6002_v19 = vadd.f32 %v5892_v4, %v5724_v42  ;;  %v6481_v39 = vmul.f32 %v11418_v9, %v6461_v29  ;;  %v6578_v6 = vrot.slane %v11514_v59, 2 }
 0x36b   : > { %v6302_v17 = vsel %vm5611_vm1, %v6300_v33, %v6301_v37  ;;  %v6892_v0 = vmul.f32 %v11391_v36, %v11444_v23  ;;  %v11531_v11 = vmul.f32 %v11393_v25, %v11444_v23  ;;  %v7149_v35 = vunpack.c.l.bf16 %v7132_v34 }
 0x36c   : > { %v7379_v8 = vadd.f32 %v7272_v21, %v7102_v53  ;;  %v6135_v38 = vadd.f32 %v6103_v49, %v6002_v19  ;;  %v6577_v22 = vrot.slane %v6481_v39, 2  ;;  %v11535_v60 = vmul.f32 %v11393_v25, %v11455_v41  ;;  %v5478_v19 = vld [vmem:[#allocation2 + $0x8] sm:$0x1] }
 0x36d   : > { %v6988_v12 = vrot.slane %v6892_v0, 1  ;;  %v6989_v50 = vrot.slane %v11531_v11, 1  ;;  %v7169_v28 = vmul.f32 %v11455_v41, %v7149_v35  ;;  %v5417_v62 = vmul.f32 %v11375_v61, %v11384_v51 }
 0x36e   : > { %v7416_v10 = vsel %vm3701_vm0, %v7379_v8, 0.0  ;;  %v6412_v21 = vadd.f32 %v6302_v17, %v6135_v38  ;;  %v6579_v49 = vsel %vm5889_vm2, %v6577_v22, %v6578_v6  ;;  %v7266_v55 = vrot.slane %v11535_v60, 2 }
 0x36f   : > { %7417 = vadd.xlane.f32.xlu1 %v7416_v10  ;;  %v6990_v3 = vsel %vm5611_vm1, %v6988_v12, %v6989_v50  ;;  %v7265_v42 = vrot.slane %v7169_v28, 2  ;;  %v5496_v29 = vunpack.c.l.bf16 %v5479_v31  ;;  %v6106_v51 = vmul.f32 %v11393_v25, %v11398_v16 }
 0x370   : > { %v6689_v34 = vadd.f32 %v6579_v49, %v6412_v21  ;;  %v6185_v4 = vunpack.c.l.bf16 %v6168_v26  ;;  %v11553_v33 = vmul.f32 %v11434_v48, %v11450_v14  ;;  %v6873_v53 = vunpack.c.l.bf16 %v6856_v57 }
 0x371   : > { %v7267_v39 = vsel %vm5889_vm2, %v7265_v42, %v7266_v55  ;;  %v5520_v17 = vmul.f32 %v11380_v13, %v5496_v29  ;;  %v5798_v0 = vmul.f32 %v11389_v7, %v5496_v29  ;;  %v5415_v35 = vmul.f32 %v11478_v20, %v11375_v61 }
 0x372   : > { %v6823_v8 = vadd.f32 %v6791_v2, %v6689_v34  ;;  %v6209_v38 = vmul.f32 %v11403_v54, %v6185_v4  ;;  %v6486_v22 = vmul.f32 %v11418_v9, %v6185_v4  ;;  %v6897_v14 = vmul.f32 %v11444_v23, %v6873_v53  ;;  %v6167_v34 = vld [vmem:[#allocation2 + $0x14] sm:$0x1] }
 0x373   : > { %v5620_v31 = vrot.slane %v5520_v17, 1  ;;  %v5898_v12 = vrot.slane %v5798_v0, 2  ;;  %v7174_v28 = vmul.f32 %v11455_v41, %v6873_v53  ;;  %v5495_v26 = vunpack.c.l.bf16 %v5478_v19  ;;  %v6855_v53 = vld [vmem:[#allocation2 + $0x20] sm:$0x1] }
 0x374   : > { %v7100_v57 = vadd.f32 %v6990_v3, %v6823_v8  ;;  %v6308_v10 = vrot.slane %v6209_v38, 1  ;;  %v6585_v21 = vrot.slane %v6486_v22, 2  ;;  %v6996_v49 = vrot.slane %v6897_v14, 1  ;;  %v5480_v38 = vld [vmem:[#allocation2 + $0x20] sm:$0x1] }
 0x375   : > { %v5621_v20 = vsel %vm5611_vm1, %v5618_v30, %v5620_v31  ;;  %v5899_v2 = vsel %vm5889_vm2, %v5896_v45, %v5898_v12  ;;  %v7273_v42 = vrot.slane %v7174_v28, 2  ;;  %v5517_v29 = vmul.f32 %v11380_v13, %v5495_v26 }
 0x376   : > { %v7377_v4 = vadd.f32 %v7267_v39, %v7100_v57  ;;  %v5727_v17 = vadd.f32 %v5621_v20, %v5417_v62  ;;  %v6309_v3 = vsel %vm5611_vm1, %v6306_v52, %v6308_v10  ;;  %v6586_v27 = vsel %vm5889_vm2, %v6583_v32, %v6585_v21  ;;  %v6169_v20 = vld [vmem:[#allocation2 + $0x2c] sm:$0x1] }
 0x377   : > { %v6997_v58 = vsel %vm5611_vm1, %v6994_v5, %v6996_v49  ;;  %v7274_v30 = vsel %vm5889_vm2, %v7271_v46, %v7273_v42  ;;  %v5615_v45 = vrot.slane %v5517_v29, 1  ;;  %v5795_v62 = vmul.f32 %v11389_v7, %v5495_v26  ;;  %v11613_v49 = vld [vmem:[#allocation2 + $0x24] sm:$0xff]  }
 0x378   : > { %v7410_v40 = vsel %vm3701_vm0, %v7377_v4, 0.0  ;;  %v6005_v19 = vadd.f32 %v5899_v2, %v5727_v17  ;;  %v6104_v52 = vmul.f32 %v11398_v16, %v11497_v63  ;;  %v6184_v44 = vunpack.c.l.bf16 %v6167_v34  ;;  %v8693_v2 = vld [vmem:[#allocation2 + $0x30] sm:$0xff]  }
 0x379   : > { %7411 = vadd.xlane.f32.xlu0 %v7410_v40  ;;  %v5616_v32 = vsel %vm5611_vm1, %v5613_v56, %v5615_v45  ;;  %v5893_v43 = vrot.slane %v5795_v62, 2  ;;  %v6792_v18 = vmul.f32 %v11393_v25, %v11434_v48  ;;  %v6872_v5 = vunpack.c.l.bf16 %v6855_v53 }
 0x37a   : > { %v6138_v46 = vadd.f32 %v6106_v51, %v6005_v19  ;;  %v5725_v39 = vadd.f32 %v5616_v32, %v5415_v35  ;;  %v6206_v0 = vmul.f32 %v11403_v54, %v6184_v44  ;;  %v6483_v8 = vmul.f32 %v11418_v9, %v6184_v44  ;;  %v6857_v44 = vld [vmem:[#allocation2 + $0x38] sm:$0x1] }
 0x37b   : > { %v5894_v63 = vsel %vm5889_vm2, %v5891_v15, %v5893_v43  ;;  %v6894_v24 = vmul.f32 %v11444_v23, %v6872_v5  ;;  %v7171_v56 = vmul.f32 %v11455_v41, %v6872_v5  ;;  %v5419_v22 = vmul.f32 %v11393_v25, %v11375_v61 }
 0x37c   : > { %v6415_v14 = vadd.f32 %v6309_v3, %v6138_v46  ;;  %v6003_v31 = vadd.f32 %v5894_v63, %v5725_v39  ;;  %v6303_v51 = vrot.slane %v6206_v0, 1  ;;  %v6580_v35 = vrot.slane %v6483_v8, 2 }
 0x37d   : > { %v6991_v12 = vrot.slane %v6894_v24, 1  ;;  %v7268_v28 = vrot.slane %v7171_v56, 2  ;;  %v5497_v26 = vunpack.c.l.bf16 %v5480_v38  ;;  %v11605_v57 = vmul.f32 %v11393_v25, %v11380_v13 }
 0x37e   : > { %v6692_v1 = vadd.f32 %v6586_v27, %v6415_v14  ;;  %v6136_v15 = vadd.f32 %v6104_v52, %v6003_v31  ;;  %v6304_v10 = vsel %vm5611_vm1, %v6301_v37, %v6303_v51  ;;  %v6581_v21 = vsel %vm5889_vm2, %v6578_v6, %v6580_v35  ;;  %v5758_v51 = vld [vmem:[#allocation2 + $0x18] sm:$0xe] }
 0x37f   : > { %v6992_v42 = vsel %vm5611_vm1, %v6989_v50, %v6991_v12  ;;  %v7269_v29 = vsel %vm5889_vm2, %v7266_v55, %v7268_v28  ;;  %v5523_v47 = vmul.f32 %v11380_v13, %v5497_v26  ;;  %v5623_v37 = vrot.slane %v11605_v57, 1 }
 0x380   : > { %v6826_v59 = vadd.f32 %v11553_v33, %v6692_v1  ;;  %v6413_v34 = vadd.f32 %v6304_v10, %v6136_v15  ;;  %v11626_v6 = vmul.f32 %v11393_v25, %v11389_v7  ;;  %v5801_v4 = vmul.f32 %v11389_v7, %v5497_v26  ;;  %v6446_v1 = vld [vmem:[#allocation2 + $0x24] sm:$0xe] }
 0x381   : > { %v5625_v11 = vrot.slane %v5523_v47, 1  ;;  %v6072_v50 = vunpack.c.h.bf16 %v11613_v49  ;;  %v6186_v17 = vunpack.c.l.bf16 %v6169_v20  ;;  %v11630_v60 = vunpack.c.h.bf16 %v8693_v2 }
 0x382   : > { %v7103_v55 = vadd.f32 %v6997_v58, %v6826_v59  ;;  %v6690_v3 = vadd.f32 %v6581_v21, %v6413_v34  ;;  %v5901_v27 = vrot.slane %v11626_v6, 2  ;;  %v5903_v53 = vrot.slane %v5801_v4, 2  ;;  %v6170_v6 = vld [vmem:[#allocation2 + $0x38] sm:$0x1] }
 0x383   : > { %v5626_v33 = vsel %vm5611_vm1, %v5623_v37, %v5625_v11  ;;  %v6108_v25 = vmul.f32 %v11398_v16, %v6072_v50  ;;  %v11638_v45 = vmul.f32 %v11403_v54, %v6072_v50  ;;  %v6212_v62 = vmul.f32 %v11403_v54, %v6186_v17 }
 0x384   : > { %v7380_v40 = vadd.f32 %v7274_v30, %v7103_v55  ;;  %v6824_v19 = vadd.f32 %v6792_v18, %v6690_v3  ;;  %v5729_v52 = vadd.f32 %v5626_v33, %v5419_v22  ;;  %v5904_v58 = vsel %vm5889_vm2, %v5901_v27, %v5903_v53 }
 0x385   : > { %v6311_v32 = vrot.slane %v11638_v45, 1  ;;  %v6313_v43 = vrot.slane %v6212_v62, 1  ;;  %v6488_v5 = vmul.f32 %v11418_v9, %v6072_v50  ;;  %v6489_v46 = vmul.f32 %v11418_v9, %v6186_v17  ;;  %v7134_v62 = vld [vmem:[#allocation2 + $0x30] sm:$0xe] }
 0x386   : > { %v7419_v39 = vsel %vm3701_vm0, %v7380_v40, 0.0  ;;  %v7101_v0 = vadd.f32 %v6992_v42, %v6824_v19  ;;  %v6007_v8 = vadd.f32 %v5904_v58, %v5729_v52  ;;  %v6796_v30 = vmul.f32 %v11630_v60, %v11434_v48  ;;  %v11675_v40 = vld [vmem:[#allocation2 + $0x24] sm:$0xff]  }
 0x387   : > { %7420 = vadd.xlane.f32.xlu1 %v7419_v39  ;;  %v6314_v18 = vsel %vm5611_vm1, %v6311_v32, %v6313_v43  ;;  %v6588_v38 = vrot.slane %v6488_v5, 2  ;;  %v6590_v63 = vrot.slane %v6489_v46, 2  ;;  %v6874_v24 = vunpack.c.l.bf16 %v6857_v44  ;;  %v5481_v46 = vld [vmem:[#allocation2 + $0x2c] sm:$0x1] }
 0x388   : > { %v7378_v56 = vadd.f32 %v7269_v29, %v7101_v0  ;;  %v6140_v22 = vadd.f32 %v6108_v25, %v6007_v8  ;;  %v6899_v14 = vmul.f32 %v11630_v60, %v11444_v23  ;;  %v11655_v31 = vmul.f32 %v11630_v60, %v11455_v41 }
 0x389   : > { %v6591_v35 = vsel %vm5889_vm2, %v6588_v38, %v6590_v63  ;;  %v6900_v12 = vmul.f32 %v11444_v23, %v6874_v24  ;;  %v7177_v28 = vmul.f32 %v11455_v41, %v6874_v24  ;;  %v5418_v26 = vmul.f32 %v11391_v36, %v11375_v61 }
 0x38a   : > { %v7413_v15 = vsel %vm3701_vm0, %v7378_v56, 0.0  ;;  %v6417_v10 = vadd.f32 %v6314_v18, %v6140_v22  ;;  %v6999_v21 = vrot.slane %v6899_v14, 1  ;;  %v7276_v20 = vrot.slane %v11655_v31, 2 }
 0x38b   : > { %7414 = vadd.xlane.f32.xlu0 %v7413_v15  ;;  %v7001_v42 = vrot.slane %v6900_v12, 1  ;;  %v7278_v29 = vrot.slane %v7177_v28, 2  ;;  %v5521_v47 = vmul.f32 %v11391_v36, %v11380_v13  ;;  %v5775_v59 = vunpack.c.l.bf16 %v5758_v51 }
 0x38c   : > { %v6694_v34 = vadd.f32 %v6591_v35, %v6417_v10  ;;  %v6071_v4 = vunpack.c.l.bf16 %v11613_v49  ;;  %v6463_v11 = vunpack.c.l.bf16 %v6446_v1  ;;  %v11667_v50 = vunpack.c.l.bf16 %v8693_v2 }
 0x38d   : > { %v7002_v17 = vsel %vm5611_vm1, %v6999_v21, %v7001_v42  ;;  %v7279_v55 = vsel %vm5889_vm2, %v7276_v20, %v7278_v29  ;;  %v5622_v3 = vrot.slane %v5521_v47, 1  ;;  %v5799_v53 = vmul.f32 %v11389_v7, %v5775_v59 }
 0x38e   : > { %v6828_v33 = vadd.f32 %v6796_v30, %v6694_v34  ;;  %v6107_v25 = vmul.f32 %v11398_v16, %v6071_v4  ;;  %v6210_v45 = vmul.f32 %v11403_v54, %v6071_v4  ;;  %v6487_v36 = vmul.f32 %v11418_v9, %v6463_v11 }
 0x38f   : > { %v5624_v49 = vsel %vm5611_vm1, %v5622_v3, %v5623_v37  ;;  %v5900_v2 = vrot.slane %v5799_v53, 2  ;;  %v6795_v19 = vmul.f32 %v11667_v50, %v11434_v48  ;;  %v6898_v52 = vmul.f32 %v11667_v50, %v11444_v23 }
 0x390   : > { %v7105_v58 = vadd.f32 %v7002_v17, %v6828_v33  ;;  %v5728_v44 = vadd.f32 %v5624_v49, %v5418_v26  ;;  %v6310_v43 = vrot.slane %v6210_v45, 1  ;;  %v6587_v5 = vrot.slane %v6487_v36, 2 }
 0x391   : > { %v5902_v39 = vsel %vm5889_vm2, %v5900_v2, %v5901_v27  ;;  %v6998_v0 = vrot.slane %v6898_v52, 1  ;;  %v7151_v57 = vunpack.c.l.bf16 %v7134_v62  ;;  %v5385_v37 = vunpack.c.h.bf16 %v11675_v40 }
 0x392   : > { %v7382_v8 = vadd.f32 %v7279_v55, %v7105_v58  ;;  %v6006_v30 = vadd.f32 %v5902_v39, %v5728_v44  ;;  %v6312_v18 = vsel %vm5611_vm1, %v6310_v43, %v6311_v32  ;;  %v6589_v63 = vsel %vm5889_vm2, %v6587_v5, %v6588_v38  ;;  %v6858_v55 = vld [vmem:[#allocation2 + $0x44] sm:$0x1]  ;;  %v5759_v39 = vld [vmem:[#allocation2 + $0x24] sm:$0xe] }
 0x393   : > { %v7000_v24 = vsel %vm5611_vm1, %v6998_v0, %v6999_v21  ;;  %v7175_v56 = vmul.f32 %v11455_v41, %v7151_v57  ;;  %v5421_v22 = vmul.f32 %v11375_v61, %v5385_v37  ;;  %v5498_v14 = vunpack.c.l.bf16 %v5481_v46  ;;  %v11706_v21 = vld [vmem:[#allocation2 + $0x3c] sm:$0xff]  }
 0x394   : > { %v7425_v27 = vsel %vm3701_vm0, %v7382_v8, 0.0  ;;  %v6139_v31 = vadd.f32 %v6107_v25, %v6006_v30  ;;  %v11695_v51 = vmul.f32 %v11380_v13, %v5385_v37  ;;  %v11698_v35 = vmul.f32 %v11389_v7, %v5385_v37 }
 0x395   : > { %7426 = vadd.xlane.f32.xlu1 %v7425_v27  ;;  %v7275_v32 = vrot.slane %v7175_v56, 2  ;;  %v5526_v38 = vmul.f32 %v11380_v13, %v5498_v14  ;;  %v5804_v12 = vmul.f32 %v11389_v7, %v5498_v14  ;;  %v6110_v28 = vmul.f32 %v11630_v60, %v11398_v16 }
 0x396   : > { %v6416_v26 = vadd.f32 %v6312_v18, %v6139_v31  ;;  %v5628_v1 = vrot.slane %v11695_v51, 1  ;;  %v5906_v15 = vrot.slane %v11698_v35, 2  ;;  %v6187_v10 = vunpack.c.l.bf16 %v6170_v6  ;;  %v6447_v6 = vld [vmem:[#allocation2 + $0x30] sm:$0xe] }
 0x397   : > { %v7277_v42 = vsel %vm5889_vm2, %v7275_v32, %v7276_v20  ;;  %v5630_v29 = vrot.slane %v5526_v38, 1  ;;  %v5908_v47 = vrot.slane %v5804_v12, 2  ;;  %v11711_v59 = vmul.f32 %v11630_v60, %v11403_v54  ;;  %v7135_v12 = vld [vmem:[#allocation2 + $0x3c] sm:$0xe] }
 0x398   : > { %v6693_v34 = vadd.f32 %v6589_v63, %v6416_v26  ;;  %v6215_v4 = vmul.f32 %v11403_v54, %v6187_v10  ;;  %v11716_v11 = vmul.f32 %v11630_v60, %v11418_v9  ;;  %v6492_v17 = vmul.f32 %v11418_v9, %v6187_v10 }
 0x399   : > { %v5631_v20 = vsel %vm5611_vm1, %v5628_v1, %v5630_v29  ;;  %v5909_v3 = vsel %vm5889_vm2, %v5906_v15, %v5908_v47  ;;  %v6316_v53 = vrot.slane %v11711_v59, 1  ;;  %v6762_v33 = vunpack.c.h.bf16 %v11706_v21 }
 0x39a   : > { %v6827_v25 = vadd.f32 %v6795_v19, %v6693_v34  ;;  %v5731_v45 = vadd.f32 %v5631_v20, %v5421_v22  ;;  %v6318_v36 = vrot.slane %v6215_v4, 1  ;;  %v6593_v62 = vrot.slane %v11716_v11, 2 }
 0x39b   : > { %v6595_v49 = vrot.slane %v6492_v17, 2  ;;  %v6798_v2 = vmul.f32 %v11434_v48, %v6762_v33  ;;  %v6875_v52 = vunpack.c.l.bf16 %v6858_v55  ;;  %v11730_v58 = vmul.f32 %v11444_v23, %v6762_v33  ;;  %v5482_v55 = vld [vmem:[#allocation2 + $0x38] sm:$0x1] }
 0x39c   : > { %v7104_v44 = vadd.f32 %v7000_v24, %v6827_v25  ;;  %v6009_v43 = vadd.f32 %v5909_v3, %v5731_v45  ;;  %v6319_v5 = vsel %vm5611_vm1, %v6316_v53, %v6318_v36  ;;  %v11734_v46 = vmul.f32 %v11455_v41, %v6762_v33 }
 0x39d   : > { %v6596_v19 = vsel %vm5889_vm2, %v6593_v62, %v6595_v49  ;;  %v6903_v0 = vmul.f32 %v11444_v23, %v6875_v52  ;;  %v7004_v57 = vrot.slane %v11730_v58, 1  ;;  %v7180_v37 = vmul.f32 %v11455_v41, %v6875_v52 }
 0x39e   : > { %v7381_v8 = vadd.f32 %v7277_v42, %v7104_v44  ;;  %v6142_v30 = vadd.f32 %v6110_v28, %v6009_v43  ;;  %v7281_v18 = vrot.slane %v11734_v46, 2  ;;  %v5384_v63 = vunpack.c.l.bf16 %v11675_v40 }
 0x39f   : > { %v7006_v24 = vrot.slane %v6903_v0, 1  ;;  %v7283_v56 = vrot.slane %v7180_v37, 2  ;;  %v5776_v22 = vunpack.c.l.bf16 %v5759_v39  ;;  %v6109_v14 = vmul.f32 %v11667_v50, %v11398_v16  ;;  %v11776_v39 = vld [vmem:[#allocation2 + $0x3c] sm:$0xff]  }
 0x3a0   : > { %v7422_v27 = vsel %vm3701_vm0, %v7381_v8, 0.0  ;;  %v6419_v31 = vadd.f32 %v6319_v5, %v6142_v30  ;;  %v5420_v32 = vmul.f32 %v11375_v61, %v5384_v63  ;;  %v5524_v38 = vmul.f32 %v11380_v13, %v5384_v63  ;;  %v8694_v63 = vld [vmem:[#allocation2 + $0x48] sm:$0xff]  }
 0x3a1   : > { %7423 = vadd.xlane.f32.xlu0 %v7422_v27  ;;  %v7007_v28 = vsel %vm5611_vm1, %v7004_v57, %v7006_v24  ;;  %v7284_v40 = vsel %vm5889_vm2, %v7281_v18, %v7283_v56  ;;  %v5802_v26 = vmul.f32 %v11389_v7, %v5776_v22  ;;  %v6213_v10 = vmul.f32 %v11667_v50, %v11403_v54  ;;  %v6859_v24 = vld [vmem:[#allocation2 + $0x50] sm:$0x1] }
 0x3a2   : > { %v6696_v42 = vadd.f32 %v6596_v19, %v6419_v31  ;;  %v5627_v29 = vrot.slane %v5524_v38, 1  ;;  %v6464_v47 = vunpack.c.l.bf16 %v6447_v6  ;;  %v6761_v59 = vunpack.c.l.bf16 %v11706_v21  ;;  %v6171_v19 = vld [vmem:[#allocation2 + $0x44] sm:$0x1] }
 0x3a3   : > { %v5905_v34 = vrot.slane %v5802_v26, 2  ;;  %v6315_v4 = vrot.slane %v6213_v10, 1  ;;  %v7152_v11 = vunpack.c.l.bf16 %v7135_v12  ;;  %v5423_v17 = vmul.f32 %v11630_v60, %v11375_v61 }
 0x3a4   : > { %v6830_v20 = vadd.f32 %v6798_v2, %v6696_v42  ;;  %v5629_v3 = vsel %vm5611_vm1, %v5627_v29, %v5628_v1  ;;  %v6490_v33 = vmul.f32 %v11418_v9, %v6464_v47  ;;  %v6797_v25 = vmul.f32 %v11434_v48, %v6761_v59 }
 0x3a5   : > { %v5730_v45 = vadd.f32 %v5629_v3, %v5420_v32  ;;  %v5907_v21 = vsel %vm5889_vm2, %v5905_v34, %v5906_v15  ;;  %v6317_v36 = vsel %vm5611_vm1, %v6315_v4, %v6316_v53  ;;  %v6901_v49 = vmul.f32 %v11444_v23, %v6761_v59 }
 0x3a6   : > { %v7107_v52 = vadd.f32 %v7007_v28, %v6830_v20  ;;  %v6592_v58 = vrot.slane %v6490_v33, 2  ;;  %v7178_v2 = vmul.f32 %v11455_v41, %v7152_v11  ;;  %v5499_v51 = vunpack.c.l.bf16 %v5482_v55 }
 0x3a7   : > { %v6008_v44 = vadd.f32 %v5907_v21, %v5730_v45  ;;  %v7003_v1 = vrot.slane %v6901_v49, 1  ;;  %v11768_v43 = vmul.f32 %v11630_v60, %v11380_v13  ;;  %v11772_v35 = vmul.f32 %v11630_v60, %v11389_v7 }
 0x3a8   : > { %v7384_v15 = vadd.f32 %v7284_v40, %v7107_v52  ;;  %v6594_v53 = vsel %vm5889_vm2, %v6592_v58, %v6593_v62  ;;  %v7280_v5 = vrot.slane %v7178_v2, 2  ;;  %v5529_v46 = vmul.f32 %v11380_v13, %v5499_v51 }
 0x3a9   : > { %v6141_v0 = vadd.f32 %v6109_v14, %v6008_v44  ;;  %v7005_v37 = vsel %vm5611_vm1, %v7003_v1, %v7004_v57  ;;  %v5633_v8 = vrot.slane %v11768_v43, 1  ;;  %v5807_v30 = vmul.f32 %v11389_v7, %v5499_v51 }
 0x3aa   : > { %v7431_v60 = vsel %vm3701_vm0, %v7384_v15, 0.0  ;;  %v7282_v56 = vsel %vm5889_vm2, %v7280_v5, %v7281_v18  ;;  %v5635_v62 = vrot.slane %v5529_v46, 1  ;;  %v5911_v22 = vrot.slane %v11772_v35, 2  ;;  %v6172_v35 = vld [vmem:[#allocation2 + $0x50] sm:$0x1] }
 0x3ab   : > { %7432 = vadd.xlane.f32.xlu1 %v7431_v60  ;;  %v6418_v6 = vadd.f32 %v6317_v36, %v6141_v0  ;;  %v5913_v27 = vrot.slane %v5807_v30, 2  ;;  %v6076_v14 = vunpack.c.h.bf16 %v11776_v39  ;;  %v6188_v31 = vunpack.c.l.bf16 %v6171_v19  ;;  %v6448_v0 = vld [vmem:[#allocation2 + $0x3c] sm:$0xe] }
 0x3ac   : > { %v5636_v57 = vsel %vm5611_vm1, %v5633_v8, %v5635_v62  ;;  %v11788_v32 = vunpack.c.h.bf16 %v8694_v63  ;;  %v6876_v38 = vunpack.c.l.bf16 %v6859_v24  ;;  %v5422_v12 = vmul.f32 %v11667_v50, %v11375_v61  ;;  %v7136_v62 = vld [vmem:[#allocation2 + $0x48] sm:$0xe] }
 0x3ad   : > { %v6695_v18 = vadd.f32 %v6594_v53, %v6418_v6  ;;  %v5733_v28 = vadd.f32 %v5636_v57, %v5423_v17  ;;  %v5914_v40 = vsel %vm5889_vm2, %v5911_v22, %v5913_v27  ;;  %v6112_v26 = vmul.f32 %v11398_v16, %v6076_v14 }
 0x3ae   : > { %v6217_v10 = vmul.f32 %v11403_v54, %v6076_v14  ;;  %v6218_v42 = vmul.f32 %v11403_v54, %v6188_v31  ;;  %v11799_v29 = vmul.f32 %v11418_v9, %v6076_v14  ;;  %v6495_v47 = vmul.f32 %v11418_v9, %v6188_v31 }
 0x3af   : > { %v6829_v59 = vadd.f32 %v6797_v25, %v6695_v18  ;;  %v6011_v34 = vadd.f32 %v5914_v40, %v5733_v28  ;;  %v6800_v4 = vmul.f32 %v11788_v32, %v11434_v48  ;;  %v11806_v11 = vmul.f32 %v11788_v32, %v11444_v23  ;;  %v5760_v25 = vld [vmem:[#allocation2 + $0x30] sm:$0xe] }
 0x3b0   : > { %v6321_v17 = vrot.slane %v6217_v10, 1  ;;  %v6323_v55 = vrot.slane %v6218_v42, 1  ;;  %v6598_v20 = vrot.slane %v11799_v29, 2  ;;  %v6600_v3 = vrot.slane %v6495_v47, 2  ;;  %v5483_v47 = vld [vmem:[#allocation2 + $0x44] sm:$0x1] }
 0x3b1   : > { %v7106_v33 = vadd.f32 %v7005_v37, %v6829_v59  ;;  %v6144_v45 = vadd.f32 %v6112_v26, %v6011_v34  ;;  %v6906_v21 = vmul.f32 %v11444_v23, %v6876_v38  ;;  %v7009_v36 = vrot.slane %v11806_v11, 1 }
 0x3b2   : > { %v6324_v49 = vsel %vm5611_vm1, %v6321_v17, %v6323_v55  ;;  %v6601_v52 = vsel %vm5889_vm2, %v6598_v20, %v6600_v3  ;;  %v7182_v58 = vmul.f32 %v11788_v32, %v11455_v41  ;;  %v7183_v2 = vmul.f32 %v11455_v41, %v6876_v38  ;;  %v11830_v38 = vld [vmem:[#allocation2 + $0x3c] sm:$0xff]  }
 0x3b3   : > { %v7383_v51 = vadd.f32 %v7282_v56, %v7106_v33  ;;  %v6421_v44 = vadd.f32 %v6324_v49, %v6144_v45  ;;  %v7011_v1 = vrot.slane %v6906_v21, 1  ;;  %v5527_v15 = vmul.f32 %v11667_v50, %v11380_v13 }
 0x3b4   : > { %v7286_v53 = vrot.slane %v7182_v58, 2  ;;  %v7288_v5 = vrot.slane %v7183_v2, 2  ;;  %v5777_v46 = vunpack.c.l.bf16 %v5760_v25  ;;  %v6075_v19 = vunpack.c.l.bf16 %v11776_v39 }
 0x3b5   : > { %v7428_v37 = vsel %vm3701_vm0, %v7383_v51, 0.0  ;;  %v6698_v30 = vadd.f32 %v6601_v52, %v6421_v44  ;;  %v7012_v24 = vsel %vm5611_vm1, %v7009_v36, %v7011_v1  ;;  %v5632_v60 = vrot.slane %v5527_v15, 1 }
 0x3b6   : > { %7429 = vadd.xlane.f32.xlu0 %v7428_v37  ;;  %v7289_v56 = vsel %vm5889_vm2, %v7286_v53, %v7288_v5  ;;  %v5805_v6 = vmul.f32 %v11389_v7, %v5777_v46  ;;  %v6111_v50 = vmul.f32 %v11398_v16, %v6075_v19  ;;  %v6216_v27 = vmul.f32 %v11403_v54, %v6075_v19  ;;  %v6860_v37 = vld [vmem:[#allocation2 + $0x5c] sm:$0x1] }
 0x3b7   : > { %v6832_v14 = vadd.f32 %v6800_v4, %v6698_v30  ;;  %v5634_v39 = vsel %vm5611_vm1, %v5632_v60, %v5633_v8  ;;  %v6465_v31 = vunpack.c.l.bf16 %v6448_v0  ;;  %v11828_v57 = vunpack.c.l.bf16 %v8694_v63 }
 0x3b8   : > { %v5732_v18 = vadd.f32 %v5634_v39, %v5422_v12  ;;  %v5910_v28 = vrot.slane %v5805_v6, 2  ;;  %v6320_v40 = vrot.slane %v6216_v27, 1  ;;  %v7153_v26 = vunpack.c.l.bf16 %v7136_v62 }
 0x3b9   : > { %v7109_v10 = vadd.f32 %v7012_v24, %v6832_v14  ;;  %v6493_v42 = vmul.f32 %v11418_v9, %v6465_v31  ;;  %v6799_v29 = vmul.f32 %v11828_v57, %v11434_v48  ;;  %v6904_v43 = vmul.f32 %v11828_v57, %v11444_v23 }
 0x3ba   : > { %v5912_v8 = vsel %vm5889_vm2, %v5910_v28, %v5911_v22  ;;  %v6322_v63 = vsel %vm5611_vm1, %v6320_v40, %v6321_v17  ;;  %v7181_v12 = vmul.f32 %v11455_v41, %v7153_v26  ;;  %v5389_v59 = vunpack.c.h.bf16 %v11830_v38  ;;  %v5761_v26 = vld [vmem:[#allocation2 + $0x3c] sm:$0xe] }
 0x3bb   : > { %v7386_v34 = vadd.f32 %v7289_v56, %v7109_v10  ;;  %v6010_v4 = vadd.f32 %v5912_v8, %v5732_v18  ;;  %v6597_v11 = vrot.slane %v6493_v42, 2  ;;  %v7008_v55 = vrot.slane %v6904_v43, 1 }
 0x3bc   : > { %v7285_v3 = vrot.slane %v7181_v12, 2  ;;  %v5425_v33 = vmul.f32 %v11375_v61, %v5389_v59  ;;  %v5500_v45 = vunpack.c.l.bf16 %v5483_v47  ;;  %v11845_v21 = vmul.f32 %v11380_v13, %v5389_v59 }
 0x3bd   : > { %v7437_v22 = vsel %vm3701_vm0, %v7386_v34, 0.0  ;;  %v6143_v25 = vadd.f32 %v6111_v50, %v6010_v4  ;;  %v6599_v17 = vsel %vm5889_vm2, %v6597_v11, %v6598_v20  ;;  %v7010_v49 = vsel %vm5611_vm1, %v7008_v55, %v7009_v36  ;;  %v11859_v20 = vld [vmem:[#allocation2 + $0x54] sm:$0xff]   ;;  %v6449_v11 = vld [vmem:[#allocation2 + $0x48] sm:$0xe] }
 0x3be   : > { %7438 = vadd.xlane.f32.xlu1 %v7437_v22  ;;  %v7287_v52 = vsel %vm5889_vm2, %v7285_v3, %v7286_v53  ;;  %v5532_v58 = vmul.f32 %v11380_v13, %v5500_v45  ;;  %v5638_v2 = vrot.slane %v11845_v21, 1  ;;  %v11854_v61 = vmul.f32 %v11389_v7, %v5389_v59  ;;  %v11903_v3 = vld [vmem:[%s13030_s5] ss:$0 sm:$0xff] }
 0x3bf   : > { %v6420_v51 = vadd.f32 %v6322_v63, %v6143_v25  ;;  %v5810_v44 = vmul.f32 %v11389_v7, %v5500_v45  ;;  %v6114_v1 = vmul.f32 %v11788_v32, %v11398_v16  ;;  %v6189_v15 = vunpack.c.l.bf16 %v6172_v35  ;;  %v7137_v35 = vld [vmem:[#allocation2 + $0x54] sm:$0xe]  ;;  %v11919_v25 = vld [vmem:[%s13030_s5 + $0x2] ss:$0 sm:$0xff] }
 0x3c0   : > { %v5640_v36 = vrot.slane %v5532_v58, 1  ;;  %v5916_v5 = vrot.slane %v11854_v61, 2  ;;  %v11864_v13 = vmul.f32 %v11788_v32, %v11403_v54  ;;  %v11868_v53 = vmul.f32 %v11788_v32, %v11418_v9 }
 0x3c1   : > { %v6697_v46 = vadd.f32 %v6599_v17, %v6420_v51  ;;  %v5918_v19 = vrot.slane %v5810_v44, 2  ;;  %v6221_v7 = vmul.f32 %v11403_v54, %v6189_v15  ;;  %v6498_v0 = vmul.f32 %v11418_v9, %v6189_v15 }
 0x3c2   : > { %v5641_v30 = vsel %vm5611_vm1, %v5638_v2, %v5640_v36  ;;  %v6326_v24 = vrot.slane %v11864_v13, 1  ;;  %v6603_v60 = vrot.slane %v11868_v53, 2  ;;  %v6766_v62 = vunpack.c.h.bf16 %v11859_v20 }
 0x3c3   : > { %v6831_v56 = vadd.f32 %v6799_v29, %v6697_v46  ;;  %v5735_v6 = vadd.f32 %v5641_v30, %v5425_v33  ;;  %v5919_v50 = vsel %vm5889_vm2, %v5916_v5, %v5918_v19  ;;  %v6328_v54 = vrot.slane %v6221_v7, 1  ;;  %v5484_v19 = vld [vmem:[#allocation2 + $0x50] sm:$0x1] }
 0x3c4   : > { %v6605_v27 = vrot.slane %v6498_v0, 2  ;;  %v6802_v9 = vmul.f32 %v11434_v48, %v6766_v62  ;;  %v6877_v14 = vunpack.c.l.bf16 %v6860_v37  ;;  %v11883_v39 = vmul.f32 %v11444_v23, %v6766_v62  ;;  %v11938_v37 = vld [vmem:[%s13030_s5 + $0x5] ss:$0 sm:$0xff] }
 0x3c5   : > { %v7108_v31 = vadd.f32 %v7010_v49, %v6831_v56  ;;  %v6013_v18 = vadd.f32 %v5919_v50, %v5735_v6  ;;  %v6329_v28 = vsel %vm5611_vm1, %v6326_v24, %v6328_v54  ;;  %v11887_v40 = vmul.f32 %v11455_v41, %v6766_v62  ;;  %v11925_v49 = vld [vmem:[%s13030_s5 + $0x4] ss:$0 sm:$0xff]  ;;  %v11954_v6 = vld [vmem:[%s13030_s5 + $0x7] ss:$0 sm:$0xff] }
 0x3c6   : > { %v6606_v10 = vsel %vm5889_vm2, %v6603_v60, %v6605_v27  ;;  %v6909_v42 = vmul.f32 %v11444_v23, %v6877_v14  ;;  %v7014_v48 = vrot.slane %v11883_v39, 1  ;;  %v7186_v29 = vmul.f32 %v11455_v41, %v6877_v14 }
 0x3c7   : > { %v7385_v43 = vadd.f32 %v7287_v52, %v7108_v31  ;;  %v6146_v47 = vadd.f32 %v6114_v1, %v6013_v18  ;;  %v7291_v8 = vrot.slane %v11887_v40, 2  ;;  %v5388_v63 = vunpack.c.l.bf16 %v11830_v38  ;;  %v11909_v38 = vld [vmem:[%s13030_s5 + $0x1] ss:$0 sm:$0xff] }
 0x3c8   : > { %v7016_v12 = vrot.slane %v6909_v42, 1  ;;  %v7293_v59 = vrot.slane %v7186_v29, 2  ;;  %v5778_v34 = vunpack.c.l.bf16 %v5761_v26  ;;  %v6113_v4 = vmul.f32 %v11828_v57, %v11398_v16 }
 0x3c9   : > { %v7434_v55 = vsel %vm3701_vm0, %v7385_v43, 0.0  ;;  %v6423_v23 = vadd.f32 %v6329_v28, %v6146_v47  ;;  %v5424_v33 = vmul.f32 %v11903_v3, %v5388_v63  ;;  %v5530_v45 = vmul.f32 %v11909_v38, %v5388_v63  ;;  %v6861_v63 = vld [vmem:[#allocation2 + $0x68] sm:$0x1] }
 0x3ca   : > { %7435 = vadd.xlane.f32.xlu0 %v7434_v55  ;;  %v7017_v16 = vsel %vm5611_vm1, %v7014_v48, %v7016_v12  ;;  %v7294_v22 = vsel %vm5889_vm2, %v7291_v8, %v7293_v59  ;;  %v5808_v17 = vmul.f32 %v11919_v25, %v5778_v34  ;;  %v6219_v52 = vmul.f32 %v11925_v49, %v11828_v57 }
 0x3cb   : > { %v6700_v58 = vadd.f32 %v6606_v10, %v6423_v23  ;;  %v5637_v51 = vrot.slane %v5530_v45, 1  ;;  %v6466_v44 = vunpack.c.l.bf16 %v6449_v11  ;;  %v6765_v1 = vunpack.c.l.bf16 %v11859_v20  ;;  %v11944_v20 = vld [vmem:[%s13030_s5 + $0x6] ss:$0 sm:$0xff]  ;;  %v6173_v10 = vld [vmem:[#allocation2 + $0x5c] sm:$0x1] }
 0x3cc   : > { %v5915_v15 = vrot.slane %v5808_v17, 2  ;;  %v6325_v36 = vrot.slane %v6219_v52, 1  ;;  %v7154_v13 = vunpack.c.l.bf16 %v7137_v35  ;;  %v5427_v46 = vmul.f32 %v11903_v3, %v11788_v32 }
 0x3cd   : > { %v6834_v7 = vadd.f32 %v6802_v9, %v6700_v58  ;;  %v5639_v0 = vsel %vm5611_vm1, %v5637_v51, %v5638_v2  ;;  %v6496_v30 = vmul.f32 %v11938_v37, %v6466_v44  ;;  %v6801_v62 = vmul.f32 %v11944_v20, %v6765_v1 }
 0x3ce   : > { %v5734_v56 = vadd.f32 %v5639_v0, %v5424_v33  ;;  %v5917_v21 = vsel %vm5889_vm2, %v5915_v15, %v5916_v5  ;;  %v6327_v2 = vsel %vm5611_vm1, %v6325_v36, %v6326_v24  ;;  %v6907_v50 = vmul.f32 %v11954_v6, %v6765_v1 }
 0x3cf   : > { %v7111_v54 = vadd.f32 %v7017_v16, %v6834_v7  ;;  %v6602_v27 = vrot.slane %v6496_v30, 2  ;;  %v7184_v9 = vmul.f32 %v11455_v41, %v7154_v13  ;;  %v5501_v14 = vunpack.c.l.bf16 %v5484_v19  ;;  %v11970_v41 = vld [vmem:[#allocation2 + $0x54] sm:$0xff]   ;;  %v11997_v16 = vld [vmem:[%s13030_s5 + $0x3] ss:$0 sm:$0xff] }
 0x3d0   : > { %v6012_v39 = vadd.f32 %v5917_v21, %v5734_v56  ;;  %v7013_v31 = vrot.slane %v6907_v50, 1  ;;  %v11960_v61 = vmul.f32 %v11909_v38, %v11788_v32  ;;  %v11964_v5 = vmul.f32 %v11919_v25, %v11788_v32  ;;  %v11975_v32 = vld [vmem:[#allocation2 + $0x60] sm:$0xff]  }
 0x3d1   : > { %v7388_v24 = vadd.f32 %v7294_v22, %v7111_v54  ;;  %v6604_v18 = vsel %vm5889_vm2, %v6602_v27, %v6603_v60  ;;  %v7290_v28 = vrot.slane %v7184_v9, 2  ;;  %v5535_v26 = vmul.f32 %v11909_v38, %v5501_v14  ;;  %v12020_v54 = vld [vmem:[%s13030_s5 + $0x8] ss:$0 sm:$0xff] }
 0x3d2   : > { %v6145_v42 = vadd.f32 %v6113_v4, %v6012_v39  ;;  %v7015_v29 = vsel %vm5611_vm1, %v7013_v31, %v7014_v48  ;;  %v5643_v43 = vrot.slane %v11960_v61, 1  ;;  %v5813_v47 = vmul.f32 %v11919_v25, %v5501_v14 }
 0x3d3   : > { %v7443_v53 = vsel %vm3701_vm0, %v7388_v24, 0.0  ;;  %v7292_v60 = vsel %vm5889_vm2, %v7290_v28, %v7291_v8  ;;  %v5645_v12 = vrot.slane %v5535_v26, 1  ;;  %v5921_v59 = vrot.slane %v11964_v5, 2  ;;  %v6174_v5 = vld [vmem:[#allocation2 + $0x68] sm:$0x1] }
 0x3d4   : > { %7444 = vadd.xlane.f32.xlu1 %v7443_v53  ;;  %v6422_v34 = vadd.f32 %v6327_v2, %v6145_v42  ;;  %v5923_v4 = vrot.slane %v5813_v47, 2  ;;  %v6080_v48 = vunpack.c.h.bf16 %v11970_v41  ;;  %v6190_v11 = vunpack.c.l.bf16 %v6173_v10  ;;  %v6450_v42 = vld [vmem:[#allocation2 + $0x54] sm:$0xe] }
 0x3d5   : > { %v5646_v55 = vsel %vm5611_vm1, %v5643_v43, %v5645_v12  ;;  %v11987_v23 = vunpack.c.h.bf16 %v11975_v32  ;;  %v6878_v33 = vunpack.c.l.bf16 %v6861_v63  ;;  %v5426_v40 = vmul.f32 %v11903_v3, %v11828_v57  ;;  %v7138_v12 = vld [vmem:[#allocation2 + $0x60] sm:$0xe] }
 0x3d6   : > { %v6699_v8 = vadd.f32 %v6604_v18, %v6422_v34  ;;  %v5737_v45 = vadd.f32 %v5646_v55, %v5427_v46  ;;  %v5924_v35 = vsel %vm5889_vm2, %v5921_v59, %v5923_v4  ;;  %v6116_v22 = vmul.f32 %v11997_v16, %v6080_v48 }
 0x3d7   : > { %v6223_v17 = vmul.f32 %v11925_v49, %v6080_v48  ;;  %v6224_v52 = vmul.f32 %v11925_v49, %v6190_v11  ;;  %v12003_v58 = vmul.f32 %v11938_v37, %v6080_v48  ;;  %v6501_v51 = vmul.f32 %v11938_v37, %v6190_v11 }
 0x3d8   : > { %v6833_v44 = vadd.f32 %v6801_v62, %v6699_v8  ;;  %v6015_v1 = vadd.f32 %v5924_v35, %v5737_v45  ;;  %v6804_v15 = vmul.f32 %v11944_v20, %v11987_v23  ;;  %v12010_v36 = vmul.f32 %v11954_v6, %v11987_v23  ;;  %v5762_v62 = vld [vmem:[#allocation2 + $0x48] sm:$0xe] }
 0x3d9   : > { %v6331_v13 = vrot.slane %v6223_v17, 1  ;;  %v6333_v46 = vrot.slane %v6224_v52, 1  ;;  %v6608_v19 = vrot.slane %v12003_v58, 2  ;;  %v6610_v7 = vrot.slane %v6501_v51, 2 }
 0x3da   : > { %v7110_v0 = vadd.f32 %v7015_v29, %v6833_v44  ;;  %v6148_v30 = vadd.f32 %v6116_v22, %v6015_v1  ;;  %v6912_v56 = vmul.f32 %v11954_v6, %v6878_v33  ;;  %v7019_v21 = vrot.slane %v12010_v36, 1 }
 0x3db   : > { %v6334_v2 = vsel %vm5611_vm1, %v6331_v13, %v6333_v46  ;;  %v6611_v50 = vsel %vm5889_vm2, %v6608_v19, %v6610_v7  ;;  %v7188_v27 = vmul.f32 %v12020_v54, %v11987_v23  ;;  %v7189_v9 = vmul.f32 %v12020_v54, %v6878_v33  ;;  %v12040_v33 = vld [vmem:[#allocation2 + $0x54] sm:$0xff]  }
 0x3dc   : > { %v7387_v14 = vadd.f32 %v7292_v60, %v7110_v0  ;;  %v6425_v39 = vadd.f32 %v6334_v2, %v6148_v30  ;;  %v7021_v31 = vrot.slane %v6912_v56, 1  ;;  %v5533_v24 = vmul.f32 %v11909_v38, %v11828_v57 }
 0x3dd   : > { %v7296_v18 = vrot.slane %v7188_v27, 2  ;;  %v7298_v28 = vrot.slane %v7189_v9, 2  ;;  %v5779_v26 = vunpack.c.l.bf16 %v5762_v62  ;;  %v6079_v10 = vunpack.c.l.bf16 %v11970_v41 }
 0x3de   : > { %v7440_v29 = vsel %vm3701_vm0, %v7387_v14, 0.0  ;;  %v6702_v47 = vadd.f32 %v6611_v50, %v6425_v39  ;;  %v7022_v63 = vsel %vm5611_vm1, %v7019_v21, %v7021_v31  ;;  %v5642_v53 = vrot.slane %v5533_v24, 1 }
 0x3df   : > { %7441 = vadd.xlane.f32.xlu0 %v7440_v29  ;;  %v7299_v60 = vsel %vm5889_vm2, %v7296_v18, %v7298_v28  ;;  %v5811_v34 = vmul.f32 %v11919_v25, %v5779_v26  ;;  %v6115_v57 = vmul.f32 %v11997_v16, %v6079_v10  ;;  %v6222_v4 = vmul.f32 %v11925_v49, %v6079_v10 }
 0x3e0   : > { %v6836_v48 = vadd.f32 %v6804_v15, %v6702_v47  ;;  %v5644_v41 = vsel %vm5611_vm1, %v5642_v53, %v5643_v43  ;;  %v6467_v11 = vunpack.c.l.bf16 %v6450_v42  ;;  %v12038_v55 = vunpack.c.l.bf16 %v11975_v32  ;;  %v5485_v43 = vld [vmem:[#allocation2 + $0x5c] sm:$0x1]  ;;  %v6862_v53 = vld [vmem:[#allocation2 + $0x74] sm:$0x1] }
 0x3e1   : > { %v5736_v8 = vadd.f32 %v5644_v41, %v5426_v40  ;;  %v5920_v45 = vrot.slane %v5811_v34, 2  ;;  %v6330_v35 = vrot.slane %v6222_v4, 1  ;;  %v7155_v22 = vunpack.c.l.bf16 %v7138_v12 }
 0x3e2   : > { %v7113_v17 = vadd.f32 %v7022_v63, %v6836_v48  ;;  %v6499_v52 = vmul.f32 %v11938_v37, %v6467_v11  ;;  %v6803_v58 = vmul.f32 %v11944_v20, %v12038_v55  ;;  %v6910_v61 = vmul.f32 %v11954_v6, %v12038_v55 }
 0x3e3   : > { %v5922_v32 = vsel %vm5889_vm2, %v5920_v45, %v5921_v59  ;;  %v6332_v51 = vsel %vm5611_vm1, %v6330_v35, %v6331_v13  ;;  %v7187_v40 = vmul.f32 %v12020_v54, %v7155_v22  ;;  %v5393_v44 = vunpack.c.h.bf16 %v12040_v33 }
 0x3e4   : > { %v7390_v1 = vadd.f32 %v7299_v60, %v7113_v17  ;;  %v6014_v15 = vadd.f32 %v5922_v32, %v5736_v8  ;;  %v6607_v36 = vrot.slane %v6499_v52, 2  ;;  %v7018_v46 = vrot.slane %v6910_v61, 1 }
 0x3e5   : > { %v7295_v7 = vrot.slane %v7187_v40, 2  ;;  %v5429_v0 = vmul.f32 %v11903_v3, %v5393_v44  ;;  %v5502_v30 = vunpack.c.l.bf16 %v5485_v43  ;;  %v12055_v56 = vmul.f32 %v11909_v38, %v5393_v44 }
 0x3e6   : > { %v7449_v59 = vsel %vm3701_vm0, %v7390_v1, 0.0  ;;  %v6147_v62 = vadd.f32 %v6115_v57, %v6014_v15  ;;  %v6609_v13 = vsel %vm5889_vm2, %v6607_v36, %v6608_v19  ;;  %v7020_v2 = vsel %vm5611_vm1, %v7018_v46, %v7019_v21  ;;  %v12069_v19 = vld [vmem:[#allocation2 + $0x6c] sm:$0xff]  }
 0x3e7   : > { %7450 = vadd.xlane.f32.xlu1 %v7449_v59  ;;  %v7297_v50 = vsel %vm5889_vm2, %v7295_v7, %v7296_v18  ;;  %v5538_v27 = vmul.f32 %v11909_v38, %v5502_v30  ;;  %v5648_v9 = vrot.slane %v12055_v56, 1  ;;  %v12064_v14 = vmul.f32 %v11919_v25, %v5393_v44  ;;  %v6451_v59 = vld [vmem:[#allocation2 + $0x60] sm:$0xe] }
 0x3e8   : > { %v6424_v39 = vadd.f32 %v6332_v51, %v6147_v62  ;;  %v5816_v31 = vmul.f32 %v11919_v25, %v5502_v30  ;;  %v6118_v24 = vmul.f32 %v11997_v16, %v11987_v23  ;;  %v6191_v28 = vunpack.c.l.bf16 %v6174_v5 }
 0x3e9   : > { %v5650_v21 = vrot.slane %v5538_v27, 1  ;;  %v5926_v26 = vrot.slane %v12064_v14, 2  ;;  %v12074_v18 = vmul.f32 %v11925_v49, %v11987_v23  ;;  %v12078_v10 = vmul.f32 %v11938_v37, %v11987_v23 }
 0x3ea   : > { %v6701_v42 = vadd.f32 %v6609_v13, %v6424_v39  ;;  %v5928_v29 = vrot.slane %v5816_v31, 2  ;;  %v6227_v47 = vmul.f32 %v11925_v49, %v6191_v28  ;;  %v6504_v63 = vmul.f32 %v11938_v37, %v6191_v28 }
 0x3eb   : > { %v5651_v12 = vsel %vm5611_vm1, %v5648_v9, %v5650_v21  ;;  %v6336_v60 = vrot.slane %v12074_v18, 1  ;;  %v6613_v34 = vrot.slane %v12078_v10, 2  ;;  %v6770_v57 = vunpack.c.h.bf16 %v12069_v19 }
 0x3ec   : > { %v6835_v4 = vadd.f32 %v6803_v58, %v6701_v42  ;;  %v5739_v48 = vadd.f32 %v5651_v12, %v5429_v0  ;;  %v5929_v41 = vsel %vm5889_vm2, %v5926_v26, %v5928_v29  ;;  %v6338_v11 = vrot.slane %v6227_v47, 1  ;;  %v5763_v58 = vld [vmem:[#allocation2 + $0x54] sm:$0xe]  ;;  %v5486_v12 = vld [vmem:[#allocation2 + $0x68] sm:$0x1] }
 0x3ed   : > { %v6615_v8 = vrot.slane %v6504_v63, 2  ;;  %v6806_v45 = vmul.f32 %v11944_v20, %v6770_v57  ;;  %v6879_v35 = vunpack.c.l.bf16 %v6862_v53  ;;  %v12093_v22 = vmul.f32 %v11954_v6, %v6770_v57 }
 0x3ee   : > { %v7112_v17 = vadd.f32 %v7020_v2, %v6835_v4  ;;  %v6017_v52 = vadd.f32 %v5929_v41, %v5739_v48  ;;  %v6339_v61 = vsel %vm5611_vm1, %v6336_v60, %v6338_v11  ;;  %v12097_v43 = vmul.f32 %v12020_v54, %v6770_v57 }
 0x3ef   : > { %v6616_v32 = vsel %vm5889_vm2, %v6613_v34, %v6615_v8  ;;  %v6915_v51 = vmul.f32 %v11954_v6, %v6879_v35  ;;  %v7024_v40 = vrot.slane %v12093_v22, 1  ;;  %v7192_v44 = vmul.f32 %v12020_v54, %v6879_v35 }
 0x3f0   : > { %v7389_v1 = vadd.f32 %v7297_v50, %v7112_v17  ;;  %v6150_v15 = vadd.f32 %v6118_v24, %v6017_v52  ;;  %v7301_v36 = vrot.slane %v12097_v43, 2  ;;  %v5392_v46 = vunpack.c.l.bf16 %v12040_v33  ;;  %v7139_v50 = vld [vmem:[#allocation2 + $0x6c] sm:$0xe] }
 0x3f1   : > { %v7026_v7 = vrot.slane %v6915_v51, 1  ;;  %v7303_v0 = vrot.slane %v7192_v44, 2  ;;  %v5780_v30 = vunpack.c.l.bf16 %v5763_v58  ;;  %v6117_v5 = vmul.f32 %v11997_v16, %v12038_v55  ;;  %v6175_v51 = vld [vmem:[#allocation2 + $0x74] sm:$0x1] }
 0x3f2   : > { %v7446_v62 = vsel %vm3701_vm0, %v7389_v1, 0.0  ;;  %v6427_v13 = vadd.f32 %v6339_v61, %v6150_v15  ;;  %v5428_v2 = vmul.f32 %v11903_v3, %v5392_v46  ;;  %v5536_v27 = vmul.f32 %v11909_v38, %v5392_v46 }
 0x3f3   : > { %7447 = vadd.xlane.f32.xlu0 %v7446_v62  ;;  %v7027_v39 = vsel %vm5611_vm1, %v7024_v40, %v7026_v7  ;;  %v7304_v33 = vsel %vm5889_vm2, %v7301_v36, %v7303_v0  ;;  %v5814_v31 = vmul.f32 %v11919_v25, %v5780_v30  ;;  %v6225_v24 = vmul.f32 %v11925_v49, %v12038_v55  ;;  %v6863_v7 = vld [vmem:[#allocation2 + $0x80] sm:$0x1] }
 0x3f4   : > { %v6704_v28 = vadd.f32 %v6616_v32, %v6427_v13  ;;  %v5647_v21 = vrot.slane %v5536_v27, 1  ;;  %v6468_v18 = vunpack.c.l.bf16 %v6451_v59  ;;  %v6769_v42 = vunpack.c.l.bf16 %v12069_v19  ;;  %v12143_v32 = vld [vmem:[#allocation2 + $0x6c] sm:$0xff]  }
 0x3f5   : > { %v5925_v29 = vrot.slane %v5814_v31, 2  ;;  %v6335_v47 = vrot.slane %v6225_v24, 1  ;;  %v7156_v63 = vunpack.c.l.bf16 %v7139_v50  ;;  %v5431_v53 = vmul.f32 %v11903_v3, %v11987_v23 }
 0x3f6   : > { %v6838_v57 = vadd.f32 %v6806_v45, %v6704_v28  ;;  %v5649_v4 = vsel %vm5611_vm1, %v5647_v21, %v5648_v9  ;;  %v6502_v48 = vmul.f32 %v11938_v37, %v6468_v18  ;;  %v6805_v41 = vmul.f32 %v11944_v20, %v6769_v42 }
 0x3f7   : > { %v5738_v11 = vadd.f32 %v5649_v4, %v5428_v2  ;;  %v5927_v19 = vsel %vm5889_vm2, %v5925_v29, %v5926_v26  ;;  %v6337_v8 = vsel %vm5611_vm1, %v6335_v47, %v6336_v60  ;;  %v6913_v35 = vmul.f32 %v11954_v6, %v6769_v42 }
 0x3f8   : > { %v7115_v22 = vadd.f32 %v7027_v39, %v6838_v57  ;;  %v6612_v17 = vrot.slane %v6502_v48, 2  ;;  %v7190_v45 = vmul.f32 %v12020_v54, %v7156_v63  ;;  %v5503_v56 = vunpack.c.l.bf16 %v5486_v12 }
 0x3f9   : > { %v6016_v52 = vadd.f32 %v5927_v19, %v5738_v11  ;;  %v7023_v9 = vrot.slane %v6913_v35, 1  ;;  %v12133_v61 = vmul.f32 %v11909_v38, %v11987_v23  ;;  %v12137_v14 = vmul.f32 %v11919_v25, %v11987_v23  ;;  %v8696_v23 = vld [vmem:[#allocation2 + $0x78] sm:$0xff]  }
 0x3fa   : > { %v7392_v26 = vadd.f32 %v7304_v33, %v7115_v22  ;;  %v6614_v60 = vsel %vm5889_vm2, %v6612_v17, %v6613_v34  ;;  %v7300_v43 = vrot.slane %v7190_v45, 2  ;;  %v5541_v58 = vmul.f32 %v11909_v38, %v5503_v56 }
 0x3fb   : > { %v6149_v44 = vadd.f32 %v6117_v5, %v6016_v52  ;;  %v7025_v1 = vsel %vm5611_vm1, %v7023_v9, %v7024_v40  ;;  %v5653_v15 = vrot.slane %v12133_v61, 1  ;;  %v5819_v46 = vmul.f32 %v11919_v25, %v5503_v56 }
 0x3fc   : > { %v7455_v0 = vsel %vm3701_vm0, %v7392_v26, 0.0  ;;  %v7302_v10 = vsel %vm5889_vm2, %v7300_v43, %v7301_v36  ;;  %v5655_v34 = vrot.slane %v5541_v58, 1  ;;  %v5931_v30 = vrot.slane %v12137_v14, 2  ;;  %v6176_v14 = vld [vmem:[#allocation2 + $0x80] sm:$0x1] }
 0x3fd   : > { %7456 = vadd.xlane.f32.xlu1 %v7455_v0  ;;  %v6426_v59 = vadd.f32 %v6337_v8, %v6149_v44  ;;  %v5933_v62 = vrot.slane %v5819_v46, 2  ;;  %v6084_v5 = vunpack.c.h.bf16 %v12143_v32  ;;  %v6192_v13 = vunpack.c.l.bf16 %v6175_v51  ;;  %v6452_v44 = vld [vmem:[#allocation2 + $0x6c] sm:$0xe] }
 0x3fe   : > { %v5656_v40 = vsel %vm5611_vm1, %v5653_v15, %v5655_v34  ;;  %v12155_v2 = vunpack.c.h.bf16 %v8696_v23  ;;  %v6880_v27 = vunpack.c.l.bf16 %v6863_v7  ;;  %v5430_v50 = vmul.f32 %v11903_v3, %v12038_v55  ;;  %v7140_v34 = vld [vmem:[#allocation2 + $0x78] sm:$0xe] }
 0x3ff   : > { %v6703_v36 = vadd.f32 %v6614_v60, %v6426_v59  ;;  %v5741_v39 = vadd.f32 %v5656_v40, %v5431_v53  ;;  %v5934_v33 = vsel %vm5889_vm2, %v5931_v30, %v5933_v62  ;;  %v6120_v31 = vmul.f32 %v11997_v16, %v6084_v5 }
 0x400   : > { %v6229_v24 = vmul.f32 %v11925_v49, %v6084_v5  ;;  %v6230_v28 = vmul.f32 %v11925_v49, %v6192_v13  ;;  %v12166_v21 = vmul.f32 %v11938_v37, %v6084_v5  ;;  %v6507_v18 = vmul.f32 %v11938_v37, %v6192_v13 }
 0x401   : > { %v6837_v42 = vadd.f32 %v6805_v41, %v6703_v36  ;;  %v6019_v29 = vadd.f32 %v5934_v33, %v5741_v39  ;;  %v6808_v47 = vmul.f32 %v11944_v20, %v12155_v2  ;;  %v12173_v63 = vmul.f32 %v11954_v6, %v12155_v2  ;;  %v5764_v41 = vld [vmem:[#allocation2 + $0x60] sm:$0xe] }
 0x402   : > { %v6341_v53 = vrot.slane %v6229_v24, 1  ;;  %v6343_v12 = vrot.slane %v6230_v28, 1  ;;  %v6618_v57 = vrot.slane %v12166_v21, 2  ;;  %v6620_v4 = vrot.slane %v6507_v18, 2  ;;  %v5487_v18 = vld [vmem:[#allocation2 + $0x74] sm:$0x1] }
 0x403   : > { %v7114_v48 = vadd.f32 %v7025_v1, %v6837_v42  ;;  %v6152_v11 = vadd.f32 %v6120_v31, %v6019_v29  ;;  %v6918_v19 = vmul.f32 %v11954_v6, %v6880_v27  ;;  %v7029_v8 = vrot.slane %v12173_v63, 1 }
 0x404   : > { %v6344_v35 = vsel %vm5611_vm1, %v6341_v53, %v6343_v12  ;;  %v6621_v22 = vsel %vm5889_vm2, %v6618_v57, %v6620_v4  ;;  %v7194_v17 = vmul.f32 %v12020_v54, %v12155_v2  ;;  %v7195_v45 = vmul.f32 %v12020_v54, %v6880_v27  ;;  %v12197_v27 = vld [vmem:[#allocation2 + $0x6c] sm:$0xff]  }
 0x405   : > { %v7391_v56 = vadd.f32 %v7302_v10, %v7114_v48  ;;  %v6429_v52 = vadd.f32 %v6344_v35, %v6152_v11  ;;  %v7031_v9 = vrot.slane %v6918_v19, 1  ;;  %v5539_v26 = vmul.f32 %v11909_v38, %v12038_v55 }
 0x406   : > { %v7306_v60 = vrot.slane %v7194_v17, 2  ;;  %v7308_v43 = vrot.slane %v7195_v45, 2  ;;  %v5781_v58 = vunpack.c.l.bf16 %v5764_v41  ;;  %v6083_v51 = vunpack.c.l.bf16 %v12143_v32 }
 0x407   : > { %v7452_v1 = vsel %vm3701_vm0, %v7391_v56, 0.0  ;;  %v6706_v46 = vadd.f32 %v6621_v22, %v6429_v52  ;;  %v7032_v7 = vsel %vm5611_vm1, %v7029_v8, %v7031_v9  ;;  %v5652_v0 = vrot.slane %v5539_v26, 1 }
 0x408   : > { %7453 = vadd.xlane.f32.xlu0 %v7452_v1  ;;  %v7309_v10 = vsel %vm5889_vm2, %v7306_v60, %v7308_v43  ;;  %v5817_v59 = vmul.f32 %v11919_v25, %v5781_v58  ;;  %v6119_v55 = vmul.f32 %v11997_v16, %v6083_v51  ;;  %v6228_v62 = vmul.f32 %v11925_v49, %v6083_v51 }
 0x409   : > { %v6840_v5 = vadd.f32 %v6808_v47, %v6706_v46  ;;  %v5654_v32 = vsel %vm5611_vm1, %v5652_v0, %v5653_v15  ;;  %v6469_v13 = vunpack.c.l.bf16 %v6452_v44  ;;  %v12195_v40 = vunpack.c.l.bf16 %v8696_v23  ;;  %v6864_v0 = vld [vmem:[#allocation2 + $0x8c] sm:$0x1] }
 0x40a   : > { %v5740_v36 = vadd.f32 %v5654_v32, %v5430_v50  ;;  %v5930_v39 = vrot.slane %v5817_v59, 2  ;;  %v6340_v33 = vrot.slane %v6228_v62, 1  ;;  %v7157_v31 = vunpack.c.l.bf16 %v7140_v34 }
 0x40b   : > { %v7117_v24 = vadd.f32 %v7032_v7, %v6840_v5  ;;  %v6505_v28 = vmul.f32 %v11938_v37, %v6469_v13  ;;  %v6807_v21 = vmul.f32 %v11944_v20, %v12195_v40  ;;  %v6916_v61 = vmul.f32 %v11954_v6, %v12195_v40 }
 0x40c   : > { %v5932_v15 = vsel %vm5889_vm2, %v5930_v39, %v5931_v30  ;;  %v6342_v23 = vsel %vm5611_vm1, %v6340_v33, %v6341_v53  ;;  %v7193_v50 = vmul.f32 %v12020_v54, %v7157_v31  ;;  %v5397_v42 = vunpack.c.h.bf16 %v12197_v27 }
 0x40d   : > { %v7394_v29 = vadd.f32 %v7309_v10, %v7117_v24  ;;  %v6018_v47 = vadd.f32 %v5932_v15, %v5740_v36  ;;  %v6617_v63 = vrot.slane %v6505_v28, 2  ;;  %v7028_v12 = vrot.slane %v6916_v61, 1 }
 0x40e   : > { %v7305_v4 = vrot.slane %v7193_v50, 2  ;;  %v5433_v48 = vmul.f32 %v11903_v3, %v5397_v42  ;;  %v5504_v11 = vunpack.c.l.bf16 %v5487_v18  ;;  %v12212_v19 = vmul.f32 %v11909_v38, %v5397_v42 }
 0x40f   : > { %v7461_v30 = vsel %vm3701_vm0, %v7394_v29, 0.0  ;;  %v6151_v41 = vadd.f32 %v6119_v55, %v6018_v47  ;;  %v6619_v53 = vsel %vm5889_vm2, %v6617_v63, %v6618_v57  ;;  %v7030_v35 = vsel %vm5611_vm1, %v7028_v12, %v7029_v8  ;;  %v12226_v57 = vld [vmem:[#allocation2 + $0x84] sm:$0xff]  }
 0x410   : > { %7462 = vadd.xlane.f32.xlu1 %v7461_v30  ;;  %v7307_v22 = vsel %vm5889_vm2, %v7305_v4, %v7306_v60  ;;  %v5544_v17 = vmul.f32 %v11909_v38, %v5504_v11  ;;  %v5658_v45 = vrot.slane %v12212_v19, 1  ;;  %v12221_v56 = vmul.f32 %v11919_v25, %v5397_v42  ;;  %v6453_v30 = vld [vmem:[#allocation2 + $0x78] sm:$0xe] }
 0x411   : > { %v6428_v52 = vadd.f32 %v6342_v23, %v6151_v41  ;;  %v5822_v9 = vmul.f32 %v11919_v25, %v5504_v11  ;;  %v6122_v26 = vmul.f32 %v11997_v16, %v12155_v2  ;;  %v6193_v43 = vunpack.c.l.bf16 %v6176_v14 }
 0x412   : > { %v5660_v8 = vrot.slane %v5544_v17, 1  ;;  %v5936_v58 = vrot.slane %v12221_v56, 2  ;;  %v12231_v60 = vmul.f32 %v11925_v49, %v12155_v2  ;;  %v12235_v51 = vmul.f32 %v11938_v37, %v12155_v2 }
 0x413   : > { %v6705_v44 = vadd.f32 %v6619_v53, %v6428_v52  ;;  %v5938_v1 = vrot.slane %v5822_v9, 2  ;;  %v6233_v46 = vmul.f32 %v11925_v49, %v6193_v43  ;;  %v6510_v7 = vmul.f32 %v11938_v37, %v6193_v43 }
 0x414   : > { %v5661_v34 = vsel %vm5611_vm1, %v5658_v45, %v5660_v8  ;;  %v6346_v10 = vrot.slane %v12231_v60, 1  ;;  %v6623_v59 = vrot.slane %v12235_v51, 2  ;;  %v6774_v55 = vunpack.c.h.bf16 %v12226_v57 }
 0x415   : > { %v6839_v62 = vadd.f32 %v6807_v21, %v6705_v44  ;;  %v5743_v5 = vadd.f32 %v5661_v34, %v5433_v48  ;;  %v5939_v32 = vsel %vm5889_vm2, %v5936_v58, %v5938_v1  ;;  %v6348_v13 = vrot.slane %v6233_v46, 1  ;;  %v5765_v21 = vld [vmem:[#allocation2 + $0x6c] sm:$0xe]  ;;  %v5488_v34 = vld [vmem:[#allocation2 + $0x80] sm:$0x1] }
 0x416   : > { %v6625_v36 = vrot.slane %v6510_v7, 2  ;;  %v6810_v39 = vmul.f32 %v11944_v20, %v6774_v55  ;;  %v6881_v33 = vunpack.c.l.bf16 %v6864_v0  ;;  %v12250_v31 = vmul.f32 %v11954_v6, %v6774_v55 }
 0x417   : > { %v7116_v24 = vadd.f32 %v7030_v35, %v6839_v62  ;;  %v6021_v28 = vadd.f32 %v5939_v32, %v5743_v5  ;;  %v6349_v61 = vsel %vm5611_vm1, %v6346_v10, %v6348_v13  ;;  %v12254_v18 = vmul.f32 %v12020_v54, %v6774_v55 }
 0x418   : > { %v6626_v15 = vsel %vm5889_vm2, %v6623_v59, %v6625_v36  ;;  %v6921_v23 = vmul.f32 %v11954_v6, %v6881_v33  ;;  %v7034_v50 = vrot.slane %v12250_v31, 1  ;;  %v7198_v42 = vmul.f32 %v12020_v54, %v6881_v33 }
 0x419   : > { %v7393_v29 = vadd.f32 %v7307_v22, %v7116_v24  ;;  %v6154_v47 = vadd.f32 %v6122_v26, %v6021_v28  ;;  %v7311_v63 = vrot.slane %v12254_v18, 2  ;;  %v5396_v12 = vunpack.c.l.bf16 %v12197_v27  ;;  %v7141_v22 = vld [vmem:[#allocation2 + $0x84] sm:$0xe] }
 0x41a   : > { %v7036_v4 = vrot.slane %v6921_v23, 1  ;;  %v7313_v48 = vrot.slane %v7198_v42, 2  ;;  %v5782_v11 = vunpack.c.l.bf16 %v5765_v21  ;;  %v6121_v14 = vmul.f32 %v11997_v16, %v12195_v40  ;;  %v6177_v23 = vld [vmem:[#allocation2 + $0x8c] sm:$0x1] }
 0x41b   : > { %v7458_v41 = vsel %vm3701_vm0, %v7393_v29, 0.0  ;;  %v6431_v53 = vadd.f32 %v6349_v61, %v6154_v47  ;;  %v5432_v35 = vmul.f32 %v11903_v3, %v5396_v12  ;;  %v5542_v17 = vmul.f32 %v11909_v38, %v5396_v12 }
 0x41c   : > { %7459 = vadd.xlane.f32.xlu0 %v7458_v41  ;;  %v7037_v52 = vsel %vm5611_vm1, %v7034_v50, %v7036_v4  ;;  %v7314_v27 = vsel %vm5889_vm2, %v7311_v63, %v7313_v48  ;;  %v5820_v9 = vmul.f32 %v11919_v25, %v5782_v11  ;;  %v6231_v26 = vmul.f32 %v11925_v49, %v12195_v40  ;;  %v6865_v4 = vld [vmem:[#allocation2 + $0x98] sm:$0x1] }
 0x41d   : > { %v6708_v43 = vadd.f32 %v6626_v15, %v6431_v53  ;;  %v5657_v8 = vrot.slane %v5542_v17, 1  ;;  %v6470_v60 = vunpack.c.l.bf16 %v6453_v30  ;;  %v6773_v44 = vunpack.c.l.bf16 %v12226_v57  ;;  %v12300_v15 = vld [vmem:[#allocation2 + $0x84] sm:$0xff]  }
 0x41e   : > { %v5935_v1 = vrot.slane %v5820_v9, 2  ;;  %v6345_v46 = vrot.slane %v6231_v26, 1  ;;  %v7158_v7 = vunpack.c.l.bf16 %v7141_v22  ;;  %v5435_v0 = vmul.f32 %v11903_v3, %v12155_v2 }
 0x41f   : > { %v6842_v55 = vadd.f32 %v6810_v39, %v6708_v43  ;;  %v5659_v62 = vsel %vm5611_vm1, %v5657_v8, %v5658_v45  ;;  %v6508_v5 = vmul.f32 %v11938_v37, %v6470_v60  ;;  %v6809_v32 = vmul.f32 %v11944_v20, %v6773_v44 }
 0x420   : > { %v5742_v13 = vadd.f32 %v5659_v62, %v5432_v35  ;;  %v5937_v57 = vsel %vm5889_vm2, %v5935_v1, %v5936_v58  ;;  %v6347_v36 = vsel %vm5611_vm1, %v6345_v46, %v6346_v10  ;;  %v6919_v33 = vmul.f32 %v11954_v6, %v6773_v44 }
 0x421   : > { %v7119_v31 = vadd.f32 %v7037_v52, %v6842_v55  ;;  %v6622_v24 = vrot.slane %v6508_v5, 2  ;;  %v7196_v39 = vmul.f32 %v12020_v54, %v7158_v7  ;;  %v5505_v19 = vunpack.c.l.bf16 %v5488_v34 }
 0x422   : > { %v6020_v28 = vadd.f32 %v5937_v57, %v5742_v13  ;;  %v7033_v45 = vrot.slane %v6919_v33, 1  ;;  %v12290_v61 = vmul.f32 %v11909_v38, %v12155_v2  ;;  %v12294_v56 = vmul.f32 %v11919_v25, %v12155_v2  ;;  %v8697_v2 = vld [vmem:[#allocation2 + $0x90] sm:$0xff]  }
 0x423   : > { %v7396_v58 = vadd.f32 %v7314_v27, %v7119_v31  ;;  %v6624_v10 = vsel %vm5889_vm2, %v6622_v24, %v6623_v59  ;;  %v7310_v18 = vrot.slane %v7196_v39, 2  ;;  %v5547_v21 = vmul.f32 %v11909_v38, %v5505_v19 }
 0x424   : > { %v6153_v42 = vadd.f32 %v6121_v14, %v6020_v28  ;;  %v7035_v29 = vsel %vm5611_vm1, %v7033_v45, %v7034_v50  ;;  %v5663_v47 = vrot.slane %v12290_v61, 1  ;;  %v5825_v12 = vmul.f32 %v11919_v25, %v5505_v19 }
 0x425   : > { %v7467_v48 = vsel %vm3701_vm0, %v7396_v58, 0.0  ;;  %v7312_v51 = vsel %vm5889_vm2, %v7310_v18, %v7311_v63  ;;  %v5665_v59 = vrot.slane %v5547_v21, 1  ;;  %v5941_v11 = vrot.slane %v12294_v56, 2  ;;  %v6178_v56 = vld [vmem:[#allocation2 + $0x98] sm:$0x1] }
 0x426   : > { %7468 = vadd.xlane.f32.xlu1 %v7467_v48  ;;  %v6430_v30 = vadd.f32 %v6347_v36, %v6153_v42  ;;  %v5943_v41 = vrot.slane %v5825_v12, 2  ;;  %v6088_v14 = vunpack.c.h.bf16 %v12300_v15  ;;  %v6194_v53 = vunpack.c.l.bf16 %v6177_v23  ;;  %v6454_v42 = vld [vmem:[#allocation2 + $0x84] sm:$0xe] }
 0x427   : > { %v5666_v50 = vsel %vm5611_vm1, %v5663_v47, %v5665_v59  ;;  %v12312_v35 = vunpack.c.h.bf16 %v8697_v2  ;;  %v6882_v17 = vunpack.c.l.bf16 %v6865_v4  ;;  %v5434_v22 = vmul.f32 %v11903_v3, %v12195_v40  ;;  %v7142_v59 = vld [vmem:[#allocation2 + $0x90] sm:$0xe] }
 0x428   : > { %v6707_v63 = vadd.f32 %v6624_v10, %v6430_v30  ;;  %v5745_v52 = vadd.f32 %v5666_v50, %v5435_v0  ;;  %v5944_v27 = vsel %vm5889_vm2, %v5941_v11, %v5943_v41  ;;  %v6124_v9 = vmul.f32 %v11997_v16, %v6088_v14 }
 0x429   : > { %v6235_v26 = vmul.f32 %v11925_v49, %v6088_v14  ;;  %v6236_v43 = vmul.f32 %v11925_v49, %v6194_v53  ;;  %v12323_v8 = vmul.f32 %v11938_v37, %v6088_v14  ;;  %v6513_v60 = vmul.f32 %v11938_v37, %v6194_v53 }
 0x42a   : > { %v6841_v44 = vadd.f32 %v6809_v32, %v6707_v63  ;;  %v6023_v1 = vadd.f32 %v5944_v27, %v5745_v52  ;;  %v6812_v46 = vmul.f32 %v11944_v20, %v12312_v35  ;;  %v12330_v7 = vmul.f32 %v11954_v6, %v12312_v35  ;;  %v5766_v32 = vld [vmem:[#allocation2 + $0x78] sm:$0xe] }
 0x42b   : > { %v6351_v0 = vrot.slane %v6235_v26, 1  ;;  %v6353_v34 = vrot.slane %v6236_v43, 1  ;;  %v6628_v55 = vrot.slane %v12323_v8, 2  ;;  %v6630_v62 = vrot.slane %v6513_v60, 2  ;;  %v5489_v60 = vld [vmem:[#allocation2 + $0x8c] sm:$0x1] }
 0x42c   : > { %v7118_v5 = vadd.f32 %v7035_v29, %v6841_v44  ;;  %v6156_v13 = vadd.f32 %v6124_v9, %v6023_v1  ;;  %v6924_v57 = vmul.f32 %v11954_v6, %v6882_v17  ;;  %v7039_v36 = vrot.slane %v12330_v7, 1 }
 0x42d   : > { %v6354_v33 = vsel %vm5611_vm1, %v6351_v0, %v6353_v34  ;;  %v6631_v31 = vsel %vm5889_vm2, %v6628_v55, %v6630_v62  ;;  %v7200_v24 = vmul.f32 %v12020_v54, %v12312_v35  ;;  %v7201_v39 = vmul.f32 %v12020_v54, %v6882_v17  ;;  %v12354_v17 = vld [vmem:[#allocation2 + $0x84] sm:$0xff]  }
 0x42e   : > { %v7395_v19 = vadd.f32 %v7312_v51, %v7118_v5  ;;  %v6433_v28 = vadd.f32 %v6354_v33, %v6156_v13  ;;  %v7041_v45 = vrot.slane %v6924_v57, 1  ;;  %v5545_v58 = vmul.f32 %v11909_v38, %v12195_v40 }
 0x42f   : > { %v7316_v10 = vrot.slane %v7200_v24, 2  ;;  %v7318_v18 = vrot.slane %v7201_v39, 2  ;;  %v5783_v21 = vunpack.c.l.bf16 %v5766_v32  ;;  %v6087_v23 = vunpack.c.l.bf16 %v12300_v15 }
 0x430   : > { %v7464_v29 = vsel %vm3701_vm0, %v7395_v19, 0.0  ;;  %v6710_v12 = vadd.f32 %v6631_v31, %v6433_v28  ;;  %v7042_v4 = vsel %vm5611_vm1, %v7039_v36, %v7041_v45  ;;  %v5662_v48 = vrot.slane %v5545_v58, 1 }
 0x431   : > { %7465 = vadd.xlane.f32.xlu0 %v7464_v29  ;;  %v7319_v51 = vsel %vm5889_vm2, %v7316_v10, %v7318_v18  ;;  %v5823_v30 = vmul.f32 %v11919_v25, %v5783_v21  ;;  %v6123_v40 = vmul.f32 %v11997_v16, %v6087_v23  ;;  %v6234_v41 = vmul.f32 %v11925_v49, %v6087_v23  ;;  %v6866_v29 = vld [vmem:[#allocation2 + $0xa4] sm:$0x1] }
 0x432   : > { %v6844_v14 = vadd.f32 %v6812_v46, %v6710_v12  ;;  %v5664_v15 = vsel %vm5611_vm1, %v5662_v48, %v5663_v47  ;;  %v6471_v53 = vunpack.c.l.bf16 %v6454_v42  ;;  %v12352_v50 = vunpack.c.l.bf16 %v8697_v2 }
 0x433   : > { %v5744_v63 = vadd.f32 %v5664_v15, %v5434_v22  ;;  %v5940_v52 = vrot.slane %v5823_v30, 2  ;;  %v6350_v27 = vrot.slane %v6234_v41, 1  ;;  %v7159_v9 = vunpack.c.l.bf16 %v7142_v59 }
 0x434   : > { %v7121_v26 = vadd.f32 %v7042_v4, %v6844_v14  ;;  %v6511_v43 = vmul.f32 %v11938_v37, %v6471_v53  ;;  %v6811_v8 = vmul.f32 %v11944_v20, %v12352_v50  ;;  %v6922_v61 = vmul.f32 %v11954_v6, %v12352_v50 }
 0x435   : > { %v5942_v47 = vsel %vm5889_vm2, %v5940_v52, %v5941_v11  ;;  %v6352_v2 = vsel %vm5611_vm1, %v6350_v27, %v6351_v0  ;;  %v7199_v22 = vmul.f32 %v12020_v54, %v7159_v9  ;;  %v5401_v44 = vunpack.c.h.bf16 %v12354_v17  ;;  %v5767_v9 = vld [vmem:[#allocation2 + $0x84] sm:$0xe] }
 0x436   : > { %v7398_v1 = vadd.f32 %v7319_v51, %v7121_v26  ;;  %v6022_v46 = vadd.f32 %v5942_v47, %v5744_v63  ;;  %v6627_v7 = vrot.slane %v6511_v43, 2  ;;  %v7038_v34 = vrot.slane %v6922_v61, 1 }
 0x437   : > { %v7315_v62 = vrot.slane %v7199_v22, 2  ;;  %v5437_v5 = vmul.f32 %v11903_v3, %v5401_v44  ;;  %v5506_v13 = vunpack.c.l.bf16 %v5489_v60  ;;  %v12369_v57 = vmul.f32 %v11909_v38, %v5401_v44 }
 0x438   : > { %v7473_v11 = vsel %vm3701_vm0, %v7398_v1, 0.0  ;;  %v6155_v32 = vadd.f32 %v6123_v40, %v6022_v46  ;;  %v6629_v0 = vsel %vm5889_vm2, %v6627_v7, %v6628_v55  ;;  %v7040_v33 = vsel %vm5611_vm1, %v7038_v34, %v7039_v36  ;;  %v12383_v55 = vld [vmem:[#allocation2 + $0x9c] sm:$0xff]   ;;  %v6455_v7 = vld [vmem:[#allocation2 + $0x90] sm:$0xe] }
 0x439   : > { %7474 = vadd.xlane.f32.xlu1 %v7473_v11  ;;  %v7317_v31 = vsel %vm5889_vm2, %v7315_v62, %v7316_v10  ;;  %v5550_v24 = vmul.f32 %v11909_v38, %v5506_v13  ;;  %v5668_v39 = vrot.slane %v12369_v57, 1  ;;  %v12378_v3 = vmul.f32 %v11919_v25, %v5401_v44  ;;  %v7143_v11 = vld [vmem:[#allocation2 + $0x9c] sm:$0xe] }
 0x43a   : > { %v6432_v19 = vadd.f32 %v6352_v2, %v6155_v32  ;;  %v5828_v28 = vmul.f32 %v11919_v25, %v5506_v13  ;;  %v6126_v45 = vmul.f32 %v11997_v16, %v12312_v35  ;;  %v6195_v58 = vunpack.c.l.bf16 %v6178_v56 }
 0x43b   : > { %v5670_v36 = vrot.slane %v5550_v24, 1  ;;  %v5946_v18 = vrot.slane %v12378_v3, 2  ;;  %v12388_v38 = vmul.f32 %v11925_v49, %v12312_v35  ;;  %v12392_v10 = vmul.f32 %v11938_v37, %v12312_v35 }
 0x43c   : > { %v6709_v21 = vadd.f32 %v6629_v0, %v6432_v19  ;;  %v5948_v23 = vrot.slane %v5828_v28, 2  ;;  %v6239_v25 = vmul.f32 %v11925_v49, %v6195_v58  ;;  %v6516_v42 = vmul.f32 %v11938_v37, %v6195_v58  ;;  %v12446_v0 = vld [vmem:[%s13030_s5 + $0x2] ss:$0 sm:$0xff] }
 0x43d   : > { %v5671_v12 = vsel %vm5611_vm1, %v5668_v39, %v5670_v36  ;;  %v6356_v4 = vrot.slane %v12388_v38, 1  ;;  %v6633_v48 = vrot.slane %v12392_v10, 2  ;;  %v6778_v59 = vunpack.c.h.bf16 %v12383_v55 }
 0x43e   : > { %v6843_v51 = vadd.f32 %v6811_v8, %v6709_v21  ;;  %v5747_v30 = vadd.f32 %v5671_v12, %v5437_v5  ;;  %v5949_v40 = vsel %vm5889_vm2, %v5946_v18, %v5948_v23  ;;  %v6358_v49 = vrot.slane %v6239_v25, 1  ;;  %v12432_v5 = vld [vmem:[%s13030_s5] ss:$0 sm:$0xff]  ;;  %v5490_v25 = vld [vmem:[#allocation2 + $0x98] sm:$0x1] }
 0x43f   : > { %v6635_v41 = vrot.slane %v6516_v42, 2  ;;  %v6814_v37 = vmul.f32 %v11944_v20, %v6778_v59  ;;  %v6883_v14 = vunpack.c.l.bf16 %v6866_v29  ;;  %v12407_v15 = vmul.f32 %v11954_v6, %v6778_v59  ;;  %v12419_v20 = vld [vmem:[%s13030_s5 + $0x7] ss:$0 sm:$0xff]  ;;  %v12465_v12 = vld [vmem:[%s13030_s5 + $0x5] ss:$0 sm:$0xff] }
 0x440   : > { %v7120_v53 = vadd.f32 %v7040_v33, %v6843_v51  ;;  %v6025_v63 = vadd.f32 %v5949_v40, %v5747_v30  ;;  %v6359_v52 = vsel %vm5611_vm1, %v6356_v4, %v6358_v49  ;;  %v12411_v27 = vmul.f32 %v12020_v54, %v6778_v59 }
 0x441   : > { %v6636_v26 = vsel %vm5889_vm2, %v6633_v48, %v6635_v41  ;;  %v6927_v6 = vmul.f32 %v12419_v20, %v6883_v14  ;;  %v7044_v43 = vrot.slane %v12407_v15, 1  ;;  %v7204_v8 = vmul.f32 %v12020_v54, %v6883_v14 }
 0x442   : > { %v7397_v61 = vadd.f32 %v7317_v31, %v7120_v53  ;;  %v6158_v60 = vadd.f32 %v6126_v45, %v6025_v63  ;;  %v7321_v47 = vrot.slane %v12411_v27, 2  ;;  %v5400_v2 = vunpack.c.l.bf16 %v12354_v17  ;;  %v12438_v17 = vld [vmem:[%s13030_s5 + $0x1] ss:$0 sm:$0xff]  ;;  %v12452_v31 = vld [vmem:[%s13030_s5 + $0x4] ss:$0 sm:$0xff] }
 0x443   : > { %v7046_v22 = vrot.slane %v6927_v6, 1  ;;  %v7323_v44 = vrot.slane %v7204_v8, 2  ;;  %v5784_v1 = vunpack.c.l.bf16 %v5767_v9  ;;  %v6125_v46 = vmul.f32 %v11997_v16, %v12352_v50  ;;  %v6179_v9 = vld [vmem:[#allocation2 + $0xa4] sm:$0x1] }
 0x444   : > { %v7470_v34 = vsel %vm3701_vm0, %v7397_v61, 0.0  ;;  %v6435_v62 = vadd.f32 %v6359_v52, %v6158_v60  ;;  %v5436_v13 = vmul.f32 %v12432_v5, %v5400_v2  ;;  %v5548_v56 = vmul.f32 %v12438_v17, %v5400_v2  ;;  %v6867_v60 = vld [vmem:[#allocation2 + $0xb0] sm:$0x1] }
 0x445   : > { %7471 = vadd.xlane.f32.xlu0 %v7470_v34  ;;  %v7047_v16 = vsel %vm5611_vm1, %v7044_v43, %v7046_v22  ;;  %v7324_v32 = vsel %vm5889_vm2, %v7321_v47, %v7323_v44  ;;  %v5826_v33 = vmul.f32 %v12446_v0, %v5784_v1  ;;  %v6237_v24 = vmul.f32 %v12452_v31, %v12352_v50 }
 0x446   : > { %v6712_v19 = vadd.f32 %v6636_v26, %v6435_v62  ;;  %v5667_v28 = vrot.slane %v5548_v56, 1  ;;  %v6472_v45 = vunpack.c.l.bf16 %v6455_v7  ;;  %v6777_v58 = vunpack.c.l.bf16 %v12383_v55  ;;  %v12471_v55 = vld [vmem:[%s13030_s5 + $0x6] ss:$0 sm:$0xff] }
 0x447   : > { %v5945_v36 = vrot.slane %v5826_v33, 2  ;;  %v6355_v38 = vrot.slane %v6237_v24, 1  ;;  %v7160_v21 = vunpack.c.l.bf16 %v7143_v11  ;;  %v5439_v23 = vmul.f32 %v12432_v5, %v12312_v35 }
 0x448   : > { %v6846_v42 = vadd.f32 %v6814_v37, %v6712_v19  ;;  %v5669_v29 = vsel %vm5611_vm1, %v5667_v28, %v5668_v39  ;;  %v6514_v59 = vmul.f32 %v12465_v12, %v6472_v45  ;;  %v6813_v51 = vmul.f32 %v12471_v55, %v6777_v58 }
 0x449   : > { %v5746_v30 = vadd.f32 %v5669_v29, %v5436_v13  ;;  %v5947_v57 = vsel %vm5889_vm2, %v5945_v36, %v5946_v18  ;;  %v6357_v39 = vsel %vm5611_vm1, %v6355_v38, %v6356_v4  ;;  %v6925_v40 = vmul.f32 %v12419_v20, %v6777_v58 }
 0x44a   : > { %v7123_v49 = vadd.f32 %v7047_v16, %v6846_v42  ;;  %v6632_v41 = vrot.slane %v6514_v59, 2  ;;  %v7202_v37 = vmul.f32 %v12020_v54, %v7160_v21  ;;  %v5507_v14 = vunpack.c.l.bf16 %v5490_v25  ;;  %v12492_v54 = vld [vmem:[#allocation2 + $0x9c] sm:$0xff]  }
 0x44b   : > { %v6024_v15 = vadd.f32 %v5947_v57, %v5746_v30  ;;  %v7043_v53 = vrot.slane %v6925_v40, 1  ;;  %v12482_v63 = vmul.f32 %v12438_v17, %v12312_v35  ;;  %v12486_v3 = vmul.f32 %v12446_v0, %v12312_v35  ;;  %v12497_v35 = vld [vmem:[#allocation2 + $0xa8] sm:$0xff]   ;;  %v12517_v16 = vld [vmem:[%s13030_s5 + $0x3] ss:$0 sm:$0xff] }
 0x44c   : > { %v7400_v18 = vadd.f32 %v7324_v32, %v7123_v49  ;;  %v6634_v4 = vsel %vm5889_vm2, %v6632_v41, %v6633_v48  ;;  %v7320_v52 = vrot.slane %v7202_v37, 2  ;;  %v5553_v27 = vmul.f32 %v12438_v17, %v5507_v14  ;;  %v12540_v49 = vld [vmem:[%s13030_s5 + $0x8] ss:$0 sm:$0xff] }
 0x44d   : > { %v6157_v26 = vadd.f32 %v6125_v46, %v6024_v15  ;;  %v7045_v6 = vsel %vm5611_vm1, %v7043_v53, %v7044_v43  ;;  %v5673_v8 = vrot.slane %v12482_v63, 1  ;;  %v5831_v61 = vmul.f32 %v12446_v0, %v5507_v14 }
 0x44e   : > { %v7479_v10 = vsel %vm3701_vm0, %v7400_v18, 0.0  ;;  %v7322_v48 = vsel %vm5889_vm2, %v7320_v52, %v7321_v47  ;;  %v5675_v2 = vrot.slane %v5553_v27, 1  ;;  %v5951_v22 = vrot.slane %v12486_v3, 2  ;;  %v6180_v3 = vld [vmem:[#allocation2 + $0xb0] sm:$0x1] }
 0x44f   : > { %7480 = vadd.xlane.f32.xlu1 %v7479_v10  ;;  %v6434_v44 = vadd.f32 %v6357_v39, %v6157_v26  ;;  %v5953_v1 = vrot.slane %v5831_v61, 2  ;;  %v6092_v46 = vunpack.c.h.bf16 %v12492_v54  ;;  %v6196_v43 = vunpack.c.l.bf16 %v6179_v9  ;;  %v6456_v26 = vld [vmem:[#allocation2 + $0x9c] sm:$0xe] }
 0x450   : > { %v5676_v7 = vsel %vm5611_vm1, %v5673_v8, %v5675_v2  ;;  %v12507_v34 = vunpack.c.h.bf16 %v12497_v35  ;;  %v6884_v62 = vunpack.c.l.bf16 %v6867_v60  ;;  %v5438_v47 = vmul.f32 %v12432_v5, %v12352_v50  ;;  %v7144_v2 = vld [vmem:[#allocation2 + $0xa8] sm:$0xe] }
 0x451   : > { %v6711_v13 = vadd.f32 %v6634_v4, %v6434_v44  ;;  %v5749_v56 = vadd.f32 %v5676_v7, %v5439_v23  ;;  %v5954_v11 = vsel %vm5889_vm2, %v5951_v22, %v5953_v1  ;;  %v6128_v32 = vmul.f32 %v12517_v16, %v6092_v46 }
 0x452   : > { %v6241_v33 = vmul.f32 %v12452_v31, %v6092_v46  ;;  %v6242_v24 = vmul.f32 %v12452_v31, %v6196_v43  ;;  %v12523_v19 = vmul.f32 %v12465_v12, %v6092_v46  ;;  %v6519_v28 = vmul.f32 %v12465_v12, %v6196_v43 }
 0x453   : > { %v6845_v45 = vadd.f32 %v6813_v51, %v6711_v13  ;;  %v6027_v58 = vadd.f32 %v5954_v11, %v5749_v56  ;;  %v6816_v36 = vmul.f32 %v12471_v55, %v12507_v34  ;;  %v12530_v38 = vmul.f32 %v12419_v20, %v12507_v34  ;;  %v5768_v51 = vld [vmem:[#allocation2 + $0x90] sm:$0xe] }
 0x454   : > { %v6361_v21 = vrot.slane %v6241_v33, 1  ;;  %v6363_v23 = vrot.slane %v6242_v24, 1  ;;  %v6638_v25 = vrot.slane %v12523_v19, 2  ;;  %v6640_v42 = vrot.slane %v6519_v28, 2 }
 0x455   : > { %v7122_v29 = vadd.f32 %v7045_v6, %v6845_v45  ;;  %v6160_v59 = vadd.f32 %v6128_v32, %v6027_v58  ;;  %v6930_v30 = vmul.f32 %v12419_v20, %v6884_v62  ;;  %v7049_v57 = vrot.slane %v12530_v38, 1 }
 0x456   : > { %v6364_v39 = vsel %vm5611_vm1, %v6361_v21, %v6363_v23  ;;  %v6641_v40 = vsel %vm5889_vm2, %v6638_v25, %v6640_v42  ;;  %v7206_v41 = vmul.f32 %v12540_v49, %v12507_v34  ;;  %v7207_v37 = vmul.f32 %v12540_v49, %v6884_v62  ;;  %v12560_v62 = vld [vmem:[#allocation2 + $0x9c] sm:$0xff]  }
 0x457   : > { %v7399_v14 = vadd.f32 %v7322_v48, %v7122_v29  ;;  %v6437_v15 = vadd.f32 %v6364_v39, %v6160_v59  ;;  %v7051_v53 = vrot.slane %v6930_v30, 1  ;;  %v5551_v18 = vmul.f32 %v12438_v17, %v12352_v50 }
 0x458   : > { %v7326_v4 = vrot.slane %v7206_v41, 2  ;;  %v7328_v52 = vrot.slane %v7207_v37, 2  ;;  %v5785_v27 = vunpack.c.l.bf16 %v5768_v51  ;;  %v6091_v9 = vunpack.c.l.bf16 %v12492_v54 }
 0x459   : > { %v7476_v6 = vsel %vm3701_vm0, %v7399_v14, 0.0  ;;  %v6714_v61 = vadd.f32 %v6641_v40, %v6437_v15  ;;  %v7052_v60 = vsel %vm5611_vm1, %v7049_v57, %v7051_v53  ;;  %v5672_v10 = vrot.slane %v5551_v18, 1 }
 0x45a   : > { %7477 = vadd.xlane.f32.xlu0 %v7476_v6  ;;  %v7329_v48 = vsel %vm5889_vm2, %v7326_v4, %v7328_v52  ;;  %v5829_v44 = vmul.f32 %v12446_v0, %v5785_v27  ;;  %v6127_v50 = vmul.f32 %v12517_v16, %v6091_v9  ;;  %v6240_v1 = vmul.f32 %v12452_v31, %v6091_v9 }
 0x45b   : > { %v6848_v46 = vadd.f32 %v6816_v36, %v6714_v61  ;;  %v5674_v54 = vsel %vm5611_vm1, %v5672_v10, %v5673_v8  ;;  %v6473_v43 = vunpack.c.l.bf16 %v6456_v26  ;;  %v12558_v7 = vunpack.c.l.bf16 %v12497_v35  ;;  %v5491_v8 = vld [vmem:[#allocation2 + $0xa4] sm:$0x1]  ;;  %v6868_v10 = vld [vmem:[#allocation2 + $0xbc] sm:$0x1] }
 0x45c   : > { %v5748_v13 = vadd.f32 %v5674_v54, %v5438_v47  ;;  %v5950_v56 = vrot.slane %v5829_v44, 2  ;;  %v6360_v11 = vrot.slane %v6240_v1, 1  ;;  %v7161_v32 = vunpack.c.l.bf16 %v7144_v2 }
 0x45d   : > { %v7125_v33 = vadd.f32 %v7052_v60, %v6848_v46  ;;  %v6517_v24 = vmul.f32 %v12465_v12, %v6473_v43  ;;  %v6815_v19 = vmul.f32 %v12471_v55, %v12558_v7  ;;  %v6928_v63 = vmul.f32 %v12419_v20, %v12558_v7 }
 0x45e   : > { %v5952_v35 = vsel %vm5889_vm2, %v5950_v56, %v5951_v22  ;;  %v6362_v28 = vsel %vm5611_vm1, %v6360_v11, %v6361_v21  ;;  %v7205_v47 = vmul.f32 %v12540_v49, %v7161_v32  ;;  %v5405_v45 = vunpack.c.h.bf16 %v12560_v62 }
 0x45f   : > { %v7402_v58 = vadd.f32 %v7329_v48, %v7125_v33  ;;  %v6026_v36 = vadd.f32 %v5952_v35, %v5748_v13  ;;  %v6637_v38 = vrot.slane %v6517_v24, 2  ;;  %v7048_v23 = vrot.slane %v6928_v63, 1 }
 0x460   : > { %v7325_v42 = vrot.slane %v7205_v47, 2  ;;  %v5441_v29 = vmul.f32 %v12432_v5, %v5405_v45  ;;  %v5508_v59 = vunpack.c.l.bf16 %v5491_v8  ;;  %v12575_v30 = vmul.f32 %v12438_v17, %v5405_v45 }
 0x461   : > { %v7485_v22 = vsel %vm3701_vm0, %v7402_v58, 0.0  ;;  %v6159_v51 = vadd.f32 %v6127_v50, %v6026_v36  ;;  %v6639_v21 = vsel %vm5889_vm2, %v6637_v38, %v6638_v25  ;;  %v7050_v39 = vsel %vm5611_vm1, %v7048_v23, %v7049_v57  ;;  %v12589_v25 = vld [vmem:[#allocation2 + $0xb4] sm:$0xff]  }
 0x462   : > { %7486 = vadd.xlane.f32.xlu1 %v7485_v22  ;;  %v7327_v40 = vsel %vm5889_vm2, %v7325_v42, %v7326_v4  ;;  %v5556_v41 = vmul.f32 %v12438_v17, %v5508_v59  ;;  %v5678_v37 = vrot.slane %v12575_v30, 1  ;;  %v12584_v14 = vmul.f32 %v12446_v0, %v5405_v45  ;;  %v6457_v22 = vld [vmem:[#allocation2 + $0xa8] sm:$0xe] }
 0x463   : > { %v6436_v15 = vadd.f32 %v6362_v28, %v6159_v51  ;;  %v5834_v53 = vmul.f32 %v12446_v0, %v5508_v59  ;;  %v6130_v18 = vmul.f32 %v12517_v16, %v12507_v34  ;;  %v6197_v52 = vunpack.c.l.bf16 %v6180_v3 }
 0x464   : > { %v5680_v57 = vrot.slane %v5556_v41, 1  ;;  %v5956_v27 = vrot.slane %v12584_v14, 2  ;;  %v12594_v4 = vmul.f32 %v12452_v31, %v12507_v34  ;;  %v12598_v9 = vmul.f32 %v12465_v12, %v12507_v34 }
 0x465   : > { %v6713_v26 = vadd.f32 %v6639_v21, %v6436_v15  ;;  %v5958_v6 = vrot.slane %v5834_v53, 2  ;;  %v6245_v61 = vmul.f32 %v12452_v31, %v6197_v52  ;;  %v6522_v60 = vmul.f32 %v12465_v12, %v6197_v52 }
 0x466   : > { %v5681_v2 = vsel %vm5611_vm1, %v5678_v37, %v5680_v57  ;;  %v6366_v48 = vrot.slane %v12594_v4, 1  ;;  %v6643_v44 = vrot.slane %v12598_v9, 2  ;;  %v6782_v50 = vunpack.c.h.bf16 %v12589_v25 }
 0x467   : > { %v6847_v1 = vadd.f32 %v6815_v19, %v6713_v26  ;;  %v5751_v46 = vadd.f32 %v5681_v2, %v5441_v29  ;;  %v5959_v54 = vsel %vm5889_vm2, %v5956_v27, %v5958_v6  ;;  %v6368_v43 = vrot.slane %v6245_v61, 1  ;;  %v5769_v19 = vld [vmem:[#allocation2 + $0x9c] sm:$0xe]  ;;  %v5492_v2 = vld [vmem:[#allocation2 + $0xb0] sm:$0x1] }
 0x468   : > { %v6645_v13 = vrot.slane %v6522_v60, 2  ;;  %v6818_v56 = vmul.f32 %v12471_v55, %v6782_v50  ;;  %v6885_v11 = vunpack.c.l.bf16 %v6868_v10  ;;  %v12613_v32 = vmul.f32 %v12419_v20, %v6782_v50 }
 0x469   : > { %v7124_v33 = vadd.f32 %v7050_v39, %v6847_v1  ;;  %v6029_v24 = vadd.f32 %v5959_v54, %v5751_v46  ;;  %v6369_v63 = vsel %vm5611_vm1, %v6366_v48, %v6368_v43  ;;  %v12617_v8 = vmul.f32 %v12540_v49, %v6782_v50 }
 0x46a   : > { %v6646_v35 = vsel %vm5889_vm2, %v6643_v44, %v6645_v13  ;;  %v6933_v28 = vmul.f32 %v12419_v20, %v6885_v11  ;;  %v7054_v47 = vrot.slane %v12613_v32, 1  ;;  %v7210_v45 = vmul.f32 %v12540_v49, %v6885_v11 }
 0x46b   : > { %v7401_v58 = vadd.f32 %v7327_v40, %v7124_v33  ;;  %v6162_v36 = vadd.f32 %v6130_v18, %v6029_v24  ;;  %v7331_v38 = vrot.slane %v12617_v8, 2  ;;  %v5404_v23 = vunpack.c.l.bf16 %v12560_v62  ;;  %v7145_v40 = vld [vmem:[#allocation2 + $0xb4] sm:$0xe] }
 0x46c   : > { %v7056_v42 = vrot.slane %v6933_v28, 1  ;;  %v7333_v29 = vrot.slane %v7210_v45, 2  ;;  %v5786_v59 = vunpack.c.l.bf16 %v5769_v19  ;;  %v6129_v3 = vmul.f32 %v12517_v16, %v12558_v7  ;;  %v6181_v28 = vld [vmem:[#allocation2 + $0xbc] sm:$0x1] }
 0x46d   : > { %v7482_v51 = vsel %vm3701_vm0, %v7401_v58, 0.0  ;;  %v6439_v21 = vadd.f32 %v6369_v63, %v6162_v36  ;;  %v5440_v39 = vmul.f32 %v12432_v5, %v5404_v23  ;;  %v5554_v41 = vmul.f32 %v12438_v17, %v5404_v23 }
 0x46e   : > { %7483 = vadd.xlane.f32.xlu0 %v7482_v51  ;;  %v7057_v15 = vsel %vm5611_vm1, %v7054_v47, %v7056_v42  ;;  %v7334_v62 = vsel %vm5889_vm2, %v7331_v38, %v7333_v29  ;;  %v5832_v53 = vmul.f32 %v12446_v0, %v5786_v59  ;;  %v6243_v18 = vmul.f32 %v12452_v31, %v12558_v7  ;;  %v6869_v42 = vld [vmem:[#allocation2 + $0xc8] sm:$0x1] }
 0x46f   : > { %v6716_v52 = vadd.f32 %v6646_v35, %v6439_v21  ;;  %v5677_v57 = vrot.slane %v5554_v41, 1  ;;  %v6474_v4 = vunpack.c.l.bf16 %v6457_v22  ;;  %v6781_v26 = vunpack.c.l.bf16 %v12589_v25  ;;  %v12663_v35 = vld [vmem:[#allocation2 + $0xb4] sm:$0xff]  }
 0x470   : > { %v5955_v6 = vrot.slane %v5832_v53, 2  ;;  %v6365_v61 = vrot.slane %v6243_v18, 1  ;;  %v7162_v60 = vunpack.c.l.bf16 %v7145_v40  ;;  %v5443_v10 = vmul.f32 %v12432_v5, %v12507_v34 }
 0x471   : > { %v6850_v50 = vadd.f32 %v6818_v56, %v6716_v52  ;;  %v5679_v1 = vsel %vm5611_vm1, %v5677_v57, %v5678_v37  ;;  %v6520_v46 = vmul.f32 %v12465_v12, %v6474_v4  ;;  %v6817_v54 = vmul.f32 %v12471_v55, %v6781_v26 }
 0x472   : > { %v5750_v43 = vadd.f32 %v5679_v1, %v5440_v39  ;;  %v5957_v25 = vsel %vm5889_vm2, %v5955_v6, %v5956_v27  ;;  %v6367_v13 = vsel %vm5611_vm1, %v6365_v61, %v6366_v48  ;;  %v6931_v11 = vmul.f32 %v12419_v20, %v6781_v26 }
 0x473   : > { %v7127_v32 = vadd.f32 %v7057_v15, %v6850_v50  ;;  %v6642_v33 = vrot.slane %v6520_v46, 2  ;;  %v7208_v56 = vmul.f32 %v12540_v49, %v7162_v60  ;;  %v5509_v30 = vunpack.c.l.bf16 %v5492_v2 }
 0x474   : > { %v6028_v24 = vadd.f32 %v5957_v25, %v5750_v43  ;;  %v7053_v37 = vrot.slane %v6931_v11, 1  ;;  %v12653_v63 = vmul.f32 %v12438_v17, %v12507_v34  ;;  %v12657_v14 = vmul.f32 %v12446_v0, %v12507_v34  ;;  %v8699_v34 = vld [vmem:[#allocation2 + $0xc0] sm:$0xff]  }
 0x475   : > { %v7404_v27 = vadd.f32 %v7334_v62, %v7127_v32  ;;  %v6644_v48 = vsel %vm5889_vm2, %v6642_v33, %v6643_v44  ;;  %v7330_v8 = vrot.slane %v7208_v56, 2  ;;  %v5559_v19 = vmul.f32 %v12438_v17, %v5509_v30 }
 0x476   : > { %v6161_v45 = vadd.f32 %v6129_v3, %v6028_v24  ;;  %v7055_v58 = vsel %vm5611_vm1, %v7053_v37, %v7054_v47  ;;  %v5683_v36 = vrot.slane %v12653_v63, 1  ;;  %v5837_v23 = vmul.f32 %v12446_v0, %v5509_v30 }
 0x477   : > { %v7491_v29 = vsel %vm3701_vm0, %v7404_v27, 0.0  ;;  %v7332_v9 = vsel %vm5889_vm2, %v7330_v8, %v7331_v38  ;;  %v5685_v44 = vrot.slane %v5559_v19, 1  ;;  %v5961_v59 = vrot.slane %v12657_v14, 2  ;;  %v6182_v14 = vld [vmem:[#allocation2 + $0xc8] sm:$0x1] }
 0x478   : > { %7492 = vadd.xlane.f32.xlu1 %v7491_v29  ;;  %v6438_v22 = vadd.f32 %v6367_v13, %v6161_v45  ;;  %v5963_v51 = vrot.slane %v5837_v23, 2  ;;  %v6096_v3 = vunpack.c.h.bf16 %v12663_v35  ;;  %v6198_v21 = vunpack.c.l.bf16 %v6181_v28  ;;  %v5770_v13 = vld [vmem:[#allocation2 + $0xa8] sm:$0xe]  ;;  %v6458_v28 = vld [vmem:[#allocation2 + $0xb4] sm:$0xe] }
 0x479   : > { %v5686_v47 = vsel %vm5611_vm1, %v5683_v36, %v5685_v44  ;;  %v12673_v39 = vunpack.c.h.bf16 %v8699_v34  ;;  %v6886_v41 = vunpack.c.l.bf16 %v6869_v42  ;;  %v5442_v40 = vmul.f32 %v12432_v5, %v12558_v7  ;;  %v7146_v42 = vld [vmem:[#allocation2 + $0xc0] sm:$0xe] }
 0x47a   : > { %v6715_v15 = vadd.f32 %v6644_v48, %v6438_v22  ;;  %v5753_v62 = vadd.f32 %v5686_v47, %v5443_v10  ;;  %v5964_v38 = vsel %vm5889_vm2, %v5961_v59, %v5963_v51  ;;  %v6132_v53 = vmul.f32 %v12517_v16, %v6096_v3 }
 0x47b   : > { %v12682_v18 = vmul.f32 %v12452_v31, %v6096_v3  ;;  %v6248_v52 = vmul.f32 %v12452_v31, %v6198_v21  ;;  %v12686_v57 = vmul.f32 %v12465_v12, %v6096_v3  ;;  %v6525_v4 = vmul.f32 %v12465_v12, %v6198_v21  ;;  %v12715_v21 = vld [vmem:[#allocation2 + $0xb4] sm:$0xff]  }
 0x47c   : > { %v6849_v26 = vadd.f32 %v6817_v54, %v6715_v15  ;;  %v6031_v6 = vadd.f32 %v5964_v38, %v5753_v62  ;;  %v6820_v61 = vmul.f32 %v12471_v55, %v12673_v39  ;;  %v12693_v60 = vmul.f32 %v12419_v20, %v12673_v39 }
 0x47d   : > { %v6371_v10 = vrot.slane %v12682_v18, 1  ;;  %v6373_v2 = vrot.slane %v6248_v52, 1  ;;  %v6648_v50 = vrot.slane %v12686_v57, 2  ;;  %v6650_v1 = vrot.slane %v6525_v4, 2  ;;  %v5493_v57 = vld [vmem:[#allocation2 + $0xbc] sm:$0x1] }
 0x47e   : > { %v7126_v46 = vadd.f32 %v7055_v58, %v6849_v26  ;;  %v6164_v43 = vadd.f32 %v6132_v53, %v6031_v6  ;;  %v6936_v25 = vmul.f32 %v12419_v20, %v6886_v41  ;;  %v7059_v54 = vrot.slane %v12693_v60, 1 }
 0x47f   : > { %v6374_v11 = vsel %vm5611_vm1, %v6371_v10, %v6373_v2  ;;  %v6651_v32 = vsel %vm5889_vm2, %v6648_v50, %v6650_v1  ;;  %v7212_v33 = vmul.f32 %v12540_v49, %v12673_v39  ;;  %v7213_v56 = vmul.f32 %v12540_v49, %v6886_v41 }
 0x480   : > { %v7403_v30 = vadd.f32 %v7332_v9, %v7126_v46  ;;  %v6441_v24 = vadd.f32 %v6374_v11, %v6164_v43  ;;  %v7061_v37 = vrot.slane %v6936_v25, 1  ;;  %v5557_v63 = vmul.f32 %v12438_v17, %v12558_v7 }
 0x481   : > { %v7336_v27 = vrot.slane %v7212_v33, 2  ;;  %v7338_v48 = vrot.slane %v7213_v56, 2  ;;  %v5787_v8 = vunpack.c.l.bf16 %v5770_v13  ;;  %v6095_v19 = vunpack.c.l.bf16 %v12663_v35 }
 0x482   : > { %v7488_v45 = vsel %vm3701_vm0, %v7403_v30, 0.0  ;;  %v6718_v58 = vadd.f32 %v6651_v32, %v6441_v24  ;;  %v5682_v23 = vrot.slane %v5557_v63, 1  ;;  %v7062_v29 = vsel %vm5611_vm1, %v7059_v54, %v7061_v37 }
 0x483   : > { %7489 = vadd.xlane.f32.xlu0 %v7488_v45  ;;  %v7339_v9 = vsel %vm5889_vm2, %v7336_v27, %v7338_v48  ;;  %v5835_v44 = vmul.f32 %v12446_v0, %v5787_v8  ;;  %v6246_v7 = vmul.f32 %v12452_v31, %v6095_v19  ;;  %v6475_v3 = vunpack.c.l.bf16 %v6458_v28  ;;  %v12743_v48 = vld [vmem:[#allocation2 + $0xcc] sm:$0xff]  }
 0x484   : > { %v6852_v22 = vadd.f32 %v6820_v61, %v6718_v58  ;;  %v5684_v51 = vsel %vm5611_vm1, %v5682_v23, %v5683_v36  ;;  %v12713_v35 = vunpack.c.l.bf16 %v8699_v34  ;;  %v7163_v62 = vunpack.c.l.bf16 %v7146_v42  ;;  %v6870_v23 = vld [vmem:[#allocation2 + $0xd4] sm:$0x1] }
 0x485   : > { %v5752_v47 = vadd.f32 %v5684_v51, %v5442_v40  ;;  %v5960_v41 = vrot.slane %v5835_v44, 2  ;;  %v6370_v15 = vrot.slane %v6246_v7, 1  ;;  %v6131_v53 = vmul.f32 %v12517_v16, %v6095_v19 }
 0x486   : > { %v7129_v38 = vadd.f32 %v7062_v29, %v6852_v22  ;;  %v6523_v18 = vmul.f32 %v12465_v12, %v6475_v3  ;;  %v6934_v52 = vmul.f32 %v12419_v20, %v12713_v35  ;;  %v6819_v34 = vmul.f32 %v12471_v55, %v12713_v35 }
 0x487   : > { %v5962_v36 = vsel %vm5889_vm2, %v5960_v41, %v5961_v59  ;;  %v7211_v40 = vmul.f32 %v12540_v49, %v7163_v62  ;;  %v5409_v4 = vunpack.c.h.bf16 %v12715_v21  ;;  %v6372_v2 = vsel %vm5611_vm1, %v6370_v15, %v6371_v10 }
 0x488   : > { %v7406_v26 = vadd.f32 %v7339_v9, %v7129_v38  ;;  %v6030_v6 = vadd.f32 %v5962_v36, %v5752_v47  ;;  %v6647_v61 = vrot.slane %v6523_v18, 2  ;;  %v7058_v60 = vrot.slane %v6934_v52, 1 }
 0x489   : > { %v7335_v1 = vrot.slane %v7211_v40, 2  ;;  %v5510_v46 = vunpack.c.l.bf16 %v5493_v57  ;;  %v12730_v43 = vmul.f32 %v12438_v17, %v5409_v4  ;;  %v5445_v11 = vmul.f32 %v12432_v5, %v5409_v4 }
 0x48a   : > { %v7497_v59 = vsel %vm3701_vm0, %v7406_v26, 0.0  ;;  %v6163_v25 = vadd.f32 %v6131_v53, %v6030_v6  ;;  %v6649_v13 = vsel %vm5889_vm2, %v6647_v61, %v6648_v50  ;;  %v7060_v32 = vsel %vm5611_vm1, %v7058_v60, %v7059_v54 }
 0x48b   : > { %7498 = vadd.xlane.f32.xlu1 %v7497_v59  ;;  %v5562_v33 = vmul.f32 %v12438_v17, %v5510_v46  ;;  %v5688_v10 = vrot.slane %v12730_v43, 1  ;;  %v12739_v56 = vmul.f32 %v12446_v0, %v5409_v4  ;;  %v7337_v24 = vsel %vm5889_vm2, %v7335_v1, %v7336_v27  ;;  %v6459_v1 = vld [vmem:[#allocation2 + $0xc0] sm:$0xe] }
 0x48c   : > { %v6440_v30 = vadd.f32 %v6372_v2, %v6163_v25  ;;  %v5840_v37 = vmul.f32 %v12446_v0, %v5510_v46  ;;  %v6199_v63 = vunpack.c.l.bf16 %v6182_v14  ;;  %v12748_v54 = vmul.f32 %v12452_v31, %v12673_v39 }
 0x48d   : > { %v5690_v50 = vrot.slane %v5562_v33, 1  ;;  %v5966_v8 = vrot.slane %v12739_v56, 2  ;;  %v12752_v19 = vmul.f32 %v12465_v12, %v12673_v39  ;;  %v6134_v29 = vmul.f32 %v12517_v16, %v12673_v39  ;;  %v5771_v39 = vld [vmem:[#allocation2 + $0xb4] sm:$0xe]  ;;  %v7147_v33 = vld [vmem:[#allocation2 + $0xcc] sm:$0xe] }
 0x48e   : > { %v6717_v28 = vadd.f32 %v6649_v13, %v6440_v30  ;;  %v5968_v45 = vrot.slane %v5840_v37, 2  ;;  %v6251_v27 = vmul.f32 %v12452_v31, %v6199_v63  ;;  %v6528_v58 = vmul.f32 %v12465_v12, %v6199_v63 }
 0x48f   : > { %v5691_v42 = vsel %vm5611_vm1, %v5688_v10, %v5690_v50  ;;  %v6376_v9 = vrot.slane %v12748_v54, 1  ;;  %v6786_v44 = vunpack.c.h.bf16 %v12743_v48  ;;  %v6653_v47 = vrot.slane %v12752_v19, 2 }
 0x490   : > { %v6851_v7 = vadd.f32 %v6819_v34, %v6717_v28  ;;  %v5755_v22 = vadd.f32 %v5691_v42, %v5445_v11  ;;  %v5969_v51 = vsel %vm5889_vm2, %v5966_v8, %v5968_v45  ;;  %v6378_v3 = vrot.slane %v6251_v27, 1 }
 0x491   : > { %v6655_v41 = vrot.slane %v6528_v58, 2  ;;  %v6887_v15 = vunpack.c.l.bf16 %v6870_v23  ;;  %v6938_v62 = vmul.f32 %v12419_v20, %v6786_v44  ;;  %v7215_v18 = vmul.f32 %v12540_v49, %v6786_v44 }
 0x492   : > { %v7128_v38 = vadd.f32 %v7060_v32, %v6851_v7  ;;  %v6033_v53 = vadd.f32 %v5969_v51, %v5755_v22  ;;  %v6379_v52 = vsel %vm5611_vm1, %v6376_v9, %v6378_v3  ;;  %v6822_v4 = vmul.f32 %v12471_v55, %v6786_v44 }
 0x493   : > { %v6939_v57 = vmul.f32 %v12419_v20, %v6887_v15  ;;  %v7216_v36 = vmul.f32 %v12540_v49, %v6887_v15  ;;  %v5408_v26 = vunpack.c.l.bf16 %v12715_v21  ;;  %v6656_v6 = vsel %vm5889_vm2, %v6653_v47, %v6655_v41 }
 0x494   : > { %v7405_v34 = vadd.f32 %v7337_v24, %v7128_v38  ;;  %v6166_v40 = vadd.f32 %v6134_v29, %v6033_v53  ;;  %v7064_v61 = vrot.slane %v6938_v62, 1  ;;  %v5788_v2 = vunpack.c.l.bf16 %v5771_v39  ;;  %v7506_v53 = vld [vmem:[%s9560_s20] sm:$0xff] }
 0x495   : > { %v7066_v60 = vrot.slane %v6939_v57, 1  ;;  %v7341_v59 = vrot.slane %v7215_v18, 2  ;;  %v5560_v25 = vmul.f32 %v12438_v17, %v5408_v26  ;;  %v7343_v13 = vrot.slane %v7216_v36, 2 }
 0x496   : > { %v7494_v46 = vsel %vm3701_vm0, %v7405_v34, 0.0  ;;  %v6443_v14 = vadd.f32 %v6379_v52, %v6166_v40  ;;  %v5444_v11 = vmul.f32 %v12432_v5, %v5408_v26  ;;  %v5838_v32 = vmul.f32 %v12446_v0, %v5788_v2 }
 0x497   : > { %7495 = vadd.xlane.f32.xlu0 %v7494_v46  ;;  %v6249_v21 = vmul.f32 %v12452_v31, %v12713_v35  ;;  %v5687_v30 = vrot.slane %v5560_v25, 1  ;;  %v6476_v24 = vunpack.c.l.bf16 %v6459_v1  ;;  %v6785_v37 = vunpack.c.l.bf16 %v12743_v48  ;;  %v12810_v46 = vpop.xlane.xlu1 %7417 }
 0x498   : > { %v6720_v56 = vadd.f32 %v6656_v6, %v6443_v14  ;;  %v7067_v63 = vsel %vm5611_vm1, %v7064_v61, %v7066_v60  ;;  %v5965_v50 = vrot.slane %v5838_v32, 2  ;;  %v7164_v19 = vunpack.c.l.bf16 %v7147_v33  ;;  %v7507_v14 = vld [vmem:[%s9560_s20 + $0x8] sm:$0xff]  ;;  %s8581_s20 = sshll.u32 %s9517_s25, 8 }
 0x499   : > { %v6375_v54 = vrot.slane %v6249_v21, 1  ;;  %v5689_v5 = vsel %vm5611_vm1, %v5687_v30, %v5688_v10  ;;  %v6526_v0 = vmul.f32 %v12465_v12, %v6476_v24  ;;  %v7344_v31 = vsel %vm5889_vm2, %v7341_v59, %v7343_v13  ;;  %s12974_s16 = scalar_lea.hbm %s13031_s6, %s8581_s20 }
 0x49a   : > { %v6854_v17 = vadd.f32 %v6822_v4, %v6720_v56  ;;  %v5754_v28 = vadd.f32 %v5689_v5, %v5444_v11  ;;  %v5967_v45 = vsel %vm5889_vm2, %v5965_v50, %v5966_v8  ;;  %v6133_v48 = vmul.f32 %v12517_v16, %v12713_v35  ;;  %v7412_v11 = vpop.xlane.xlu0 %7411 }
 0x49b   : > { %v6652_v58 = vrot.slane %v6526_v0, 2  ;;  %v6937_v23 = vmul.f32 %v12419_v20, %v6785_v37  ;;  %v6377_v43 = vsel %vm5611_vm1, %v6375_v54, %v6376_v9  ;;  %v7214_v10 = vmul.f32 %v12540_v49, %v7164_v19  ;;  %v12813_v25 = vpop.xlane.xlu1 %7420 }
 0x49c   : > { %v7131_v27 = vadd.f32 %v7067_v63, %v6854_v17  ;;  %v6032_v42 = vadd.f32 %v5967_v45, %v5754_v28  ;;  %v6821_v16 = vmul.f32 %v12471_v55, %v6785_v37  ;;  %v7510_v51 = vlaneseq }
 0x49d   : > { %v6654_v7 = vsel %vm5889_vm2, %v6652_v58, %v6653_v47  ;;  %v7063_v8 = vrot.slane %v6937_v23, 1  ;;  %v7340_v35 = vrot.slane %v7214_v10, 2  ;;  %vm7889_vm3 = vcmask 130112  }
 0x49e   : > { %v7408_v29 = vadd.f32 %v7344_v31, %v7131_v27  ;;  %v6165_v12 = vadd.f32 %v6133_v48, %v6032_v42  ;;  %v12798_v49 = vshrl.u32 %v7510_v51, 7  ;;  %v7415_v56 = vpop.xlane.xlu0 %7414  ;;  %vm8032_vm7 = vcmask 1044484  }
 0x49f   : > { %v7065_v3 = vsel %vm5611_vm1, %v7063_v8, %v7064_v61  ;;  %v7342_v9 = vsel %vm5889_vm2, %v7340_v35, %v7341_v59  ;;  %v12815_v21 = vpop.xlane.xlu1 %7426  ;;  %vm8034_vm8 = vcmask 1045509   ;;  %vm8036_vm9 = vcmask 1046534  }
 0x4a0   : > { %v7503_v44 = vsel %vm3701_vm0, %v7408_v29, 0.0  ;;  %v6442_v22 = vadd.f32 %v6377_v43, %v6165_v12  ;;  %v7512_v47 = vsub.s32 0, %v12798_v49  ;;  %v7523_v18 = vsub.s32 1, %v12798_v49 }
 0x4a1   : > { %7504 = vadd.xlane.f32.xlu1 %v7503_v44  ;;  %v7534_v52 = vsub.s32 2, %v12798_v49  ;;  %v7545_v36 = vsub.s32 3, %v12798_v49  ;;  %v7556_v40 = vsub.s32 4, %v12798_v49  ;;  %v7567_v26 = vsub.s32 5, %v12798_v49 }
 0x4a2   : > { %v6719_v20 = vadd.f32 %v6654_v7, %v6442_v22  ;;  %v7513_v55 = vrot.slane %v7506_v53, %v7512_v47  ;;  %v7524_v39 = vrot.slane %v7506_v53, %v7523_v18  ;;  %v7578_v61 = vsub.s32 6, %v12798_v49  ;;  %v7424_v37 = vpop.xlane.xlu0 %7423 }
 0x4a3   : > { %v7535_v57 = vrot.slane %v7506_v53, %v7534_v52  ;;  %v7546_v34 = vrot.slane %v7506_v53, %v7545_v36  ;;  %v7557_v4 = vrot.slane %v7506_v53, %v7556_v40  ;;  %v7568_v6 = vrot.slane %v7506_v53, %v7567_v26  ;;  %v12817_v30 = vpop.xlane.xlu1 %7432 }
 0x4a4   : > { %v6853_v41 = vadd.f32 %v6821_v16, %v6719_v20  ;;  %v7579_v60 = vrot.slane %v7506_v53, %v7578_v61  ;;  %v7589_v2 = vsub.s32 7, %v12798_v49  ;;  %v7601_v59 = vrot.slane %v7507_v14, %v7512_v47 }
 0x4a5   : > { %v7612_v13 = vrot.slane %v7507_v14, %v7523_v18  ;;  %v7623_v32 = vrot.slane %v7507_v14, %v7534_v52  ;;  %v7634_v33 = vrot.slane %v7507_v14, %v7545_v36  ;;  %v7645_v24 = vrot.slane %v7507_v14, %v7556_v40 }
 0x4a6   : > { %v7130_v15 = vadd.f32 %v7065_v3, %v6853_v41  ;;  %v7590_v1 = vrot.slane %v7506_v53, %v7589_v2  ;;  %v7656_v63 = vrot.slane %v7507_v14, %v7567_v26  ;;  %v7667_v54 = vrot.slane %v7507_v14, %v7578_v61  ;;  %v7430_v17 = vpop.xlane.xlu0 %7429 }
 0x4a7   : > { %v12819_v50 = vpop.xlane.xlu1 %7438  ;;  %v7678_v0 = vrot.slane %v7507_v14, %v7589_v2 }
 0x4a8   : > { %v7407_v62 = vadd.f32 %v7342_v9, %v7130_v15 }
 0x4aa   : > { %v7500_v38 = vsel %vm3701_vm0, %v7407_v62, 0.0  ;;  %v7436_v19 = vpop.xlane.xlu0 %7435 }
 0x4ab   : > { %7501 = vadd.xlane.f32.xlu0 %v7500_v38  ;;  %v12821_v5 = vpop.xlane.xlu1 %7444 }
 0x4ae   : > { %v7442_v28 = vpop.xlane.xlu0 %7441 }
 0x4af   : > { %v12823_v31 = vpop.xlane.xlu1 %7450 }
 0x4b2   : > { %7519 = vbcast.lane.b32.xlu1 %v7513_v55, 264  ;;  %v7448_v48 = vpop.xlane.xlu0 %7447 }
 0x4b3   : > { %v12825_v45 = vpop.xlane.xlu1 %7456 }
 0x4b6   : > { %7526 = vbcast.lane.b32.xlu1 %v7524_v39, 256  ;;  %v12827_v58 = vpop.xlane.xlu0 %7453 }
 0x4b7   : > { %v7463_v27 = vpop.xlane.xlu1 %7462 }
 0x4ba   : > { %7530 = vbcast.lane.b32.xlu1 %v7524_v39, 264  ;;  %v7460_v42 = vpop.xlane.xlu0 %7459 }
 0x4bb   : > { %v12829_v23 = vpop.xlane.xlu1 %7468 }
 0x4be   : > { %7541 = vbcast.lane.b32.xlu1 %v7535_v57, 264  ;;  %v12833_v43 = vpop.xlane.xlu0 %7465 }
 0x4c1   : > { %7515 = vbcast.lane.b32.xlu0 %v7513_v55, 256 }
 0x4c2   : > { %7552 = vbcast.lane.b32.xlu1 %v7546_v34, 264  ;;  %v12831_v29 = vpop.xlane.xlu1 %7474 }
 0x4c5   : > { %7537 = vbcast.lane.b32.xlu0 %v7535_v57, 256 }
 0x4c6   : > { %7563 = vbcast.lane.b32.xlu1 %v7557_v4, 264 }
 0x4c9   : > { %7548 = vbcast.lane.b32.xlu0 %v7546_v34, 256 }
 0x4ca   : > { %7574 = vbcast.lane.b32.xlu1 %v7568_v6, 264 }
 0x4cd   : > { %7559 = vbcast.lane.b32.xlu0 %v7557_v4, 256 }
 0x4ce   : > { %7585 = vbcast.lane.b32.xlu1 %v7579_v60, 264  ;;  %v12837_v12 = vpop.xlane.xlu0 %7471 }
 0x4d1   : > { %7570 = vbcast.lane.b32.xlu0 %v7568_v6, 256 }
 0x4d2   : > { %7596 = vbcast.lane.b32.xlu1 %v7590_v1, 264 }
 0x4d5   : > { %7581 = vbcast.lane.b32.xlu0 %v7579_v60, 256 }
 0x4d6   : > { %7607 = vbcast.lane.b32.xlu1 %v7601_v59, 264 }
 0x4d8   : > { %v12835_v10 = vpop.xlane.xlu1 %7480 }
 0x4d9   : > { %7592 = vbcast.lane.b32.xlu0 %v7590_v1, 256 }
 0x4da   : > { %7618 = vbcast.lane.b32.xlu1 %v7612_v13, 264 }
 0x4dd   : > { %7603 = vbcast.lane.b32.xlu0 %v7601_v59, 256 }
 0x4de   : > { %7629 = vbcast.lane.b32.xlu1 %v7623_v32, 264 }
 0x4e1   : > { %7614 = vbcast.lane.b32.xlu0 %v7612_v13, 256 }
 0x4e2   : > { %7640 = vbcast.lane.b32.xlu1 %v7634_v33, 264 }
 0x4e3   : > { %v12841_v7 = vpop.xlane.xlu0 %7477 }
 0x4e5   : > { %7625 = vbcast.lane.b32.xlu0 %v7623_v32, 256 }
 0x4e6   : > { %7651 = vbcast.lane.b32.xlu1 %v7645_v24, 264 }
 0x4e9   : > { %7636 = vbcast.lane.b32.xlu0 %v7634_v33, 256 }
 0x4ea   : > { %7662 = vbcast.lane.b32.xlu1 %v7656_v63, 264 }
 0x4eb   : > { %v12839_v44 = vpop.xlane.xlu1 %7486 }
 0x4ed   : > { %7647 = vbcast.lane.b32.xlu0 %v7645_v24, 256 }
 0x4ee   : > { %7673 = vbcast.lane.b32.xlu1 %v7667_v54, 264 }
 0x4f1   : > { %7658 = vbcast.lane.b32.xlu0 %v7656_v63, 256 }
 0x4f2   : > { %7684 = vbcast.lane.b32.xlu1 %v7678_v0, 264 }
 0x4f5   : > { %7669 = vbcast.lane.b32.xlu0 %v7667_v54, 256 }
 0x4f7   : > { %v12845_v22 = vpop.xlane.xlu0 %7483 }
 0x4f9   : > { %7680 = vbcast.lane.b32.xlu0 %v7678_v0, 256 }
 0x501   : > { %v12843_v8 = vpop.xlane.xlu1 %7492 }
 0x50c   : > { %v12849_v35 = vpop.xlane.xlu0 %7489 }
 0x514   : > { %v12847_v16 = vpop.xlane.xlu1 %7498 }
 0x520   : > { %v12853_v41 = vpop.xlane.xlu0 %7495 }
 0x52a   : > { %v12851_v20 = vpop.xlane.xlu1 %7504 }
 0x52e   : > { %v7520_v3 = vpop.permute.xlu1 %7519 }
 0x52f   : > { %v7719_v9 = vadd.f32 %v7520_v3, %v7415_v56 }
 0x531   : > { %7786 = vperm.xlu1 %9367, %v7719_v9  }
 0x532   : > { %v7527_v15 = vpop.permute.xlu1 %7526 }
 0x533   : > { %v7720_v62 = vadd.f32 %v7527_v15, %v12810_v46 }
 0x534   : > { %v12856_v47 = vpop.xlane.xlu0 %7501 }
 0x535   : > { %7789 = vperm.xlu1 %9367, %v7720_v62  }
 0x536   : > { %v7531_v38 = vpop.permute.xlu1 %7530 }
 0x537   : > { %v7721_v39 = vadd.f32 %v7531_v38, %v12813_v25 }
 0x538   : > { %v7516_v53 = vpop.permute.xlu0 %7515 }
 0x539   : > { %v7718_v55 = vadd.f32 %v7516_v53, %v7412_v11 }
 0x53a   : > { %v7542_v18 = vpop.permute.xlu1 %7541 }
 0x53b   : > { %7783 = vperm.xlu0 %9366, %v7718_v55   ;;  %v7723_v34 = vadd.f32 %v7542_v18, %v12815_v21 }
 0x53c   : > { %v7538_v52 = vpop.permute.xlu0 %7537 }
 0x53d   : > { %v7722_v57 = vadd.f32 %v7538_v52, %v7424_v37 }
 0x53e   : > { %v7553_v36 = vpop.permute.xlu1 %7552 }
 0x53f   : > { %7792 = vperm.xlu0 %9366, %v7721_v39   ;;  %7795 = vperm.xlu1 %9367, %v7722_v57   ;;  %v7725_v6 = vadd.f32 %v7553_v36, %v12817_v30 }
 0x540   : > { %v7549_v40 = vpop.permute.xlu0 %7548 }
 0x541   : > { %v7724_v4 = vadd.f32 %v7549_v40, %v7430_v17 }
 0x542   : > { %v7564_v26 = vpop.permute.xlu1 %7563 }
 0x543   : > { %7798 = vperm.xlu0 %9366, %v7723_v34   ;;  %7801 = vperm.xlu1 %9367, %v7724_v4   ;;  %v7727_v1 = vadd.f32 %v7564_v26, %v12819_v50 }
 0x544   : > { %v7560_v61 = vpop.permute.xlu0 %7559 }
 0x545   : > { %v7726_v60 = vadd.f32 %v7560_v61, %v7436_v19 }
 0x546   : > { %v7575_v2 = vpop.permute.xlu1 %7574 }
 0x547   : > { %7804 = vperm.xlu0 %9366, %v7725_v6   ;;  %7807 = vperm.xlu1 %9367, %v7726_v60   ;;  %v7729_v25 = vadd.f32 %v7575_v2, %v12821_v5 }
 0x548   : > { %v7571_v46 = vpop.permute.xlu0 %7570 }
 0x549   : > { %v7728_v14 = vadd.f32 %v7571_v46, %v7442_v28 }
 0x54a   : > { %v7586_v59 = vpop.permute.xlu1 %7585 }
 0x54b   : > { %7810 = vperm.xlu0 %9366, %v7727_v1   ;;  %7813 = vperm.xlu1 %9367, %v7728_v14   ;;  %v7731_v21 = vadd.f32 %v7586_v59, %v12823_v31  ;;  %v7879_v1 = vand.u32 127, %v7510_v51 }
 0x54c   : > { %v7582_v13 = vpop.permute.xlu0 %7581 }
 0x54d   : > { %v7730_v11 = vadd.f32 %v7582_v13, %v7448_v48  ;;  %v7884_v59 = vadd.s32 4294967288, %v7879_v1 }
 0x54e   : > { %v7597_v32 = vpop.permute.xlu1 %7596 }
 0x54f   : > { %7816 = vperm.xlu0 %9366, %v7729_v25   ;;  %7819 = vperm.xlu1 %9367, %v7730_v11   ;;  %v12892_v11 = vsub.s32 %v7884_v59, %v12798_v49 }
 0x550   : > { %v7593_v33 = vpop.permute.xlu0 %7592 }
 0x552   : > { %v7608_v56 = vpop.permute.xlu1 %7607 }
 0x553   : > { %7822 = vperm.xlu0 %9366, %v7731_v21   ;;  %v7735_v30 = vadd.f32 %v7608_v56, %v7463_v27 }
 0x554   : > { %v7604_v24 = vpop.permute.xlu0 %7603 }
 0x555   : > { %v7734_v37 = vadd.f32 %v7604_v24, %v7460_v42 }
 0x556   : > { %v7619_v63 = vpop.permute.xlu1 %7618 }
 0x557   : > { %7831 = vperm.xlu1 %9367, %v7734_v37   ;;  %7834 = vperm.xlu0 %9366, %v7735_v30   ;;  %v7737_v50 = vadd.f32 %v7619_v63, %v12829_v23 }
 0x558   : > { %v7615_v54 = vpop.permute.xlu0 %7614 }
 0x559   : > { %v7736_v17 = vadd.f32 %v7615_v54, %v12833_v43 }
 0x55a   : > { %v7630_v5 = vpop.permute.xlu1 %7629 }
 0x55b   : > { %7837 = vperm.xlu1 %9367, %v7736_v17   ;;  %7840 = vperm.xlu0 %9366, %v7737_v50   ;;  %v7739_v0 = vadd.f32 %v7630_v5, %v12831_v29 }
 0x55c   : > { %v7626_v19 = vpop.permute.xlu0 %7625 }
 0x55d   : > { %v7738_v31 = vadd.f32 %v7626_v19, %v12837_v12 }
 0x55e   : > { %v7641_v28 = vpop.permute.xlu1 %7640 }
 0x55f   : > { %7843 = vperm.xlu1 %9367, %v7738_v31   ;;  %7846 = vperm.xlu0 %9366, %v7739_v0   ;;  %v7741_v48 = vadd.f32 %v7641_v28, %v12835_v10 }
 0x560   : > { %v7637_v27 = vpop.permute.xlu0 %7636 }
 0x561   : > { %v7740_v42 = vadd.f32 %v7637_v27, %v12841_v7 }
 0x562   : > { %v7652_v23 = vpop.permute.xlu1 %7651 }
 0x563   : > { %7849 = vperm.xlu1 %9367, %v7740_v42   ;;  %7852 = vperm.xlu0 %9366, %v7741_v48   ;;  %v7743_v43 = vadd.f32 %v7652_v23, %v12839_v44  ;;  %v7732_v44 = vadd.f32 %v7593_v33, %v12827_v58 }
 0x564   : > { %v7648_v3 = vpop.permute.xlu0 %7647 }
 0x565   : > { %v7742_v9 = vadd.f32 %v7648_v3, %v12845_v22  ;;  %v7733_v22 = vadd.f32 %v7597_v32, %v12825_v45  ;;  %v12895_v32 = vsub.s32 %v7879_v1, %v12798_v49 }
 0x566   : > { %v7663_v29 = vpop.permute.xlu1 %7662 }
 0x567   : > { %7855 = vperm.xlu1 %9367, %v7742_v9   ;;  %7858 = vperm.xlu0 %9366, %v7743_v43   ;;  %v7745_v12 = vadd.f32 %v7663_v29, %v12843_v8 }
 0x568   : > { %v7659_v15 = vpop.permute.xlu0 %7658 }
 0x569   : > { %v7744_v62 = vadd.f32 %v7659_v15, %v12849_v35 }
 0x56a   : > { %v7674_v10 = vpop.permute.xlu1 %7673 }
 0x56b   : > { %7861 = vperm.xlu1 %9367, %v7744_v62   ;;  %7864 = vperm.xlu0 %9366, %v7745_v12   ;;  %v7747_v7 = vadd.f32 %v7674_v10, %v12847_v16 }
 0x56c   : > { %v7670_v38 = vpop.permute.xlu0 %7669 }
 0x56d   : > { %v7746_v53 = vadd.f32 %v7670_v38, %v12853_v41 }
 0x56e   : > { %v7685_v18 = vpop.permute.xlu1 %7684 }
 0x56f   : > { %7867 = vperm.xlu1 %9367, %v7746_v53   ;;  %7870 = vperm.xlu0 %9366, %v7747_v7   ;;  %v7749_v35 = vadd.f32 %v7685_v18, %v12851_v20 }
 0x570   : > { %v7681_v55 = vpop.permute.xlu0 %7680 }
 0x571   : > { %v7748_v8 = vadd.f32 %v7681_v55, %v12856_v47 }
 0x573   : > { %7825 = vperm.xlu1 %9367, %v7732_v44   ;;  %7828 = vperm.xlu0 %9366, %v7733_v22  }
 0x577   : > { %7873 = vperm.xlu1 %9367, %v7748_v8   ;;  %7876 = vperm.xlu0 %9366, %v7749_v35  }
 0x5ac   : > { %v7787_v16 = vpop.permute.xlu1 %7786 }
 0x5ad   : > { %v7888_v30 = vrot.slane %v7787_v16, %v12892_v11 }
 0x5b0   : > { %v7790_v39 = vpop.permute.xlu1 %7789 }
 0x5b1   : > { %v7894_v37 = vrot.slane %v7790_v39, %v12895_v32 }
 0x5b6   : > { %v7784_v52 = vpop.permute.xlu0 %7783 }
 0x5b7   : > { %v7883_v24 = vrot.slane %v7784_v52, %v12895_v32 }
 0x5b9   : > { %v7890_v28 = vsel %vm7889_vm3, %v7888_v30, %v7883_v24 }
 0x5ba   : > { %v7796_v41 = vpop.permute.xlu1 %7795  ;;  %v7793_v57 = vpop.permute.xlu0 %7792 }
 0x5bb   : > { %v7898_v21 = vrot.slane %v7793_v57, %v12892_v11  ;;  %v7903_v49 = vrot.slane %v7796_v41, %v12895_v32 }
 0x5bd   : > { %v7899_v54 = vsel %vm7889_vm3, %v7898_v21, %v7894_v37 }
 0x5be   : > { %v7802_v36 = vpop.permute.xlu1 %7801  ;;  %v7799_v34 = vpop.permute.xlu0 %7798  ;;  %v8027_v27 = vsel %vm8026_vm4, %v7899_v54, %v7890_v28 }
 0x5bf   : > { %v7907_v33 = vrot.slane %v7799_v34, %v12892_v11  ;;  %v7912_v17 = vrot.slane %v7802_v36, %v12895_v32 }
 0x5c1   : > { %v7908_v5 = vsel %vm7889_vm3, %v7907_v33, %v7903_v49 }
 0x5c2   : > { %v7808_v58 = vpop.permute.xlu1 %7807  ;;  %v7805_v40 = vpop.permute.xlu0 %7804  ;;  %v8029_v43 = vsel %vm8028_vm5, %v7908_v5, %v8027_v27 }
 0x5c3   : > { %v7916_v63 = vrot.slane %v7805_v40, %v12892_v11  ;;  %v7921_v0 = vrot.slane %v7808_v58, %v12895_v32 }
 0x5c5   : > { %v7917_v48 = vsel %vm7889_vm3, %v7916_v63, %v7912_v17 }
 0x5c6   : > { %v7814_v45 = vpop.permute.xlu1 %7813  ;;  %v7811_v4 = vpop.permute.xlu0 %7810  ;;  %v8031_v29 = vsel %vm8030_vm6, %v7917_v48, %v8029_v43 }
 0x5c7   : > { %v7925_v50 = vrot.slane %v7811_v4, %v12892_v11  ;;  %v7930_v12 = vrot.slane %v7814_v45, %v12895_v32 }
 0x5c9   : > { %v7926_v42 = vsel %vm7889_vm3, %v7925_v50, %v7921_v0 }
 0x5ca   : > { %v7817_v26 = vpop.permute.xlu0 %7816  ;;  %v12880_v6 = vpop.permute.xlu1 %7819  ;;  %v8033_v38 = vsel %vm8032_vm7, %v7926_v42, %v8031_v29 }
 0x5cb   : > { %v7934_v23 = vrot.slane %v7817_v26, %v12892_v11  ;;  %v7939_v53 = vrot.slane %v12880_v6, %v12895_v32 }
 0x5cd   : > { %v7935_v55 = vsel %vm7889_vm3, %v7934_v23, %v7930_v12 }
 0x5ce   : > { %v7823_v61 = vpop.permute.xlu0 %7822 }
 0x5cf   : > { %v7943_v3 = vrot.slane %v7823_v61, %v12892_v11 }
 0x5d1   : > { %v7944_v16 = vsel %vm7889_vm3, %v7943_v3, %v7939_v53 }
 0x5d2   : > { %v12882_v47 = vpop.permute.xlu1 %7831  ;;  %v12884_v20 = vpop.permute.xlu0 %7834 }
 0x5d3   : > { %v7961_v15 = vrot.slane %v12884_v20, %v12892_v11  ;;  %v7957_v18 = vrot.slane %v12882_v47, %v12895_v32  ;;  %v8035_v47 = vsel %vm8034_vm8, %v7935_v55, %v8033_v38 }
 0x5d4   : > { %v8037_v1 = vsel %vm8036_vm9, %v7944_v16, %v8035_v47 }
 0x5d5   : > { %v7962_v57 = vsel %vm7889_vm3, %v7961_v15, %v7957_v18 }
 0x5d6   : > { %v7838_v60 = vpop.permute.xlu1 %7837  ;;  %v7841_v2 = vpop.permute.xlu0 %7840 }
 0x5d7   : > { %v7970_v9 = vrot.slane %v7841_v2, %v12892_v11  ;;  %v7966_v44 = vrot.slane %v7838_v60, %v12895_v32 }
 0x5d9   : > { %v7971_v52 = vsel %vm7889_vm3, %v7970_v9, %v7966_v44 }
 0x5da   : > { %v7844_v46 = vpop.permute.xlu1 %7843  ;;  %v7847_v14 = vpop.permute.xlu0 %7846  ;;  %v8040_v20 = vsel %vm8026_vm4, %v7971_v52, %v7962_v57 }
 0x5db   : > { %v7979_v62 = vrot.slane %v7847_v14, %v12892_v11  ;;  %v7975_v8 = vrot.slane %v7844_v46, %v12895_v32 }
 0x5dd   : > { %v7980_v34 = vsel %vm7889_vm3, %v7979_v62, %v7975_v8 }
 0x5de   : > { %v12887_v25 = vpop.permute.xlu1 %7849  ;;  %v12889_v13 = vpop.permute.xlu0 %7852  ;;  %v8041_v46 = vsel %vm8028_vm5, %v7980_v34, %v8040_v20 }
 0x5df   : > { %v7988_v22 = vrot.slane %v12889_v13, %v12892_v11  ;;  %v7984_v39 = vrot.slane %v12887_v25, %v12895_v32 }
 0x5e1   : > { %v7989_v26 = vsel %vm7889_vm3, %v7988_v22, %v7984_v39 }
 0x5e2   : > { %v12899_v56 = vpop.permute.xlu1 %7855  ;;  %v12901_v51 = vpop.permute.xlu0 %7858  ;;  %v8042_v25 = vsel %vm8030_vm6, %v7989_v26, %v8041_v46 }
 0x5e3   : > { %v7997_v35 = vrot.slane %v12901_v51, %v12892_v11  ;;  %v7993_v36 = vrot.slane %v12899_v56, %v12895_v32 }
 0x5e5   : > { %v7998_v2 = vsel %vm7889_vm3, %v7997_v35, %v7993_v36 }
 0x5e6   : > { %v7862_v19 = vpop.permute.xlu1 %7861  ;;  %v7865_v31 = vpop.permute.xlu0 %7864  ;;  %v8043_v51 = vsel %vm8032_vm7, %v7998_v2, %v8042_v25 }
 0x5e7   : > { %v8006_v41 = vrot.slane %v7865_v31, %v12892_v11  ;;  %v8002_v4 = vrot.slane %v7862_v19, %v12895_v32 }
 0x5e9   : > { %v8007_v14 = vsel %vm7889_vm3, %v8006_v41, %v8002_v4 }
 0x5ea   : > { %v7868_v10 = vpop.permute.xlu1 %7867  ;;  %v7871_v7 = vpop.permute.xlu0 %7870  ;;  %v8044_v37 = vsel %vm8034_vm8, %v8007_v14, %v8043_v51 }
 0x5eb   : > { %v8015_v40 = vrot.slane %v7871_v7, %v12892_v11  ;;  %v8011_v60 = vrot.slane %v7868_v10, %v12895_v32 }
 0x5ed   : > { %v8016_v21 = vsel %vm7889_vm3, %v8015_v40, %v8011_v60 }
 0x5ee   : > { %v7826_v58 = vpop.permute.xlu1 %7825  ;;  %v7829_v45 = vpop.permute.xlu0 %7828  ;;  %v8045_v63 = vsel %vm8036_vm9, %v8016_v21, %v8044_v37 }
 0x5ef   : > { %v7948_v6 = vrot.slane %v7826_v58, %v12895_v32  ;;  %v7952_v61 = vrot.slane %v7829_v45, %v12892_v11 }
 0x5f1   : > { %v7953_v59 = vsel %vm7889_vm3, %v7952_v61, %v7948_v6 }
 0x5f2   : > { %v7874_v13 = vpop.permute.xlu1 %7873  ;;  %v8039_v33 = vsel %vm8038_vm10, %v7953_v59, %v8037_v1  ;;  %v7877_v56 = vpop.permute.xlu0 %7876 }
 0x5f3   : > { %v8020_v30 = vrot.slane %v7874_v13, %v12895_v32  ;;  %8050 = vst.msk [vmem:[%s9870_s10] sm:$0xff] %vm8049_vm11, %v8039_v33  ;;  %v8024_v24 = vrot.slane %v7877_v56, %v12892_v11 }
 0x5f5   : > { %v8025_v32 = vsel %vm7889_vm3, %v8024_v24, %v8020_v30 }
 0x5f6   : > { %v8046_v49 = vsel %vm8038_vm10, %v8025_v32, %v8045_v63 }
 0x5f7   : > { %8051 = vst.msk [vmem:[%s9870_s10 + $0x8] sm:$0xff] %vm8049_vm11, %v8046_v49 }
 0x5f8   : > { %9399 = shalt.err (!%p9396_p4)
}
 0x5f9   : > { %s9400_s9 = scalar_lea.hbm %s12974_s16, 256  ;;  %s9404_s12 = scalar_lea.hbm %s13031_s6, 512 }
 0x5fa   : > { %p9401_p7 = scmp.ne.s32.totalorder %s12974_s16, %s9400_s9  ;;  %p9405_p10 = scmp.lt.s32.totalorder %s12974_s16, %s13031_s6 }
 0x5fb   : > { %p9406_p11 = scmp.lt.s32.totalorder %s9404_s12, %s9400_s9 }
 0x5fc   : > { %p9402_p8 = pnand %p9401_p7, %p9534_p5 }
 0x5fd   : > { %p9407_p12 = por %p9406_p11, %p9405_p10 }
 0x5fe   : > { %p9403_p9 = pneg %p9402_p8 }
 0x600   : > { %p9408_p13 = pnand %p9407_p12, %p9403_p9 }
 0x602   : > { %9411 = shalt.err (!%p9408_p13)
}
 0x603   : > { %s9459_s20 = smov 128   ;;  %s9460_s25 = smov 8  }
 0x604   : > { %9090 = dma.vmem_to_hbm [thread:$0]  (%p9534_p5), %s12976_s14, 256, %s12974_s16, %s12985_s17, %s9459_s20, %s9459_s20, %s9460_s25  }
 0x605 PF: > { %p9096_p0 = scmp.ge.s32.totalorder %s9450_s24, 2  ;;  %s8081_s15 = sand.u32 1, %s9438_s21  }
 0x606   : > { %s8082_s18 = scalar_lea.sflag [#allocation4], %s8081_s15 }
 0x607   : > { %p9093_p1 = pnand %p9096_p0, %p9538_p6 }
 0x609   : > { %p9094_p2 = pneg %p9093_p1 }
 0x60b   : > { %9433 = dma.done.wait (%p9094_p2), %s8082_s18, 256  }
 0x60c   : > { %9435 = vsyncadd (%p9094_p2), %s8082_s18, 4294967040  ;;  %p16_p3 = scmp.ge.s32.totalorder %s9521_s27, 4   ;;  %s13083_s21 = smov %s9442_s22 }
 0x60d   : > { %s13084_s22 = smov %s9446_s23  ;;  %s13085_s23 = smov %s9532_s30 }
 0x60e   : > { %s13086_s24 = smov %s9521_s27  ;;  %18 = sbr.rel (!%p16_p3) target bundleno = 3 (0x3), region = 105 }
 0x613   :  { %8087 = vsyncpa [#allocation4], 1 }
 0x614   :  { %8089 = vsyncpa [#allocation4 + $0x1], 1 }

</bundles_post_ra>
